<compile_context>
chip_gen: v7x
topology: tpu7x:2x2x1
jax: 0.10.0
libtpu: 0.0.40
codegen_flags: <defaults>
</compile_context>

<pallas_src>
import functools

import jax
import jax.numpy as jnp
from jax.experimental import pallas as pl
from jax.experimental.pallas import tpu as pltpu


def _round_up(x, m):
    return ((x + m - 1) // m) * m


# ---------------------------------------------------------------------------
# Fused kernel: conv1 (VPU) + LeakyReLU + conv2 (one MXU dot) + LeakyReLU
# ---------------------------------------------------------------------------
def _fused_seq_kernel(x_ref, w1_ref, b1_ref, w2_ref, b2_ref, o_ref, rhs2_ref, *,
                      n_img, kh, kw, width, c1p, r1, m2, negative_slope):
    # x_ref   : (n_img, XR)       f32  flattened images (row stride = width), zero padded
    # w1_ref  : (c1p, kh*kw)      f32  conv1 weight, channel rows / tap cols
    # b1_ref  : (c1p, 1)          f32
    # w2_ref  : (c2p, kh*kw*c1p)  bf16 conv2 weight, K = tap-major, channel-minor
    # b2_ref  : (c2p, 1)          f32
    # o_ref   : (n_img*c2p, m2)   f32  per-image (c2p, m2) blocks stacked on sublanes
    # rhs2_ref: (kh*kw*c1p, n_img*m2) bf16 scratch = conv2 im2col RHS
    shifts = [dh * width + dw for dh in range(kh) for dw in range(kw)]
    w1 = w1_ref[...]
    b1 = b1_ref[...]
    x_all = x_ref[...]
    c2p = o_ref.shape[0] // n_img

    for n in range(n_img):                          # tiny static batch, fully unrolled
        xn = x_all[n:n + 1, :]                      # (1, XR)
        # ---- conv1 + bias: 25 shifted outer products, f32 on the VPU -------
        acc = jnp.broadcast_to(b1, (c1p, r1))
        for t, s in enumerate(shifts):
            acc = acc + w1[:, t:t + 1] * xn[:, s:s + r1]
        # LeakyReLU (valid for 0 <= slope <= 1); single bf16 cast for the MXU.
        a1 = jnp.maximum(acc, negative_slope * acc).astype(jnp.bfloat16)   # (c1p, r1)
        # ---- conv2 im2col: aligned shifted-slice copies into the big-K RHS --
        # Sublane offsets t*c1p (mult of 16) and lane offsets n*m2 (mult of 128)
        # keep every store unmasked / lane-dense.
        for t, s in enumerate(shifts):
            rhs2_ref[t * c1p:(t + 1) * c1p, n * m2:(n + 1) * m2] = a1[:, s:s + m2]

    # ---- conv2: one MXU dot over the whole batch (K = kh*kw*c1p) ------------
    out = jnp.dot(w2_ref[...], rhs2_ref[...], preferred_element_type=jnp.float32)
    out = out + b2_ref[...]
    out = jnp.maximum(out, negative_slope * out)     # LeakyReLU
    for n in range(n_img):
        o_ref[n * c2p:(n + 1) * c2p, :] = out[:, n * m2:(n + 1) * m2]


# ---------------------------------------------------------------------------
# Builder: pads/casts weights ONCE, returns a jitted forward(x) -> NCHW output
# ---------------------------------------------------------------------------
def make_sequential_forward(params, negative_slope=0.01):
    """params: [(w1, b1), (w2, b2)] with weights in HWIO layout."""
    (w1, b1), (w2, b2) = params
    KH, KW, cin, C1 = w1.shape
    C2 = w2.shape[-1]
    # TODO(synk): generalize the in-kernel conv1 to cin > 1 (spec example has cin=1).
    assert cin == 1, "fused kernel assumes Conv2d(1, C1, K) as in the Sequential docstring"
    assert 0.0 <= negative_slope <= 1.0, "max(x, a*x) == LeakyReLU only for a in [0, 1]"

    C1P = _round_up(C1, 16)          # bf16 sublane tile
    C2P = _round_up(C2, 8)
    K2 = KH * KW * C1P               # conv2 contraction depth (tap-major, channel-minor)

    # ---- one-time weight prep (hoisted out of the per-call jitted path) ----
    w1_f = jnp.asarray(w1, jnp.float32).reshape(KH * KW, C1)
    w1t = jnp.zeros((C1P, KH * KW), jnp.float32).at[:C1, :].set(w1_f.T)
    b1c = jnp.zeros((C1P, 1), jnp.float32).at[:C1, 0].set(jnp.asarray(b1, jnp.float32))
    w2_f = jnp.zeros((KH * KW, C1P, C2), jnp.float32).at[:, :C1, :].set(
        jnp.asarray(w2, jnp.float32).reshape(KH * KW, C1, C2))
    w2t = jnp.zeros((C2P, K2), jnp.float32).at[:C2, :].set(
        jnp.transpose(w2_f, (2, 0, 1)).reshape(C2, K2)).astype(jnp.bfloat16)
    b2c = jnp.zeros((C2P, 1), jnp.float32).at[:C2, 0].set(jnp.asarray(b2, jnp.float32))

    def forward(x_nchw):
        N, cin_, H, W = x_nchw.shape
        assert cin_ == cin
        Ho1, Wo1 = H - KH + 1, W - KW + 1
        Ho2, Wo2 = Ho1 - KH + 1, Wo1 - KW + 1
        M2 = Ho2 * W                        # conv2 rows kept per image (row stride = W)
        smax = (KH - 1) * W + (KW - 1)      # largest im2col shift
        R1 = _round_up(smax + M2, 8)        # conv1 rows kept resident per image
        XR = _round_up(max(H * W, smax + R1), 8)
        # Geometry guards: every shifted slice stays in-bounds and valid conv2
        # outputs (oh2<Ho2, ow2<Wo2) only ever read exactly-computed conv1 rows.
        assert Wo1 <= W and smax + M2 <= R1 and smax + R1 <= XR

        x_flat = x_nchw.reshape(N, H * W).astype(jnp.float32)
        x_flat = jnp.pad(x_flat, ((0, 0), (0, XR - H * W)))

        kernel = functools.partial(
            _fused_seq_kernel, n_img=N, kh=KH, kw=KW, width=W,
            c1p=C1P, r1=R1, m2=M2, negative_slope=negative_slope)

        flops = 2 * C2P * K2 * N * M2 + 2 * N * KH * KW * C1P * R1
        bytes_accessed = (x_flat.size * 4 + w1t.size * 4 + b1c.size * 4 +
                          w2t.size * 2 + b2c.size * 4 + N * C2P * M2 * 4)

        out = pl.pallas_call(
            kernel,
            out_shape=jax.ShapeDtypeStruct((N * C2P, M2), jnp.float32),
            grid=(1,),                                   # batch folded into one step
            in_specs=[
                pl.BlockSpec((N, XR), lambda i: (0, 0)),
                pl.BlockSpec((C1P, KH * KW), lambda i: (0, 0)),
                pl.BlockSpec((C1P, 1), lambda i: (0, 0)),
                pl.BlockSpec((C2P, K2), lambda i: (0, 0)),
                pl.BlockSpec((C2P, 1), lambda i: (0, 0)),
            ],
            out_specs=pl.BlockSpec((N * C2P, M2), lambda i: (0, 0)),
            scratch_shapes=[pltpu.VMEM((K2, N * M2), jnp.bfloat16)],
            compiler_params=pltpu.CompilerParams(
                dimension_semantics=("arbitrary",)),
            cost_estimate=pl.CostEstimate(
                flops=flops, transcendentals=0, bytes_accessed=bytes_accessed),
        )(x_flat, w1t, b1c, w2t, b2c)

        # (N*C2P, M2) -> NCHW, stripping channel / spatial alignment padding.
        out = out.reshape(N, C2P, M2)[:, :C2, :]
        out = out.reshape(N, C2, Ho2, W)[:, :, :, :Wo2]
        return out

    return jax.jit(forward)


# ---------------------------------------------------------------------------
# Pure-JAX reference (f32) for correctness checking
# ---------------------------------------------------------------------------
def reference_forward(x_nchw, params, negative_slope=0.01):
    x = x_nchw
    for w, b in params:
        w_oihw = jnp.transpose(w, (3, 2, 0, 1))            # HWIO -> OIHW
        x = jax.lax.conv_general_dilated(
            x, w_oihw, window_strides=(1, 1), padding="VALID",
            dimension_numbers=("NCHW", "OIHW", "NCHW"))
        x = x + b[None, :, None, None]
        x = jnp.where(x >= 0.0, x, negative_slope * x)
    return x


if __name__ == "__main__":
    key = jax.random.PRNGKey(0)
    k_x, k_w1, k_b1, k_w2, k_b2 = jax.random.split(key, 5)

    # Params (shapes from Conv2d(1,20,5), Conv2d(20,64,5); HWIO layout)
    w1 = jax.random.normal(k_w1, (5, 5, 1, 20), jnp.float32) * 0.1
    b1 = jax.random.normal(k_b1, (20,), jnp.float32) * 0.1
    w2 = jax.random.normal(k_w2, (5, 5, 20, 64), jnp.float32) * 0.05
    b2 = jax.random.normal(k_b2, (64,), jnp.float32) * 0.1
    params = [(w1, b1), (w2, b2)]

    # Input (NCHW, as PyTorch): [2,1,16,16] -> [2,20,12,12] -> [2,64,8,8]
    x = jax.random.normal(k_x, (2, 1, 16, 16), jnp.float32)

    fwd = make_sequential_forward(params)          # weight prep happens once here
    out = jax.block_until_ready(fwd(x))
    ref = jax.block_until_ready(reference_forward(x, params))

    assert out.shape == (2, 64, 8, 8), out.shape
    # conv1 is exact f32; only conv2 operands are bf16 (f32 accumulation).
    max_err = float(jnp.max(jnp.abs(out - ref)))
    assert jnp.allclose(out, ref, atol=5e-2, rtol=5e-2), max_err

    print("KERNEL_OK")
</pallas_src>

<mosaic_0001>
module attributes {stable_mosaic.version = 11 : i64} {
  func.func @_fused_seq_kernel(%arg0: i32, %arg1: memref<2x272xf32, #tpu.memory_space<vmem>>, %arg2: memref<32x25xf32, #tpu.memory_space<vmem>>, %arg3: memref<32x1xf32, #tpu.memory_space<vmem>>, %arg4: memref<64x800xbf16, #tpu.memory_space<vmem>>, %arg5: memref<64x1xf32, #tpu.memory_space<vmem>>, %arg6: memref<128x128xf32, #tpu.memory_space<vmem>>, %arg7: memref<800x256xbf16, #tpu.memory_space<vmem>>) attributes {dimension_semantics = [#tpu.dimension_semantics<arbitrary>], iteration_bounds = array<i64: 1>, scalar_prefetch = 0 : i64, scratch_operands = 1 : i64, tpu.core_type = #tpu.core_type<tc>, window_params = [{pipeline_mode = #tpu.pipeline_mode<synchronous>, transform_indices = @transform_0, window_bounds = array<i64: 2, 272>}, {pipeline_mode = #tpu.pipeline_mode<synchronous>, transform_indices = @transform_1, window_bounds = array<i64: 32, 25>}, {pipeline_mode = #tpu.pipeline_mode<synchronous>, transform_indices = @transform_2, window_bounds = array<i64: 32, 1>}, {pipeline_mode = #tpu.pipeline_mode<synchronous>, transform_indices = @transform_3, window_bounds = array<i64: 64, 800>}, {pipeline_mode = #tpu.pipeline_mode<synchronous>, transform_indices = @transform_4, window_bounds = array<i64: 64, 1>}, {pipeline_mode = #tpu.pipeline_mode<synchronous>, transform_indices = @transform_5, window_bounds = array<i64: 128, 128>}]} {
    %c0 = arith.constant 0 : index
    %c0_0 = arith.constant 0 : index
    %0 = vector.load %arg2[%c0, %c0_0] : memref<32x25xf32, #tpu.memory_space<vmem>>, vector<32x25xf32>
    %c0_1 = arith.constant 0 : index
    %c0_2 = arith.constant 0 : index
    %1 = vector.load %arg3[%c0_1, %c0_2] : memref<32x1xf32, #tpu.memory_space<vmem>>, vector<32x1xf32>
    %c0_3 = arith.constant 0 : index
    %c0_4 = arith.constant 0 : index
    %2 = vector.load %arg1[%c0_3, %c0_4] : memref<2x272xf32, #tpu.memory_space<vmem>>, vector<2x272xf32>
    %3 = vector.extract_strided_slice %2 {offsets = [0, 0], sizes = [1, 272], strides = [1, 1]} : vector<2x272xf32> to vector<1x272xf32>
    %4 = vector.shape_cast %1 : vector<32x1xf32> to vector<32x1xf32>
    %5 = vector.broadcast %4 : vector<32x1xf32> to vector<32x200xf32>
    %6 = vector.extract_strided_slice %0 {offsets = [0, 0], sizes = [32, 1], strides = [1, 1]} : vector<32x25xf32> to vector<32x1xf32>
    %7 = vector.extract_strided_slice %3 {offsets = [0, 0], sizes = [1, 200], strides = [1, 1]} : vector<1x272xf32> to vector<1x200xf32>
    %8 = vector.broadcast %6 : vector<32x1xf32> to vector<32x200xf32>
    %9 = vector.broadcast %7 : vector<1x200xf32> to vector<32x200xf32>
    %10 = arith.mulf %8, %9 : vector<32x200xf32>
    %11 = arith.addf %5, %10 : vector<32x200xf32>
    %12 = vector.extract_strided_slice %0 {offsets = [0, 1], sizes = [32, 1], strides = [1, 1]} : vector<32x25xf32> to vector<32x1xf32>
    %13 = vector.extract_strided_slice %3 {offsets = [0, 1], sizes = [1, 200], strides = [1, 1]} : vector<1x272xf32> to vector<1x200xf32>
    %14 = vector.broadcast %12 : vector<32x1xf32> to vector<32x200xf32>
    %15 = vector.broadcast %13 : vector<1x200xf32> to vector<32x200xf32>
    %16 = arith.mulf %14, %15 : vector<32x200xf32>
    %17 = arith.addf %11, %16 : vector<32x200xf32>
    %18 = vector.extract_strided_slice %0 {offsets = [0, 2], sizes = [32, 1], strides = [1, 1]} : vector<32x25xf32> to vector<32x1xf32>
    %19 = vector.extract_strided_slice %3 {offsets = [0, 2], sizes = [1, 200], strides = [1, 1]} : vector<1x272xf32> to vector<1x200xf32>
    %20 = vector.broadcast %18 : vector<32x1xf32> to vector<32x200xf32>
    %21 = vector.broadcast %19 : vector<1x200xf32> to vector<32x200xf32>
    %22 = arith.mulf %20, %21 : vector<32x200xf32>
    %23 = arith.addf %17, %22 : vector<32x200xf32>
    %24 = vector.extract_strided_slice %0 {offsets = [0, 3], sizes = [32, 1], strides = [1, 1]} : vector<32x25xf32> to vector<32x1xf32>
    %25 = vector.extract_strided_slice %3 {offsets = [0, 3], sizes = [1, 200], strides = [1, 1]} : vector<1x272xf32> to vector<1x200xf32>
    %26 = vector.broadcast %24 : vector<32x1xf32> to vector<32x200xf32>
    %27 = vector.broadcast %25 : vector<1x200xf32> to vector<32x200xf32>
    %28 = arith.mulf %26, %27 : vector<32x200xf32>
    %29 = arith.addf %23, %28 : vector<32x200xf32>
    %30 = vector.extract_strided_slice %0 {offsets = [0, 4], sizes = [32, 1], strides = [1, 1]} : vector<32x25xf32> to vector<32x1xf32>
    %31 = vector.extract_strided_slice %3 {offsets = [0, 4], sizes = [1, 200], strides = [1, 1]} : vector<1x272xf32> to vector<1x200xf32>
    %32 = vector.broadcast %30 : vector<32x1xf32> to vector<32x200xf32>
    %33 = vector.broadcast %31 : vector<1x200xf32> to vector<32x200xf32>
    %34 = arith.mulf %32, %33 : vector<32x200xf32>
    %35 = arith.addf %29, %34 : vector<32x200xf32>
    %36 = vector.extract_strided_slice %0 {offsets = [0, 5], sizes = [32, 1], strides = [1, 1]} : vector<32x25xf32> to vector<32x1xf32>
    %37 = vector.extract_strided_slice %3 {offsets = [0, 16], sizes = [1, 200], strides = [1, 1]} : vector<1x272xf32> to vector<1x200xf32>
    %38 = vector.broadcast %36 : vector<32x1xf32> to vector<32x200xf32>
    %39 = vector.broadcast %37 : vector<1x200xf32> to vector<32x200xf32>
    %40 = arith.mulf %38, %39 : vector<32x200xf32>
    %41 = arith.addf %35, %40 : vector<32x200xf32>
    %42 = vector.extract_strided_slice %0 {offsets = [0, 6], sizes = [32, 1], strides = [1, 1]} : vector<32x25xf32> to vector<32x1xf32>
    %43 = vector.extract_strided_slice %3 {offsets = [0, 17], sizes = [1, 200], strides = [1, 1]} : vector<1x272xf32> to vector<1x200xf32>
    %44 = vector.broadcast %42 : vector<32x1xf32> to vector<32x200xf32>
    %45 = vector.broadcast %43 : vector<1x200xf32> to vector<32x200xf32>
    %46 = arith.mulf %44, %45 : vector<32x200xf32>
    %47 = arith.addf %41, %46 : vector<32x200xf32>
    %48 = vector.extract_strided_slice %0 {offsets = [0, 7], sizes = [32, 1], strides = [1, 1]} : vector<32x25xf32> to vector<32x1xf32>
    %49 = vector.extract_strided_slice %3 {offsets = [0, 18], sizes = [1, 200], strides = [1, 1]} : vector<1x272xf32> to vector<1x200xf32>
    %50 = vector.broadcast %48 : vector<32x1xf32> to vector<32x200xf32>
    %51 = vector.broadcast %49 : vector<1x200xf32> to vector<32x200xf32>
    %52 = arith.mulf %50, %51 : vector<32x200xf32>
    %53 = arith.addf %47, %52 : vector<32x200xf32>
    %54 = vector.extract_strided_slice %0 {offsets = [0, 8], sizes = [32, 1], strides = [1, 1]} : vector<32x25xf32> to vector<32x1xf32>
    %55 = vector.extract_strided_slice %3 {offsets = [0, 19], sizes = [1, 200], strides = [1, 1]} : vector<1x272xf32> to vector<1x200xf32>
    %56 = vector.broadcast %54 : vector<32x1xf32> to vector<32x200xf32>
    %57 = vector.broadcast %55 : vector<1x200xf32> to vector<32x200xf32>
    %58 = arith.mulf %56, %57 : vector<32x200xf32>
    %59 = arith.addf %53, %58 : vector<32x200xf32>
    %60 = vector.extract_strided_slice %0 {offsets = [0, 9], sizes = [32, 1], strides = [1, 1]} : vector<32x25xf32> to vector<32x1xf32>
    %61 = vector.extract_strided_slice %3 {offsets = [0, 20], sizes = [1, 200], strides = [1, 1]} : vector<1x272xf32> to vector<1x200xf32>
    %62 = vector.broadcast %60 : vector<32x1xf32> to vector<32x200xf32>
    %63 = vector.broadcast %61 : vector<1x200xf32> to vector<32x200xf32>
    %64 = arith.mulf %62, %63 : vector<32x200xf32>
    %65 = arith.addf %59, %64 : vector<32x200xf32>
    %66 = vector.extract_strided_slice %0 {offsets = [0, 10], sizes = [32, 1], strides = [1, 1]} : vector<32x25xf32> to vector<32x1xf32>
    %67 = vector.extract_strided_slice %3 {offsets = [0, 32], sizes = [1, 200], strides = [1, 1]} : vector<1x272xf32> to vector<1x200xf32>
    %68 = vector.broadcast %66 : vector<32x1xf32> to vector<32x200xf32>
    %69 = vector.broadcast %67 : vector<1x200xf32> to vector<32x200xf32>
    %70 = arith.mulf %68, %69 : vector<32x200xf32>
    %71 = arith.addf %65, %70 : vector<32x200xf32>
    %72 = vector.extract_strided_slice %0 {offsets = [0, 11], sizes = [32, 1], strides = [1, 1]} : vector<32x25xf32> to vector<32x1xf32>
    %73 = vector.extract_strided_slice %3 {offsets = [0, 33], sizes = [1, 200], strides = [1, 1]} : vector<1x272xf32> to vector<1x200xf32>
    %74 = vector.broadcast %72 : vector<32x1xf32> to vector<32x200xf32>
    %75 = vector.broadcast %73 : vector<1x200xf32> to vector<32x200xf32>
    %76 = arith.mulf %74, %75 : vector<32x200xf32>
    %77 = arith.addf %71, %76 : vector<32x200xf32>
    %78 = vector.extract_strided_slice %0 {offsets = [0, 12], sizes = [32, 1], strides = [1, 1]} : vector<32x25xf32> to vector<32x1xf32>
    %79 = vector.extract_strided_slice %3 {offsets = [0, 34], sizes = [1, 200], strides = [1, 1]} : vector<1x272xf32> to vector<1x200xf32>
    %80 = vector.broadcast %78 : vector<32x1xf32> to vector<32x200xf32>
    %81 = vector.broadcast %79 : vector<1x200xf32> to vector<32x200xf32>
    %82 = arith.mulf %80, %81 : vector<32x200xf32>
    %83 = arith.addf %77, %82 : vector<32x200xf32>
    %84 = vector.extract_strided_slice %0 {offsets = [0, 13], sizes = [32, 1], strides = [1, 1]} : vector<32x25xf32> to vector<32x1xf32>
    %85 = vector.extract_strided_slice %3 {offsets = [0, 35], sizes = [1, 200], strides = [1, 1]} : vector<1x272xf32> to vector<1x200xf32>
    %86 = vector.broadcast %84 : vector<32x1xf32> to vector<32x200xf32>
    %87 = vector.broadcast %85 : vector<1x200xf32> to vector<32x200xf32>
    %88 = arith.mulf %86, %87 : vector<32x200xf32>
    %89 = arith.addf %83, %88 : vector<32x200xf32>
    %90 = vector.extract_strided_slice %0 {offsets = [0, 14], sizes = [32, 1], strides = [1, 1]} : vector<32x25xf32> to vector<32x1xf32>
    %91 = vector.extract_strided_slice %3 {offsets = [0, 36], sizes = [1, 200], strides = [1, 1]} : vector<1x272xf32> to vector<1x200xf32>
    %92 = vector.broadcast %90 : vector<32x1xf32> to vector<32x200xf32>
    %93 = vector.broadcast %91 : vector<1x200xf32> to vector<32x200xf32>
    %94 = arith.mulf %92, %93 : vector<32x200xf32>
    %95 = arith.addf %89, %94 : vector<32x200xf32>
    %96 = vector.extract_strided_slice %0 {offsets = [0, 15], sizes = [32, 1], strides = [1, 1]} : vector<32x25xf32> to vector<32x1xf32>
    %97 = vector.extract_strided_slice %3 {offsets = [0, 48], sizes = [1, 200], strides = [1, 1]} : vector<1x272xf32> to vector<1x200xf32>
    %98 = vector.broadcast %96 : vector<32x1xf32> to vector<32x200xf32>
    %99 = vector.broadcast %97 : vector<1x200xf32> to vector<32x200xf32>
    %100 = arith.mulf %98, %99 : vector<32x200xf32>
    %101 = arith.addf %95, %100 : vector<32x200xf32>
    %102 = vector.extract_strided_slice %0 {offsets = [0, 16], sizes = [32, 1], strides = [1, 1]} : vector<32x25xf32> to vector<32x1xf32>
    %103 = vector.extract_strided_slice %3 {offsets = [0, 49], sizes = [1, 200], strides = [1, 1]} : vector<1x272xf32> to vector<1x200xf32>
    %104 = vector.broadcast %102 : vector<32x1xf32> to vector<32x200xf32>
    %105 = vector.broadcast %103 : vector<1x200xf32> to vector<32x200xf32>
    %106 = arith.mulf %104, %105 : vector<32x200xf32>
    %107 = arith.addf %101, %106 : vector<32x200xf32>
    %108 = vector.extract_strided_slice %0 {offsets = [0, 17], sizes = [32, 1], strides = [1, 1]} : vector<32x25xf32> to vector<32x1xf32>
    %109 = vector.extract_strided_slice %3 {offsets = [0, 50], sizes = [1, 200], strides = [1, 1]} : vector<1x272xf32> to vector<1x200xf32>
    %110 = vector.broadcast %108 : vector<32x1xf32> to vector<32x200xf32>
    %111 = vector.broadcast %109 : vector<1x200xf32> to vector<32x200xf32>
    %112 = arith.mulf %110, %111 : vector<32x200xf32>
    %113 = arith.addf %107, %112 : vector<32x200xf32>
    %114 = vector.extract_strided_slice %0 {offsets = [0, 18], sizes = [32, 1], strides = [1, 1]} : vector<32x25xf32> to vector<32x1xf32>
    %115 = vector.extract_strided_slice %3 {offsets = [0, 51], sizes = [1, 200], strides = [1, 1]} : vector<1x272xf32> to vector<1x200xf32>
    %116 = vector.broadcast %114 : vector<32x1xf32> to vector<32x200xf32>
    %117 = vector.broadcast %115 : vector<1x200xf32> to vector<32x200xf32>
    %118 = arith.mulf %116, %117 : vector<32x200xf32>
    %119 = arith.addf %113, %118 : vector<32x200xf32>
    %120 = vector.extract_strided_slice %0 {offsets = [0, 19], sizes = [32, 1], strides = [1, 1]} : vector<32x25xf32> to vector<32x1xf32>
    %121 = vector.extract_strided_slice %3 {offsets = [0, 52], sizes = [1, 200], strides = [1, 1]} : vector<1x272xf32> to vector<1x200xf32>
    %122 = vector.broadcast %120 : vector<32x1xf32> to vector<32x200xf32>
    %123 = vector.broadcast %121 : vector<1x200xf32> to vector<32x200xf32>
    %124 = arith.mulf %122, %123 : vector<32x200xf32>
    %125 = arith.addf %119, %124 : vector<32x200xf32>
    %126 = vector.extract_strided_slice %0 {offsets = [0, 20], sizes = [32, 1], strides = [1, 1]} : vector<32x25xf32> to vector<32x1xf32>
    %127 = vector.extract_strided_slice %3 {offsets = [0, 64], sizes = [1, 200], strides = [1, 1]} : vector<1x272xf32> to vector<1x200xf32>
    %128 = vector.broadcast %126 : vector<32x1xf32> to vector<32x200xf32>
    %129 = vector.broadcast %127 : vector<1x200xf32> to vector<32x200xf32>
    %130 = arith.mulf %128, %129 : vector<32x200xf32>
    %131 = arith.addf %125, %130 : vector<32x200xf32>
    %132 = vector.extract_strided_slice %0 {offsets = [0, 21], sizes = [32, 1], strides = [1, 1]} : vector<32x25xf32> to vector<32x1xf32>
    %133 = vector.extract_strided_slice %3 {offsets = [0, 65], sizes = [1, 200], strides = [1, 1]} : vector<1x272xf32> to vector<1x200xf32>
    %134 = vector.broadcast %132 : vector<32x1xf32> to vector<32x200xf32>
    %135 = vector.broadcast %133 : vector<1x200xf32> to vector<32x200xf32>
    %136 = arith.mulf %134, %135 : vector<32x200xf32>
    %137 = arith.addf %131, %136 : vector<32x200xf32>
    %138 = vector.extract_strided_slice %0 {offsets = [0, 22], sizes = [32, 1], strides = [1, 1]} : vector<32x25xf32> to vector<32x1xf32>
    %139 = vector.extract_strided_slice %3 {offsets = [0, 66], sizes = [1, 200], strides = [1, 1]} : vector<1x272xf32> to vector<1x200xf32>
    %140 = vector.broadcast %138 : vector<32x1xf32> to vector<32x200xf32>
    %141 = vector.broadcast %139 : vector<1x200xf32> to vector<32x200xf32>
    %142 = arith.mulf %140, %141 : vector<32x200xf32>
    %143 = arith.addf %137, %142 : vector<32x200xf32>
    %144 = vector.extract_strided_slice %0 {offsets = [0, 23], sizes = [32, 1], strides = [1, 1]} : vector<32x25xf32> to vector<32x1xf32>
    %145 = vector.extract_strided_slice %3 {offsets = [0, 67], sizes = [1, 200], strides = [1, 1]} : vector<1x272xf32> to vector<1x200xf32>
    %146 = vector.broadcast %144 : vector<32x1xf32> to vector<32x200xf32>
    %147 = vector.broadcast %145 : vector<1x200xf32> to vector<32x200xf32>
    %148 = arith.mulf %146, %147 : vector<32x200xf32>
    %149 = arith.addf %143, %148 : vector<32x200xf32>
    %150 = vector.extract_strided_slice %0 {offsets = [0, 24], sizes = [32, 1], strides = [1, 1]} : vector<32x25xf32> to vector<32x1xf32>
    %151 = vector.extract_strided_slice %3 {offsets = [0, 68], sizes = [1, 200], strides = [1, 1]} : vector<1x272xf32> to vector<1x200xf32>
    %152 = vector.broadcast %150 : vector<32x1xf32> to vector<32x200xf32>
    %153 = vector.broadcast %151 : vector<1x200xf32> to vector<32x200xf32>
    %154 = arith.mulf %152, %153 : vector<32x200xf32>
    %155 = arith.addf %149, %154 : vector<32x200xf32>
    %cst = arith.constant 0.00999999977 : f32
    %156 = vector.broadcast %cst : f32 to vector<32x200xf32>
    %157 = arith.mulf %156, %155 : vector<32x200xf32>
    %158 = arith.maximumf %155, %157 : vector<32x200xf32>
    %159 = arith.truncf %158 : vector<32x200xf32> to vector<32x200xbf16>
    %160 = vector.extract_strided_slice %159 {offsets = [0, 0], sizes = [32, 128], strides = [1, 1]} : vector<32x200xbf16> to vector<32x128xbf16>
    %c0_5 = arith.constant 0 : index
    %c0_6 = arith.constant 0 : index
    %161 = vector.load %arg7[%c0_5, %c0_6] : memref<800x256xbf16, #tpu.memory_space<vmem>>, vector<32x128xbf16>
    tpu.vector_store %arg7[%c0_5, %c0_6], %160 {strides = array<i32>} : memref<800x256xbf16, #tpu.memory_space<vmem>>, vector<32x128xbf16>,
    %162 = vector.extract_strided_slice %159 {offsets = [0, 1], sizes = [32, 128], strides = [1, 1]} : vector<32x200xbf16> to vector<32x128xbf16>
    %c32 = arith.constant 32 : index
    %c0_7 = arith.constant 0 : index
    %163 = vector.load %arg7[%c32, %c0_7] : memref<800x256xbf16, #tpu.memory_space<vmem>>, vector<32x128xbf16>
    tpu.vector_store %arg7[%c32, %c0_7], %162 {strides = array<i32>} : memref<800x256xbf16, #tpu.memory_space<vmem>>, vector<32x128xbf16>,
    %164 = vector.extract_strided_slice %159 {offsets = [0, 2], sizes = [32, 128], strides = [1, 1]} : vector<32x200xbf16> to vector<32x128xbf16>
    %c64 = arith.constant 64 : index
    %c0_8 = arith.constant 0 : index
    %165 = vector.load %arg7[%c64, %c0_8] : memref<800x256xbf16, #tpu.memory_space<vmem>>, vector<32x128xbf16>
    tpu.vector_store %arg7[%c64, %c0_8], %164 {strides = array<i32>} : memref<800x256xbf16, #tpu.memory_space<vmem>>, vector<32x128xbf16>,
    %166 = vector.extract_strided_slice %159 {offsets = [0, 3], sizes = [32, 128], strides = [1, 1]} : vector<32x200xbf16> to vector<32x128xbf16>
    %c96 = arith.constant 96 : index
    %c0_9 = arith.constant 0 : index
    %167 = vector.load %arg7[%c96, %c0_9] : memref<800x256xbf16, #tpu.memory_space<vmem>>, vector<32x128xbf16>
    tpu.vector_store %arg7[%c96, %c0_9], %166 {strides = array<i32>} : memref<800x256xbf16, #tpu.memory_space<vmem>>, vector<32x128xbf16>,
    %168 = vector.extract_strided_slice %159 {offsets = [0, 4], sizes = [32, 128], strides = [1, 1]} : vector<32x200xbf16> to vector<32x128xbf16>
    %c128 = arith.constant 128 : index
    %c0_10 = arith.constant 0 : index
    %169 = vector.load %arg7[%c128, %c0_10] : memref<800x256xbf16, #tpu.memory_space<vmem>>, vector<32x128xbf16>
    tpu.vector_store %arg7[%c128, %c0_10], %168 {strides = array<i32>} : memref<800x256xbf16, #tpu.memory_space<vmem>>, vector<32x128xbf16>,
    %170 = vector.extract_strided_slice %159 {offsets = [0, 16], sizes = [32, 128], strides = [1, 1]} : vector<32x200xbf16> to vector<32x128xbf16>
    %c160 = arith.constant 160 : index
    %c0_11 = arith.constant 0 : index
    %171 = vector.load %arg7[%c160, %c0_11] : memref<800x256xbf16, #tpu.memory_space<vmem>>, vector<32x128xbf16>
    tpu.vector_store %arg7[%c160, %c0_11], %170 {strides = array<i32>} : memref<800x256xbf16, #tpu.memory_space<vmem>>, vector<32x128xbf16>,
    %172 = vector.extract_strided_slice %159 {offsets = [0, 17], sizes = [32, 128], strides = [1, 1]} : vector<32x200xbf16> to vector<32x128xbf16>
    %c192 = arith.constant 192 : index
    %c0_12 = arith.constant 0 : index
    %173 = vector.load %arg7[%c192, %c0_12] : memref<800x256xbf16, #tpu.memory_space<vmem>>, vector<32x128xbf16>
    tpu.vector_store %arg7[%c192, %c0_12], %172 {strides = array<i32>} : memref<800x256xbf16, #tpu.memory_space<vmem>>, vector<32x128xbf16>,
    %174 = vector.extract_strided_slice %159 {offsets = [0, 18], sizes = [32, 128], strides = [1, 1]} : vector<32x200xbf16> to vector<32x128xbf16>
    %c224 = arith.constant 224 : index
    %c0_13 = arith.constant 0 : index
    %175 = vector.load %arg7[%c224, %c0_13] : memref<800x256xbf16, #tpu.memory_space<vmem>>, vector<32x128xbf16>
    tpu.vector_store %arg7[%c224, %c0_13], %174 {strides = array<i32>} : memref<800x256xbf16, #tpu.memory_space<vmem>>, vector<32x128xbf16>,
    %176 = vector.extract_strided_slice %159 {offsets = [0, 19], sizes = [32, 128], strides = [1, 1]} : vector<32x200xbf16> to vector<32x128xbf16>
    %c256 = arith.constant 256 : index
    %c0_14 = arith.constant 0 : index
    %177 = vector.load %arg7[%c256, %c0_14] : memref<800x256xbf16, #tpu.memory_space<vmem>>, vector<32x128xbf16>
    tpu.vector_store %arg7[%c256, %c0_14], %176 {strides = array<i32>} : memref<800x256xbf16, #tpu.memory_space<vmem>>, vector<32x128xbf16>,
    %178 = vector.extract_strided_slice %159 {offsets = [0, 20], sizes = [32, 128], strides = [1, 1]} : vector<32x200xbf16> to vector<32x128xbf16>
    %c288 = arith.constant 288 : index
    %c0_15 = arith.constant 0 : index
    %179 = vector.load %arg7[%c288, %c0_15] : memref<800x256xbf16, #tpu.memory_space<vmem>>, vector<32x128xbf16>
    tpu.vector_store %arg7[%c288, %c0_15], %178 {strides = array<i32>} : memref<800x256xbf16, #tpu.memory_space<vmem>>, vector<32x128xbf16>,
    %180 = vector.extract_strided_slice %159 {offsets = [0, 32], sizes = [32, 128], strides = [1, 1]} : vector<32x200xbf16> to vector<32x128xbf16>
    %c320 = arith.constant 320 : index
    %c0_16 = arith.constant 0 : index
    %181 = vector.load %arg7[%c320, %c0_16] : memref<800x256xbf16, #tpu.memory_space<vmem>>, vector<32x128xbf16>
    tpu.vector_store %arg7[%c320, %c0_16], %180 {strides = array<i32>} : memref<800x256xbf16, #tpu.memory_space<vmem>>, vector<32x128xbf16>,
    %182 = vector.extract_strided_slice %159 {offsets = [0, 33], sizes = [32, 128], strides = [1, 1]} : vector<32x200xbf16> to vector<32x128xbf16>
    %c352 = arith.constant 352 : index
    %c0_17 = arith.constant 0 : index
    %183 = vector.load %arg7[%c352, %c0_17] : memref<800x256xbf16, #tpu.memory_space<vmem>>, vector<32x128xbf16>
    tpu.vector_store %arg7[%c352, %c0_17], %182 {strides = array<i32>} : memref<800x256xbf16, #tpu.memory_space<vmem>>, vector<32x128xbf16>,
    %184 = vector.extract_strided_slice %159 {offsets = [0, 34], sizes = [32, 128], strides = [1, 1]} : vector<32x200xbf16> to vector<32x128xbf16>
    %c384 = arith.constant 384 : index
    %c0_18 = arith.constant 0 : index
    %185 = vector.load %arg7[%c384, %c0_18] : memref<800x256xbf16, #tpu.memory_space<vmem>>, vector<32x128xbf16>
    tpu.vector_store %arg7[%c384, %c0_18], %184 {strides = array<i32>} : memref<800x256xbf16, #tpu.memory_space<vmem>>, vector<32x128xbf16>,
    %186 = vector.extract_strided_slice %159 {offsets = [0, 35], sizes = [32, 128], strides = [1, 1]} : vector<32x200xbf16> to vector<32x128xbf16>
    %c416 = arith.constant 416 : index
    %c0_19 = arith.constant 0 : index
    %187 = vector.load %arg7[%c416, %c0_19] : memref<800x256xbf16, #tpu.memory_space<vmem>>, vector<32x128xbf16>
    tpu.vector_store %arg7[%c416, %c0_19], %186 {strides = array<i32>} : memref<800x256xbf16, #tpu.memory_space<vmem>>, vector<32x128xbf16>,
    %188 = vector.extract_strided_slice %159 {offsets = [0, 36], sizes = [32, 128], strides = [1, 1]} : vector<32x200xbf16> to vector<32x128xbf16>
    %c448 = arith.constant 448 : index
    %c0_20 = arith.constant 0 : index
    %189 = vector.load %arg7[%c448, %c0_20] : memref<800x256xbf16, #tpu.memory_space<vmem>>, vector<32x128xbf16>
    tpu.vector_store %arg7[%c448, %c0_20], %188 {strides = array<i32>} : memref<800x256xbf16, #tpu.memory_space<vmem>>, vector<32x128xbf16>,
    %190 = vector.extract_strided_slice %159 {offsets = [0, 48], sizes = [32, 128], strides = [1, 1]} : vector<32x200xbf16> to vector<32x128xbf16>
    %c480 = arith.constant 480 : index
    %c0_21 = arith.constant 0 : index
    %191 = vector.load %arg7[%c480, %c0_21] : memref<800x256xbf16, #tpu.memory_space<vmem>>, vector<32x128xbf16>
    tpu.vector_store %arg7[%c480, %c0_21], %190 {strides = array<i32>} : memref<800x256xbf16, #tpu.memory_space<vmem>>, vector<32x128xbf16>,
    %192 = vector.extract_strided_slice %159 {offsets = [0, 49], sizes = [32, 128], strides = [1, 1]} : vector<32x200xbf16> to vector<32x128xbf16>
    %c512 = arith.constant 512 : index
    %c0_22 = arith.constant 0 : index
    %193 = vector.load %arg7[%c512, %c0_22] : memref<800x256xbf16, #tpu.memory_space<vmem>>, vector<32x128xbf16>
    tpu.vector_store %arg7[%c512, %c0_22], %192 {strides = array<i32>} : memref<800x256xbf16, #tpu.memory_space<vmem>>, vector<32x128xbf16>,
    %194 = vector.extract_strided_slice %159 {offsets = [0, 50], sizes = [32, 128], strides = [1, 1]} : vector<32x200xbf16> to vector<32x128xbf16>
    %c544 = arith.constant 544 : index
    %c0_23 = arith.constant 0 : index
    %195 = vector.load %arg7[%c544, %c0_23] : memref<800x256xbf16, #tpu.memory_space<vmem>>, vector<32x128xbf16>
    tpu.vector_store %arg7[%c544, %c0_23], %194 {strides = array<i32>} : memref<800x256xbf16, #tpu.memory_space<vmem>>, vector<32x128xbf16>,
    %196 = vector.extract_strided_slice %159 {offsets = [0, 51], sizes = [32, 128], strides = [1, 1]} : vector<32x200xbf16> to vector<32x128xbf16>
    %c576 = arith.constant 576 : index
    %c0_24 = arith.constant 0 : index
    %197 = vector.load %arg7[%c576, %c0_24] : memref<800x256xbf16, #tpu.memory_space<vmem>>, vector<32x128xbf16>
    tpu.vector_store %arg7[%c576, %c0_24], %196 {strides = array<i32>} : memref<800x256xbf16, #tpu.memory_space<vmem>>, vector<32x128xbf16>,
    %198 = vector.extract_strided_slice %159 {offsets = [0, 52], sizes = [32, 128], strides = [1, 1]} : vector<32x200xbf16> to vector<32x128xbf16>
    %c608 = arith.constant 608 : index
    %c0_25 = arith.constant 0 : index
    %199 = vector.load %arg7[%c608, %c0_25] : memref<800x256xbf16, #tpu.memory_space<vmem>>, vector<32x128xbf16>
    tpu.vector_store %arg7[%c608, %c0_25], %198 {strides = array<i32>} : memref<800x256xbf16, #tpu.memory_space<vmem>>, vector<32x128xbf16>,
    %200 = vector.extract_strided_slice %159 {offsets = [0, 64], sizes = [32, 128], strides = [1, 1]} : vector<32x200xbf16> to vector<32x128xbf16>
    %c640 = arith.constant 640 : index
    %c0_26 = arith.constant 0 : index
    %201 = vector.load %arg7[%c640, %c0_26] : memref<800x256xbf16, #tpu.memory_space<vmem>>, vector<32x128xbf16>
    tpu.vector_store %arg7[%c640, %c0_26], %200 {strides = array<i32>} : memref<800x256xbf16, #tpu.memory_space<vmem>>, vector<32x128xbf16>,
    %202 = vector.extract_strided_slice %159 {offsets = [0, 65], sizes = [32, 128], strides = [1, 1]} : vector<32x200xbf16> to vector<32x128xbf16>
    %c672 = arith.constant 672 : index
    %c0_27 = arith.constant 0 : index
    %203 = vector.load %arg7[%c672, %c0_27] : memref<800x256xbf16, #tpu.memory_space<vmem>>, vector<32x128xbf16>
    tpu.vector_store %arg7[%c672, %c0_27], %202 {strides = array<i32>} : memref<800x256xbf16, #tpu.memory_space<vmem>>, vector<32x128xbf16>,
    %204 = vector.extract_strided_slice %159 {offsets = [0, 66], sizes = [32, 128], strides = [1, 1]} : vector<32x200xbf16> to vector<32x128xbf16>
    %c704 = arith.constant 704 : index
    %c0_28 = arith.constant 0 : index
    %205 = vector.load %arg7[%c704, %c0_28] : memref<800x256xbf16, #tpu.memory_space<vmem>>, vector<32x128xbf16>
    tpu.vector_store %arg7[%c704, %c0_28], %204 {strides = array<i32>} : memref<800x256xbf16, #tpu.memory_space<vmem>>, vector<32x128xbf16>,
    %206 = vector.extract_strided_slice %159 {offsets = [0, 67], sizes = [32, 128], strides = [1, 1]} : vector<32x200xbf16> to vector<32x128xbf16>
    %c736 = arith.constant 736 : index
    %c0_29 = arith.constant 0 : index
    %207 = vector.load %arg7[%c736, %c0_29] : memref<800x256xbf16, #tpu.memory_space<vmem>>, vector<32x128xbf16>
    tpu.vector_store %arg7[%c736, %c0_29], %206 {strides = array<i32>} : memref<800x256xbf16, #tpu.memory_space<vmem>>, vector<32x128xbf16>,
    %208 = vector.extract_strided_slice %159 {offsets = [0, 68], sizes = [32, 128], strides = [1, 1]} : vector<32x200xbf16> to vector<32x128xbf16>
    %c768 = arith.constant 768 : index
    %c0_30 = arith.constant 0 : index
    %209 = vector.load %arg7[%c768, %c0_30] : memref<800x256xbf16, #tpu.memory_space<vmem>>, vector<32x128xbf16>
    tpu.vector_store %arg7[%c768, %c0_30], %208 {strides = array<i32>} : memref<800x256xbf16, #tpu.memory_space<vmem>>, vector<32x128xbf16>,
    %210 = vector.extract_strided_slice %2 {offsets = [1, 0], sizes = [1, 272], strides = [1, 1]} : vector<2x272xf32> to vector<1x272xf32>
    %211 = vector.shape_cast %1 : vector<32x1xf32> to vector<32x1xf32>
    %212 = vector.broadcast %211 : vector<32x1xf32> to vector<32x200xf32>
    %213 = vector.extract_strided_slice %0 {offsets = [0, 0], sizes = [32, 1], strides = [1, 1]} : vector<32x25xf32> to vector<32x1xf32>
    %214 = vector.extract_strided_slice %210 {offsets = [0, 0], sizes = [1, 200], strides = [1, 1]} : vector<1x272xf32> to vector<1x200xf32>
    %215 = vector.broadcast %213 : vector<32x1xf32> to vector<32x200xf32>
    %216 = vector.broadcast %214 : vector<1x200xf32> to vector<32x200xf32>
    %217 = arith.mulf %215, %216 : vector<32x200xf32>
    %218 = arith.addf %212, %217 : vector<32x200xf32>
    %219 = vector.extract_strided_slice %0 {offsets = [0, 1], sizes = [32, 1], strides = [1, 1]} : vector<32x25xf32> to vector<32x1xf32>
    %220 = vector.extract_strided_slice %210 {offsets = [0, 1], sizes = [1, 200], strides = [1, 1]} : vector<1x272xf32> to vector<1x200xf32>
    %221 = vector.broadcast %219 : vector<32x1xf32> to vector<32x200xf32>
    %222 = vector.broadcast %220 : vector<1x200xf32> to vector<32x200xf32>
    %223 = arith.mulf %221, %222 : vector<32x200xf32>
    %224 = arith.addf %218, %223 : vector<32x200xf32>
    %225 = vector.extract_strided_slice %0 {offsets = [0, 2], sizes = [32, 1], strides = [1, 1]} : vector<32x25xf32> to vector<32x1xf32>
    %226 = vector.extract_strided_slice %210 {offsets = [0, 2], sizes = [1, 200], strides = [1, 1]} : vector<1x272xf32> to vector<1x200xf32>
    %227 = vector.broadcast %225 : vector<32x1xf32> to vector<32x200xf32>
    %228 = vector.broadcast %226 : vector<1x200xf32> to vector<32x200xf32>
    %229 = arith.mulf %227, %228 : vector<32x200xf32>
    %230 = arith.addf %224, %229 : vector<32x200xf32>
    %231 = vector.extract_strided_slice %0 {offsets = [0, 3], sizes = [32, 1], strides = [1, 1]} : vector<32x25xf32> to vector<32x1xf32>
    %232 = vector.extract_strided_slice %210 {offsets = [0, 3], sizes = [1, 200], strides = [1, 1]} : vector<1x272xf32> to vector<1x200xf32>
    %233 = vector.broadcast %231 : vector<32x1xf32> to vector<32x200xf32>
    %234 = vector.broadcast %232 : vector<1x200xf32> to vector<32x200xf32>
    %235 = arith.mulf %233, %234 : vector<32x200xf32>
    %236 = arith.addf %230, %235 : vector<32x200xf32>
    %237 = vector.extract_strided_slice %0 {offsets = [0, 4], sizes = [32, 1], strides = [1, 1]} : vector<32x25xf32> to vector<32x1xf32>
    %238 = vector.extract_strided_slice %210 {offsets = [0, 4], sizes = [1, 200], strides = [1, 1]} : vector<1x272xf32> to vector<1x200xf32>
    %239 = vector.broadcast %237 : vector<32x1xf32> to vector<32x200xf32>
    %240 = vector.broadcast %238 : vector<1x200xf32> to vector<32x200xf32>
    %241 = arith.mulf %239, %240 : vector<32x200xf32>
    %242 = arith.addf %236, %241 : vector<32x200xf32>
    %243 = vector.extract_strided_slice %0 {offsets = [0, 5], sizes = [32, 1], strides = [1, 1]} : vector<32x25xf32> to vector<32x1xf32>
    %244 = vector.extract_strided_slice %210 {offsets = [0, 16], sizes = [1, 200], strides = [1, 1]} : vector<1x272xf32> to vector<1x200xf32>
    %245 = vector.broadcast %243 : vector<32x1xf32> to vector<32x200xf32>
    %246 = vector.broadcast %244 : vector<1x200xf32> to vector<32x200xf32>
    %247 = arith.mulf %245, %246 : vector<32x200xf32>
    %248 = arith.addf %242, %247 : vector<32x200xf32>
    %249 = vector.extract_strided_slice %0 {offsets = [0, 6], sizes = [32, 1], strides = [1, 1]} : vector<32x25xf32> to vector<32x1xf32>
    %250 = vector.extract_strided_slice %210 {offsets = [0, 17], sizes = [1, 200], strides = [1, 1]} : vector<1x272xf32> to vector<1x200xf32>
    %251 = vector.broadcast %249 : vector<32x1xf32> to vector<32x200xf32>
    %252 = vector.broadcast %250 : vector<1x200xf32> to vector<32x200xf32>
    %253 = arith.mulf %251, %252 : vector<32x200xf32>
    %254 = arith.addf %248, %253 : vector<32x200xf32>
    %255 = vector.extract_strided_slice %0 {offsets = [0, 7], sizes = [32, 1], strides = [1, 1]} : vector<32x25xf32> to vector<32x1xf32>
    %256 = vector.extract_strided_slice %210 {offsets = [0, 18], sizes = [1, 200], strides = [1, 1]} : vector<1x272xf32> to vector<1x200xf32>
    %257 = vector.broadcast %255 : vector<32x1xf32> to vector<32x200xf32>
    %258 = vector.broadcast %256 : vector<1x200xf32> to vector<32x200xf32>
    %259 = arith.mulf %257, %258 : vector<32x200xf32>
    %260 = arith.addf %254, %259 : vector<32x200xf32>
    %261 = vector.extract_strided_slice %0 {offsets = [0, 8], sizes = [32, 1], strides = [1, 1]} : vector<32x25xf32> to vector<32x1xf32>
    %262 = vector.extract_strided_slice %210 {offsets = [0, 19], sizes = [1, 200], strides = [1, 1]} : vector<1x272xf32> to vector<1x200xf32>
    %263 = vector.broadcast %261 : vector<32x1xf32> to vector<32x200xf32>
    %264 = vector.broadcast %262 : vector<1x200xf32> to vector<32x200xf32>
    %265 = arith.mulf %263, %264 : vector<32x200xf32>
    %266 = arith.addf %260, %265 : vector<32x200xf32>
    %267 = vector.extract_strided_slice %0 {offsets = [0, 9], sizes = [32, 1], strides = [1, 1]} : vector<32x25xf32> to vector<32x1xf32>
    %268 = vector.extract_strided_slice %210 {offsets = [0, 20], sizes = [1, 200], strides = [1, 1]} : vector<1x272xf32> to vector<1x200xf32>
    %269 = vector.broadcast %267 : vector<32x1xf32> to vector<32x200xf32>
    %270 = vector.broadcast %268 : vector<1x200xf32> to vector<32x200xf32>
    %271 = arith.mulf %269, %270 : vector<32x200xf32>
    %272 = arith.addf %266, %271 : vector<32x200xf32>
    %273 = vector.extract_strided_slice %0 {offsets = [0, 10], sizes = [32, 1], strides = [1, 1]} : vector<32x25xf32> to vector<32x1xf32>
    %274 = vector.extract_strided_slice %210 {offsets = [0, 32], sizes = [1, 200], strides = [1, 1]} : vector<1x272xf32> to vector<1x200xf32>
    %275 = vector.broadcast %273 : vector<32x1xf32> to vector<32x200xf32>
    %276 = vector.broadcast %274 : vector<1x200xf32> to vector<32x200xf32>
    %277 = arith.mulf %275, %276 : vector<32x200xf32>
    %278 = arith.addf %272, %277 : vector<32x200xf32>
    %279 = vector.extract_strided_slice %0 {offsets = [0, 11], sizes = [32, 1], strides = [1, 1]} : vector<32x25xf32> to vector<32x1xf32>
    %280 = vector.extract_strided_slice %210 {offsets = [0, 33], sizes = [1, 200], strides = [1, 1]} : vector<1x272xf32> to vector<1x200xf32>
    %281 = vector.broadcast %279 : vector<32x1xf32> to vector<32x200xf32>
    %282 = vector.broadcast %280 : vector<1x200xf32> to vector<32x200xf32>
    %283 = arith.mulf %281, %282 : vector<32x200xf32>
    %284 = arith.addf %278, %283 : vector<32x200xf32>
    %285 = vector.extract_strided_slice %0 {offsets = [0, 12], sizes = [32, 1], strides = [1, 1]} : vector<32x25xf32> to vector<32x1xf32>
    %286 = vector.extract_strided_slice %210 {offsets = [0, 34], sizes = [1, 200], strides = [1, 1]} : vector<1x272xf32> to vector<1x200xf32>
    %287 = vector.broadcast %285 : vector<32x1xf32> to vector<32x200xf32>
    %288 = vector.broadcast %286 : vector<1x200xf32> to vector<32x200xf32>
    %289 = arith.mulf %287, %288 : vector<32x200xf32>
    %290 = arith.addf %284, %289 : vector<32x200xf32>
    %291 = vector.extract_strided_slice %0 {offsets = [0, 13], sizes = [32, 1], strides = [1, 1]} : vector<32x25xf32> to vector<32x1xf32>
    %292 = vector.extract_strided_slice %210 {offsets = [0, 35], sizes = [1, 200], strides = [1, 1]} : vector<1x272xf32> to vector<1x200xf32>
    %293 = vector.broadcast %291 : vector<32x1xf32> to vector<32x200xf32>
    %294 = vector.broadcast %292 : vector<1x200xf32> to vector<32x200xf32>
    %295 = arith.mulf %293, %294 : vector<32x200xf32>
    %296 = arith.addf %290, %295 : vector<32x200xf32>
    %297 = vector.extract_strided_slice %0 {offsets = [0, 14], sizes = [32, 1], strides = [1, 1]} : vector<32x25xf32> to vector<32x1xf32>
    %298 = vector.extract_strided_slice %210 {offsets = [0, 36], sizes = [1, 200], strides = [1, 1]} : vector<1x272xf32> to vector<1x200xf32>
    %299 = vector.broadcast %297 : vector<32x1xf32> to vector<32x200xf32>
    %300 = vector.broadcast %298 : vector<1x200xf32> to vector<32x200xf32>
    %301 = arith.mulf %299, %300 : vector<32x200xf32>
    %302 = arith.addf %296, %301 : vector<32x200xf32>
    %303 = vector.extract_strided_slice %0 {offsets = [0, 15], sizes = [32, 1], strides = [1, 1]} : vector<32x25xf32> to vector<32x1xf32>
    %304 = vector.extract_strided_slice %210 {offsets = [0, 48], sizes = [1, 200], strides = [1, 1]} : vector<1x272xf32> to vector<1x200xf32>
    %305 = vector.broadcast %303 : vector<32x1xf32> to vector<32x200xf32>
    %306 = vector.broadcast %304 : vector<1x200xf32> to vector<32x200xf32>
    %307 = arith.mulf %305, %306 : vector<32x200xf32>
    %308 = arith.addf %302, %307 : vector<32x200xf32>
    %309 = vector.extract_strided_slice %0 {offsets = [0, 16], sizes = [32, 1], strides = [1, 1]} : vector<32x25xf32> to vector<32x1xf32>
    %310 = vector.extract_strided_slice %210 {offsets = [0, 49], sizes = [1, 200], strides = [1, 1]} : vector<1x272xf32> to vector<1x200xf32>
    %311 = vector.broadcast %309 : vector<32x1xf32> to vector<32x200xf32>
    %312 = vector.broadcast %310 : vector<1x200xf32> to vector<32x200xf32>
    %313 = arith.mulf %311, %312 : vector<32x200xf32>
    %314 = arith.addf %308, %313 : vector<32x200xf32>
    %315 = vector.extract_strided_slice %0 {offsets = [0, 17], sizes = [32, 1], strides = [1, 1]} : vector<32x25xf32> to vector<32x1xf32>
    %316 = vector.extract_strided_slice %210 {offsets = [0, 50], sizes = [1, 200], strides = [1, 1]} : vector<1x272xf32> to vector<1x200xf32>
    %317 = vector.broadcast %315 : vector<32x1xf32> to vector<32x200xf32>
    %318 = vector.broadcast %316 : vector<1x200xf32> to vector<32x200xf32>
    %319 = arith.mulf %317, %318 : vector<32x200xf32>
    %320 = arith.addf %314, %319 : vector<32x200xf32>
    %321 = vector.extract_strided_slice %0 {offsets = [0, 18], sizes = [32, 1], strides = [1, 1]} : vector<32x25xf32> to vector<32x1xf32>
    %322 = vector.extract_strided_slice %210 {offsets = [0, 51], sizes = [1, 200], strides = [1, 1]} : vector<1x272xf32> to vector<1x200xf32>
    %323 = vector.broadcast %321 : vector<32x1xf32> to vector<32x200xf32>
    %324 = vector.broadcast %322 : vector<1x200xf32> to vector<32x200xf32>
    %325 = arith.mulf %323, %324 : vector<32x200xf32>
    %326 = arith.addf %320, %325 : vector<32x200xf32>
    %327 = vector.extract_strided_slice %0 {offsets = [0, 19], sizes = [32, 1], strides = [1, 1]} : vector<32x25xf32> to vector<32x1xf32>
    %328 = vector.extract_strided_slice %210 {offsets = [0, 52], sizes = [1, 200], strides = [1, 1]} : vector<1x272xf32> to vector<1x200xf32>
    %329 = vector.broadcast %327 : vector<32x1xf32> to vector<32x200xf32>
    %330 = vector.broadcast %328 : vector<1x200xf32> to vector<32x200xf32>
    %331 = arith.mulf %329, %330 : vector<32x200xf32>
    %332 = arith.addf %326, %331 : vector<32x200xf32>
    %333 = vector.extract_strided_slice %0 {offsets = [0, 20], sizes = [32, 1], strides = [1, 1]} : vector<32x25xf32> to vector<32x1xf32>
    %334 = vector.extract_strided_slice %210 {offsets = [0, 64], sizes = [1, 200], strides = [1, 1]} : vector<1x272xf32> to vector<1x200xf32>
    %335 = vector.broadcast %333 : vector<32x1xf32> to vector<32x200xf32>
    %336 = vector.broadcast %334 : vector<1x200xf32> to vector<32x200xf32>
    %337 = arith.mulf %335, %336 : vector<32x200xf32>
    %338 = arith.addf %332, %337 : vector<32x200xf32>
    %339 = vector.extract_strided_slice %0 {offsets = [0, 21], sizes = [32, 1], strides = [1, 1]} : vector<32x25xf32> to vector<32x1xf32>
    %340 = vector.extract_strided_slice %210 {offsets = [0, 65], sizes = [1, 200], strides = [1, 1]} : vector<1x272xf32> to vector<1x200xf32>
    %341 = vector.broadcast %339 : vector<32x1xf32> to vector<32x200xf32>
    %342 = vector.broadcast %340 : vector<1x200xf32> to vector<32x200xf32>
    %343 = arith.mulf %341, %342 : vector<32x200xf32>
    %344 = arith.addf %338, %343 : vector<32x200xf32>
    %345 = vector.extract_strided_slice %0 {offsets = [0, 22], sizes = [32, 1], strides = [1, 1]} : vector<32x25xf32> to vector<32x1xf32>
    %346 = vector.extract_strided_slice %210 {offsets = [0, 66], sizes = [1, 200], strides = [1, 1]} : vector<1x272xf32> to vector<1x200xf32>
    %347 = vector.broadcast %345 : vector<32x1xf32> to vector<32x200xf32>
    %348 = vector.broadcast %346 : vector<1x200xf32> to vector<32x200xf32>
    %349 = arith.mulf %347, %348 : vector<32x200xf32>
    %350 = arith.addf %344, %349 : vector<32x200xf32>
    %351 = vector.extract_strided_slice %0 {offsets = [0, 23], sizes = [32, 1], strides = [1, 1]} : vector<32x25xf32> to vector<32x1xf32>
    %352 = vector.extract_strided_slice %210 {offsets = [0, 67], sizes = [1, 200], strides = [1, 1]} : vector<1x272xf32> to vector<1x200xf32>
    %353 = vector.broadcast %351 : vector<32x1xf32> to vector<32x200xf32>
    %354 = vector.broadcast %352 : vector<1x200xf32> to vector<32x200xf32>
    %355 = arith.mulf %353, %354 : vector<32x200xf32>
    %356 = arith.addf %350, %355 : vector<32x200xf32>
    %357 = vector.extract_strided_slice %0 {offsets = [0, 24], sizes = [32, 1], strides = [1, 1]} : vector<32x25xf32> to vector<32x1xf32>
    %358 = vector.extract_strided_slice %210 {offsets = [0, 68], sizes = [1, 200], strides = [1, 1]} : vector<1x272xf32> to vector<1x200xf32>
    %359 = vector.broadcast %357 : vector<32x1xf32> to vector<32x200xf32>
    %360 = vector.broadcast %358 : vector<1x200xf32> to vector<32x200xf32>
    %361 = arith.mulf %359, %360 : vector<32x200xf32>
    %362 = arith.addf %356, %361 : vector<32x200xf32>
    %cst_31 = arith.constant 0.00999999977 : f32
    %363 = vector.broadcast %cst_31 : f32 to vector<32x200xf32>
    %364 = arith.mulf %363, %362 : vector<32x200xf32>
    %365 = arith.maximumf %362, %364 : vector<32x200xf32>
    %366 = arith.truncf %365 : vector<32x200xf32> to vector<32x200xbf16>
    %367 = vector.extract_strided_slice %366 {offsets = [0, 0], sizes = [32, 128], strides = [1, 1]} : vector<32x200xbf16> to vector<32x128xbf16>
    %c0_32 = arith.constant 0 : index
    %c128_33 = arith.constant 128 : index
    %368 = vector.load %arg7[%c0_32, %c128_33] : memref<800x256xbf16, #tpu.memory_space<vmem>>, vector<32x128xbf16>
    tpu.vector_store %arg7[%c0_32, %c128_33], %367 {strides = array<i32>} : memref<800x256xbf16, #tpu.memory_space<vmem>>, vector<32x128xbf16>,
    %369 = vector.extract_strided_slice %366 {offsets = [0, 1], sizes = [32, 128], strides = [1, 1]} : vector<32x200xbf16> to vector<32x128xbf16>
    %c32_34 = arith.constant 32 : index
    %c128_35 = arith.constant 128 : index
    %370 = vector.load %arg7[%c32_34, %c128_35] : memref<800x256xbf16, #tpu.memory_space<vmem>>, vector<32x128xbf16>
    tpu.vector_store %arg7[%c32_34, %c128_35], %369 {strides = array<i32>} : memref<800x256xbf16, #tpu.memory_space<vmem>>, vector<32x128xbf16>,
    %371 = vector.extract_strided_slice %366 {offsets = [0, 2], sizes = [32, 128], strides = [1, 1]} : vector<32x200xbf16> to vector<32x128xbf16>
    %c64_36 = arith.constant 64 : index
    %c128_37 = arith.constant 128 : index
    %372 = vector.load %arg7[%c64_36, %c128_37] : memref<800x256xbf16, #tpu.memory_space<vmem>>, vector<32x128xbf16>
    tpu.vector_store %arg7[%c64_36, %c128_37], %371 {strides = array<i32>} : memref<800x256xbf16, #tpu.memory_space<vmem>>, vector<32x128xbf16>,
    %373 = vector.extract_strided_slice %366 {offsets = [0, 3], sizes = [32, 128], strides = [1, 1]} : vector<32x200xbf16> to vector<32x128xbf16>
    %c96_38 = arith.constant 96 : index
    %c128_39 = arith.constant 128 : index
    %374 = vector.load %arg7[%c96_38, %c128_39] : memref<800x256xbf16, #tpu.memory_space<vmem>>, vector<32x128xbf16>
    tpu.vector_store %arg7[%c96_38, %c128_39], %373 {strides = array<i32>} : memref<800x256xbf16, #tpu.memory_space<vmem>>, vector<32x128xbf16>,
    %375 = vector.extract_strided_slice %366 {offsets = [0, 4], sizes = [32, 128], strides = [1, 1]} : vector<32x200xbf16> to vector<32x128xbf16>
    %c128_40 = arith.constant 128 : index
    %c128_41 = arith.constant 128 : index
    %376 = vector.load %arg7[%c128_40, %c128_41] : memref<800x256xbf16, #tpu.memory_space<vmem>>, vector<32x128xbf16>
    tpu.vector_store %arg7[%c128_40, %c128_41], %375 {strides = array<i32>} : memref<800x256xbf16, #tpu.memory_space<vmem>>, vector<32x128xbf16>,
    %377 = vector.extract_strided_slice %366 {offsets = [0, 16], sizes = [32, 128], strides = [1, 1]} : vector<32x200xbf16> to vector<32x128xbf16>
    %c160_42 = arith.constant 160 : index
    %c128_43 = arith.constant 128 : index
    %378 = vector.load %arg7[%c160_42, %c128_43] : memref<800x256xbf16, #tpu.memory_space<vmem>>, vector<32x128xbf16>
    tpu.vector_store %arg7[%c160_42, %c128_43], %377 {strides = array<i32>} : memref<800x256xbf16, #tpu.memory_space<vmem>>, vector<32x128xbf16>,
    %379 = vector.extract_strided_slice %366 {offsets = [0, 17], sizes = [32, 128], strides = [1, 1]} : vector<32x200xbf16> to vector<32x128xbf16>
    %c192_44 = arith.constant 192 : index
    %c128_45 = arith.constant 128 : index
    %380 = vector.load %arg7[%c192_44, %c128_45] : memref<800x256xbf16, #tpu.memory_space<vmem>>, vector<32x128xbf16>
    tpu.vector_store %arg7[%c192_44, %c128_45], %379 {strides = array<i32>} : memref<800x256xbf16, #tpu.memory_space<vmem>>, vector<32x128xbf16>,
    %381 = vector.extract_strided_slice %366 {offsets = [0, 18], sizes = [32, 128], strides = [1, 1]} : vector<32x200xbf16> to vector<32x128xbf16>
    %c224_46 = arith.constant 224 : index
    %c128_47 = arith.constant 128 : index
    %382 = vector.load %arg7[%c224_46, %c128_47] : memref<800x256xbf16, #tpu.memory_space<vmem>>, vector<32x128xbf16>
    tpu.vector_store %arg7[%c224_46, %c128_47], %381 {strides = array<i32>} : memref<800x256xbf16, #tpu.memory_space<vmem>>, vector<32x128xbf16>,
    %383 = vector.extract_strided_slice %366 {offsets = [0, 19], sizes = [32, 128], strides = [1, 1]} : vector<32x200xbf16> to vector<32x128xbf16>
    %c256_48 = arith.constant 256 : index
    %c128_49 = arith.constant 128 : index
    %384 = vector.load %arg7[%c256_48, %c128_49] : memref<800x256xbf16, #tpu.memory_space<vmem>>, vector<32x128xbf16>
    tpu.vector_store %arg7[%c256_48, %c128_49], %383 {strides = array<i32>} : memref<800x256xbf16, #tpu.memory_space<vmem>>, vector<32x128xbf16>,
    %385 = vector.extract_strided_slice %366 {offsets = [0, 20], sizes = [32, 128], strides = [1, 1]} : vector<32x200xbf16> to vector<32x128xbf16>
    %c288_50 = arith.constant 288 : index
    %c128_51 = arith.constant 128 : index
    %386 = vector.load %arg7[%c288_50, %c128_51] : memref<800x256xbf16, #tpu.memory_space<vmem>>, vector<32x128xbf16>
    tpu.vector_store %arg7[%c288_50, %c128_51], %385 {strides = array<i32>} : memref<800x256xbf16, #tpu.memory_space<vmem>>, vector<32x128xbf16>,
    %387 = vector.extract_strided_slice %366 {offsets = [0, 32], sizes = [32, 128], strides = [1, 1]} : vector<32x200xbf16> to vector<32x128xbf16>
    %c320_52 = arith.constant 320 : index
    %c128_53 = arith.constant 128 : index
    %388 = vector.load %arg7[%c320_52, %c128_53] : memref<800x256xbf16, #tpu.memory_space<vmem>>, vector<32x128xbf16>
    tpu.vector_store %arg7[%c320_52, %c128_53], %387 {strides = array<i32>} : memref<800x256xbf16, #tpu.memory_space<vmem>>, vector<32x128xbf16>,
    %389 = vector.extract_strided_slice %366 {offsets = [0, 33], sizes = [32, 128], strides = [1, 1]} : vector<32x200xbf16> to vector<32x128xbf16>
    %c352_54 = arith.constant 352 : index
    %c128_55 = arith.constant 128 : index
    %390 = vector.load %arg7[%c352_54, %c128_55] : memref<800x256xbf16, #tpu.memory_space<vmem>>, vector<32x128xbf16>
    tpu.vector_store %arg7[%c352_54, %c128_55], %389 {strides = array<i32>} : memref<800x256xbf16, #tpu.memory_space<vmem>>, vector<32x128xbf16>,
    %391 = vector.extract_strided_slice %366 {offsets = [0, 34], sizes = [32, 128], strides = [1, 1]} : vector<32x200xbf16> to vector<32x128xbf16>
    %c384_56 = arith.constant 384 : index
    %c128_57 = arith.constant 128 : index
    %392 = vector.load %arg7[%c384_56, %c128_57] : memref<800x256xbf16, #tpu.memory_space<vmem>>, vector<32x128xbf16>
    tpu.vector_store %arg7[%c384_56, %c128_57], %391 {strides = array<i32>} : memref<800x256xbf16, #tpu.memory_space<vmem>>, vector<32x128xbf16>,
    %393 = vector.extract_strided_slice %366 {offsets = [0, 35], sizes = [32, 128], strides = [1, 1]} : vector<32x200xbf16> to vector<32x128xbf16>
    %c416_58 = arith.constant 416 : index
    %c128_59 = arith.constant 128 : index
    %394 = vector.load %arg7[%c416_58, %c128_59] : memref<800x256xbf16, #tpu.memory_space<vmem>>, vector<32x128xbf16>
    tpu.vector_store %arg7[%c416_58, %c128_59], %393 {strides = array<i32>} : memref<800x256xbf16, #tpu.memory_space<vmem>>, vector<32x128xbf16>,
    %395 = vector.extract_strided_slice %366 {offsets = [0, 36], sizes = [32, 128], strides = [1, 1]} : vector<32x200xbf16> to vector<32x128xbf16>
    %c448_60 = arith.constant 448 : index
    %c128_61 = arith.constant 128 : index
    %396 = vector.load %arg7[%c448_60, %c128_61] : memref<800x256xbf16, #tpu.memory_space<vmem>>, vector<32x128xbf16>
    tpu.vector_store %arg7[%c448_60, %c128_61], %395 {strides = array<i32>} : memref<800x256xbf16, #tpu.memory_space<vmem>>, vector<32x128xbf16>,
    %397 = vector.extract_strided_slice %366 {offsets = [0, 48], sizes = [32, 128], strides = [1, 1]} : vector<32x200xbf16> to vector<32x128xbf16>
    %c480_62 = arith.constant 480 : index
    %c128_63 = arith.constant 128 : index
    %398 = vector.load %arg7[%c480_62, %c128_63] : memref<800x256xbf16, #tpu.memory_space<vmem>>, vector<32x128xbf16>
    tpu.vector_store %arg7[%c480_62, %c128_63], %397 {strides = array<i32>} : memref<800x256xbf16, #tpu.memory_space<vmem>>, vector<32x128xbf16>,
    %399 = vector.extract_strided_slice %366 {offsets = [0, 49], sizes = [32, 128], strides = [1, 1]} : vector<32x200xbf16> to vector<32x128xbf16>
    %c512_64 = arith.constant 512 : index
    %c128_65 = arith.constant 128 : index
    %400 = vector.load %arg7[%c512_64, %c128_65] : memref<800x256xbf16, #tpu.memory_space<vmem>>, vector<32x128xbf16>
    tpu.vector_store %arg7[%c512_64, %c128_65], %399 {strides = array<i32>} : memref<800x256xbf16, #tpu.memory_space<vmem>>, vector<32x128xbf16>,
    %401 = vector.extract_strided_slice %366 {offsets = [0, 50], sizes = [32, 128], strides = [1, 1]} : vector<32x200xbf16> to vector<32x128xbf16>
    %c544_66 = arith.constant 544 : index
    %c128_67 = arith.constant 128 : index
    %402 = vector.load %arg7[%c544_66, %c128_67] : memref<800x256xbf16, #tpu.memory_space<vmem>>, vector<32x128xbf16>
    tpu.vector_store %arg7[%c544_66, %c128_67], %401 {strides = array<i32>} : memref<800x256xbf16, #tpu.memory_space<vmem>>, vector<32x128xbf16>,
    %403 = vector.extract_strided_slice %366 {offsets = [0, 51], sizes = [32, 128], strides = [1, 1]} : vector<32x200xbf16> to vector<32x128xbf16>
    %c576_68 = arith.constant 576 : index
    %c128_69 = arith.constant 128 : index
    %404 = vector.load %arg7[%c576_68, %c128_69] : memref<800x256xbf16, #tpu.memory_space<vmem>>, vector<32x128xbf16>
    tpu.vector_store %arg7[%c576_68, %c128_69], %403 {strides = array<i32>} : memref<800x256xbf16, #tpu.memory_space<vmem>>, vector<32x128xbf16>,
    %405 = vector.extract_strided_slice %366 {offsets = [0, 52], sizes = [32, 128], strides = [1, 1]} : vector<32x200xbf16> to vector<32x128xbf16>
    %c608_70 = arith.constant 608 : index
    %c128_71 = arith.constant 128 : index
    %406 = vector.load %arg7[%c608_70, %c128_71] : memref<800x256xbf16, #tpu.memory_space<vmem>>, vector<32x128xbf16>
    tpu.vector_store %arg7[%c608_70, %c128_71], %405 {strides = array<i32>} : memref<800x256xbf16, #tpu.memory_space<vmem>>, vector<32x128xbf16>,
    %407 = vector.extract_strided_slice %366 {offsets = [0, 64], sizes = [32, 128], strides = [1, 1]} : vector<32x200xbf16> to vector<32x128xbf16>
    %c640_72 = arith.constant 640 : index
    %c128_73 = arith.constant 128 : index
    %408 = vector.load %arg7[%c640_72, %c128_73] : memref<800x256xbf16, #tpu.memory_space<vmem>>, vector<32x128xbf16>
    tpu.vector_store %arg7[%c640_72, %c128_73], %407 {strides = array<i32>} : memref<800x256xbf16, #tpu.memory_space<vmem>>, vector<32x128xbf16>,
    %409 = vector.extract_strided_slice %366 {offsets = [0, 65], sizes = [32, 128], strides = [1, 1]} : vector<32x200xbf16> to vector<32x128xbf16>
    %c672_74 = arith.constant 672 : index
    %c128_75 = arith.constant 128 : index
    %410 = vector.load %arg7[%c672_74, %c128_75] : memref<800x256xbf16, #tpu.memory_space<vmem>>, vector<32x128xbf16>
    tpu.vector_store %arg7[%c672_74, %c128_75], %409 {strides = array<i32>} : memref<800x256xbf16, #tpu.memory_space<vmem>>, vector<32x128xbf16>,
    %411 = vector.extract_strided_slice %366 {offsets = [0, 66], sizes = [32, 128], strides = [1, 1]} : vector<32x200xbf16> to vector<32x128xbf16>
    %c704_76 = arith.constant 704 : index
    %c128_77 = arith.constant 128 : index
    %412 = vector.load %arg7[%c704_76, %c128_77] : memref<800x256xbf16, #tpu.memory_space<vmem>>, vector<32x128xbf16>
    tpu.vector_store %arg7[%c704_76, %c128_77], %411 {strides = array<i32>} : memref<800x256xbf16, #tpu.memory_space<vmem>>, vector<32x128xbf16>,
    %413 = vector.extract_strided_slice %366 {offsets = [0, 67], sizes = [32, 128], strides = [1, 1]} : vector<32x200xbf16> to vector<32x128xbf16>
    %c736_78 = arith.constant 736 : index
    %c128_79 = arith.constant 128 : index
    %414 = vector.load %arg7[%c736_78, %c128_79] : memref<800x256xbf16, #tpu.memory_space<vmem>>, vector<32x128xbf16>
    tpu.vector_store %arg7[%c736_78, %c128_79], %413 {strides = array<i32>} : memref<800x256xbf16, #tpu.memory_space<vmem>>, vector<32x128xbf16>,
    %415 = vector.extract_strided_slice %366 {offsets = [0, 68], sizes = [32, 128], strides = [1, 1]} : vector<32x200xbf16> to vector<32x128xbf16>
    %c768_80 = arith.constant 768 : index
    %c128_81 = arith.constant 128 : index
    %416 = vector.load %arg7[%c768_80, %c128_81] : memref<800x256xbf16, #tpu.memory_space<vmem>>, vector<32x128xbf16>
    tpu.vector_store %arg7[%c768_80, %c128_81], %415 {strides = array<i32>} : memref<800x256xbf16, #tpu.memory_space<vmem>>, vector<32x128xbf16>,
    %c0_82 = arith.constant 0 : index
    %c0_83 = arith.constant 0 : index
    %417 = vector.load %arg4[%c0_82, %c0_83] : memref<64x800xbf16, #tpu.memory_space<vmem>>, vector<64x800xbf16>
    %c0_84 = arith.constant 0 : index
    %c0_85 = arith.constant 0 : index
    %418 = vector.load %arg7[%c0_84, %c0_85] : memref<800x256xbf16, #tpu.memory_space<vmem>>, vector<800x256xbf16>
    %cst_86 = arith.constant dense<0.000000e+00> : vector<64x256xf32>
    %419 = tpu.matmul %417, %418, %cst_86 {dimension_numbers = #tpu.dot_dimension_numbers<[1], [0], [0], [1], [0, 0, 1, 1], [], []>} : vector<64x800xbf16>, vector<800x256xbf16>, vector<64x256xf32> -> vector<64x256xf32>
    %c0_87 = arith.constant 0 : index
    %c0_88 = arith.constant 0 : index
    %420 = vector.load %arg5[%c0_87, %c0_88] : memref<64x1xf32, #tpu.memory_space<vmem>>, vector<64x1xf32>
    %421 = vector.broadcast %420 : vector<64x1xf32> to vector<64x256xf32>
    %422 = arith.addf %419, %421 : vector<64x256xf32>
    %cst_89 = arith.constant 0.00999999977 : f32
    %423 = vector.broadcast %cst_89 : f32 to vector<64x256xf32>
    %424 = arith.mulf %423, %422 : vector<64x256xf32>
    %425 = arith.maximumf %422, %424 : vector<64x256xf32>
    %426 = vector.extract_strided_slice %425 {offsets = [0, 0], sizes = [64, 128], strides = [1, 1]} : vector<64x256xf32> to vector<64x128xf32>
    %c0_90 = arith.constant 0 : index
    %c0_91 = arith.constant 0 : index
    %427 = vector.load %arg6[%c0_90, %c0_91] : memref<128x128xf32, #tpu.memory_space<vmem>>, vector<64x128xf32>
    tpu.vector_store %arg6[%c0_90, %c0_91], %426 {strides = array<i32>} : memref<128x128xf32, #tpu.memory_space<vmem>>, vector<64x128xf32>,
    %428 = vector.extract_strided_slice %425 {offsets = [0, 128], sizes = [64, 128], strides = [1, 1]} : vector<64x256xf32> to vector<64x128xf32>
    %c64_92 = arith.constant 64 : index
    %c0_93 = arith.constant 0 : index
    %429 = vector.load %arg6[%c64_92, %c0_93] : memref<128x128xf32, #tpu.memory_space<vmem>>, vector<64x128xf32>
    tpu.vector_store %arg6[%c64_92, %c0_93], %428 {strides = array<i32>} : memref<128x128xf32, #tpu.memory_space<vmem>>, vector<64x128xf32>,
    return
  }
  func.func @transform_0(%arg0: i32) -> (i32, i32) {
    %c0_i32 = arith.constant 0 : i32
    %c0_i32_0 = arith.constant 0 : i32
    %c0_i32_1 = arith.constant 0 : i32
    return %c0_i32, %c0_i32_0 : i32, i32
  }
  func.func @transform_1(%arg0: i32) -> (i32, i32) {
    %c0_i32 = arith.constant 0 : i32
    %c0_i32_0 = arith.constant 0 : i32
    %c0_i32_1 = arith.constant 0 : i32
    return %c0_i32, %c0_i32_0 : i32, i32
  }
  func.func @transform_2(%arg0: i32) -> (i32, i32) {
    %c0_i32 = arith.constant 0 : i32
    %c0_i32_0 = arith.constant 0 : i32
    %c0_i32_1 = arith.constant 0 : i32
    return %c0_i32, %c0_i32_0 : i32, i32
  }
  func.func @transform_3(%arg0: i32) -> (i32, i32) {
    %c0_i32 = arith.constant 0 : i32
    %c0_i32_0 = arith.constant 0 : i32
    %c0_i32_1 = arith.constant 0 : i32
    return %c0_i32, %c0_i32_0 : i32, i32
  }
  func.func @transform_4(%arg0: i32) -> (i32, i32) {
    %c0_i32 = arith.constant 0 : i32
    %c0_i32_0 = arith.constant 0 : i32
    %c0_i32_1 = arith.constant 0 : i32
    return %c0_i32, %c0_i32_0 : i32, i32
  }
  func.func @transform_5(%arg0: i32) -> (i32, i32) {
    %c0_i32 = arith.constant 0 : i32
    %c0_i32_0 = arith.constant 0 : i32
    %c0_i32_1 = arith.constant 0 : i32
    return %c0_i32, %c0_i32_0 : i32, i32
  }
}

</mosaic_0001>

<bundles_post_ra>
// kernel: forward.1
= control target key start
LH: loop header
LB: loop body
LE: loop exit
PB: predicated region body
PF: predicated region fallthrough
CT: control target
= control target key end

     0   :  { %v9296_v0 = vmov 0   ;;  %v4929_v2 = vmov 1   ;;  %v4930_v7 = vmov 2   ;;  %v4931_v8 = vmov 3   ;;  %s4935_s7 = smov 127   ;;  %s4936_s8 = smov 126   ;;  %s9290_s2 = inlined_call_operand.vmem [shape: f32[32,1], index: 2, kind: input, shape index: {}]   ;;  %s9291_s1 = inlined_call_operand.vmem [shape: f32[32,25], index: 1, kind: input, shape index: {}]   ;;  %s9292_s0 = inlined_call_operand.vmem [shape: f32[2,272], index: 0, kind: input, shape index: {}]   ;;  %s9293_s3 = inlined_call_operand.vmem [shape: bf16[64,800], index: 3, kind: input, shape index: {}]   ;;  %s9294_s4 = inlined_call_operand.vmem [shape: f32[64,1], index: 4, kind: input, shape index: {}]   ;;  %s9295_s5 = inlined_call_operand.vmem [shape: f32[128,128], index: 5, kind: output, shape index: {}]  }
   0x1   :  { %4831 = vset.pattern.permute.xlu1 %v9296_v0  ;;  %v27_v1 = vld [vmem:[%s9290_s2 + $0x10] sm:$0xff]  ;;  %4832 = vset.pattern.permute.xlu0 %v4929_v2  ;;  %v5014_v3 = vld [vmem:[%s9291_s1] sm:$0xff]  ;;  %v28_v4 = vld [vmem:[%s9290_s2 + $0x18] sm:$0xff]  ;;  %v4932_v10 = vmov 4   ;;  %v4933_v11 = vmov 5   ;;  %v4934_v12 = vmov 6   ;;  %v71_v13 = vlaneseq }
   0x2   :  { %42 = vperm.xlu1 %4831, %v27_v1   ;;  %106 = vperm.xlu0 %4832, %v5014_v3   ;;  %v5023_v5 = vld [vmem:[%s9291_s1 + $0x18] sm:$0xff]  ;;  %v5028_v6 = vld [vmem:[%s9291_s1 + $0x8] sm:$0xff]  ;;  %v5039_v9 = vld [vmem:[%s9291_s1 + $0x10] sm:$0xff]  ;;  %s4937_s9 = smov 125   ;;  %s4938_s10 = smov 124   ;;  %vm153_vm0 = vcmask 1039360  }
   0x3   :  { %v5056_v14 = vshrl.u32 %v71_v13, 7  ;;  %v29_v17 = vld [vmem:[%s9292_s0] sm:$0x3f]  ;;  %s4939_s11 = smov 112   ;;  %s4941_s12 = smov 111   ;;  %vm222_vm1 = vcmask 1031168  }
   0x4   :  { %s4943_s13 = smov 110   ;;  %s4945_s14 = smov 109   ;;  %vm291_vm2 = vcmask 1022976   ;;  %vm360_vm3 = vcmask 1014784   ;;  %vm429_vm4 = vcmask 916480   ;;  %vm9642_vm5 = vcmask 908288  }
   0x5   :  { %9644 = vst [vmem:[#allocation3_spill] sm:$0xff] %v5056_v14  ;;  %v5059_v15 = vsub.s32 0, %v5056_v14  ;;  %v77_v16 = vsub.s32 2, %v5056_v14  ;;  %s4947_s15 = smov 108   ;;  %s4949_s16 = smov 96   ;;  %vm9641_vm6 = vcmask 900096  }
   0x6   :  { %47 = vperm.xlu1 %4831, %v28_v4   ;;  %118 = vperm.xlu0 %4832, %v5023_v5   ;;  %s4951_s17 = smov 95   ;;  %s4953_s18 = smov 94   ;;  %vm9640_vm7 = vcmask 891904   ;;  %vm705_vm8 = vcmask 883712   ;;  %vm9643_vm9 = vcmask 785408   ;;  %vm9569_vm10 = vcmask 777216  }
   0x7   :  { %v74_v18 = vrot.slane %v29_v17, %v5059_v15  ;;  %v78_v19 = vrot.slane %v29_v17, %v77_v16  ;;  %s4955_s19 = smov 93   ;;  %s4957_s20 = smov 92   ;;  %vm9570_vm11 = vcmask 769024   ;;  %vm9571_vm12 = vcmask 760832  }
   0x8   :  { %s4959_s27 = smov 80   ;;  %s4963_s30 = smov 78   ;;  %vm9572_vm13 = vcmask 752640   ;;  %vm9573_vm14 = vcmask 654336   ;;  %vm9576_vm15 = vcmask 646144  }
   0x9   :  { %v5069_v21 = vrot.slane %v74_v18, %v5059_v15  ;;  %v5072_v22 = vrot.slane %v78_v19, %v5059_v15  ;;  %s4965_s6 = smov 77   ;;  %s4967_s21 = smov 76  }
   0xa   :  { %57 = vperm.xlu1 %4831, %v5028_v6   ;;  %4835 = vset.pattern.permute.xlu0 %v4930_v7  ;;  %s4969_s24 = smov 64   ;;  %s4971_s25 = smov 63  }
   0xb   :  { %179 = vperm.xlu0 %4835, %v5028_v6   ;;  %s9543_s26 = smov 62   ;;  %s4975_s28 = smov 61  }
   0xe   :  { %67 = vperm.xlu1 %4831, %v5023_v5  }
   0xf   :  { %4836 = vset.pattern.permute.xlu0 %v4931_v8 }
  0x10   :  { %244 = vperm.xlu0 %4836, %v5014_v3  }
  0x12   :  { %4833 = vset.pattern.permute.xlu1 %v4929_v2 }
  0x13   :  { %110 = vperm.xlu1 %4833, %v5028_v6  }
  0x14   :  { %256 = vperm.xlu0 %4836, %v5023_v5  }
  0x17   :  { %114 = vperm.xlu1 %4833, %v5039_v9  }
  0x18   :  { %4839 = vset.pattern.permute.xlu0 %v4932_v10 }
  0x19   :  { %317 = vperm.xlu0 %4839, %v5028_v6  }
  0x1b   :  { %4834 = vset.pattern.permute.xlu1 %v4930_v7 }
  0x1c   :  { %175 = vperm.xlu1 %4834, %v5014_v3  }
  0x1d   :  { %4840 = vset.pattern.permute.xlu0 %v4933_v11 }
  0x1e   :  { %382 = vperm.xlu0 %4840, %v5014_v3  }
  0x20   :  { %183 = vperm.xlu1 %4834, %v5039_v9  }
  0x22   :  { %394 = vperm.xlu0 %4840, %v5023_v5  }
  0x24   :  { %187 = vperm.xlu1 %4834, %v5023_v5  }
  0x26   :  { %4843 = vset.pattern.permute.xlu0 %v4934_v12 }
  0x28   :  { %4837 = vset.pattern.permute.xlu1 %v4931_v8 }
  0x29   :  { %248 = vperm.xlu1 %4837, %v5028_v6  }
  0x2d   :  { %252 = vperm.xlu1 %4837, %v5039_v9  }
  0x31   :  { %4838 = vset.pattern.permute.xlu1 %v4932_v10 }
  0x32   :  { %313 = vperm.xlu1 %4838, %v5014_v3  }
  0x36   :  { %321 = vperm.xlu1 %4838, %v5039_v9  }
  0x3a   :  { %325 = vperm.xlu1 %4838, %v5023_v5  }
  0x3e   :  { %4841 = vset.pattern.permute.xlu1 %v4933_v11 }
  0x3f   :  { %386 = vperm.xlu1 %4841, %v5028_v6  }
  0x43   :  { %390 = vperm.xlu1 %4841, %v5039_v9  }
  0x47   :  { %4842 = vset.pattern.permute.xlu1 %v4934_v12 }
  0x81   :  { %v5066_v20 = vpop.permute.xlu1 %42  ;;  %v5074_v23 = vpop.permute.xlu0 %106 }
  0x82   :  { %9645 = vst [vmem:[#allocation4_spill] sm:$0xff] %v5074_v23  ;;  %v122_v24 = vmul.f32 %v5074_v23, %v5072_v22  ;;  %v121_v25 = vmul.f32 %v5074_v23, %v5069_v21 }
  0x84   :  { %139 = vrot.lane.b32.xlu0 %v122_v24, %s4935_s7  ;;  %137 = vrot.lane.b32.xlu1 %v121_v25, %s4935_s7 }
  0x85   :  { %v5080_v26 = vpop.permute.xlu1 %47  ;;  %v5102_v35 = vpop.permute.xlu0 %118 }
  0x86   :  { %9649 = vst [vmem:[#allocation8_spill] sm:$0xff] %v5102_v35  ;;  %v128_v36 = vmul.f32 %v5102_v35, %v5072_v22  ;;  %v127_v37 = vmul.f32 %v5102_v35, %v5069_v21 }
  0x89   :  { %v5084_v27 = vpop.permute.xlu1 %57 }
  0x8a   :  { %9646 = vst [vmem:[#allocation5_spill] sm:$0xff] %v5084_v27  ;;  %v5118_v41 = vpop.permute.xlu0 %179 }
  0x8b   :  { %9651 = vst [vmem:[#allocation10_spill] sm:$0xff] %v5118_v41  ;;  %v192_v42 = vmul.f32 %v5118_v41, %v5069_v21  ;;  %v193_v43 = vmul.f32 %v5118_v41, %v5072_v22 }
  0x8d   :  { %v5086_v28 = vpop.permute.xlu1 %67 }
  0x8f   :  { %v5142_v50 = vpop.permute.xlu0 %244 }
  0x90   :  { %9654 = vst [vmem:[#allocation13_spill] sm:$0xff] %v5142_v50  ;;  %v260_v51 = vmul.f32 %v5142_v50, %v5072_v22  ;;  %v259_v52 = vmul.f32 %v5142_v50, %v5069_v21 }
  0x92   :  { %v5088_v29 = vpop.permute.xlu1 %110 }
  0x93   :  { %9647 = vst [vmem:[#allocation6_spill] sm:$0xff] %v5088_v29  ;;  %v124_v30 = vmul.f32 %v5088_v29, %v5072_v22  ;;  %v123_v31 = vmul.f32 %v5088_v29, %v5069_v21  ;;  %v5166_v59 = vpop.permute.xlu0 %256 }
  0x94   :  { %9657 = vst [vmem:[#allocation16_spill] sm:$0xff] %v5166_v59  ;;  %v266_v60 = vmul.f32 %v5166_v59, %v5072_v22  ;;  %v265_v61 = vmul.f32 %v5166_v59, %v5069_v21 }
  0x95   :  { %143 = vrot.lane.b32.xlu0 %v124_v30, %s4935_s7  ;;  %141 = vrot.lane.b32.xlu1 %v123_v31, %s4935_s7 }
  0x96   :  { %v5096_v32 = vpop.permute.xlu1 %114 }
  0x97   :  { %9648 = vst [vmem:[#allocation7_spill] sm:$0xff] %v5096_v32  ;;  %v126_v33 = vmul.f32 %v5096_v32, %v5072_v22  ;;  %v125_v34 = vmul.f32 %v5096_v32, %v5069_v21 }
  0x98   :  { %v5182_v2 = vpop.permute.xlu0 %317 }
  0x99   :  { %147 = vrot.lane.b32.xlu0 %v126_v33, %s4935_s7  ;;  %145 = vrot.lane.b32.xlu1 %v125_v34, %s4935_s7  ;;  %9659 = vst [vmem:[#allocation18_spill] sm:$0xff] %v5182_v2  ;;  %v330_v4 = vmul.f32 %v5182_v2, %v5069_v21  ;;  %v331_v7 = vmul.f32 %v5182_v2, %v5072_v22 }
  0x9b   :  { %v5110_v38 = vpop.permute.xlu1 %175 }
  0x9c   :  { %9650 = vst [vmem:[#allocation9_spill] sm:$0xff] %v5110_v38  ;;  %v190_v39 = vmul.f32 %v5110_v38, %v5069_v21  ;;  %v191_v40 = vmul.f32 %v5110_v38, %v5072_v22 }
  0x9d   :  { %151 = vrot.lane.b32.xlu0 %v128_v36, %s4935_s7  ;;  %149 = vrot.lane.b32.xlu1 %v127_v37, %s4935_s7  ;;  %v5206_v17 = vpop.permute.xlu0 %382 }
  0x9e   :  { %9662 = vst [vmem:[#allocation21_spill] sm:$0xff] %v5206_v17  ;;  %v398_v18 = vmul.f32 %v5206_v17, %v5072_v22  ;;  %v397_v19 = vmul.f32 %v5206_v17, %v5069_v21 }
  0x9f   :  { %v5126_v44 = vpop.permute.xlu1 %183 }
  0xa0   :  { %9652 = vst [vmem:[#allocation11_spill] sm:$0xff] %v5126_v44  ;;  %v194_v45 = vmul.f32 %v5126_v44, %v5069_v21  ;;  %v195_v46 = vmul.f32 %v5126_v44, %v5072_v22 }
  0xa1   :  { %206 = vrot.lane.b32.xlu0 %v190_v39, %s4936_s8  ;;  %208 = vrot.lane.b32.xlu1 %v191_v40, %s4936_s8  ;;  %v5230_v36 = vpop.permute.xlu0 %394  ;;  %v4940_v40 = vmov 7  }
  0xa2   :  { %9665 = vst [vmem:[#allocation24_spill] sm:$0xff] %v5230_v36  ;;  %v404_v37 = vmul.f32 %v5230_v36, %v5072_v22  ;;  %v403_v39 = vmul.f32 %v5230_v36, %v5069_v21 }
  0xa3   :  { %v5134_v47 = vpop.permute.xlu1 %187 }
  0xa4   :  { %9653 = vst [vmem:[#allocation12_spill] sm:$0xff] %v5134_v47  ;;  %v196_v48 = vmul.f32 %v5134_v47, %v5069_v21  ;;  %v197_v49 = vmul.f32 %v5134_v47, %v5072_v22 }
  0xa5   :  { %210 = vrot.lane.b32.xlu0 %v192_v42, %s4936_s8  ;;  %212 = vrot.lane.b32.xlu1 %v193_v43, %s4936_s8 }
  0xa8   :  { %v5150_v53 = vpop.permute.xlu1 %248 }
  0xa9   :  { %214 = vrot.lane.b32.xlu0 %v194_v45, %s4936_s8  ;;  %216 = vrot.lane.b32.xlu1 %v195_v46, %s4936_s8  ;;  %9655 = vst [vmem:[#allocation14_spill] sm:$0xff] %v5150_v53  ;;  %v262_v54 = vmul.f32 %v5150_v53, %v5072_v22  ;;  %v261_v55 = vmul.f32 %v5150_v53, %v5069_v21 }
  0xac   :  { %v5158_v56 = vpop.permute.xlu1 %252 }
  0xad   :  { %218 = vrot.lane.b32.xlu0 %v196_v48, %s4936_s8  ;;  %220 = vrot.lane.b32.xlu1 %v197_v49, %s4936_s8  ;;  %9656 = vst [vmem:[#allocation15_spill] sm:$0xff] %v5158_v56  ;;  %v264_v57 = vmul.f32 %v5158_v56, %v5072_v22  ;;  %v263_v58 = vmul.f32 %v5158_v56, %v5069_v21 }
  0xb1   :  { %277 = vrot.lane.b32.xlu0 %v260_v51, %s4937_s9  ;;  %275 = vrot.lane.b32.xlu1 %v259_v52, %s4937_s9  ;;  %v5174_v62 = vpop.permute.xlu1 %313 }
  0xb2   :  { %9658 = vst [vmem:[#allocation17_spill] sm:$0xff] %v5174_v62  ;;  %v328_v63 = vmul.f32 %v5174_v62, %v5069_v21  ;;  %v329_v1 = vmul.f32 %v5174_v62, %v5072_v22 }
  0xb5   :  { %281 = vrot.lane.b32.xlu0 %v262_v54, %s4937_s9  ;;  %279 = vrot.lane.b32.xlu1 %v261_v55, %s4937_s9  ;;  %v5190_v8 = vpop.permute.xlu1 %321 }
  0xb6   :  { %9660 = vst [vmem:[#allocation19_spill] sm:$0xff] %v5190_v8  ;;  %v332_v10 = vmul.f32 %v5190_v8, %v5069_v21  ;;  %v333_v11 = vmul.f32 %v5190_v8, %v5072_v22 }
  0xb9   :  { %285 = vrot.lane.b32.xlu0 %v264_v57, %s4937_s9  ;;  %283 = vrot.lane.b32.xlu1 %v263_v58, %s4937_s9  ;;  %v5198_v12 = vpop.permute.xlu1 %325 }
  0xba   :  { %9661 = vst [vmem:[#allocation20_spill] sm:$0xff] %v5198_v12  ;;  %v334_v13 = vmul.f32 %v5198_v12, %v5069_v21  ;;  %v335_v16 = vmul.f32 %v5198_v12, %v5072_v22 }
  0xbd   :  { %289 = vrot.lane.b32.xlu0 %v266_v60, %s4937_s9  ;;  %287 = vrot.lane.b32.xlu1 %v265_v61, %s4937_s9 }
  0xbe   :  { %v5214_v24 = vpop.permute.xlu1 %386 }
  0xbf   :  { %9663 = vst [vmem:[#allocation22_spill] sm:$0xff] %v5214_v24  ;;  %v400_v25 = vmul.f32 %v5214_v24, %v5072_v22  ;;  %v399_v30 = vmul.f32 %v5214_v24, %v5069_v21 }
  0xc1   :  { %344 = vrot.lane.b32.xlu0 %v328_v63, %s4938_s10  ;;  %346 = vrot.lane.b32.xlu1 %v329_v1, %s4938_s10 }
  0xc2   :  { %v5222_v31 = vpop.permute.xlu1 %390 }
  0xc3   :  { %9664 = vst [vmem:[#allocation23_spill] sm:$0xff] %v5222_v31  ;;  %v402_v33 = vmul.f32 %v5222_v31, %v5072_v22  ;;  %v401_v34 = vmul.f32 %v5222_v31, %v5069_v21 }
  0xc5   :  { %348 = vrot.lane.b32.xlu0 %v330_v4, %s4938_s10  ;;  %350 = vrot.lane.b32.xlu1 %v331_v7, %s4938_s10 }
  0xc9   :  { %352 = vrot.lane.b32.xlu0 %v332_v10, %s4938_s10  ;;  %354 = vrot.lane.b32.xlu1 %v333_v11, %s4938_s10 }
  0xcd   :  { %356 = vrot.lane.b32.xlu0 %v334_v13, %s4938_s10  ;;  %358 = vrot.lane.b32.xlu1 %v335_v16, %s4938_s10 }
  0xd1   :  { %415 = vrot.lane.b32.xlu0 %v398_v18, %s4939_s11  ;;  %413 = vrot.lane.b32.xlu1 %v397_v19, %s4939_s11 }
  0xd5   :  { %419 = vrot.lane.b32.xlu0 %v400_v25, %s4939_s11  ;;  %417 = vrot.lane.b32.xlu1 %v399_v30, %s4939_s11 }
  0xd9   :  { %423 = vrot.lane.b32.xlu0 %v402_v33, %s4939_s11  ;;  %421 = vrot.lane.b32.xlu1 %v401_v34, %s4939_s11 }
  0xdd   :  { %427 = vrot.lane.b32.xlu0 %v404_v37, %s4939_s11  ;;  %425 = vrot.lane.b32.xlu1 %v403_v39, %s4939_s11 }
  0xe1   :  { %451 = vperm.xlu1 %4842, %v5014_v3   ;;  %455 = vperm.xlu0 %4843, %v5028_v6  }
  0xe5   :  { %459 = vperm.xlu1 %4842, %v5039_v9   ;;  %4844 = vset.pattern.permute.xlu0 %v4940_v40 }
  0xe9   :  { %463 = vperm.xlu1 %4842, %v5023_v5  }
  0xed   :  { %4845 = vset.pattern.permute.xlu1 %v4940_v40 }
  0xf6   :  { %v5244_v42 = vpop.permute.xlu0 %139  ;;  %v5246_v43 = vpop.permute.xlu1 %137 }
 0x107   :  { %v5248_v45 = vpop.permute.xlu0 %143  ;;  %v5250_v46 = vpop.permute.xlu1 %141 }
 0x10b   :  { %v5252_v48 = vpop.permute.xlu0 %147  ;;  %v5254_v49 = vpop.permute.xlu1 %145 }
 0x10f   :  { %v5256_v51 = vpop.permute.xlu0 %151  ;;  %v5258_v52 = vpop.permute.xlu1 %149 }
 0x113   :  { %v5260_v54 = vpop.permute.xlu0 %206  ;;  %v5262_v55 = vpop.permute.xlu1 %208 }
 0x117   :  { %v5264_v57 = vpop.permute.xlu0 %210  ;;  %v5266_v58 = vpop.permute.xlu1 %212 }
 0x11b   :  { %v5268_v60 = vpop.permute.xlu0 %214  ;;  %v5270_v61 = vpop.permute.xlu1 %216 }
 0x11f   :  { %v5272_v63 = vpop.permute.xlu0 %218  ;;  %v5274_v1 = vpop.permute.xlu1 %220 }
 0x123   :  { %v5276_v4 = vpop.permute.xlu0 %277  ;;  %v5278_v7 = vpop.permute.xlu1 %275 }
 0x127   :  { %v5280_v10 = vpop.permute.xlu0 %281  ;;  %v5282_v11 = vpop.permute.xlu1 %279 }
 0x12b   :  { %v5284_v13 = vpop.permute.xlu0 %285  ;;  %v5286_v16 = vpop.permute.xlu1 %283 }
 0x12f   :  { %v5288_v18 = vpop.permute.xlu0 %289  ;;  %v5290_v19 = vpop.permute.xlu1 %287 }
 0x133   :  { %v5292_v25 = vpop.permute.xlu0 %344  ;;  %v5294_v30 = vpop.permute.xlu1 %346 }
 0x137   :  { %v5296_v33 = vpop.permute.xlu0 %348  ;;  %v5298_v34 = vpop.permute.xlu1 %350 }
 0x13b   :  { %v5300_v37 = vpop.permute.xlu0 %352  ;;  %v5302_v39 = vpop.permute.xlu1 %354 }
 0x13f   :  { %v5304_v40 = vpop.permute.xlu0 %356  ;;  %v5306_v0 = vpop.permute.xlu1 %358 }
 0x140   :  { %9666 = vst [vmem:[#allocation25_spill] sm:$0xff] %v5304_v40 }
 0x143   :  { %v5308_v36 = vpop.permute.xlu0 %415  ;;  %v5310_v31 = vpop.permute.xlu1 %413 }
 0x147   :  { %v5312_v24 = vpop.permute.xlu0 %419  ;;  %v5314_v17 = vpop.permute.xlu1 %417 }
 0x14b   :  { %v5316_v12 = vpop.permute.xlu0 %423  ;;  %v5318_v8 = vpop.permute.xlu1 %421 }
 0x14c   :  { %9667 = vst [vmem:[#allocation26_spill] sm:$0xff] %v5316_v12  ;;  %9668 = vst [vmem:[#allocation27_spill] sm:$0xff] %v5318_v8 }
 0x14f   :  { %v5320_v2 = vpop.permute.xlu0 %427  ;;  %v5322_v62 = vpop.permute.xlu1 %425 }
 0x150   :  { %9669 = vst [vmem:[#allocation28_spill] sm:$0xff] %v5320_v2  ;;  %9670 = vst [vmem:[#allocation29_spill] sm:$0xff] %v5322_v62 }
 0x160   :  { %v5324_v59 = vpop.permute.xlu1 %451  ;;  %v5326_v56 = vpop.permute.xlu0 %455 }
 0x161   :  { %9671 = vst [vmem:[#allocation30_spill] sm:$0xff] %v5324_v59  ;;  %9672 = vst [vmem:[#allocation31_spill] sm:$0xff] %v5326_v56  ;;  %v467_v53 = vmul.f32 %v5324_v59, %v5072_v22  ;;  %v466_v50 = vmul.f32 %v5324_v59, %v5069_v21  ;;  %v469_v47 = vmul.f32 %v5326_v56, %v5072_v22 }
 0x162   :  { %v468_v44 = vmul.f32 %v5326_v56, %v5069_v21 }
 0x163   :  { %484 = vrot.lane.b32.xlu1 %v467_v53, %s4941_s12  ;;  %482 = vrot.lane.b32.xlu0 %v466_v50, %s4941_s12 }
 0x164   :  { %v5338_v41 = vpop.permute.xlu1 %459 }
 0x165   :  { %9673 = vst [vmem:[#allocation32_spill] sm:$0xff] %v5338_v41  ;;  %v471_v59 = vmul.f32 %v5338_v41, %v5072_v22  ;;  %v470_v53 = vmul.f32 %v5338_v41, %v5069_v21 }
 0x167   :  { %488 = vrot.lane.b32.xlu1 %v469_v47, %s4941_s12  ;;  %486 = vrot.lane.b32.xlu0 %v468_v44, %s4941_s12  ;;  %v4942_v44 = vmov 8  }
 0x168   :  { %v5346_v38 = vpop.permute.xlu1 %463 }
 0x169   :  { %9674 = vst [vmem:[#allocation33_spill] sm:$0xff] %v5346_v38  ;;  %v473_v50 = vmul.f32 %v5346_v38, %v5072_v22  ;;  %v472_v47 = vmul.f32 %v5346_v38, %v5069_v21 }
 0x16b   :  { %492 = vrot.lane.b32.xlu1 %v471_v59, %s4941_s12  ;;  %490 = vrot.lane.b32.xlu0 %v470_v53, %s4941_s12 }
 0x16f   :  { %496 = vrot.lane.b32.xlu1 %v473_v50, %s4941_s12  ;;  %494 = vrot.lane.b32.xlu0 %v472_v47, %s4941_s12 }
 0x173   :  { %524 = vperm.xlu1 %4845, %v5028_v6   ;;  %520 = vperm.xlu0 %4844, %v5014_v3  }
 0x177   :  { %528 = vperm.xlu1 %4845, %v5039_v9   ;;  %532 = vperm.xlu0 %4844, %v5023_v5  }
 0x17b   :  { %4846 = vset.pattern.permute.xlu1 %v4942_v44  ;;  %4847 = vset.pattern.permute.xlu0 %v4942_v44 }
 0x1d5   :  { %v5360_v59 = vpop.permute.xlu0 %482  ;;  %v5362_v53 = vpop.permute.xlu1 %484 }
 0x1d9   :  { %v5364_v38 = vpop.permute.xlu0 %486  ;;  %v5366_v50 = vpop.permute.xlu1 %488 }
 0x1dd   :  { %v5368_v47 = vpop.permute.xlu0 %490  ;;  %v5370_v41 = vpop.permute.xlu1 %492 }
 0x1de   :  { %9675 = vst [vmem:[#allocation34_spill] sm:$0xff] %v5368_v47  ;;  %9676 = vst [vmem:[#allocation35_spill] sm:$0xff] %v5370_v41 }
 0x1e1   :  { %v5372_v56 = vpop.permute.xlu0 %494  ;;  %v5374_v35 = vpop.permute.xlu1 %496 }
 0x1e2   :  { %9677 = vst [vmem:[#allocation36_spill] sm:$0xff] %v5372_v56  ;;  %9678 = vst [vmem:[#allocation37_spill] sm:$0xff] %v5374_v35 }
 0x1f2   :  { %v5376_v32 = vpop.permute.xlu0 %520  ;;  %v5378_v29 = vpop.permute.xlu1 %524 }
 0x1f3   :  { %9679 = vst [vmem:[#allocation38_spill] sm:$0xff] %v5376_v32  ;;  %9680 = vst [vmem:[#allocation39_spill] sm:$0xff] %v5378_v29  ;;  %v536_v44 = vmul.f32 %v5376_v32, %v5072_v22  ;;  %v535_v23 = vmul.f32 %v5376_v32, %v5069_v21  ;;  %v538_v56 = vmul.f32 %v5378_v29, %v5072_v22 }
 0x1f4   :  { %v537_v35 = vmul.f32 %v5378_v29, %v5069_v21 }
 0x1f5   :  { %553 = vrot.lane.b32.xlu0 %v536_v44, %s4943_s13  ;;  %551 = vrot.lane.b32.xlu1 %v535_v23, %s4943_s13 }
 0x1f6   :  { %v5390_v47 = vpop.permute.xlu1 %528  ;;  %v5398_v41 = vpop.permute.xlu0 %532 }
 0x1f7   :  { %9681 = vst [vmem:[#allocation40_spill] sm:$0xff] %v5390_v47  ;;  %v540_v32 = vmul.f32 %v5390_v47, %v5072_v22  ;;  %v539_v44 = vmul.f32 %v5390_v47, %v5069_v21  ;;  %9682 = vst [vmem:[#allocation41_spill] sm:$0xff] %v5398_v41  ;;  %v542_v23 = vmul.f32 %v5398_v41, %v5072_v22 }
 0x1f9   :  { %557 = vrot.lane.b32.xlu0 %v538_v56, %s4943_s13  ;;  %555 = vrot.lane.b32.xlu1 %v537_v35, %s4943_s13  ;;  %v541_v56 = vmul.f32 %v5398_v41, %v5069_v21 }
 0x1fd   :  { %561 = vrot.lane.b32.xlu0 %v540_v32, %s4943_s13  ;;  %559 = vrot.lane.b32.xlu1 %v539_v44, %s4943_s13  ;;  %v4944_v32 = vmov 9  }
 0x201   :  { %565 = vrot.lane.b32.xlu0 %v542_v23, %s4943_s13  ;;  %563 = vrot.lane.b32.xlu1 %v541_v56, %s4943_s13 }
 0x205   :  { %589 = vperm.xlu1 %4846, %v5014_v3   ;;  %593 = vperm.xlu0 %4847, %v5028_v6  }
 0x209   :  { %597 = vperm.xlu1 %4846, %v5039_v9   ;;  %4848 = vset.pattern.permute.xlu0 %v4944_v32 }
 0x20d   :  { %601 = vperm.xlu1 %4846, %v5023_v5  }
 0x211   :  { %4849 = vset.pattern.permute.xlu1 %v4944_v32 }
 0x267   :  { %v5412_v35 = vpop.permute.xlu0 %553  ;;  %v5414_v44 = vpop.permute.xlu1 %551 }
 0x26b   :  { %v5416_v41 = vpop.permute.xlu0 %557  ;;  %v5418_v23 = vpop.permute.xlu1 %555 }
 0x26c   :  { %9683 = vst [vmem:[#allocation42_spill] sm:$0xff] %v5416_v41  ;;  %9684 = vst [vmem:[#allocation43_spill] sm:$0xff] %v5418_v23 }
 0x26f   :  { %v5420_v56 = vpop.permute.xlu0 %561  ;;  %v5422_v47 = vpop.permute.xlu1 %559 }
 0x270   :  { %9685 = vst [vmem:[#allocation44_spill] sm:$0xff] %v5420_v56  ;;  %9686 = vst [vmem:[#allocation45_spill] sm:$0xff] %v5422_v47 }
 0x273   :  { %v5424_v29 = vpop.permute.xlu0 %565  ;;  %v5426_v62 = vpop.permute.xlu1 %563 }
 0x274   :  { %9687 = vst [vmem:[#allocation46_spill] sm:$0xff] %v5424_v29  ;;  %9688 = vst [vmem:[#allocation47_spill] sm:$0xff] %v5426_v62 }
 0x284   :  { %v5428_v2 = vpop.permute.xlu1 %589  ;;  %v5430_v8 = vpop.permute.xlu0 %593 }
 0x285   :  { %9689 = vst [vmem:[#allocation48_spill] sm:$0xff] %v5428_v2  ;;  %9690 = vst [vmem:[#allocation49_spill] sm:$0xff] %v5430_v8  ;;  %v605_v32 = vmul.f32 %v5428_v2, %v5072_v22  ;;  %v604_v41 = vmul.f32 %v5428_v2, %v5069_v21  ;;  %v607_v29 = vmul.f32 %v5430_v8, %v5072_v22 }
 0x286   :  { %v606_v62 = vmul.f32 %v5430_v8, %v5069_v21 }
 0x287   :  { %622 = vrot.lane.b32.xlu1 %v605_v32, %s4945_s14  ;;  %620 = vrot.lane.b32.xlu0 %v604_v41, %s4945_s14 }
 0x288   :  { %v5442_v47 = vpop.permute.xlu1 %597 }
 0x289   :  { %9691 = vst [vmem:[#allocation50_spill] sm:$0xff] %v5442_v47  ;;  %v609_v2 = vmul.f32 %v5442_v47, %v5072_v22  ;;  %v608_v32 = vmul.f32 %v5442_v47, %v5069_v21 }
 0x28b   :  { %626 = vrot.lane.b32.xlu1 %v607_v29, %s4945_s14  ;;  %624 = vrot.lane.b32.xlu0 %v606_v62, %s4945_s14  ;;  %v4946_v62 = vmov 10  }
 0x28c   :  { %v5450_v56 = vpop.permute.xlu1 %601 }
 0x28d   :  { %9692 = vst [vmem:[#allocation51_spill] sm:$0xff] %v5450_v56  ;;  %v611_v41 = vmul.f32 %v5450_v56, %v5072_v22  ;;  %v610_v29 = vmul.f32 %v5450_v56, %v5069_v21 }
 0x28f   :  { %630 = vrot.lane.b32.xlu1 %v609_v2, %s4945_s14  ;;  %628 = vrot.lane.b32.xlu0 %v608_v32, %s4945_s14 }
 0x293   :  { %634 = vrot.lane.b32.xlu1 %v611_v41, %s4945_s14  ;;  %632 = vrot.lane.b32.xlu0 %v610_v29, %s4945_s14 }
 0x297   :  { %662 = vperm.xlu1 %4849, %v5028_v6   ;;  %658 = vperm.xlu0 %4848, %v5014_v3  }
 0x29b   :  { %666 = vperm.xlu1 %4849, %v5039_v9   ;;  %670 = vperm.xlu0 %4848, %v5023_v5  }
 0x29f   :  { %4850 = vset.pattern.permute.xlu1 %v4946_v62  ;;  %4851 = vset.pattern.permute.xlu0 %v4946_v62 }
 0x2f9   :  { %v5464_v2 = vpop.permute.xlu0 %620  ;;  %v5466_v32 = vpop.permute.xlu1 %622 }
 0x2fa   :  { %9693 = vst [vmem:[#allocation52_spill] sm:$0xff] %v5464_v2  ;;  %9694 = vst [vmem:[#allocation53_spill] sm:$0xff] %v5466_v32 }
 0x2fd   :  { %v5468_v56 = vpop.permute.xlu0 %624  ;;  %v5470_v41 = vpop.permute.xlu1 %626 }
 0x2fe   :  { %9695 = vst [vmem:[#allocation54_spill] sm:$0xff] %v5468_v56  ;;  %9696 = vst [vmem:[#allocation55_spill] sm:$0xff] %v5470_v41 }
 0x301   :  { %v5472_v29 = vpop.permute.xlu0 %628  ;;  %v5474_v47 = vpop.permute.xlu1 %630 }
 0x302   :  { %9697 = vst [vmem:[#allocation56_spill] sm:$0xff] %v5472_v29  ;;  %9698 = vst [vmem:[#allocation57_spill] sm:$0xff] %v5474_v47 }
 0x305   :  { %v5476_v8 = vpop.permute.xlu0 %632  ;;  %v5478_v23 = vpop.permute.xlu1 %634 }
 0x306   :  { %9699 = vst [vmem:[#allocation58_spill] sm:$0xff] %v5476_v8  ;;  %9700 = vst [vmem:[#allocation59_spill] sm:$0xff] %v5478_v23 }
 0x316   :  { %v5480_v12 = vpop.permute.xlu0 %658  ;;  %v5482_v40 = vpop.permute.xlu1 %662 }
 0x317   :  { %9701 = vst [vmem:[#allocation60_spill] sm:$0xff] %v5480_v12  ;;  %9702 = vst [vmem:[#allocation61_spill] sm:$0xff] %v5482_v40  ;;  %v674_v62 = vmul.f32 %v5480_v12, %v5072_v22  ;;  %v673_v56 = vmul.f32 %v5480_v12, %v5069_v21  ;;  %v676_v8 = vmul.f32 %v5482_v40, %v5072_v22 }
 0x318   :  { %v675_v23 = vmul.f32 %v5482_v40, %v5069_v21 }
 0x319   :  { %691 = vrot.lane.b32.xlu0 %v674_v62, %s4947_s15  ;;  %689 = vrot.lane.b32.xlu1 %v673_v56, %s4947_s15 }
 0x31a   :  { %v5494_v29 = vpop.permute.xlu1 %666  ;;  %v5502_v47 = vpop.permute.xlu0 %670 }
 0x31b   :  { %9703 = vst [vmem:[#allocation62_spill] sm:$0xff] %v5494_v29  ;;  %v678_v12 = vmul.f32 %v5494_v29, %v5072_v22  ;;  %v677_v62 = vmul.f32 %v5494_v29, %v5069_v21  ;;  %9704 = vst [vmem:[#allocation63_spill] sm:$0xff] %v5502_v47  ;;  %v680_v56 = vmul.f32 %v5502_v47, %v5072_v22 }
 0x31d   :  { %695 = vrot.lane.b32.xlu0 %v676_v8, %s4947_s15  ;;  %693 = vrot.lane.b32.xlu1 %v675_v23, %s4947_s15  ;;  %v679_v8 = vmul.f32 %v5502_v47, %v5069_v21 }
 0x321   :  { %699 = vrot.lane.b32.xlu0 %v678_v12, %s4947_s15  ;;  %697 = vrot.lane.b32.xlu1 %v677_v62, %s4947_s15  ;;  %v4948_v12 = vmov 11  }
 0x325   :  { %703 = vrot.lane.b32.xlu0 %v680_v56, %s4947_s15  ;;  %701 = vrot.lane.b32.xlu1 %v679_v8, %s4947_s15 }
 0x329   :  { %727 = vperm.xlu1 %4850, %v5014_v3   ;;  %731 = vperm.xlu0 %4851, %v5028_v6  }
 0x32d   :  { %735 = vperm.xlu1 %4850, %v5039_v9   ;;  %4852 = vset.pattern.permute.xlu0 %v4948_v12 }
 0x331   :  { %739 = vperm.xlu1 %4850, %v5023_v5  }
 0x335   :  { %4853 = vset.pattern.permute.xlu1 %v4948_v12 }
 0x38b   :  { %v5516_v23 = vpop.permute.xlu0 %691  ;;  %v5518_v62 = vpop.permute.xlu1 %689 }
 0x38c   :  { %9705 = vst [vmem:[#allocation64_spill] sm:$0xff] %v5516_v23  ;;  %9706 = vst [vmem:[#allocation65_spill] sm:$0xff] %v5518_v62 }
 0x38f   :  { %v5520_v47 = vpop.permute.xlu0 %695  ;;  %v5522_v56 = vpop.permute.xlu1 %693 }
 0x390   :  { %9707 = vst [vmem:[#allocation66_spill] sm:$0xff] %v5520_v47  ;;  %9708 = vst [vmem:[#allocation67_spill] sm:$0xff] %v5522_v56 }
 0x393   :  { %v5524_v8 = vpop.permute.xlu0 %699  ;;  %v5526_v29 = vpop.permute.xlu1 %697 }
 0x394   :  { %9709 = vst [vmem:[#allocation68_spill] sm:$0xff] %v5524_v8  ;;  %9710 = vst [vmem:[#allocation69_spill] sm:$0xff] %v5526_v29 }
 0x397   :  { %v5528_v40 = vpop.permute.xlu0 %703  ;;  %v5530_v41 = vpop.permute.xlu1 %701 }
 0x398   :  { %9711 = vst [vmem:[#allocation70_spill] sm:$0xff] %v5528_v40  ;;  %9712 = vst [vmem:[#allocation71_spill] sm:$0xff] %v5530_v41 }
 0x3a8   :  { %v5532_v2 = vpop.permute.xlu1 %727  ;;  %v5534_v32 = vpop.permute.xlu0 %731 }
 0x3a9   :  { %9713 = vst [vmem:[#allocation72_spill] sm:$0xff] %v5532_v2  ;;  %9714 = vst [vmem:[#allocation73_spill] sm:$0xff] %v5534_v32  ;;  %v743_v12 = vmul.f32 %v5532_v2, %v5072_v22  ;;  %v742_v47 = vmul.f32 %v5532_v2, %v5069_v21  ;;  %v745_v40 = vmul.f32 %v5534_v32, %v5072_v22 }
 0x3aa   :  { %v744_v41 = vmul.f32 %v5534_v32, %v5069_v21 }
 0x3ab   :  { %760 = vrot.lane.b32.xlu1 %v743_v12, %s4949_s16  ;;  %758 = vrot.lane.b32.xlu0 %v742_v47, %s4949_s16 }
 0x3ac   :  { %v5546_v29 = vpop.permute.xlu1 %735 }
 0x3ad   :  { %9715 = vst [vmem:[#allocation74_spill] sm:$0xff] %v5546_v29  ;;  %v747_v2 = vmul.f32 %v5546_v29, %v5072_v22  ;;  %v746_v12 = vmul.f32 %v5546_v29, %v5069_v21 }
 0x3af   :  { %764 = vrot.lane.b32.xlu1 %v745_v40, %s4949_s16  ;;  %762 = vrot.lane.b32.xlu0 %v744_v41, %s4949_s16 }
 0x3b0   :  { %v5554_v8 = vpop.permute.xlu1 %739 }
 0x3b1   :  { %9716 = vst [vmem:[#allocation75_spill] sm:$0xff] %v5554_v8  ;;  %v749_v47 = vmul.f32 %v5554_v8, %v5072_v22  ;;  %v748_v40 = vmul.f32 %v5554_v8, %v5069_v21 }
 0x3b3   :  { %768 = vrot.lane.b32.xlu1 %v747_v2, %s4949_s16  ;;  %766 = vrot.lane.b32.xlu0 %v746_v12, %s4949_s16  ;;  %v4950_v2 = vmov 12  }
 0x3b7   :  { %772 = vrot.lane.b32.xlu1 %v749_v47, %s4949_s16  ;;  %770 = vrot.lane.b32.xlu0 %v748_v40, %s4949_s16 }
 0x3bb   :  { %800 = vperm.xlu1 %4853, %v5028_v6   ;;  %796 = vperm.xlu0 %4852, %v5014_v3  }
 0x3bf   :  { %804 = vperm.xlu1 %4853, %v5039_v9   ;;  %808 = vperm.xlu0 %4852, %v5023_v5  }
 0x3c3   :  { %4854 = vset.pattern.permute.xlu1 %v4950_v2  ;;  %4855 = vset.pattern.permute.xlu0 %v4950_v2 }
 0x41d   :  { %v5568_v41 = vpop.permute.xlu0 %758  ;;  %v5570_v12 = vpop.permute.xlu1 %760 }
 0x41e   :  { %9717 = vst [vmem:[#allocation76_spill] sm:$0xff] %v5568_v41  ;;  %9718 = vst [vmem:[#allocation77_spill] sm:$0xff] %v5570_v12 }
 0x421   :  { %v5572_v8 = vpop.permute.xlu0 %762  ;;  %v5574_v47 = vpop.permute.xlu1 %764 }
 0x422   :  { %9719 = vst [vmem:[#allocation78_spill] sm:$0xff] %v5572_v8  ;;  %9720 = vst [vmem:[#allocation79_spill] sm:$0xff] %v5574_v47 }
 0x425   :  { %v5576_v40 = vpop.permute.xlu0 %766  ;;  %v5578_v29 = vpop.permute.xlu1 %768 }
 0x426   :  { %9721 = vst [vmem:[#allocation80_spill] sm:$0xff] %v5576_v40  ;;  %9722 = vst [vmem:[#allocation81_spill] sm:$0xff] %v5578_v29 }
 0x429   :  { %v5580_v32 = vpop.permute.xlu0 %770  ;;  %v5582_v56 = vpop.permute.xlu1 %772 }
 0x42a   :  { %9723 = vst [vmem:[#allocation82_spill] sm:$0xff] %v5580_v32  ;;  %9724 = vst [vmem:[#allocation83_spill] sm:$0xff] %v5582_v56 }
 0x43a   :  { %v5584_v62 = vpop.permute.xlu0 %796  ;;  %v5586_v23 = vpop.permute.xlu1 %800 }
 0x43b   :  { %9725 = vst [vmem:[#allocation84_spill] sm:$0xff] %v5584_v62  ;;  %9726 = vst [vmem:[#allocation85_spill] sm:$0xff] %v5586_v23  ;;  %v812_v2 = vmul.f32 %v5584_v62, %v5072_v22  ;;  %v811_v8 = vmul.f32 %v5584_v62, %v5069_v21  ;;  %v814_v32 = vmul.f32 %v5586_v23, %v5072_v22 }
 0x43c   :  { %v813_v56 = vmul.f32 %v5586_v23, %v5069_v21 }
 0x43d   :  { %829 = vrot.lane.b32.xlu0 %v812_v2, %s4951_s17  ;;  %827 = vrot.lane.b32.xlu1 %v811_v8, %s4951_s17 }
 0x43e   :  { %v5598_v40 = vpop.permute.xlu1 %804  ;;  %v5606_v29 = vpop.permute.xlu0 %808 }
 0x43f   :  { %9727 = vst [vmem:[#allocation86_spill] sm:$0xff] %v5598_v40  ;;  %v816_v62 = vmul.f32 %v5598_v40, %v5072_v22  ;;  %v815_v2 = vmul.f32 %v5598_v40, %v5069_v21  ;;  %9728 = vst [vmem:[#allocation87_spill] sm:$0xff] %v5606_v29  ;;  %v818_v8 = vmul.f32 %v5606_v29, %v5072_v22 }
 0x441   :  { %833 = vrot.lane.b32.xlu0 %v814_v32, %s4951_s17  ;;  %831 = vrot.lane.b32.xlu1 %v813_v56, %s4951_s17  ;;  %v817_v32 = vmul.f32 %v5606_v29, %v5069_v21 }
 0x445   :  { %837 = vrot.lane.b32.xlu0 %v816_v62, %s4951_s17  ;;  %835 = vrot.lane.b32.xlu1 %v815_v2, %s4951_s17  ;;  %v4952_v62 = vmov 13  }
 0x449   :  { %841 = vrot.lane.b32.xlu0 %v818_v8, %s4951_s17  ;;  %839 = vrot.lane.b32.xlu1 %v817_v32, %s4951_s17 }
 0x44d   :  { %865 = vperm.xlu1 %4854, %v5014_v3   ;;  %869 = vperm.xlu0 %4855, %v5028_v6  }
 0x451   :  { %873 = vperm.xlu1 %4854, %v5039_v9   ;;  %4856 = vset.pattern.permute.xlu0 %v4952_v62 }
 0x455   :  { %877 = vperm.xlu1 %4854, %v5023_v5  }
 0x459   :  { %4857 = vset.pattern.permute.xlu1 %v4952_v62 }
 0x4af   :  { %v5620_v56 = vpop.permute.xlu0 %829  ;;  %v5622_v2 = vpop.permute.xlu1 %827 }
 0x4b0   :  { %9729 = vst [vmem:[#allocation88_spill] sm:$0xff] %v5620_v56  ;;  %9730 = vst [vmem:[#allocation89_spill] sm:$0xff] %v5622_v2 }
 0x4b3   :  { %v5624_v29 = vpop.permute.xlu0 %833  ;;  %v5626_v8 = vpop.permute.xlu1 %831 }
 0x4b4   :  { %9731 = vst [vmem:[#allocation90_spill] sm:$0xff] %v5624_v29  ;;  %9732 = vst [vmem:[#allocation91_spill] sm:$0xff] %v5626_v8 }
 0x4b7   :  { %v5628_v32 = vpop.permute.xlu0 %837  ;;  %v5630_v40 = vpop.permute.xlu1 %835 }
 0x4b8   :  { %9733 = vst [vmem:[#allocation92_spill] sm:$0xff] %v5628_v32  ;;  %9734 = vst [vmem:[#allocation93_spill] sm:$0xff] %v5630_v40 }
 0x4bb   :  { %v5632_v23 = vpop.permute.xlu0 %841  ;;  %v5634_v47 = vpop.permute.xlu1 %839 }
 0x4bc   :  { %9735 = vst [vmem:[#allocation94_spill] sm:$0xff] %v5632_v23  ;;  %9736 = vst [vmem:[#allocation95_spill] sm:$0xff] %v5634_v47 }
 0x4cc   :  { %v5636_v41 = vpop.permute.xlu1 %865  ;;  %v5638_v12 = vpop.permute.xlu0 %869 }
 0x4cd   :  { %9737 = vst [vmem:[#allocation96_spill] sm:$0xff] %v5636_v41  ;;  %9738 = vst [vmem:[#allocation97_spill] sm:$0xff] %v5638_v12  ;;  %v881_v62 = vmul.f32 %v5636_v41, %v5072_v22  ;;  %v880_v29 = vmul.f32 %v5636_v41, %v5069_v21  ;;  %v883_v23 = vmul.f32 %v5638_v12, %v5072_v22 }
 0x4ce   :  { %v882_v47 = vmul.f32 %v5638_v12, %v5069_v21 }
 0x4cf   :  { %898 = vrot.lane.b32.xlu1 %v881_v62, %s4953_s18  ;;  %896 = vrot.lane.b32.xlu0 %v880_v29, %s4953_s18 }
 0x4d0   :  { %v5650_v40 = vpop.permute.xlu1 %873 }
 0x4d1   :  { %9739 = vst [vmem:[#allocation98_spill] sm:$0xff] %v5650_v40  ;;  %v885_v41 = vmul.f32 %v5650_v40, %v5072_v22  ;;  %v884_v62 = vmul.f32 %v5650_v40, %v5069_v21 }
 0x4d3   :  { %902 = vrot.lane.b32.xlu1 %v883_v23, %s4953_s18  ;;  %900 = vrot.lane.b32.xlu0 %v882_v47, %s4953_s18 }
 0x4d4   :  { %v5658_v32 = vpop.permute.xlu1 %877 }
 0x4d5   :  { %9740 = vst [vmem:[#allocation99_spill] sm:$0xff] %v5658_v32  ;;  %v887_v29 = vmul.f32 %v5658_v32, %v5072_v22  ;;  %v886_v23 = vmul.f32 %v5658_v32, %v5069_v21 }
 0x4d7   :  { %906 = vrot.lane.b32.xlu1 %v885_v41, %s4953_s18  ;;  %904 = vrot.lane.b32.xlu0 %v884_v62, %s4953_s18  ;;  %v4954_v41 = vmov 14  }
 0x4db   :  { %910 = vrot.lane.b32.xlu1 %v887_v29, %s4953_s18  ;;  %908 = vrot.lane.b32.xlu0 %v886_v23, %s4953_s18 }
 0x4df   :  { %938 = vperm.xlu1 %4857, %v5028_v6   ;;  %934 = vperm.xlu0 %4856, %v5014_v3  }
 0x4e3   :  { %942 = vperm.xlu1 %4857, %v5039_v9   ;;  %946 = vperm.xlu0 %4856, %v5023_v5  }
 0x4e7   :  { %4858 = vset.pattern.permute.xlu1 %v4954_v41  ;;  %4859 = vset.pattern.permute.xlu0 %v4954_v41 }
 0x541   :  { %v5672_v47 = vpop.permute.xlu0 %896  ;;  %v5674_v62 = vpop.permute.xlu1 %898 }
 0x542   :  { %9741 = vst [vmem:[#allocation100_spill] sm:$0xff] %v5672_v47  ;;  %9742 = vst [vmem:[#allocation101_spill] sm:$0xff] %v5674_v62 }
 0x545   :  { %v5676_v32 = vpop.permute.xlu0 %900  ;;  %v5678_v29 = vpop.permute.xlu1 %902 }
 0x546   :  { %9743 = vst [vmem:[#allocation102_spill] sm:$0xff] %v5676_v32  ;;  %9744 = vst [vmem:[#allocation103_spill] sm:$0xff] %v5678_v29 }
 0x549   :  { %v5680_v23 = vpop.permute.xlu0 %904  ;;  %v5682_v40 = vpop.permute.xlu1 %906 }
 0x54a   :  { %9745 = vst [vmem:[#allocation104_spill] sm:$0xff] %v5680_v23  ;;  %9746 = vst [vmem:[#allocation105_spill] sm:$0xff] %v5682_v40 }
 0x54d   :  { %v5684_v12 = vpop.permute.xlu0 %908  ;;  %v5686_v8 = vpop.permute.xlu1 %910 }
 0x54e   :  { %9747 = vst [vmem:[#allocation106_spill] sm:$0xff] %v5684_v12  ;;  %9748 = vst [vmem:[#allocation107_spill] sm:$0xff] %v5686_v8 }
 0x55e   :  { %v5688_v2 = vpop.permute.xlu0 %934  ;;  %v5690_v56 = vpop.permute.xlu1 %938 }
 0x55f   :  { %9749 = vst [vmem:[#allocation108_spill] sm:$0xff] %v5688_v2  ;;  %9750 = vst [vmem:[#allocation109_spill] sm:$0xff] %v5690_v56  ;;  %v950_v41 = vmul.f32 %v5688_v2, %v5072_v22  ;;  %v949_v32 = vmul.f32 %v5688_v2, %v5069_v21  ;;  %v952_v12 = vmul.f32 %v5690_v56, %v5072_v22 }
 0x560   :  { %v951_v8 = vmul.f32 %v5690_v56, %v5069_v21 }
 0x561   :  { %967 = vrot.lane.b32.xlu0 %v950_v41, %s4955_s19  ;;  %965 = vrot.lane.b32.xlu1 %v949_v32, %s4955_s19 }
 0x562   :  { %v5702_v23 = vpop.permute.xlu1 %942  ;;  %v5710_v40 = vpop.permute.xlu0 %946 }
 0x563   :  { %9751 = vst [vmem:[#allocation110_spill] sm:$0xff] %v5702_v23  ;;  %v954_v2 = vmul.f32 %v5702_v23, %v5072_v22  ;;  %v953_v41 = vmul.f32 %v5702_v23, %v5069_v21  ;;  %9752 = vst [vmem:[#allocation111_spill] sm:$0xff] %v5710_v40  ;;  %v956_v32 = vmul.f32 %v5710_v40, %v5072_v22 }
 0x565   :  { %971 = vrot.lane.b32.xlu0 %v952_v12, %s4955_s19  ;;  %969 = vrot.lane.b32.xlu1 %v951_v8, %s4955_s19  ;;  %v955_v12 = vmul.f32 %v5710_v40, %v5069_v21 }
 0x569   :  { %975 = vrot.lane.b32.xlu0 %v954_v2, %s4955_s19  ;;  %973 = vrot.lane.b32.xlu1 %v953_v41, %s4955_s19  ;;  %v4956_v2 = vmov 15  }
 0x56d   :  { %979 = vrot.lane.b32.xlu0 %v956_v32, %s4955_s19  ;;  %977 = vrot.lane.b32.xlu1 %v955_v12, %s4955_s19 }
 0x571   :  { %1003 = vperm.xlu1 %4858, %v5014_v3   ;;  %1007 = vperm.xlu0 %4859, %v5028_v6  }
 0x575   :  { %1011 = vperm.xlu1 %4858, %v5039_v9   ;;  %4860 = vset.pattern.permute.xlu0 %v4956_v2 }
 0x579   :  { %1015 = vperm.xlu1 %4858, %v5023_v5  }
 0x57d   :  { %4861 = vset.pattern.permute.xlu1 %v4956_v2 }
 0x5d3   :  { %v5724_v8 = vpop.permute.xlu0 %967  ;;  %v5726_v41 = vpop.permute.xlu1 %965 }
 0x5d4   :  { %9753 = vst [vmem:[#allocation112_spill] sm:$0xff] %v5724_v8  ;;  %9754 = vst [vmem:[#allocation113_spill] sm:$0xff] %v5726_v41 }
 0x5d7   :  { %v5728_v40 = vpop.permute.xlu0 %971  ;;  %v5730_v32 = vpop.permute.xlu1 %969 }
 0x5d8   :  { %9755 = vst [vmem:[#allocation114_spill] sm:$0xff] %v5728_v40  ;;  %9756 = vst [vmem:[#allocation115_spill] sm:$0xff] %v5730_v32 }
 0x5db   :  { %v5732_v12 = vpop.permute.xlu0 %975  ;;  %v5734_v3 = vpop.permute.xlu1 %973 }
 0x5dc   :  { %9757 = vst [vmem:[#allocation116_spill] sm:$0xff] %v5732_v12  ;;  %9758 = vst [vmem:[#allocation117_spill] sm:$0xff] %v5734_v3 }
 0x5df   :  { %v5736_v6 = vpop.permute.xlu0 %979  ;;  %v5738_v23 = vpop.permute.xlu1 %977 }
 0x5e0   :  { %9759 = vst [vmem:[#allocation118_spill] sm:$0xff] %v5736_v6  ;;  %9760 = vst [vmem:[#allocation119_spill] sm:$0xff] %v5738_v23 }
 0x5f0   :  { %v5740_v5 = vpop.permute.xlu1 %1003  ;;  %v5742_v56 = vpop.permute.xlu0 %1007 }
 0x5f1   :  { %9761 = vst [vmem:[#allocation120_spill] sm:$0xff] %v5740_v5  ;;  %9762 = vst [vmem:[#allocation121_spill] sm:$0xff] %v5742_v56  ;;  %v1019_v2 = vmul.f32 %v5740_v5, %v5072_v22  ;;  %v1018_v40 = vmul.f32 %v5740_v5, %v5069_v21  ;;  %v1021_v6 = vmul.f32 %v5742_v56, %v5072_v22 }
 0x5f2   :  { %v1020_v23 = vmul.f32 %v5742_v56, %v5069_v21 }
 0x5f3   :  { %1036 = vrot.lane.b32.xlu1 %v1019_v2, %s4957_s20  ;;  %1034 = vrot.lane.b32.xlu0 %v1018_v40, %s4957_s20 }
 0x5f4   :  { %v5754_v3 = vpop.permute.xlu1 %1011 }
 0x5f5   :  { %9763 = vst [vmem:[#allocation122_spill] sm:$0xff] %v5754_v3  ;;  %v1023_v5 = vmul.f32 %v5754_v3, %v5072_v22  ;;  %v1022_v2 = vmul.f32 %v5754_v3, %v5069_v21 }
 0x5f7   :  { %1040 = vrot.lane.b32.xlu1 %v1021_v6, %s4957_s20  ;;  %1038 = vrot.lane.b32.xlu0 %v1020_v23, %s4957_s20  ;;  %v5775_v23 = vld [vmem:[%s9291_s1 + $0x8] sm:$0xff] }
 0x5f8   :  { %v5762_v12 = vpop.permute.xlu1 %1015 }
 0x5f9   :  { %9764 = vst [vmem:[#allocation123_spill] sm:$0xff] %v5762_v12  ;;  %v1025_v40 = vmul.f32 %v5762_v12, %v5072_v22  ;;  %v1024_v6 = vmul.f32 %v5762_v12, %v5069_v21 }
 0x5fb   :  { %1044 = vrot.lane.b32.xlu1 %v1023_v5, %s4957_s20  ;;  %1042 = vrot.lane.b32.xlu0 %v1022_v2, %s4957_s20  ;;  %v5781_v5 = vld [vmem:[%s9291_s1] sm:$0xff]  ;;  %v5788_v2 = vld [vmem:[%s9291_s1 + $0x18] sm:$0xff] }
 0x5ff   :  { %1048 = vrot.lane.b32.xlu1 %v1025_v40, %s4957_s20  ;;  %1046 = vrot.lane.b32.xlu0 %v1024_v6, %s4957_s20  ;;  %v4958_v40 = vmov 16  }
 0x603   :  { %1076 = vperm.xlu1 %4861, %v5775_v23   ;;  %1072 = vperm.xlu0 %4860, %v5781_v5  }
 0x607   :  { %1080 = vperm.xlu1 %4861, %v5039_v9   ;;  %1084 = vperm.xlu0 %4860, %v5788_v2  }
 0x60b   :  { %4862 = vset.pattern.permute.xlu1 %v4958_v40  ;;  %4863 = vset.pattern.permute.xlu0 %v4958_v40 }
 0x665   :  { %v5791_v6 = vpop.permute.xlu0 %1034  ;;  %v5793_v12 = vpop.permute.xlu1 %1036 }
 0x666   :  { %9765 = vst [vmem:[#allocation124_spill] sm:$0xff] %v5791_v6  ;;  %9766 = vst [vmem:[#allocation125_spill] sm:$0xff] %v5793_v12 }
 0x669   :  { %v5795_v3 = vpop.permute.xlu0 %1038  ;;  %v5797_v56 = vpop.permute.xlu1 %1040 }
 0x66a   :  { %9767 = vst [vmem:[#allocation126_spill] sm:$0xff] %v5795_v3  ;;  %9768 = vst [vmem:[#allocation127_spill] sm:$0xff] %v5797_v56 }
 0x66d   :  { %v5799_v32 = vpop.permute.xlu0 %1042  ;;  %v5801_v9 = vpop.permute.xlu1 %1044 }
 0x66e   :  { %9769 = vst [vmem:[#allocation128_spill] sm:$0xff] %v5799_v32  ;;  %9770 = vst [vmem:[#allocation129_spill] sm:$0xff] %v5801_v9 }
 0x671   :  { %v5803_v41 = vpop.permute.xlu0 %1046  ;;  %v5805_v8 = vpop.permute.xlu1 %1048 }
 0x672   :  { %9771 = vst [vmem:[#allocation130_spill] sm:$0xff] %v5803_v41  ;;  %9772 = vst [vmem:[#allocation131_spill] sm:$0xff] %v5805_v8 }
 0x682   :  { %v5807_v29 = vpop.permute.xlu0 %1072  ;;  %v5809_v47 = vpop.permute.xlu1 %1076 }
 0x683   :  { %9773 = vst [vmem:[#allocation132_spill] sm:$0xff] %v5807_v29  ;;  %9774 = vst [vmem:[#allocation133_spill] sm:$0xff] %v5809_v47  ;;  %v1088_v40 = vmul.f32 %v5807_v29, %v5072_v22  ;;  %v1087_v3 = vmul.f32 %v5807_v29, %v5069_v21  ;;  %v1090_v41 = vmul.f32 %v5809_v47, %v5072_v22 }
 0x684   :  { %v1089_v8 = vmul.f32 %v5809_v47, %v5069_v21 }
 0x685   :  { %1105 = vrot.lane.b32.xlu0 %v1088_v40, %s4959_s27  ;;  %1103 = vrot.lane.b32.xlu1 %v1087_v3, %s4959_s27 }
 0x686   :  { %v5821_v32 = vpop.permute.xlu1 %1080  ;;  %v5829_v9 = vpop.permute.xlu0 %1084 }
 0x687   :  { %9775 = vst [vmem:[#allocation134_spill] sm:$0xff] %v5821_v32  ;;  %v1092_v29 = vmul.f32 %v5821_v32, %v5072_v22  ;;  %v1091_v40 = vmul.f32 %v5821_v32, %v5069_v21  ;;  %9776 = vst [vmem:[#allocation135_spill] sm:$0xff] %v5829_v9  ;;  %v1094_v3 = vmul.f32 %v5829_v9, %v5072_v22 }
 0x689   :  { %1109 = vrot.lane.b32.xlu0 %v1090_v41, %s4959_s27  ;;  %1107 = vrot.lane.b32.xlu1 %v1089_v8, %s4959_s27  ;;  %v1093_v41 = vmul.f32 %v5829_v9, %v5069_v21  ;;  %v4960_v8 = vmov 17  }
 0x68d   :  { %1113 = vrot.lane.b32.xlu0 %v1092_v29, %s4959_s27  ;;  %1111 = vrot.lane.b32.xlu1 %v1091_v40, %s4959_s27  ;;  %v5844_v29 = vld [vmem:[%s9291_s1 + $0x10] sm:$0xff]  ;;  %s4961_s1 = smov 79  }
 0x691   :  { %1117 = vrot.lane.b32.xlu0 %v1094_v3, %s4959_s27  ;;  %1115 = vrot.lane.b32.xlu1 %v1093_v41, %s4959_s27 }
 0x695   :  { %1141 = vperm.xlu1 %4862, %v5781_v5   ;;  %1145 = vperm.xlu0 %4863, %v5775_v23  }
 0x699   :  { %1149 = vperm.xlu1 %4862, %v5844_v29   ;;  %4864 = vset.pattern.permute.xlu0 %v4960_v8 }
 0x69d   :  { %1153 = vperm.xlu1 %4862, %v5788_v2  }
 0x6a1   :  { %4865 = vset.pattern.permute.xlu1 %v4960_v8 }
 0x6f7   :  { %v5848_v40 = vpop.permute.xlu0 %1105  ;;  %v5850_v3 = vpop.permute.xlu1 %1103 }
 0x6f8   :  { %9777 = vst [vmem:[#allocation136_spill] sm:$0xff] %v5848_v40  ;;  %9778 = vst [vmem:[#allocation137_spill] sm:$0xff] %v5850_v3 }
 0x6fb   :  { %v5852_v41 = vpop.permute.xlu0 %1109  ;;  %v5854_v9 = vpop.permute.xlu1 %1107 }
 0x6fc   :  { %9779 = vst [vmem:[#allocation138_spill] sm:$0xff] %v5852_v41  ;;  %9780 = vst [vmem:[#allocation139_spill] sm:$0xff] %v5854_v9 }
 0x6ff   :  { %v5856_v32 = vpop.permute.xlu0 %1113  ;;  %v5858_v47 = vpop.permute.xlu1 %1111 }
 0x700   :  { %9781 = vst [vmem:[#allocation140_spill] sm:$0xff] %v5856_v32  ;;  %9782 = vst [vmem:[#allocation141_spill] sm:$0xff] %v5858_v47 }
 0x703   :  { %v5860_v56 = vpop.permute.xlu0 %1117  ;;  %v5862_v6 = vpop.permute.xlu1 %1115 }
 0x704   :  { %9783 = vst [vmem:[#allocation142_spill] sm:$0xff] %v5860_v56  ;;  %9784 = vst [vmem:[#allocation143_spill] sm:$0xff] %v5862_v6 }
 0x714   :  { %v5864_v12 = vpop.permute.xlu1 %1141  ;;  %v5866_v62 = vpop.permute.xlu0 %1145 }
 0x715   :  { %9785 = vst [vmem:[#allocation144_spill] sm:$0xff] %v5864_v12  ;;  %9786 = vst [vmem:[#allocation145_spill] sm:$0xff] %v5866_v62  ;;  %v1157_v8 = vmul.f32 %v5864_v12, %v5072_v22  ;;  %v1156_v41 = vmul.f32 %v5864_v12, %v5069_v21  ;;  %v1159_v56 = vmul.f32 %v5866_v62, %v5072_v22 }
 0x716   :  { %v1158_v6 = vmul.f32 %v5866_v62, %v5069_v21 }
 0x717   :  { %1174 = vrot.lane.b32.xlu1 %v1157_v8, %s4961_s1  ;;  %1172 = vrot.lane.b32.xlu0 %v1156_v41, %s4961_s1 }
 0x718   :  { %v5878_v47 = vpop.permute.xlu1 %1149 }
 0x719   :  { %9787 = vst [vmem:[#allocation146_spill] sm:$0xff] %v5878_v47  ;;  %v1161_v12 = vmul.f32 %v5878_v47, %v5072_v22  ;;  %v1160_v8 = vmul.f32 %v5878_v47, %v5069_v21 }
 0x71b   :  { %1178 = vrot.lane.b32.xlu1 %v1159_v56, %s4961_s1  ;;  %1176 = vrot.lane.b32.xlu0 %v1158_v6, %s4961_s1 }
 0x71c   :  { %v5886_v32 = vpop.permute.xlu1 %1153 }
 0x71d   :  { %9788 = vst [vmem:[#allocation147_spill] sm:$0xff] %v5886_v32  ;;  %v1163_v41 = vmul.f32 %v5886_v32, %v5072_v22  ;;  %v1162_v56 = vmul.f32 %v5886_v32, %v5069_v21 }
 0x71f   :  { %1182 = vrot.lane.b32.xlu1 %v1161_v12, %s4961_s1  ;;  %1180 = vrot.lane.b32.xlu0 %v1160_v8, %s4961_s1  ;;  %v4962_v12 = vmov 18  }
 0x723   :  { %1186 = vrot.lane.b32.xlu1 %v1163_v41, %s4961_s1  ;;  %1184 = vrot.lane.b32.xlu0 %v1162_v56, %s4961_s1 }
 0x727   :  { %1214 = vperm.xlu1 %4865, %v5775_v23   ;;  %1210 = vperm.xlu0 %4864, %v5781_v5  }
 0x72b   :  { %1218 = vperm.xlu1 %4865, %v5844_v29   ;;  %1222 = vperm.xlu0 %4864, %v5788_v2  }
 0x72f   :  { %4866 = vset.pattern.permute.xlu1 %v4962_v12  ;;  %4867 = vset.pattern.permute.xlu0 %v4962_v12 }
 0x789   :  { %v5900_v6 = vpop.permute.xlu0 %1172  ;;  %v5902_v8 = vpop.permute.xlu1 %1174 }
 0x78a   :  { %9789 = vst [vmem:[#allocation148_spill] sm:$0xff] %v5900_v6  ;;  %9790 = vst [vmem:[#allocation149_spill] sm:$0xff] %v5902_v8 }
 0x78d   :  { %v5904_v32 = vpop.permute.xlu0 %1176  ;;  %v5906_v41 = vpop.permute.xlu1 %1178 }
 0x78e   :  { %9791 = vst [vmem:[#allocation150_spill] sm:$0xff] %v5904_v32  ;;  %9792 = vst [vmem:[#allocation151_spill] sm:$0xff] %v5906_v41 }
 0x791   :  { %v5908_v56 = vpop.permute.xlu0 %1180  ;;  %v5910_v47 = vpop.permute.xlu1 %1182 }
 0x792   :  { %9793 = vst [vmem:[#allocation152_spill] sm:$0xff] %v5908_v56  ;;  %9794 = vst [vmem:[#allocation153_spill] sm:$0xff] %v5910_v47 }
 0x795   :  { %v5912_v62 = vpop.permute.xlu0 %1184  ;;  %v5914_v9 = vpop.permute.xlu1 %1186 }
 0x796   :  { %9795 = vst [vmem:[#allocation154_spill] sm:$0xff] %v5912_v62  ;;  %9796 = vst [vmem:[#allocation155_spill] sm:$0xff] %v5914_v9 }
 0x7a6   :  { %v5916_v3 = vpop.permute.xlu0 %1210  ;;  %v5918_v40 = vpop.permute.xlu1 %1214 }
 0x7a7   :  { %9797 = vst [vmem:[#allocation156_spill] sm:$0xff] %v5916_v3  ;;  %9798 = vst [vmem:[#allocation157_spill] sm:$0xff] %v5918_v40  ;;  %v1226_v12 = vmul.f32 %v5916_v3, %v5072_v22  ;;  %v1225_v32 = vmul.f32 %v5916_v3, %v5069_v21  ;;  %v1228_v62 = vmul.f32 %v5918_v40, %v5072_v22 }
 0x7a8   :  { %v1227_v9 = vmul.f32 %v5918_v40, %v5069_v21 }
 0x7a9   :  { %1243 = vrot.lane.b32.xlu0 %v1226_v12, %s4963_s30  ;;  %1241 = vrot.lane.b32.xlu1 %v1225_v32, %s4963_s30 }
 0x7aa   :  { %v5930_v56 = vpop.permute.xlu1 %1218  ;;  %v5938_v47 = vpop.permute.xlu0 %1222 }
 0x7ab   :  { %9799 = vst [vmem:[#allocation158_spill] sm:$0xff] %v5930_v56  ;;  %v1230_v3 = vmul.f32 %v5930_v56, %v5072_v22  ;;  %v1229_v12 = vmul.f32 %v5930_v56, %v5069_v21  ;;  %9800 = vst [vmem:[#allocation159_spill] sm:$0xff] %v5938_v47  ;;  %v1232_v32 = vmul.f32 %v5938_v47, %v5072_v22 }
 0x7ad   :  { %1247 = vrot.lane.b32.xlu0 %v1228_v62, %s4963_s30  ;;  %1245 = vrot.lane.b32.xlu1 %v1227_v9, %s4963_s30  ;;  %v1231_v62 = vmul.f32 %v5938_v47, %v5069_v21  ;;  %v4964_v9 = vmov 19  }
 0x7b1   :  { %1251 = vrot.lane.b32.xlu0 %v1230_v3, %s4963_s30  ;;  %1249 = vrot.lane.b32.xlu1 %v1229_v12, %s4963_s30 }
 0x7b5   :  { %1255 = vrot.lane.b32.xlu0 %v1232_v32, %s4963_s30  ;;  %1253 = vrot.lane.b32.xlu1 %v1231_v62, %s4963_s30 }
 0x7b9   :  { %1279 = vperm.xlu1 %4866, %v5781_v5   ;;  %1283 = vperm.xlu0 %4867, %v5775_v23  }
 0x7bd   :  { %1287 = vperm.xlu1 %4866, %v5844_v29   ;;  %4868 = vset.pattern.permute.xlu0 %v4964_v9 }
 0x7c1   :  { %1291 = vperm.xlu1 %4866, %v5788_v2  }
 0x7c5   :  { %4869 = vset.pattern.permute.xlu1 %v4964_v9 }
 0x81b   :  { %v5952_v3 = vpop.permute.xlu0 %1243  ;;  %v5954_v12 = vpop.permute.xlu1 %1241 }
 0x81c   :  { %9801 = vst [vmem:[#allocation160_spill] sm:$0xff] %v5952_v3  ;;  %9802 = vst [vmem:[#allocation161_spill] sm:$0xff] %v5954_v12 }
 0x81f   :  { %v5956_v47 = vpop.permute.xlu0 %1247  ;;  %v5958_v32 = vpop.permute.xlu1 %1245 }
 0x820   :  { %9803 = vst [vmem:[#allocation162_spill] sm:$0xff] %v5956_v47  ;;  %9804 = vst [vmem:[#allocation163_spill] sm:$0xff] %v5958_v32 }
 0x823   :  { %v5960_v62 = vpop.permute.xlu0 %1251  ;;  %v5962_v56 = vpop.permute.xlu1 %1249 }
 0x824   :  { %9805 = vst [vmem:[#allocation164_spill] sm:$0xff] %v5960_v62  ;;  %9806 = vst [vmem:[#allocation165_spill] sm:$0xff] %v5962_v56 }
 0x827   :  { %v5964_v40 = vpop.permute.xlu0 %1255  ;;  %v5966_v41 = vpop.permute.xlu1 %1253 }
 0x828   :  { %9807 = vst [vmem:[#allocation166_spill] sm:$0xff] %v5964_v40  ;;  %9808 = vst [vmem:[#allocation167_spill] sm:$0xff] %v5966_v41 }
 0x838   :  { %v5968_v6 = vpop.permute.xlu1 %1279  ;;  %v5970_v8 = vpop.permute.xlu0 %1283 }
 0x839   :  { %9809 = vst [vmem:[#allocation168_spill] sm:$0xff] %v5968_v6  ;;  %9810 = vst [vmem:[#allocation169_spill] sm:$0xff] %v5970_v8  ;;  %v1295_v9 = vmul.f32 %v5968_v6, %v5072_v22  ;;  %v1294_v47 = vmul.f32 %v5968_v6, %v5069_v21  ;;  %v1297_v40 = vmul.f32 %v5970_v8, %v5072_v22 }
 0x83a   :  { %v1296_v41 = vmul.f32 %v5970_v8, %v5069_v21 }
 0x83b   :  { %1312 = vrot.lane.b32.xlu1 %v1295_v9, %s4965_s6  ;;  %1310 = vrot.lane.b32.xlu0 %v1294_v47, %s4965_s6 }
 0x83c   :  { %v5982_v56 = vpop.permute.xlu1 %1287 }
 0x83d   :  { %9811 = vst [vmem:[#allocation170_spill] sm:$0xff] %v5982_v56  ;;  %v1299_v6 = vmul.f32 %v5982_v56, %v5072_v22  ;;  %v1298_v9 = vmul.f32 %v5982_v56, %v5069_v21 }
 0x83f   :  { %1316 = vrot.lane.b32.xlu1 %v1297_v40, %s4965_s6  ;;  %1314 = vrot.lane.b32.xlu0 %v1296_v41, %s4965_s6 }
 0x840   :  { %v5990_v62 = vpop.permute.xlu1 %1291 }
 0x841   :  { %9812 = vst [vmem:[#allocation171_spill] sm:$0xff] %v5990_v62  ;;  %v1301_v47 = vmul.f32 %v5990_v62, %v5072_v22  ;;  %v1300_v40 = vmul.f32 %v5990_v62, %v5069_v21 }
 0x843   :  { %1320 = vrot.lane.b32.xlu1 %v1299_v6, %s4965_s6  ;;  %1318 = vrot.lane.b32.xlu0 %v1298_v9, %s4965_s6  ;;  %v4966_v6 = vmov 20  }
 0x847   :  { %1324 = vrot.lane.b32.xlu1 %v1301_v47, %s4965_s6  ;;  %1322 = vrot.lane.b32.xlu0 %v1300_v40, %s4965_s6 }
 0x84b   :  { %1352 = vperm.xlu1 %4869, %v5775_v23   ;;  %1348 = vperm.xlu0 %4868, %v5781_v5  }
 0x84f   :  { %1356 = vperm.xlu1 %4869, %v5844_v29   ;;  %1360 = vperm.xlu0 %4868, %v5788_v2  }
 0x853   :  { %4870 = vset.pattern.permute.xlu1 %v4966_v6  ;;  %4871 = vset.pattern.permute.xlu0 %v4966_v6 }
 0x8ad   :  { %v6004_v41 = vpop.permute.xlu0 %1310  ;;  %v6006_v9 = vpop.permute.xlu1 %1312 }
 0x8ae   :  { %9813 = vst [vmem:[#allocation172_spill] sm:$0xff] %v6004_v41 }
 0x8b1   :  { %v6008_v62 = vpop.permute.xlu0 %1314  ;;  %v6010_v47 = vpop.permute.xlu1 %1316 }
 0x8b2   :  { %9814 = vst [vmem:[#allocation173_spill] sm:$0xff] %v6008_v62  ;;  %9815 = vst [vmem:[#allocation174_spill] sm:$0xff] %v6010_v47 }
 0x8b5   :  { %v6012_v40 = vpop.permute.xlu0 %1318  ;;  %v6014_v56 = vpop.permute.xlu1 %1320 }
 0x8b6   :  { %9816 = vst [vmem:[#allocation175_spill] sm:$0xff] %v6012_v40  ;;  %9817 = vst [vmem:[#allocation176_spill] sm:$0xff] %v6014_v56 }
 0x8b9   :  { %v6016_v8 = vpop.permute.xlu0 %1322  ;;  %v6018_v32 = vpop.permute.xlu1 %1324 }
 0x8ba   :  { %9818 = vst [vmem:[#allocation177_spill] sm:$0xff] %v6016_v8  ;;  %9819 = vst [vmem:[#allocation178_spill] sm:$0xff] %v6018_v32 }
 0x8ca   :  { %v6020_v12 = vpop.permute.xlu0 %1348  ;;  %v6022_v3 = vpop.permute.xlu1 %1352 }
 0x8cb   :  { %9820 = vst [vmem:[#allocation179_spill] sm:$0xff] %v6020_v12  ;;  %9821 = vst [vmem:[#allocation180_spill] sm:$0xff] %v6022_v3  ;;  %v1364_v6 = vmul.f32 %v6020_v12, %v5072_v22  ;;  %v1363_v62 = vmul.f32 %v6020_v12, %v5069_v21  ;;  %v1366_v8 = vmul.f32 %v6022_v3, %v5072_v22 }
 0x8cc   :  { %v1365_v32 = vmul.f32 %v6022_v3, %v5069_v21  ;;  %v1434_v3 = vsub.s32 4, %v5056_v14 }
 0x8cd   :  { %1381 = vrot.lane.b32.xlu0 %v1364_v6, %s4967_s21  ;;  %1379 = vrot.lane.b32.xlu1 %v1363_v62, %s4967_s21 }
 0x8ce   :  { %v6034_v40 = vpop.permute.xlu1 %1356  ;;  %v6042_v56 = vpop.permute.xlu0 %1360 }
 0x8cf   :  { %9822 = vst [vmem:[#allocation181_spill] sm:$0xff] %v6034_v40  ;;  %v1368_v12 = vmul.f32 %v6034_v40, %v5072_v22  ;;  %v1367_v6 = vmul.f32 %v6034_v40, %v5069_v21  ;;  %9823 = vst [vmem:[#allocation182_spill] sm:$0xff] %v6042_v56  ;;  %v1370_v62 = vmul.f32 %v6042_v56, %v5072_v22 }
 0x8d1   :  { %1385 = vrot.lane.b32.xlu0 %v1366_v8, %s4967_s21  ;;  %1383 = vrot.lane.b32.xlu1 %v1365_v32, %s4967_s21  ;;  %v1369_v8 = vmul.f32 %v6042_v56, %v5069_v21 }
 0x8d5   :  { %1389 = vrot.lane.b32.xlu0 %v1368_v12, %s4967_s21  ;;  %1387 = vrot.lane.b32.xlu1 %v1367_v6, %s4967_s21  ;;  %v4968_v12 = vmov 21  }
 0x8d9   :  { %1393 = vrot.lane.b32.xlu0 %v1370_v62, %s4967_s21  ;;  %1391 = vrot.lane.b32.xlu1 %v1369_v8, %s4967_s21 }
 0x8dd   :  { %1417 = vperm.xlu1 %4870, %v5781_v5   ;;  %1421 = vperm.xlu0 %4871, %v5775_v23  }
 0x8e1   :  { %1425 = vperm.xlu1 %4870, %v5844_v29   ;;  %4872 = vset.pattern.permute.xlu0 %v4968_v12 }
 0x8e5   :  { %1429 = vperm.xlu1 %4870, %v5788_v2  }
 0x8e9   :  { %4873 = vset.pattern.permute.xlu1 %v4968_v12  ;;  %v4926_v12 = vld [vmem:[%s9292_s0] sm:$0x3f] }
 0x93f   :  { %v6056_v32 = vpop.permute.xlu0 %1381  ;;  %v6058_v6 = vpop.permute.xlu1 %1379 }
 0x940   :  { %9824 = vst [vmem:[#allocation183_spill] sm:$0xff] %v6056_v32  ;;  %9825 = vst [vmem:[#allocation184_spill] sm:$0xff] %v6058_v6  ;;  %v1435_v32 = vrot.slane %v4926_v12, %v1434_v3 }
 0x942   :  { %v6085_v14 = vrot.slane %v1435_v32, %v5059_v15 }
 0x943   :  { %v6060_v56 = vpop.permute.xlu0 %1385  ;;  %v6062_v62 = vpop.permute.xlu1 %1383 }
 0x944   :  { %9826 = vst [vmem:[#allocation185_spill] sm:$0xff] %v6060_v56  ;;  %9827 = vst [vmem:[#allocation186_spill] sm:$0xff] %v6062_v62 }
 0x947   :  { %v6064_v8 = vpop.permute.xlu0 %1389  ;;  %v6066_v40 = vpop.permute.xlu1 %1387 }
 0x948   :  { %9828 = vst [vmem:[#allocation187_spill] sm:$0xff] %v6064_v8  ;;  %9829 = vst [vmem:[#allocation188_spill] sm:$0xff] %v6066_v40 }
 0x94b   :  { %v6069_v47 = vpop.permute.xlu0 %1393  ;;  %v6071_v41 = vpop.permute.xlu1 %1391 }
 0x94c   :  { %9830 = vst [vmem:[#allocation189_spill] sm:$0xff] %v6069_v47  ;;  %9831 = vst [vmem:[#allocation190_spill] sm:$0xff] %v6071_v41 }
 0x95c   :  { %v6076_v6 = vpop.permute.xlu1 %1417  ;;  %v6078_v56 = vpop.permute.xlu0 %1421 }
 0x95d   :  { %9832 = vst [vmem:[#allocation191_spill] sm:$0xff] %v6076_v6  ;;  %9833 = vst [vmem:[#allocation192_spill] sm:$0xff] %v6078_v56  ;;  %v1442_v8 = vmul.f32 %v6076_v6, %v5072_v22  ;;  %v1441_v40 = vmul.f32 %v6076_v6, %v5069_v21  ;;  %v1444_v3 = vmul.f32 %v6078_v56, %v5069_v21 }
 0x95e   :  { %v1443_v12 = vmul.f32 %v6085_v14, %v6076_v6  ;;  %v1446_v41 = vmul.f32 %v6085_v14, %v6078_v56  ;;  %v1445_v15 = vmul.f32 %v6078_v56, %v5072_v22 }
 0x95f   :  { %1467 = vrot.lane.b32.xlu1 %v1442_v8, %s4969_s24  ;;  %1465 = vrot.lane.b32.xlu0 %v1441_v40, %s4969_s24 }
 0x960   :  { %v6099_v32 = vpop.permute.xlu1 %1425 }
 0x961   :  { %9834 = vst [vmem:[#allocation193_spill] sm:$0xff] %v6099_v32  ;;  %v1448_v40 = vmul.f32 %v6099_v32, %v5072_v22  ;;  %v1447_v8 = vmul.f32 %v6099_v32, %v5069_v21 }
 0x963   :  { %1471 = vrot.lane.b32.xlu1 %v1444_v3, %s4969_s24  ;;  %1469 = vrot.lane.b32.xlu0 %v1443_v12, %s4969_s24  ;;  %v1449_v12 = vmul.f32 %v6085_v14, %v6099_v32 }
 0x964   :  { %v6107_v3 = vpop.permute.xlu1 %1429 }
 0x965   :  { %9835 = vst [vmem:[#allocation194_spill] sm:$0xff] %v6107_v3  ;;  %v1452_v56 = vmul.f32 %v6085_v14, %v6107_v3 }
 0x967   :  { %1475 = vrot.lane.b32.xlu1 %v1446_v41, %s4969_s24  ;;  %1473 = vrot.lane.b32.xlu0 %v1445_v15, %s4969_s24  ;;  %v1450_v41 = vmul.f32 %v6107_v3, %v5069_v21  ;;  %v1451_v15 = vmul.f32 %v6107_v3, %v5072_v22 }
 0x96b   :  { %1479 = vrot.lane.b32.xlu1 %v1448_v40, %s4969_s24  ;;  %1477 = vrot.lane.b32.xlu0 %v1447_v8, %s4969_s24  ;;  %v4970_v40 = vmov 22  }
 0x96f   :  { %1481 = vrot.lane.b32.xlu0 %v1449_v12, %s4969_s24  ;;  %1483 = vrot.lane.b32.xlu1 %v1450_v41, %s4969_s24 }
 0x973   :  { %1485 = vrot.lane.b32.xlu0 %v1451_v15, %s4969_s24  ;;  %1487 = vrot.lane.b32.xlu1 %v1452_v56, %s4969_s24 }
 0x977   :  { %1515 = vperm.xlu0 %4872, %v5781_v5   ;;  %1519 = vperm.xlu1 %4873, %v5775_v23  }
 0x97b   :  { %1527 = vperm.xlu0 %4872, %v5788_v2   ;;  %1523 = vperm.xlu1 %4873, %v5844_v29  }
 0x97f   :  { %4874 = vset.pattern.permute.xlu1 %v4970_v40  ;;  %4875 = vset.pattern.permute.xlu0 %v4970_v40 }
 0x9d1   :  { %v6127_v8 = vpop.permute.xlu0 %1465  ;;  %v6129_v12 = vpop.permute.xlu1 %1467 }
 0x9d2   :  { %9836 = vst [vmem:[#allocation195_spill] sm:$0xff] %v6127_v8  ;;  %9837 = vst [vmem:[#allocation196_spill] sm:$0xff] %v6129_v12 }
 0x9d5   :  { %v6131_v41 = vpop.permute.xlu0 %1469  ;;  %v6133_v15 = vpop.permute.xlu1 %1471 }
 0x9d6   :  { %9838 = vst [vmem:[#allocation197_spill] sm:$0xff] %v6131_v41  ;;  %9839 = vst [vmem:[#allocation198_spill] sm:$0xff] %v6133_v15 }
 0x9d9   :  { %v6135_v56 = vpop.permute.xlu0 %1473  ;;  %v6137_v3 = vpop.permute.xlu1 %1475 }
 0x9da   :  { %9840 = vst [vmem:[#allocation199_spill] sm:$0xff] %v6135_v56  ;;  %9841 = vst [vmem:[#allocation200_spill] sm:$0xff] %v6137_v3 }
 0x9dd   :  { %v6139_v32 = vpop.permute.xlu0 %1477  ;;  %v6141_v6 = vpop.permute.xlu1 %1479 }
 0x9de   :  { %9842 = vst [vmem:[#allocation201_spill] sm:$0xff] %v6139_v32  ;;  %9843 = vst [vmem:[#allocation202_spill] sm:$0xff] %v6141_v6 }
 0x9e1   :  { %v6143_v47 = vpop.permute.xlu0 %1481  ;;  %v6145_v62 = vpop.permute.xlu1 %1483 }
 0x9e2   :  { %9844 = vst [vmem:[#allocation203_spill] sm:$0xff] %v6143_v47  ;;  %9845 = vst [vmem:[#allocation204_spill] sm:$0xff] %v6145_v62 }
 0x9e5   :  { %v6147_v40 = vpop.permute.xlu0 %1485  ;;  %v6149_v8 = vpop.permute.xlu1 %1487 }
 0x9e6   :  { %9846 = vst [vmem:[#allocation205_spill] sm:$0xff] %v6147_v40  ;;  %9847 = vst [vmem:[#allocation206_spill] sm:$0xff] %v6149_v8 }
 0x9f6   :  { %v6151_v12 = vpop.permute.xlu0 %1515  ;;  %v6153_v41 = vpop.permute.xlu1 %1519 }
 0x9f7   :  { %9848 = vst [vmem:[#allocation207_spill] sm:$0xff] %v6151_v12  ;;  %9849 = vst [vmem:[#allocation208_spill] sm:$0xff] %v6153_v41  ;;  %v1531_v15 = vmul.f32 %v6151_v12, %v5072_v22  ;;  %v1530_v32 = vmul.f32 %v6151_v12, %v5069_v21  ;;  %v1533_v62 = vmul.f32 %v6153_v41, %v5069_v21 }
 0x9f8   :  { %v1532_v8 = vmul.f32 %v6151_v12, %v6085_v14  ;;  %v1534_v40 = vmul.f32 %v6153_v41, %v5072_v22  ;;  %v1535_v47 = vmul.f32 %v6153_v41, %v6085_v14 }
 0x9f9   :  { %1556 = vrot.lane.b32.xlu0 %v1531_v15, %s4971_s25  ;;  %1554 = vrot.lane.b32.xlu1 %v1530_v32, %s4971_s25 }
 0x9fa   :  { %v6171_v6 = vpop.permute.xlu1 %1523  ;;  %v6179_v15 = vpop.permute.xlu0 %1527 }
 0x9fb   :  { %9850 = vst [vmem:[#allocation209_spill] sm:$0xff] %v6171_v6  ;;  %v1537_v32 = vmul.f32 %v6171_v6, %v5072_v22  ;;  %9851 = vst [vmem:[#allocation210_spill] sm:$0xff] %v6179_v15  ;;  %v1540_v41 = vmul.f32 %v6179_v15, %v5072_v22 }
 0x9fd   :  { %1558 = vrot.lane.b32.xlu1 %v1532_v8, %s4971_s25  ;;  %1560 = vrot.lane.b32.xlu0 %v1533_v62, %s4971_s25  ;;  %v1536_v8 = vmul.f32 %v6171_v6, %v5069_v21  ;;  %v1539_v62 = vmul.f32 %v6179_v15, %v5069_v21 }
 0xa01   :  { %1562 = vrot.lane.b32.xlu1 %v1534_v40, %s4971_s25  ;;  %1564 = vrot.lane.b32.xlu0 %v1535_v47, %s4971_s25  ;;  %v1538_v40 = vmul.f32 %v6171_v6, %v6085_v14  ;;  %v1541_v47 = vmul.f32 %v6179_v15, %v6085_v14 }
 0xa05   :  { %1568 = vrot.lane.b32.xlu0 %v1537_v32, %s4971_s25  ;;  %1566 = vrot.lane.b32.xlu1 %v1536_v8, %s4971_s25  ;;  %v4972_v32 = vmov 23  }
 0xa09   :  { %1572 = vrot.lane.b32.xlu0 %v1539_v62, %s4971_s25  ;;  %1570 = vrot.lane.b32.xlu1 %v1538_v40, %s4971_s25 }
 0xa0d   :  { %1576 = vrot.lane.b32.xlu0 %v1541_v47, %s4971_s25  ;;  %1574 = vrot.lane.b32.xlu1 %v1540_v41, %s4971_s25 }
 0xa11   :  { %1604 = vperm.xlu1 %4874, %v5781_v5   ;;  %1608 = vperm.xlu0 %4875, %v5775_v23  }
 0xa15   :  { %1612 = vperm.xlu1 %4874, %v5844_v29   ;;  %4876 = vset.pattern.permute.xlu0 %v4972_v32 }
 0xa19   :  { %1616 = vperm.xlu1 %4874, %v5788_v2  }
 0xa1d   :  { %4877 = vset.pattern.permute.xlu1 %v4972_v32 }
 0xa6b   :  { %v6199_v8 = vpop.permute.xlu0 %1556  ;;  %v6201_v62 = vpop.permute.xlu1 %1554 }
 0xa6c   :  { %9852 = vst [vmem:[#allocation211_spill] sm:$0xff] %v6199_v8  ;;  %9853 = vst [vmem:[#allocation212_spill] sm:$0xff] %v6201_v62 }
 0xa6f   :  { %v6203_v40 = vpop.permute.xlu0 %1560  ;;  %v6205_v47 = vpop.permute.xlu1 %1558 }
 0xa70   :  { %9854 = vst [vmem:[#allocation213_spill] sm:$0xff] %v6203_v40  ;;  %9855 = vst [vmem:[#allocation214_spill] sm:$0xff] %v6205_v47 }
 0xa73   :  { %v6207_v41 = vpop.permute.xlu0 %1564  ;;  %v6209_v15 = vpop.permute.xlu1 %1562 }
 0xa74   :  { %9856 = vst [vmem:[#allocation215_spill] sm:$0xff] %v6207_v41  ;;  %9857 = vst [vmem:[#allocation216_spill] sm:$0xff] %v6209_v15 }
 0xa77   :  { %v6211_v6 = vpop.permute.xlu0 %1568  ;;  %v6213_v12 = vpop.permute.xlu1 %1566 }
 0xa78   :  { %9858 = vst [vmem:[#allocation217_spill] sm:$0xff] %v6211_v6  ;;  %9859 = vst [vmem:[#allocation218_spill] sm:$0xff] %v6213_v12 }
 0xa7b   :  { %v6215_v3 = vpop.permute.xlu0 %1572  ;;  %v6217_v56 = vpop.permute.xlu1 %1570 }
 0xa7c   :  { %9860 = vst [vmem:[#allocation219_spill] sm:$0xff] %v6215_v3  ;;  %9861 = vst [vmem:[#allocation220_spill] sm:$0xff] %v6217_v56 }
 0xa7f   :  { %v6219_v32 = vpop.permute.xlu0 %1576  ;;  %v6221_v8 = vpop.permute.xlu1 %1574 }
 0xa80   :  { %9862 = vst [vmem:[#allocation221_spill] sm:$0xff] %v6219_v32  ;;  %9863 = vst [vmem:[#allocation222_spill] sm:$0xff] %v6221_v8 }
 0xa90   :  { %v6223_v62 = vpop.permute.xlu1 %1604  ;;  %v6225_v40 = vpop.permute.xlu0 %1608 }
 0xa91   :  { %9864 = vst [vmem:[#allocation223_spill] sm:$0xff] %v6223_v62  ;;  %9865 = vst [vmem:[#allocation224_spill] sm:$0xff] %v6225_v40  ;;  %v1620_v41 = vmul.f32 %v6223_v62, %v5072_v22  ;;  %v1619_v6 = vmul.f32 %v6223_v62, %v5069_v21  ;;  %v1622_v32 = vmul.f32 %v6225_v40, %v5069_v21 }
 0xa92   :  { %v1621_v3 = vmul.f32 %v6223_v62, %v6085_v14  ;;  %v1624_v8 = vmul.f32 %v6225_v40, %v6085_v14  ;;  %v1623_v56 = vmul.f32 %v6225_v40, %v5072_v22 }
 0xa93   :  { %1645 = vrot.lane.b32.xlu1 %v1620_v41, %s9543_s26  ;;  %1643 = vrot.lane.b32.xlu0 %v1619_v6, %s9543_s26 }
 0xa94   :  { %v6243_v12 = vpop.permute.xlu1 %1612 }
 0xa95   :  { %9866 = vst [vmem:[#allocation225_spill] sm:$0xff] %v6243_v12  ;;  %v1626_v6 = vmul.f32 %v6243_v12, %v5072_v22  ;;  %v1625_v41 = vmul.f32 %v6243_v12, %v5069_v21 }
 0xa97   :  { %1649 = vrot.lane.b32.xlu1 %v1622_v32, %s9543_s26  ;;  %1647 = vrot.lane.b32.xlu0 %v1621_v3, %s9543_s26  ;;  %v1627_v3 = vmul.f32 %v6243_v12, %v6085_v14 }
 0xa98   :  { %v6251_v32 = vpop.permute.xlu1 %1616 }
 0xa99   :  { %9867 = vst [vmem:[#allocation226_spill] sm:$0xff] %v6251_v32  ;;  %v1630_v40 = vmul.f32 %v6251_v32, %v6085_v14 }
 0xa9b   :  { %1653 = vrot.lane.b32.xlu1 %v1624_v8, %s9543_s26  ;;  %1651 = vrot.lane.b32.xlu0 %v1623_v56, %s9543_s26  ;;  %v1628_v8 = vmul.f32 %v6251_v32, %v5069_v21  ;;  %v1629_v56 = vmul.f32 %v6251_v32, %v5072_v22 }
 0xa9f   :  { %1657 = vrot.lane.b32.xlu1 %v1626_v6, %s9543_s26  ;;  %1655 = vrot.lane.b32.xlu0 %v1625_v41, %s9543_s26  ;;  %v4974_v6 = vmov 24  }
 0xaa3   :  { %1659 = vrot.lane.b32.xlu0 %v1627_v3, %s9543_s26  ;;  %1661 = vrot.lane.b32.xlu1 %v1628_v8, %s9543_s26 }
 0xaa7   :  { %1663 = vrot.lane.b32.xlu0 %v1629_v56, %s9543_s26  ;;  %1665 = vrot.lane.b32.xlu1 %v1630_v40, %s9543_s26  ;;  %s10085_s26 = smov 62  }
 0xaab   :  { %1693 = vperm.xlu0 %4876, %v5781_v5   ;;  %1697 = vperm.xlu1 %4877, %v5775_v23  }
 0xaaf   :  { %1705 = vperm.xlu0 %4876, %v5788_v2   ;;  %1701 = vperm.xlu1 %4877, %v5844_v29  }
 0xab3   :  { %4879 = vset.pattern.permute.xlu0 %v4974_v6  ;;  %4878 = vset.pattern.permute.xlu1 %v4974_v6 }
 0xb05   :  { %v6271_v41 = vpop.permute.xlu0 %1643  ;;  %v6273_v3 = vpop.permute.xlu1 %1645 }
 0xb06   :  { %9868 = vst [vmem:[#allocation227_spill] sm:$0xff] %v6271_v41  ;;  %9869 = vst [vmem:[#allocation228_spill] sm:$0xff] %v6273_v3 }
 0xb09   :  { %v6275_v8 = vpop.permute.xlu0 %1647  ;;  %v6277_v56 = vpop.permute.xlu1 %1649 }
 0xb0a   :  { %9870 = vst [vmem:[#allocation229_spill] sm:$0xff] %v6275_v8  ;;  %9871 = vst [vmem:[#allocation230_spill] sm:$0xff] %v6277_v56 }
 0xb0d   :  { %v6279_v40 = vpop.permute.xlu0 %1651  ;;  %v6281_v32 = vpop.permute.xlu1 %1653 }
 0xb11   :  { %v6283_v12 = vpop.permute.xlu0 %1655  ;;  %v6285_v62 = vpop.permute.xlu1 %1657 }
 0xb12   :  { %9872 = vst [vmem:[#allocation231_spill] sm:$0xff] %v6283_v12  ;;  %9873 = vst [vmem:[#allocation232_spill] sm:$0xff] %v6285_v62 }
 0xb15   :  { %v6287_v15 = vpop.permute.xlu0 %1659  ;;  %v6289_v47 = vpop.permute.xlu1 %1661 }
 0xb16   :  { %9874 = vst [vmem:[#allocation233_spill] sm:$0xff] %v6287_v15  ;;  %9875 = vst [vmem:[#allocation234_spill] sm:$0xff] %v6289_v47 }
 0xb19   :  { %v6291_v6 = vpop.permute.xlu0 %1663  ;;  %v6293_v41 = vpop.permute.xlu1 %1665 }
 0xb1a   :  { %9876 = vst [vmem:[#allocation235_spill] sm:$0xff] %v6291_v6  ;;  %9877 = vst [vmem:[#allocation236_spill] sm:$0xff] %v6293_v41 }
 0xb2a   :  { %v6295_v3 = vpop.permute.xlu0 %1693  ;;  %v6297_v8 = vpop.permute.xlu1 %1697 }
 0xb2b   :  { %9878 = vst [vmem:[#allocation237_spill] sm:$0xff] %v6295_v3  ;;  %9879 = vst [vmem:[#allocation238_spill] sm:$0xff] %v6297_v8  ;;  %v1709_v56 = vmul.f32 %v6295_v3, %v5072_v22  ;;  %v1708_v12 = vmul.f32 %v6295_v3, %v5069_v21  ;;  %v1711_v47 = vmul.f32 %v6297_v8, %v5069_v21 }
 0xb2c   :  { %v1710_v41 = vmul.f32 %v6295_v3, %v6085_v14  ;;  %v1712_v6 = vmul.f32 %v6297_v8, %v5072_v22  ;;  %v1713_v15 = vmul.f32 %v6297_v8, %v6085_v14 }
 0xb2d   :  { %1734 = vrot.lane.b32.xlu0 %v1709_v56, %s4975_s28  ;;  %1732 = vrot.lane.b32.xlu1 %v1708_v12, %s4975_s28 }
 0xb2e   :  { %v6315_v62 = vpop.permute.xlu1 %1701  ;;  %v6323_v56 = vpop.permute.xlu0 %1705 }
 0xb2f   :  { %9880 = vst [vmem:[#allocation239_spill] sm:$0xff] %v6315_v62  ;;  %v1715_v12 = vmul.f32 %v6315_v62, %v5072_v22  ;;  %9881 = vst [vmem:[#allocation240_spill] sm:$0xff] %v6323_v56  ;;  %v1718_v8 = vmul.f32 %v6323_v56, %v5072_v22 }
 0xb31   :  { %1736 = vrot.lane.b32.xlu1 %v1710_v41, %s4975_s28  ;;  %1738 = vrot.lane.b32.xlu0 %v1711_v47, %s4975_s28  ;;  %v1714_v41 = vmul.f32 %v6315_v62, %v5069_v21  ;;  %v1717_v47 = vmul.f32 %v6323_v56, %v5069_v21 }
 0xb35   :  { %1740 = vrot.lane.b32.xlu1 %v1712_v6, %s4975_s28  ;;  %1742 = vrot.lane.b32.xlu0 %v1713_v15, %s4975_s28  ;;  %v1716_v6 = vmul.f32 %v6315_v62, %v6085_v14  ;;  %v1719_v15 = vmul.f32 %v6323_v56, %v6085_v14 }
 0xb39   :  { %1746 = vrot.lane.b32.xlu0 %v1715_v12, %s4975_s28  ;;  %1744 = vrot.lane.b32.xlu1 %v1714_v41, %s4975_s28  ;;  %v25_v12 = vld [vmem:[%s9290_s2] sm:$0xff]  ;;  %v9882_v41 = vmov 0  }
 0xb3d   :  { %1750 = vrot.lane.b32.xlu0 %v1717_v47, %s4975_s28  ;;  %1748 = vrot.lane.b32.xlu1 %v1716_v6, %s4975_s28  ;;  %v26_v47 = vld [vmem:[%s9290_s2 + $0x8] sm:$0xff]  ;;  %s4976_s2 = smov 60  }
 0xb41   :  { %1754 = vrot.lane.b32.xlu0 %v1719_v15, %s4975_s28  ;;  %1752 = vrot.lane.b32.xlu1 %v1718_v8, %s4975_s28 }
 0xb45   :  { %1786 = vperm.xlu0 %4879, %v5775_v23   ;;  %1782 = vperm.xlu1 %4878, %v5781_v5  }
 0xb49   :  { %4880 = vset.pattern.permute.xlu0 %v9882_v41  ;;  %1790 = vperm.xlu1 %4878, %v5844_v29  }
 0xb4a   :  { %32 = vperm.xlu0 %4880, %v25_v12  }
 0xb4d   :  { %1794 = vperm.xlu1 %4878, %v5788_v2  }
 0xb4e   :  { %37 = vperm.xlu0 %4880, %v26_v47  }
 0xb51   :  { %4881 = vset.pattern.permute.xlu1 %v9882_v41 }
 0xb52   :  { %52 = vperm.xlu0 %4880, %v5781_v5  }
 0xb56   :  { %62 = vperm.xlu0 %4880, %v5844_v29  }
 0xb9f   :  { %v6353_v23 = vpop.permute.xlu1 %1732  ;;  %v6355_v8 = vpop.permute.xlu0 %1734 }
 0xba0   :  { %9883 = vst [vmem:[#allocation241_spill] sm:$0xff] %v6353_v23 }
 0xba3   :  { %v6357_v6 = vpop.permute.xlu1 %1736  ;;  %v6359_v15 = vpop.permute.xlu0 %1738 }
 0xba4   :  { %9884 = vst [vmem:[#allocation242_spill] sm:$0xff] %v6357_v6  ;;  %9885 = vst [vmem:[#allocation243_spill] sm:$0xff] %v6359_v15 }
 0xba7   :  { %v6361_v12 = vpop.permute.xlu1 %1740  ;;  %v6363_v56 = vpop.permute.xlu0 %1742 }
 0xba8   :  { %9886 = vst [vmem:[#allocation244_spill] sm:$0xff] %v6361_v12  ;;  %9887 = vst [vmem:[#allocation245_spill] sm:$0xff] %v6363_v56 }
 0xbab   :  { %v6365_v2 = vpop.permute.xlu1 %1744  ;;  %v6367_v47 = vpop.permute.xlu0 %1746 }
 0xbac   :  { %9888 = vst [vmem:[#allocation246_spill] sm:$0xff] %v6365_v2  ;;  %9889 = vst [vmem:[#allocation247_spill] sm:$0xff] %v6367_v47 }
 0xbaf   :  { %v6369_v41 = vpop.permute.xlu1 %1748  ;;  %v6371_v5 = vpop.permute.xlu0 %1750 }
 0xbb0   :  { %9890 = vst [vmem:[#allocation248_spill] sm:$0xff] %v6369_v41  ;;  %9891 = vst [vmem:[#allocation249_spill] sm:$0xff] %v6371_v5 }
 0xbb3   :  { %v6373_v29 = vpop.permute.xlu1 %1752  ;;  %v6375_v62 = vpop.permute.xlu0 %1754 }
 0xbb4   :  { %9892 = vst [vmem:[#allocation250_spill] sm:$0xff] %v6373_v29  ;;  %9893 = vst [vmem:[#allocation251_spill] sm:$0xff] %v6375_v62 }
 0xbc4   :  { %v6377_v3 = vpop.permute.xlu1 %1782  ;;  %v6383_v12 = vpop.permute.xlu0 %1786 }
 0xbc5   :  { %9894 = vst [vmem:[#allocation252_spill] sm:$0xff] %v6377_v3  ;;  %v1798_v15 = vmul.f32 %v6377_v3, %v5072_v22  ;;  %v1797_v56 = vmul.f32 %v6377_v3, %v5069_v21  ;;  %9895 = vst [vmem:[#allocation253_spill] sm:$0xff] %v6383_v12  ;;  %v1800_v5 = vmul.f32 %v6383_v12, %v5069_v21 }
 0xbc6   :  { %v1799_v62 = vmul.f32 %v6377_v3, %v6085_v14  ;;  %v1802_v41 = vmul.f32 %v6383_v12, %v6085_v14 }
 0xbc7   :  { %1823 = vrot.lane.b32.xlu1 %v1798_v15, %s4976_s2  ;;  %1821 = vrot.lane.b32.xlu0 %v1797_v56, %s4976_s2  ;;  %v1801_v15 = vmul.f32 %v6383_v12, %v5072_v22 }
 0xbc8   :  { %v6393_v29 = vpop.permute.xlu1 %1790 }
 0xbc9   :  { %9896 = vst [vmem:[#allocation254_spill] sm:$0xff] %v6393_v29  ;;  %v6399_v2 = vpop.permute.xlu0 %32  ;;  %v1804_v56 = vmul.f32 %v6393_v29, %v5072_v22  ;;  %v1805_v12 = vmul.f32 %v6393_v29, %v6085_v14 }
 0xbca   :  { %9897 = vst [vmem:[#allocation255_spill] sm:$0xff] %v6399_v2 }
 0xbcb   :  { %1827 = vrot.lane.b32.xlu1 %v1800_v5, %s4976_s2  ;;  %1825 = vrot.lane.b32.xlu0 %v1799_v62, %s4976_s2  ;;  %v1803_v62 = vmul.f32 %v6393_v29, %v5069_v21 }
 0xbcc   :  { %v6407_v5 = vpop.permute.xlu1 %1794 }
 0xbcd   :  { %9898 = vst [vmem:[#allocation256_spill] sm:$0xff] %v6407_v5  ;;  %v6411_v3 = vpop.permute.xlu0 %37 }
 0xbcf   :  { %1831 = vrot.lane.b32.xlu1 %v1802_v41, %s4976_s2  ;;  %1829 = vrot.lane.b32.xlu0 %v1801_v15, %s4976_s2  ;;  %v1806_v41 = vmul.f32 %v6407_v5, %v5069_v21  ;;  %v1807_v15 = vmul.f32 %v6407_v5, %v5072_v22 }
 0xbd1   :  { %v6423_v47 = vpop.permute.xlu0 %52 }
 0xbd2   :  { %9899 = vst [vmem:[#allocation257_spill] sm:$0xff] %v6423_v47 }
 0xbd3   :  { %1835 = vrot.lane.b32.xlu1 %v1804_v56, %s4976_s2  ;;  %1833 = vrot.lane.b32.xlu0 %v1803_v62, %s4976_s2  ;;  %v1808_v56 = vmul.f32 %v6407_v5, %v6085_v14  ;;  %v89_v62 = vmul.f32 %v5069_v21, %v6423_v47  ;;  %v91_v14 = vmul.f32 %v5069_v21, %v5084_v27 }
 0xbd4   :  { %v92_v5 = vmul.f32 %v5072_v22, %v5084_v27 }
 0xbd5   :  { %v6443_v23 = vpop.permute.xlu0 %62 }
 0xbd6   :  { %v100_v6 = vadd.f32 %v92_v5, %v6411_v3 }
 0xbd7   :  { %1837 = vrot.lane.b32.xlu0 %v1805_v12, %s4976_s2  ;;  %1839 = vrot.lane.b32.xlu1 %v1806_v41, %s4976_s2  ;;  %v90_v12 = vmul.f32 %v5072_v22, %v6423_v47  ;;  %v97_v41 = vadd.f32 %v89_v62, %v6399_v2 }
 0xbd9   :  { %v98_v29 = vadd.f32 %v90_v12, %v6399_v2  ;;  %v155_v12 = vsel %vm153_vm0, %v5250_v46, %v5248_v45  ;;  %v223_v2 = vsel %vm222_vm1, %v5260_v54, %v5262_v55  ;;  %v224_v46 = vsel %vm222_vm1, %v5264_v57, %v5266_v58 }
 0xbda   :  { %v292_v54 = vsel %vm291_vm2, %v5278_v7, %v5276_v4  ;;  %v95_v57 = vmul.f32 %v5069_v21, %v5086_v28  ;;  %v293_v7 = vsel %vm291_vm2, %v5282_v11, %v5280_v10 }
 0xbdb   :  { %1841 = vrot.lane.b32.xlu0 %v1807_v15, %s4976_s2  ;;  %1843 = vrot.lane.b32.xlu1 %v1808_v56, %s4976_s2  ;;  %v154_v15 = vsel %vm153_vm0, %v5246_v43, %v5244_v42  ;;  %v99_v56 = vadd.f32 %v91_v14, %v6411_v3  ;;  %v167_v62 = vadd.f32 %v5244_v42, %v98_v29 }
 0xbdc   :  { %v166_v47 = vadd.f32 %v154_v15, %v97_v41  ;;  %v169_v14 = vadd.f32 %v5248_v45, %v100_v6  ;;  %v93_v42 = vmul.f32 %v5069_v21, %v6443_v23  ;;  %v94_v29 = vmul.f32 %v5072_v22, %v6443_v23 }
 0xbdd   :  { %v168_v43 = vadd.f32 %v155_v12, %v99_v56  ;;  %v236_v5 = vadd.f32 %v5262_v55, %v167_v62  ;;  %v96_v15 = vmul.f32 %v5072_v22, %v5086_v28 }
 0xbde   :  { %v235_v27 = vadd.f32 %v223_v2, %v166_v47  ;;  %v238_v45 = vadd.f32 %v5266_v58, %v169_v14  ;;  %v101_v2 = vadd.f32 %v93_v42, %v5066_v20  ;;  %v102_v47 = vadd.f32 %v94_v29, %v5066_v20 }
 0xbdf   :  { %v237_v41 = vadd.f32 %v224_v46, %v168_v43  ;;  %v305_v55 = vadd.f32 %v5276_v4, %v236_v5  ;;  %v361_v58 = vsel %vm360_vm3, %v5292_v25, %v5294_v30  ;;  %v104_v11 = vadd.f32 %v96_v15, %v5080_v26 }
 0xbe0   :  { %v304_v6 = vadd.f32 %v292_v54, %v235_v27  ;;  %v156_v27 = vsel %vm153_vm0, %v5254_v49, %v5252_v48  ;;  %v307_v56 = vadd.f32 %v5280_v10, %v238_v45  ;;  %v171_v12 = vadd.f32 %v5252_v48, %v102_v47 }
 0xbe1   :  { %v306_v4 = vadd.f32 %v293_v7, %v237_v41  ;;  %v374_v62 = vadd.f32 %v5294_v30, %v305_v55  ;;  %v170_v21 = vadd.f32 %v156_v27, %v101_v2  ;;  %v103_v43 = vadd.f32 %v95_v57, %v5080_v26  ;;  %v9900_v57 = vld [vmem:[#allocation25_spill] sm:$0xff]  ;;  %v9901_v7 = vld [vmem:[#allocation26_spill] sm:$0xff]  ;;  %v9902_v27 = vld [vmem:[#allocation27_spill] sm:$0xff] }
 0xbe2   :  { %v373_v22 = vadd.f32 %v361_v58, %v304_v6  ;;  %v157_v49 = vsel %vm153_vm0, %v5258_v52, %v5256_v51  ;;  %v225_v25 = vsel %vm222_vm1, %v5268_v60, %v5270_v61  ;;  %v362_v10 = vsel %vm360_vm3, %v5296_v33, %v5298_v34  ;;  %v9903_v58 = vld [vmem:[#allocation42_spill] sm:$0xff] }
 0xbe3   :  { %v430_v48 = vsel %vm429_vm4, %v5310_v31, %v5308_v36  ;;  %v375_v30 = vadd.f32 %v362_v10, %v306_v4  ;;  %v376_v14 = vadd.f32 %v5298_v34, %v307_v56  ;;  %v443_v42 = vadd.f32 %v5308_v36, %v374_v62  ;;  %v9904_v4 = vld [vmem:[#allocation43_spill] sm:$0xff]  ;;  %v9905_v56 = vld [vmem:[#allocation53_spill] sm:$0xff] }
 0xbe4   :  { %v442_v5 = vadd.f32 %v430_v48, %v373_v22  ;;  %v239_v52 = vadd.f32 %v225_v25, %v170_v21  ;;  %v240_v29 = vadd.f32 %v5270_v61, %v171_v12  ;;  %v173_v60 = vadd.f32 %v5256_v51, %v104_v11  ;;  %v9907_v25 = vld [vmem:[#allocation28_spill] sm:$0xff]  ;;  %v9908_v10 = vld [vmem:[#allocation29_spill] sm:$0xff] }
 0xbe5   :  { %v172_v46 = vadd.f32 %v157_v49, %v103_v43  ;;  %v226_v33 = vsel %vm222_vm1, %v5272_v63, %v5274_v1  ;;  %v294_v31 = vsel %vm291_vm2, %v5286_v16, %v5284_v13  ;;  %v431_v34 = vsel %vm429_vm4, %v5314_v17, %v5312_v24 }
 0xbe6   :  { %v499_v36 = vsel %vm9642_vm5, %v5360_v59, %v5362_v53  ;;  %v444_v61 = vadd.f32 %v431_v34, %v375_v30  ;;  %v445_v51 = vadd.f32 %v5312_v24, %v376_v14  ;;  %v512_v41 = vadd.f32 %v5362_v53, %v443_v42  ;;  %v9909_v30 = vld [vmem:[#allocation35_spill] sm:$0xff]  ;;  %v9910_v14 = vld [vmem:[#allocation34_spill] sm:$0xff] }
 0xbe7   :  { %v511_v54 = vadd.f32 %v499_v36, %v442_v5  ;;  %v308_v63 = vadd.f32 %v294_v31, %v239_v52  ;;  %v309_v45 = vadd.f32 %v5284_v13, %v240_v29  ;;  %v242_v16 = vadd.f32 %v5274_v1, %v173_v60  ;;  %v9911_v42 = vld [vmem:[#allocation55_spill] sm:$0xff]  ;;  %v9912_v52 = vld [vmem:[#allocation54_spill] sm:$0xff]  ;;  %v9913_v60 = vld [vmem:[#allocation64_spill] sm:$0xff] }
 0xbe8   :  { %v241_v6 = vadd.f32 %v226_v33, %v172_v46  ;;  %v295_v17 = vsel %vm291_vm2, %v5290_v19, %v5288_v18  ;;  %v363_v59 = vsel %vm360_vm3, %v5300_v37, %v5302_v39  ;;  %v500_v24 = vsel %vm9642_vm5, %v5364_v38, %v5366_v50  ;;  %v9914_v46 = vld [vmem:[#allocation65_spill] sm:$0xff] }
 0xbe9   :  { %v568_v53 = vsel %vm9641_vm6, %v5414_v44, %v5412_v35  ;;  %v513_v13 = vadd.f32 %v500_v24, %v444_v61  ;;  %v514_v1 = vadd.f32 %v5366_v50, %v445_v51  ;;  %v581_v2 = vadd.f32 %v5412_v35, %v512_v41  ;;  %v9906_v35 = vld [vmem:[#allocation52_spill] sm:$0xff]  ;;  %v9919_v24 = vld [vmem:[#allocation66_spill] sm:$0xff] }
 0xbea   :  { %v580_v55 = vadd.f32 %v568_v53, %v511_v54  ;;  %v377_v19 = vadd.f32 %v363_v59, %v308_v63  ;;  %v378_v47 = vadd.f32 %v5302_v39, %v309_v45  ;;  %v311_v37 = vadd.f32 %v5288_v18, %v242_v16  ;;  %v9915_v63 = vld [vmem:[#allocation37_spill] sm:$0xff]  ;;  %v9916_v45 = vld [vmem:[#allocation36_spill] sm:$0xff]  ;;  %v9920_v53 = vld [vmem:[#allocation67_spill] sm:$0xff] }
 0xbeb   :  { %v310_v15 = vadd.f32 %v295_v17, %v241_v6  ;;  %v364_v38 = vsel %vm360_vm3, %v9900_v57, %v5306_v0  ;;  %v432_v44 = vsel %vm429_vm4, %v9902_v27, %v9901_v7  ;;  %v569_v50 = vsel %vm9641_vm6, %v9904_v4, %v9903_v58  ;;  %v9917_v6 = vld [vmem:[#allocation44_spill] sm:$0xff]  ;;  %v9918_v17 = vld [vmem:[#allocation45_spill] sm:$0xff] }
 0xbec   :  { %v637_v22 = vsel %vm9640_vm7, %v9906_v35, %v9905_v56  ;;  %v582_v39 = vadd.f32 %v569_v50, %v513_v13  ;;  %v583_v18 = vadd.f32 %v9903_v58, %v514_v1  ;;  %v650_v21 = vadd.f32 %v9905_v56, %v581_v2  ;;  %v9921_v1 = vld [vmem:[#allocation77_spill] sm:$0xff]  ;;  %v9924_v58 = vld [vmem:[#allocation47_spill] sm:$0xff]  ;;  %v9926_v56 = vld [vmem:[#allocation56_spill] sm:$0xff] }
 0xbed   :  { %v649_v62 = vadd.f32 %v637_v22, %v580_v55  ;;  %v446_v12 = vadd.f32 %v432_v44, %v377_v19  ;;  %v447_v11 = vadd.f32 %v9901_v7, %v378_v47  ;;  %v380_v43 = vadd.f32 %v5306_v0, %v311_v37  ;;  %v9922_v55 = vld [vmem:[#allocation76_spill] sm:$0xff]  ;;  %v9923_v44 = vld [vmem:[#allocation46_spill] sm:$0xff]  ;;  %v9925_v50 = vld [vmem:[#allocation57_spill] sm:$0xff] }
 0xbee   :  { %v379_v49 = vadd.f32 %v364_v38, %v310_v15  ;;  %v433_v48 = vsel %vm429_vm4, %v9908_v10, %v9907_v25  ;;  %v501_v5 = vsel %vm9642_vm5, %v9910_v14, %v9909_v30  ;;  %v638_v29 = vsel %vm9640_vm7, %v9912_v52, %v9911_v42  ;;  %v9927_v22 = vld [vmem:[#allocation79_spill] sm:$0xff] }
 0xbef   :  { %v706_v33 = vsel %vm705_vm8, %v9914_v46, %v9913_v60  ;;  %v651_v31 = vadd.f32 %v638_v29, %v582_v39  ;;  %v652_v0 = vadd.f32 %v9911_v42, %v583_v18  ;;  %v719_v36 = vadd.f32 %v9913_v60, %v650_v21  ;;  %v9928_v39 = vld [vmem:[#allocation78_spill] sm:$0xff]  ;;  %v9930_v21 = vld [vmem:[#allocation89_spill] sm:$0xff]  ;;  %v9933_v29 = vld [vmem:[#allocation68_spill] sm:$0xff] }
 0xbf0   :  { %v718_v34 = vadd.f32 %v706_v33, %v649_v62  ;;  %v515_v61 = vadd.f32 %v501_v5, %v446_v12  ;;  %v516_v51 = vadd.f32 %v9909_v30, %v447_v11  ;;  %v449_v54 = vadd.f32 %v9907_v25, %v380_v43  ;;  %v9929_v62 = vld [vmem:[#allocation88_spill] sm:$0xff]  ;;  %v9931_v5 = vld [vmem:[#allocation59_spill] sm:$0xff]  ;;  %v9932_v42 = vld [vmem:[#allocation58_spill] sm:$0xff] }
 0xbf1   :  { %v448_v41 = vadd.f32 %v433_v48, %v379_v49  ;;  %v502_v16 = vsel %vm9642_vm5, %v9916_v45, %v9915_v63  ;;  %v570_v59 = vsel %vm9641_vm6, %v9918_v17, %v9917_v6  ;;  %v707_v13 = vsel %vm705_vm8, %v9920_v53, %v9919_v24  ;;  %v9934_v60 = vld [vmem:[#allocation69_spill] sm:$0xff]  ;;  %v9935_v33 = vld [vmem:[#allocation90_spill] sm:$0xff] }
 0xbf2   :  { %v775_v2 = vsel %vm9643_vm9, %v9922_v55, %v9921_v1  ;;  %v720_v19 = vadd.f32 %v707_v13, %v651_v31  ;;  %v721_v47 = vadd.f32 %v9919_v24, %v652_v0  ;;  %v788_v15 = vadd.f32 %v9921_v1, %v719_v36  ;;  %v9936_v31 = vld [vmem:[#allocation91_spill] sm:$0xff]  ;;  %v9938_v36 = vld [vmem:[#allocation100_spill] sm:$0xff]  ;;  %v9941_v13 = vld [vmem:[#allocation81_spill] sm:$0xff] }
 0xbf3   :  { %v787_v37 = vadd.f32 %v775_v2, %v718_v34  ;;  %v584_v57 = vadd.f32 %v570_v59, %v515_v61  ;;  %v585_v38 = vadd.f32 %v9917_v6, %v516_v51  ;;  %v518_v7 = vadd.f32 %v9915_v63, %v449_v54  ;;  %v9937_v34 = vld [vmem:[#allocation101_spill] sm:$0xff]  ;;  %v9939_v59 = vld [vmem:[#allocation70_spill] sm:$0xff]  ;;  %v9940_v24 = vld [vmem:[#allocation71_spill] sm:$0xff] }
 0xbf4   :  { %v517_v27 = vadd.f32 %v502_v16, %v448_v41  ;;  %v571_v4 = vsel %vm9641_vm6, %v9924_v58, %v9923_v44  ;;  %v639_v35 = vsel %vm9640_vm7, %v9926_v56, %v9925_v50  ;;  %v776_v18 = vsel %vm9643_vm9, %v9928_v39, %v9927_v22  ;;  %v9942_v1 = vld [vmem:[#allocation80_spill] sm:$0xff]  ;;  %v9943_v2 = vld [vmem:[#allocation103_spill] sm:$0xff] }
 0xbf5   :  { %v844_v12 = vsel %vm9569_vm10, %v9930_v21, %v9929_v62  ;;  %v789_v11 = vadd.f32 %v776_v18, %v720_v19  ;;  %v790_v43 = vadd.f32 %v9927_v22, %v721_v47  ;;  %v653_v49 = vadd.f32 %v639_v35, %v584_v57  ;;  %v9944_v19 = vld [vmem:[#allocation102_spill] sm:$0xff]  ;;  %v9947_v35 = vld [vmem:[#allocation83_spill] sm:$0xff]  ;;  %v9949_v18 = vld [vmem:[#allocation92_spill] sm:$0xff] }
 0xbf6   :  { %v654_v25 = vadd.f32 %v9925_v50, %v585_v38  ;;  %v856_v10 = vadd.f32 %v844_v12, %v787_v37  ;;  %v857_v48 = vadd.f32 %v9929_v62, %v788_v15  ;;  %v587_v30 = vadd.f32 %v9923_v44, %v518_v7  ;;  %v9945_v37 = vld [vmem:[#allocation112_spill] sm:$0xff]  ;;  %v9946_v15 = vld [vmem:[#allocation113_spill] sm:$0xff]  ;;  %v9948_v22 = vld [vmem:[#allocation82_spill] sm:$0xff] }
 0xbf7   :  { %v586_v14 = vadd.f32 %v571_v4, %v517_v27  ;;  %v640_v52 = vsel %vm9640_vm7, %v9932_v42, %v9931_v5  ;;  %v708_v46 = vsel %vm705_vm8, %v9934_v60, %v9933_v29  ;;  %v845_v0 = vsel %vm9569_vm10, %v9936_v31, %v9935_v33  ;;  %v9950_v62 = vld [vmem:[#allocation93_spill] sm:$0xff]  ;;  %v9951_v12 = vld [vmem:[#allocation114_spill] sm:$0xff] }
 0xbf8   :  { %v913_v61 = vsel %vm9570_vm11, %v9938_v36, %v9937_v34  ;;  %v858_v51 = vadd.f32 %v845_v0, %v789_v11  ;;  %v859_v54 = vadd.f32 %v9935_v33, %v790_v43  ;;  %v722_v41 = vadd.f32 %v708_v46, %v653_v49  ;;  %v9952_v11 = vld [vmem:[#allocation115_spill] sm:$0xff]  ;;  %v9953_v49 = vld [vmem:[#allocation125_spill] sm:$0xff]  ;;  %v9955_v46 = vld [vmem:[#allocation94_spill] sm:$0xff] }
 0xbf9   :  { %v723_v63 = vadd.f32 %v9933_v29, %v654_v25  ;;  %v925_v45 = vadd.f32 %v913_v61, %v856_v10  ;;  %v926_v16 = vadd.f32 %v9937_v34, %v857_v48  ;;  %v656_v6 = vadd.f32 %v9931_v5, %v587_v30  ;;  %v9954_v25 = vld [vmem:[#allocation124_spill] sm:$0xff]  ;;  %v9956_v33 = vld [vmem:[#allocation95_spill] sm:$0xff]  ;;  %v9957_v0 = vld [vmem:[#allocation105_spill] sm:$0xff] }
 0xbfa   :  { %v655_v17 = vadd.f32 %v640_v52, %v586_v14  ;;  %v709_v53 = vsel %vm705_vm8, %v9940_v24, %v9939_v59  ;;  %v777_v55 = vsel %vm9643_vm9, %v9942_v1, %v9941_v13  ;;  %v914_v47 = vsel %vm9570_vm11, %v9944_v19, %v9943_v2  ;;  %v9958_v34 = vld [vmem:[#allocation104_spill] sm:$0xff]  ;;  %v9959_v61 = vld [vmem:[#allocation127_spill] sm:$0xff] }
 0xbfb   :  { %v982_v57 = vsel %vm9571_vm12, %v9946_v15, %v9945_v37  ;;  %v927_v38 = vadd.f32 %v914_v47, %v858_v51  ;;  %v928_v7 = vadd.f32 %v9943_v2, %v859_v54  ;;  %v791_v27 = vadd.f32 %v777_v55, %v722_v41  ;;  %v9960_v51 = vld [vmem:[#allocation126_spill] sm:$0xff]  ;;  %v9961_v41 = vld [vmem:[#allocation136_spill] sm:$0xff]  ;;  %v9963_v55 = vld [vmem:[#allocation107_spill] sm:$0xff] }
 0xbfc   :  { %v792_v44 = vadd.f32 %v9941_v13, %v723_v63  ;;  %v994_v58 = vadd.f32 %v982_v57, %v925_v45  ;;  %v995_v4 = vadd.f32 %v9945_v37, %v926_v16  ;;  %v725_v50 = vadd.f32 %v9939_v59, %v656_v6  ;;  %v9962_v63 = vld [vmem:[#allocation137_spill] sm:$0xff]  ;;  %v9964_v2 = vld [vmem:[#allocation106_spill] sm:$0xff]  ;;  %v9965_v47 = vld [vmem:[#allocation116_spill] sm:$0xff] }
 0xbfd   :  { %v724_v56 = vadd.f32 %v709_v53, %v655_v17  ;;  %v778_v39 = vsel %vm9643_vm9, %v9948_v22, %v9947_v35  ;;  %v846_v21 = vsel %vm9569_vm10, %v9950_v62, %v9949_v18  ;;  %v983_v43 = vsel %vm9571_vm12, %v9952_v11, %v9951_v12  ;;  %v9966_v37 = vld [vmem:[#allocation117_spill] sm:$0xff]  ;;  %v9967_v57 = vld [vmem:[#allocation138_spill] sm:$0xff] }
 0xbfe   :  { %v1051_v10 = vsel %vm9572_vm13, %v9954_v25, %v9953_v49  ;;  %v996_v48 = vadd.f32 %v983_v43, %v927_v38  ;;  %v997_v30 = vadd.f32 %v9951_v12, %v928_v7  ;;  %v1064_v5 = vadd.f32 %v9953_v49, %v995_v4  ;;  %v9968_v38 = vld [vmem:[#allocation139_spill] sm:$0xff]  ;;  %v9973_v43 = vld [vmem:[#allocation129_spill] sm:$0xff]  ;;  %v9974_v49 = vld [vmem:[#allocation128_spill] sm:$0xff] }
 0xbff   :  { %v1063_v14 = vadd.f32 %v1051_v10, %v994_v58  ;;  %v860_v42 = vadd.f32 %v846_v21, %v791_v27  ;;  %v861_v52 = vadd.f32 %v9949_v18, %v792_v44  ;;  %v794_v29 = vadd.f32 %v9947_v35, %v725_v50  ;;  %v9969_v27 = vld [vmem:[#allocation149_spill] sm:$0xff]  ;;  %v9970_v44 = vld [vmem:[#allocation148_spill] sm:$0xff]  ;;  %v9971_v21 = vld [vmem:[#allocation118_spill] sm:$0xff] }
 0xc00   :  { %v793_v60 = vadd.f32 %v778_v39, %v724_v56  ;;  %v847_v31 = vsel %vm9569_vm10, %v9956_v33, %v9955_v46  ;;  %v915_v36 = vsel %vm9570_vm11, %v9958_v34, %v9957_v0  ;;  %v1052_v54 = vsel %vm9572_vm13, %v9960_v51, %v9959_v61  ;;  %v9972_v12 = vld [vmem:[#allocation119_spill] sm:$0xff] }
 0xc01   :  { %v1120_v45 = vsel %vm9573_vm14, %v9962_v63, %v9961_v41  ;;  %v1065_v16 = vadd.f32 %v1052_v54, %v996_v48  ;;  %v1066_v6 = vadd.f32 %v9959_v61, %v997_v30  ;;  %v1133_v59 = vadd.f32 %v9961_v41, %v1064_v5  ;;  %v9975_v10 = vld [vmem:[#allocation151_spill] sm:$0xff]  ;;  %v9976_v48 = vld [vmem:[#allocation150_spill] sm:$0xff]  ;;  %v9978_v5 = vld [vmem:[#allocation161_spill] sm:$0xff] }
 0xc02   :  { %v1132_v17 = vadd.f32 %v1120_v45, %v1063_v14  ;;  %v929_v24 = vadd.f32 %v915_v36, %v860_v42  ;;  %v930_v53 = vadd.f32 %v9957_v0, %v861_v52  ;;  %v863_v13 = vadd.f32 %v9955_v46, %v794_v29  ;;  %v9977_v14 = vld [vmem:[#allocation160_spill] sm:$0xff]  ;;  %v9979_v36 = vld [vmem:[#allocation131_spill] sm:$0xff]  ;;  %v9980_v61 = vld [vmem:[#allocation130_spill] sm:$0xff] }
 0xc03   :  { %v862_v1 = vadd.f32 %v847_v31, %v793_v60  ;;  %v916_v19 = vsel %vm9570_vm11, %v9964_v2, %v9963_v55  ;;  %v984_v15 = vsel %vm9571_vm12, %v9966_v37, %v9965_v47  ;;  %v1121_v7 = vsel %vm9573_vm14, %v9968_v38, %v9967_v57  ;;  %v9981_v54 = vld [vmem:[#allocation140_spill] sm:$0xff]  ;;  %v9982_v41 = vld [vmem:[#allocation141_spill] sm:$0xff]  ;;  %v9983_v45 = vld [vmem:[#allocation162_spill] sm:$0xff] }
 0xc04   :  { %v1189_v58 = vsel %vm9576_vm15, %v9970_v44, %v9969_v27  ;;  %vm9574_vm10 = vcmask 637952   ;;  %v1134_v4 = vadd.f32 %v1121_v7, %v1065_v16  ;;  %v1135_v50 = vadd.f32 %v9967_v57, %v1066_v6  ;;  %v9984_v16 = vld [vmem:[#allocation163_spill] sm:$0xff]  ;;  %v9986_v37 = vld [vmem:[#allocation142_spill] sm:$0xff]  ;;  %v9988_v38 = vld [vmem:[#allocation153_spill] sm:$0xff] }
 0xc05   :  { %v1201_v56 = vadd.f32 %v1189_v58, %v1132_v17  ;;  %v1202_v35 = vadd.f32 %v9969_v27, %v1133_v59  ;;  %v998_v22 = vadd.f32 %v984_v15, %v929_v24  ;;  %v999_v39 = vadd.f32 %v9965_v47, %v930_v53  ;;  %v9985_v17 = vld [vmem:[#allocation172_spill] sm:$0xff]  ;;  %v9987_v15 = vld [vmem:[#allocation143_spill] sm:$0xff]  ;;  %v9990_v44 = vld [vmem:[#allocation174_spill] sm:$0xff] }
 0xc06   :  { %v932_v18 = vadd.f32 %v9963_v55, %v863_v13  ;;  %v931_v62 = vadd.f32 %v916_v19, %v862_v1  ;;  %v985_v11 = vsel %vm9571_vm12, %v9972_v12, %v9971_v21  ;;  %v1053_v25 = vsel %vm9572_vm13, %v9974_v49, %v9973_v43  ;;  %v9989_v7 = vld [vmem:[#allocation152_spill] sm:$0xff]  ;;  %v9991_v58 = vld [vmem:[#allocation173_spill] sm:$0xff]  ;;  %v9995_v49 = vld [vmem:[#allocation154_spill] sm:$0xff] }
 0xc07   :  { %v1190_v30 = vsel %vm9576_vm15, %v9976_v48, %v9975_v10  ;;  %v1258_v42 = vsel %vm9574_vm10, %v9978_v5, %v9977_v14  ;;  %vm9575_vm11 = vcmask 629760   ;;  %v1204_v29 = vadd.f32 %v9975_v10, %v1135_v50  ;;  %v9992_v50 = vld [vmem:[#allocation183_spill] sm:$0xff]  ;;  %v9996_v10 = vld [vmem:[#allocation164_spill] sm:$0xff]  ;;  %v9997_v48 = vld [vmem:[#allocation165_spill] sm:$0xff] }
 0xc08   :  { %v1203_v52 = vadd.f32 %v1190_v30, %v1134_v4  ;;  %v1270_v60 = vadd.f32 %v1258_v42, %v1201_v56  ;;  %v1271_v46 = vadd.f32 %v9977_v14, %v1202_v35  ;;  %v1067_v33 = vadd.f32 %v1053_v25, %v998_v22  ;;  %v9998_v14 = vld [vmem:[#allocation185_spill] sm:$0xff]  ;;  %v9999_v5 = vld [vmem:[#allocation186_spill] sm:$0xff] }
 0xc09   :  { %v1068_v31 = vadd.f32 %v9973_v43, %v999_v39  ;;  %v1001_v0 = vadd.f32 %v9971_v21, %v932_v18  ;;  %v1000_v34 = vadd.f32 %v985_v11, %v931_v62  ;;  %v1054_v51 = vsel %vm9572_vm13, %v9980_v61, %v9979_v36  ;;  %v9994_v43 = vld [vmem:[#allocation155_spill] sm:$0xff] }
 0xc0a   :  { %v1122_v63 = vsel %vm9573_vm14, %v9982_v41, %v9981_v54  ;;  %v1259_v6 = vsel %vm9574_vm10, %v9984_v16, %v9983_v45  ;;  %v1327_v59 = vsel %vm9575_vm11, %v9985_v17, %v6006_v9  ;;  %vm1395_vm12 = vcmask 621568   ;;  %v10006_v17 = vld [vmem:[#allocation175_spill] sm:$0xff] }
 0xc0b   :  { %v1272_v24 = vadd.f32 %v1259_v6, %v1203_v52  ;;  %v1273_v53 = vadd.f32 %v9983_v45, %v1204_v29  ;;  %v1339_v13 = vadd.f32 %v1327_v59, %v1270_v60  ;;  %v1340_v1 = vadd.f32 %v6006_v9, %v1271_v46  ;;  %v9993_v9 = vld [vmem:[#allocation184_spill] sm:$0xff]  ;;  %v10001_v29 = vld [vmem:[#allocation195_spill] sm:$0xff]  ;;  %v10002_v46 = vld [vmem:[#allocation197_spill] sm:$0xff] }
 0xc0c   :  { %v1136_v55 = vadd.f32 %v1122_v63, %v1067_v33  ;;  %v1137_v2 = vadd.f32 %v9981_v54, %v1068_v31  ;;  %v1070_v19 = vadd.f32 %v9979_v36, %v1001_v0  ;;  %v1069_v47 = vadd.f32 %v1054_v51, %v1000_v34  ;;  %v10000_v52 = vld [vmem:[#allocation196_spill] sm:$0xff]  ;;  %v10003_v63 = vld [vmem:[#allocation166_spill] sm:$0xff]  ;;  %v10004_v45 = vld [vmem:[#allocation167_spill] sm:$0xff] }
 0xc0d   :  { %v1123_v57 = vsel %vm9573_vm14, %v9987_v15, %v9986_v37  ;;  %v1191_v27 = vsel %vm9576_vm15, %v9989_v7, %v9988_v38  ;;  %v1328_v4 = vsel %vm9575_vm11, %v9991_v58, %v9990_v44  ;;  %v1396_v56 = vsel %vm1395_vm12, %v9993_v9, %v9992_v50  ;;  %v10005_v6 = vld [vmem:[#allocation176_spill] sm:$0xff]  ;;  %v10013_v9 = vld [vmem:[#allocation178_spill] sm:$0xff] }
 0xc0e   :  { %vm1489_vm13 = vcmask 523264   ;;  %v1341_v35 = vadd.f32 %v1328_v4, %v1272_v24  ;;  %v1342_v22 = vadd.f32 %v9990_v44, %v1273_v53  ;;  %v1408_v39 = vadd.f32 %v1396_v56, %v1339_v13  ;;  %v10007_v24 = vld [vmem:[#allocation199_spill] sm:$0xff]  ;;  %v10008_v53 = vld [vmem:[#allocation198_spill] sm:$0xff]  ;;  %v10014_v56 = vld [vmem:[#allocation177_spill] sm:$0xff] }
 0xc0f   :  { %v1409_v18 = vadd.f32 %v9992_v50, %v1340_v1  ;;  %v1205_v62 = vadd.f32 %v1191_v27, %v1136_v55  ;;  %v1206_v21 = vadd.f32 %v9988_v38, %v1137_v2  ;;  %v1139_v12 = vadd.f32 %v9986_v37, %v1070_v19  ;;  %v10009_v1 = vld [vmem:[#allocation200_spill] sm:$0xff]  ;;  %v10010_v2 = vld [vmem:[#allocation211_spill] sm:$0xff]  ;;  %v10012_v37 = vld [vmem:[#allocation214_spill] sm:$0xff] }
 0xc10   :  { %v1138_v11 = vadd.f32 %v1123_v57, %v1069_v47  ;;  %v1192_v25 = vsel %vm9576_vm15, %v9995_v49, %v9994_v43  ;;  %v1260_v30 = vsel %vm9574_vm10, %v9997_v48, %v9996_v10  ;;  %v1397_v42 = vsel %vm1395_vm12, %v9999_v5, %v9998_v14  ;;  %v10011_v19 = vld [vmem:[#allocation212_spill] sm:$0xff]  ;;  %v10022_v48 = vld [vmem:[#allocation229_spill] sm:$0xff] }
 0xc11   :  { %v1490_v60 = vsel %vm1489_vm13, %v10001_v29, %v10000_v52  ;;  %v1491_v33 = vsel %vm1489_vm13, %v10000_v52, %v10002_v46  ;;  %vm1578_vm14 = vcmask 515072   ;;  %v1410_v31 = vadd.f32 %v1397_v42, %v1341_v35  ;;  %v10020_v49 = vld [vmem:[#allocation228_spill] sm:$0xff] }
 0xc12   :  { %v1411_v0 = vadd.f32 %v9998_v14, %v1342_v22  ;;  %v1506_v34 = vadd.f32 %v1490_v60, %v1408_v39  ;;  %v1507_v36 = vadd.f32 %v1491_v33, %v1409_v18  ;;  %v1274_v61 = vadd.f32 %v1260_v30, %v1205_v62  ;;  %v10015_v22 = vld [vmem:[#allocation187_spill] sm:$0xff]  ;;  %v10016_v39 = vld [vmem:[#allocation188_spill] sm:$0xff] }
 0xc13   :  { %v1275_v51 = vadd.f32 %v9996_v10, %v1206_v21  ;;  %v1207_v54 = vadd.f32 %v1192_v25, %v1138_v11  ;;  %v1208_v41 = vadd.f32 %v9994_v43, %v1139_v12  ;;  %v1261_v16 = vsel %vm9574_vm10, %v10004_v45, %v10003_v63  ;;  %v10017_v62 = vld [vmem:[#allocation216_spill] sm:$0xff]  ;;  %v10018_v21 = vld [vmem:[#allocation213_spill] sm:$0xff]  ;;  %v10019_v11 = vld [vmem:[#allocation215_spill] sm:$0xff] }
 0xc14   :  { %v1329_v59 = vsel %vm9575_vm11, %v10006_v17, %v10005_v6  ;;  %v1492_v13 = vsel %vm1489_vm13, %v10008_v53, %v10007_v24  ;;  %v1493_v55 = vsel %vm1489_vm13, %v10007_v24, %v10009_v1  ;;  %v1579_v47 = vsel %vm1578_vm14, %v10011_v19, %v10010_v2  ;;  %v10021_v25 = vld [vmem:[#allocation227_spill] sm:$0xff]  ;;  %v10030_v53 = vld [vmem:[#allocation242_spill] sm:$0xff] }
 0xc15   :  { %v1580_v15 = vsel %vm1578_vm14, %v10010_v2, %v10012_v37  ;;  %vm1667_vm10 = vcmask 506880   ;;  %v1508_v57 = vadd.f32 %v1492_v13, %v1410_v31  ;;  %v1509_v38 = vadd.f32 %v1493_v55, %v1411_v0 }
 0xc16   :  { %v1595_v7 = vadd.f32 %v1579_v47, %v1506_v34  ;;  %v1596_v27 = vadd.f32 %v1580_v15, %v1507_v36  ;;  %v1343_v44 = vadd.f32 %v1329_v59, %v1274_v61  ;;  %v1344_v58 = vadd.f32 %v10005_v6, %v1275_v51  ;;  %v10023_v34 = vld [vmem:[#allocation189_spill] sm:$0xff]  ;;  %v10024_v36 = vld [vmem:[#allocation190_spill] sm:$0xff] }
 0xc17   :  { %v1277_v4 = vadd.f32 %v10003_v63, %v1208_v41  ;;  %v1276_v50 = vadd.f32 %v1261_v16, %v1207_v54  ;;  %v1330_v35 = vsel %vm9575_vm11, %v10014_v56, %v10013_v9  ;;  %v1398_v18 = vsel %vm1395_vm12, %v10016_v39, %v10015_v22  ;;  %v10025_v51 = vld [vmem:[#allocation202_spill] sm:$0xff]  ;;  %v10026_v54 = vld [vmem:[#allocation201_spill] sm:$0xff]  ;;  %v10027_v63 = vld [vmem:[#allocation203_spill] sm:$0xff] }
 0xc18   :  { %v1581_v12 = vsel %vm1578_vm14, %v10018_v21, %v10017_v62  ;;  %v1582_v43 = vsel %vm1578_vm14, %v10017_v62, %v10019_v11  ;;  %v1668_v10 = vsel %vm1667_vm10, %v10021_v25, %v10020_v49  ;;  %v1669_v30 = vsel %vm1667_vm10, %v10020_v49, %v10022_v48  ;;  %v10028_v16 = vld [vmem:[#allocation230_spill] sm:$0xff]  ;;  %v10029_v59 = vld [vmem:[#allocation241_spill] sm:$0xff]  ;;  %v10036_v39 = vld [vmem:[#allocation220_spill] sm:$0xff] }
 0xc19   :  { %vm1756_vm11 = vcmask 498688   ;;  %vm1845_vm15 = vcmask 490496   ;;  %v1597_v14 = vadd.f32 %v1581_v12, %v1508_v57  ;;  %v1598_v5 = vadd.f32 %v1582_v43, %v1509_v38  ;;  %v10034_v56 = vld [vmem:[#allocation217_spill] sm:$0xff]  ;;  %v10037_v62 = vld [vmem:[#allocation244_spill] sm:$0xff]  ;;  %v10038_v21 = vld [vmem:[#allocation243_spill] sm:$0xff] }
 0xc1a   :  { %v1684_v52 = vadd.f32 %v1668_v10, %v1595_v7  ;;  %v1685_v60 = vadd.f32 %v1669_v30, %v1596_v27  ;;  %v1412_v46 = vadd.f32 %v1398_v18, %v1343_v44  ;;  %v1413_v33 = vadd.f32 %v10015_v22, %v1344_v58  ;;  %v10031_v27 = vld [vmem:[#allocation205_spill] sm:$0xff]  ;;  %v10032_v44 = vld [vmem:[#allocation204_spill] sm:$0xff] }
 0xc1b   :  { %v1345_v31 = vadd.f32 %v1330_v35, %v1276_v50  ;;  %v1346_v0 = vadd.f32 %v10013_v9, %v1277_v4  ;;  %v1399_v61 = vsel %vm1395_vm12, %v10024_v36, %v10023_v34  ;;  %v1494_v41 = vsel %vm1489_vm13, %v10026_v54, %v10025_v51  ;;  %v10035_v35 = vld [vmem:[#allocation218_spill] sm:$0xff]  ;;  %v10039_v11 = vld [vmem:[#allocation245_spill] sm:$0xff]  ;;  %v10043_v54 = vld [vmem:[#allocation232_spill] sm:$0xff] }
 0xc1c   :  { %v1495_v45 = vsel %vm1489_vm13, %v10025_v51, %v10027_v63  ;;  %v1670_v6 = vsel %vm1667_vm10, %v10028_v16, %v6279_v40  ;;  %v1671_v17 = vsel %vm1667_vm10, %v6279_v40, %v6281_v32  ;;  %v1757_v24 = vsel %vm1756_vm11, %v10029_v59, %v6355_v8 }
 0xc1d   :  { %v1758_v13 = vsel %vm1756_vm11, %v6355_v8, %v10030_v53  ;;  %v1686_v55 = vadd.f32 %v1670_v6, %v1597_v14  ;;  %v1687_v2 = vadd.f32 %v1671_v17, %v1598_v5  ;;  %v1773_v19 = vadd.f32 %v1757_v24, %v1684_v52  ;;  %v10033_v8 = vld [vmem:[#allocation206_spill] sm:$0xff] }
 0xc1e   :  { %v1774_v47 = vadd.f32 %v1758_v13, %v1685_v60  ;;  %v1510_v57 = vadd.f32 %v1494_v41, %v1412_v46  ;;  %v1511_v38 = vadd.f32 %v1495_v45, %v1413_v33  ;;  %v1415_v32 = vadd.f32 %v10023_v34, %v1346_v0  ;;  %v10040_v5 = vld [vmem:[#allocation222_spill] sm:$0xff]  ;;  %v10044_v41 = vld [vmem:[#allocation231_spill] sm:$0xff]  ;;  %v10045_v45 = vld [vmem:[#allocation233_spill] sm:$0xff] }
 0xc1f   :  { %v1414_v40 = vadd.f32 %v1399_v61, %v1345_v31  ;;  %v1496_v58 = vsel %vm1489_vm13, %v10032_v44, %v10031_v27  ;;  %v1497_v4 = vsel %vm1489_vm13, %v10031_v27, %v10033_v8  ;;  %v1583_v22 = vsel %vm1578_vm14, %v10035_v35, %v10034_v56  ;;  %v10050_v27 = vld [vmem:[#allocation246_spill] sm:$0xff] }
 0xc20   :  { %v1584_v18 = vsel %vm1578_vm14, %v10034_v56, %v10036_v39  ;;  %v1759_v12 = vsel %vm1756_vm11, %v10038_v21, %v10037_v62  ;;  %v1760_v43 = vsel %vm1756_vm11, %v10037_v62, %v10039_v11  ;;  %v1599_v30 = vadd.f32 %v1583_v22, %v1510_v57  ;;  %v10053_v62 = vld [vmem:[#allocation250_spill] sm:$0xff]  ;;  %v10054_v21 = vld [vmem:[#allocation249_spill] sm:$0xff]  ;;  %v10055_v11 = vld [vmem:[#allocation251_spill] sm:$0xff] }
 0xc21   :  { %v1775_v25 = vadd.f32 %v1759_v12, %v1686_v55  ;;  %v1776_v10 = vadd.f32 %v1760_v43, %v1687_v2  ;;  %v1600_v14 = vadd.f32 %v1584_v18, %v1511_v38  ;;  %v1512_v61 = vadd.f32 %v1496_v58, %v1414_v40  ;;  %v10046_v2 = vld [vmem:[#allocation235_spill] sm:$0xff]  ;;  %v10051_v58 = vld [vmem:[#allocation248_spill] sm:$0xff] }
 0xc22   :  { %v1513_v51 = vadd.f32 %v1497_v4, %v1415_v32  ;;  %v1672_v63 = vsel %vm1667_vm10, %v10044_v41, %v10043_v54  ;;  %v1673_v16 = vsel %vm1667_vm10, %v10043_v54, %v10045_v45  ;;  %v10048_v32 = vld [vmem:[#allocation236_spill] sm:$0xff]  ;;  %v1763_v12 = vsel %vm1756_vm11, %v10054_v21, %v10053_v62 }
 0xc23   :  { %v1688_v24 = vadd.f32 %v1672_v63, %v1599_v30  ;;  %v1689_v13 = vadd.f32 %v1673_v16, %v1600_v14  ;;  %v1675_v40 = vsel %vm1667_vm10, %v10046_v2, %v10048_v32  ;;  %v1764_v43 = vsel %vm1756_vm11, %v10053_v62, %v10055_v11 }
 0xc39   :  { %v1822_v42 = vpop.permute.xlu0 %1821  ;;  %v1824_v29 = vpop.permute.xlu1 %1823 }
 0xc3a   :  { %v1846_v1 = vsel %vm1845_vm15, %v1822_v42, %v1824_v29  ;;  %v10041_v42 = vld [vmem:[#allocation219_spill] sm:$0xff] }
 0xc3b   :  { %v1862_v50 = vadd.f32 %v1846_v1, %v1773_v19  ;;  %v1585_v52 = vsel %vm1578_vm14, %v10041_v42, %v10040_v5  ;;  %v10047_v19 = vld [vmem:[#allocation234_spill] sm:$0xff] }
 0xc3c   :  { %v1601_v1 = vadd.f32 %v1585_v52, %v1512_v61 }
 0xc3d   :  { %v1826_v37 = vpop.permute.xlu0 %1825  ;;  %v1828_v15 = vpop.permute.xlu1 %1827  ;;  %v1870_v31 = vmul.f32 0.01, %v1862_v50 }
 0xc3e   :  { %v1847_v7 = vsel %vm1845_vm15, %v1824_v29, %v1826_v37  ;;  %v10042_v29 = vld [vmem:[#allocation221_spill] sm:$0xff] }
 0xc3f   :  { %v1863_v9 = vadd.f32 %v1847_v7, %v1774_v47  ;;  %v1586_v60 = vsel %vm1578_vm14, %v10040_v5, %v10042_v29  ;;  %v1674_v47 = vsel %vm1667_vm10, %v10047_v19, %v10046_v2  ;;  %v1878_v37 = vmax.f32 %v1862_v50, %v1870_v31  ;;  %v10049_v7 = vld [vmem:[#allocation247_spill] sm:$0xff] }
 0xc40   :  { %v1602_v55 = vadd.f32 %v1586_v60, %v1513_v51  ;;  %v1761_v44 = vsel %vm1756_vm11, %v10050_v27, %v10049_v7  ;;  %v1762_v8 = vsel %vm1756_vm11, %v10049_v7, %v10051_v58  ;;  %v1690_v18 = vadd.f32 %v1674_v47, %v1601_v1 }
 0xc41   :  { %v1830_v49 = vpop.permute.xlu0 %1829  ;;  %v1832_v48 = vpop.permute.xlu1 %1831  ;;  %v1871_v0 = vmul.f32 0.01, %v1863_v9  ;;  %v1778_v35 = vadd.f32 %v1762_v8, %v1689_v13 }
 0xc42   :  { %v1848_v46 = vsel %vm1845_vm15, %v1828_v15, %v1830_v49  ;;  %v1849_v33 = vsel %vm1845_vm15, %v1830_v49, %v1832_v48  ;;  %v1779_v30 = vadd.f32 %v1763_v12, %v1690_v18 }
 0xc43   :  { %v1864_v34 = vadd.f32 %v1848_v46, %v1775_v25  ;;  %v1865_v36 = vadd.f32 %v1849_v33, %v1776_v10  ;;  %v1879_v15 = vmax.f32 %v1863_v9, %v1871_v0  ;;  %v1777_v9 = vadd.f32 %v1761_v44, %v1688_v24 }
 0xc44   :  { %v1691_v25 = vadd.f32 %v1675_v40, %v1602_v55 }
 0xc45   :  { %v1872_v6 = vmul.f32 0.01, %v1864_v34  ;;  %v1873_v17 = vmul.f32 0.01, %v1865_v36  ;;  %v1834_v59 = vpop.permute.xlu0 %1833  ;;  %v1836_v53 = vpop.permute.xlu1 %1835 }
 0xc46   :  { %v1850_v4 = vsel %vm1845_vm15, %v1834_v59, %v1836_v53  ;;  %v1780_v14 = vadd.f32 %v1764_v43, %v1691_v25  ;;  %v10092_v43 = vld [vmem:[#allocation3_spill] sm:$0xff] }
 0xc47   :  { %v1880_v57 = vmax.f32 %v1864_v34, %v1872_v6  ;;  %v1881_v38 = vmax.f32 %v1865_v36, %v1873_v17  ;;  %v1866_v10 = vadd.f32 %v1850_v4, %v1777_v9  ;;  %v2262_v25 = vsub.s32 3, %v10092_v43 }
 0xc49   :  { %v6852_v56 = vpack.c.bf16 %v1880_v57, %v1878_v37  ;;  %v6854_v50 = vpack.c.bf16 %v1881_v38, %v1879_v15  ;;  %v1838_v22 = vpop.permute.xlu0 %1837  ;;  %v1840_v39 = vpop.permute.xlu1 %1839  ;;  %v1874_v60 = vmul.f32 0.01, %v1866_v10 }
 0xc4a   :  { %v1851_v49 = vsel %vm1845_vm15, %v1836_v53, %v1838_v22 }
 0xc4b   :  { %10052 = vst [vmem:[#allocation25_spill] sm:$0xff] %v6852_v56  ;;  %v1867_v48 = vadd.f32 %v1851_v49, %v1778_v35  ;;  %1898 = vrot.lane.b32.xlu1 %v6854_v50, %s4935_s7  ;;  %1896 = vrot.lane.b32.xlu0 %v6852_v56, %s4935_s7  ;;  %v1882_v36 = vmax.f32 %v1866_v10, %v1874_v60  ;;  %v7122_v49 = vsub.s32 1, %v10092_v43 }
 0xc4d   :  { %v1842_v5 = vpop.permute.xlu0 %1841  ;;  %v1844_v42 = vpop.permute.xlu1 %1843  ;;  %v1875_v46 = vmul.f32 0.01, %v1867_v48 }
 0xc4e   :  { %v1852_v52 = vsel %vm1845_vm15, %v1840_v39, %v1842_v5  ;;  %v1853_v29 = vsel %vm1845_vm15, %v1842_v5, %v1844_v42 }
 0xc4f   :  { %v1868_v33 = vadd.f32 %v1852_v52, %v1779_v30  ;;  %v1869_v31 = vadd.f32 %v1853_v29, %v1780_v14  ;;  %v1883_v61 = vmax.f32 %v1867_v48, %v1875_v46  ;;  %v7136_v30 = vld [vmem:[%s9292_s0] sm:$0x3f] }
 0xc50   :  { %v2263_v14 = vrot.slane %v7136_v30, %v2262_v25  ;;  %v2259_v5 = vrot.slane %v7136_v30, %v7122_v49 }
 0xc51   :  { %v1876_v0 = vmul.f32 0.01, %v1868_v33  ;;  %v1877_v34 = vmul.f32 0.01, %v1869_v31 }
 0xc52   :  { %v7153_v29 = vrot.slane %v2259_v5, %v7122_v49 }
 0xc53   :  { %v1884_v51 = vmax.f32 %v1868_v33, %v1876_v0  ;;  %v1885_v54 = vmax.f32 %v1869_v31, %v1877_v34  ;;  %v10099_v33 = vld [vmem:[#allocation4_spill] sm:$0xff] }
 0xc54   :  { %v2290_v0 = vmul.f32 %v7153_v29, %v10099_v33 }
 0xc55   :  { %v6869_v41 = vpack.c.bf16 %v1884_v51, %v1882_v36  ;;  %v6871_v63 = vpack.c.bf16 %v1885_v54, %v1883_v61  ;;  %v10102_v61 = vld [vmem:[#allocation6_spill] sm:$0xff] }
 0xc56   :  { %v2292_v54 = vmul.f32 %v7153_v29, %v10102_v61 }
 0xc57   :  { %10056 = vst [vmem:[#allocation26_spill] sm:$0xff] %v6869_v41  ;;  %1902 = vrot.lane.b32.xlu1 %v6871_v63, %s4935_s7  ;;  %1900 = vrot.lane.b32.xlu0 %v6869_v41, %s4935_s7 }
 0xc5b   :  { %1913 = vrot.lane.b32.xlu1 %v6854_v50, %s4936_s8  ;;  %1911 = vrot.lane.b32.xlu0 %v6852_v56, %s4936_s8 }
 0xc5f   :  { %1917 = vrot.lane.b32.xlu1 %v6871_v63, %s4936_s8  ;;  %1915 = vrot.lane.b32.xlu0 %v6869_v41, %s4936_s8 }
 0xc63   :  { %1928 = vrot.lane.b32.xlu1 %v6854_v50, %s4937_s9  ;;  %1926 = vrot.lane.b32.xlu0 %v6852_v56, %s4937_s9 }
 0xc67   :  { %1932 = vrot.lane.b32.xlu1 %v6871_v63, %s4937_s9  ;;  %1930 = vrot.lane.b32.xlu0 %v6869_v41, %s4937_s9 }
 0xc6b   :  { %1943 = vrot.lane.b32.xlu1 %v6854_v50, %s4938_s10  ;;  %1941 = vrot.lane.b32.xlu0 %v6852_v56, %s4938_s10 }
 0xc6f   :  { %1947 = vrot.lane.b32.xlu1 %v6871_v63, %s4938_s10  ;;  %1945 = vrot.lane.b32.xlu0 %v6869_v41, %s4938_s10 }
 0xc73   :  { %1958 = vrot.lane.b32.xlu1 %v6854_v50, %s4939_s11  ;;  %1956 = vrot.lane.b32.xlu0 %v6852_v56, %s4939_s11 }
 0xc77   :  { %1962 = vrot.lane.b32.xlu1 %v6871_v63, %s4939_s11  ;;  %1960 = vrot.lane.b32.xlu0 %v6869_v41, %s4939_s11 }
 0xc7b   :  { %1973 = vrot.lane.b32.xlu1 %v6854_v50, %s4941_s12  ;;  %1971 = vrot.lane.b32.xlu0 %v6852_v56, %s4941_s12 }
 0xc7f   :  { %1977 = vrot.lane.b32.xlu1 %v6871_v63, %s4941_s12  ;;  %1975 = vrot.lane.b32.xlu0 %v6869_v41, %s4941_s12 }
 0xc83   :  { %1988 = vrot.lane.b32.xlu1 %v6854_v50, %s4943_s13  ;;  %1986 = vrot.lane.b32.xlu0 %v6852_v56, %s4943_s13 }
 0xc87   :  { %1992 = vrot.lane.b32.xlu1 %v6871_v63, %s4943_s13  ;;  %1990 = vrot.lane.b32.xlu0 %v6869_v41, %s4943_s13 }
 0xc8b   :  { %2003 = vrot.lane.b32.xlu1 %v6854_v50, %s4945_s14  ;;  %2001 = vrot.lane.b32.xlu0 %v6852_v56, %s4945_s14 }
 0xc8f   :  { %2007 = vrot.lane.b32.xlu1 %v6871_v63, %s4945_s14  ;;  %2005 = vrot.lane.b32.xlu0 %v6869_v41, %s4945_s14 }
 0xc93   :  { %2018 = vrot.lane.b32.xlu1 %v6854_v50, %s4947_s15  ;;  %2016 = vrot.lane.b32.xlu0 %v6852_v56, %s4947_s15 }
 0xc97   :  { %2022 = vrot.lane.b32.xlu1 %v6871_v63, %s4947_s15  ;;  %2020 = vrot.lane.b32.xlu0 %v6869_v41, %s4947_s15 }
 0xc9b   :  { %2033 = vrot.lane.b32.xlu1 %v6854_v50, %s4949_s16  ;;  %2031 = vrot.lane.b32.xlu0 %v6852_v56, %s4949_s16 }
 0xc9f   :  { %2037 = vrot.lane.b32.xlu1 %v6871_v63, %s4949_s16  ;;  %2035 = vrot.lane.b32.xlu0 %v6869_v41, %s4949_s16 }
 0xca3   :  { %2048 = vrot.lane.b32.xlu1 %v6854_v50, %s4951_s17  ;;  %2046 = vrot.lane.b32.xlu0 %v6852_v56, %s4951_s17 }
 0xca7   :  { %2052 = vrot.lane.b32.xlu1 %v6871_v63, %s4951_s17  ;;  %2050 = vrot.lane.b32.xlu0 %v6869_v41, %s4951_s17 }
 0xcab   :  { %2063 = vrot.lane.b32.xlu1 %v6854_v50, %s4953_s18  ;;  %2061 = vrot.lane.b32.xlu0 %v6852_v56, %s4953_s18 }
 0xcaf   :  { %2067 = vrot.lane.b32.xlu1 %v6871_v63, %s4953_s18  ;;  %2065 = vrot.lane.b32.xlu0 %v6869_v41, %s4953_s18 }
 0xcb3   :  { %2078 = vrot.lane.b32.xlu1 %v6854_v50, %s4955_s19  ;;  %2076 = vrot.lane.b32.xlu0 %v6852_v56, %s4955_s19 }
 0xcb7   :  { %2082 = vrot.lane.b32.xlu1 %v6871_v63, %s4955_s19  ;;  %2080 = vrot.lane.b32.xlu0 %v6869_v41, %s4955_s19 }
 0xcbb   :  { %2093 = vrot.lane.b32.xlu1 %v6854_v50, %s4957_s20  ;;  %2091 = vrot.lane.b32.xlu0 %v6852_v56, %s4957_s20 }
 0xcbd   :  { %v6985_v45 = vpop.permute.xlu1 %1898  ;;  %v6987_v16 = vpop.permute.xlu0 %1896 }
 0xcbe   :  { %10057 = vst [vmem:[#allocation27_spill] sm:$0xff] %v6985_v45  ;;  %10058 = vst [vmem:[#allocation42_spill] sm:$0xff] %v6987_v16 }
 0xcbf   :  { %2097 = vrot.lane.b32.xlu1 %v6871_v63, %s4957_s20  ;;  %2095 = vrot.lane.b32.xlu0 %v6869_v41, %s4957_s20 }
 0xcc3   :  { %2108 = vrot.lane.b32.xlu1 %v6854_v50, %s4959_s27  ;;  %2106 = vrot.lane.b32.xlu0 %v6852_v56, %s4959_s27 }
 0xcc7   :  { %2112 = vrot.lane.b32.xlu1 %v6871_v63, %s4959_s27  ;;  %2110 = vrot.lane.b32.xlu0 %v6869_v41, %s4959_s27 }
 0xcc9   :  { %v6993_v6 = vpop.permute.xlu1 %1902  ;;  %v6995_v17 = vpop.permute.xlu0 %1900 }
 0xcca   :  { %10059 = vst [vmem:[#allocation43_spill] sm:$0xff] %v6993_v6  ;;  %10060 = vst [vmem:[#allocation53_spill] sm:$0xff] %v6995_v17 }
 0xccb   :  { %2123 = vrot.lane.b32.xlu1 %v6854_v50, %s4961_s1  ;;  %2121 = vrot.lane.b32.xlu0 %v6852_v56, %s4961_s1 }
 0xccd   :  { %v7001_v59 = vpop.permute.xlu1 %1913  ;;  %v7003_v24 = vpop.permute.xlu0 %1911 }
 0xcce   :  { %10061 = vst [vmem:[#allocation52_spill] sm:$0xff] %v7001_v59  ;;  %10062 = vst [vmem:[#allocation28_spill] sm:$0xff] %v7003_v24 }
 0xccf   :  { %2127 = vrot.lane.b32.xlu1 %v6871_v63, %s4961_s1  ;;  %2125 = vrot.lane.b32.xlu0 %v6869_v41, %s4961_s1 }
 0xcd1   :  { %v7009_v53 = vpop.permute.xlu1 %1917  ;;  %v7011_v13 = vpop.permute.xlu0 %1915 }
 0xcd2   :  { %10063 = vst [vmem:[#allocation29_spill] sm:$0xff] %v7009_v53  ;;  %10064 = vst [vmem:[#allocation35_spill] sm:$0xff] %v7011_v13 }
 0xcd3   :  { %2138 = vrot.lane.b32.xlu1 %v6854_v50, %s4963_s30  ;;  %2136 = vrot.lane.b32.xlu0 %v6852_v56, %s4963_s30 }
 0xcd5   :  { %v7017_v1 = vpop.permute.xlu1 %1928  ;;  %v7019_v55 = vpop.permute.xlu0 %1926 }
 0xcd6   :  { %10065 = vst [vmem:[#allocation34_spill] sm:$0xff] %v7017_v1  ;;  %10066 = vst [vmem:[#allocation55_spill] sm:$0xff] %v7019_v55 }
 0xcd7   :  { %2142 = vrot.lane.b32.xlu1 %v6871_v63, %s4963_s30  ;;  %2140 = vrot.lane.b32.xlu0 %v6869_v41, %s4963_s30 }
 0xcd9   :  { %v7025_v2 = vpop.permute.xlu1 %1932  ;;  %v7027_v19 = vpop.permute.xlu0 %1930 }
 0xcda   :  { %10067 = vst [vmem:[#allocation54_spill] sm:$0xff] %v7025_v2  ;;  %10068 = vst [vmem:[#allocation64_spill] sm:$0xff] %v7027_v19 }
 0xcdb   :  { %2153 = vrot.lane.b32.xlu1 %v6854_v50, %s4965_s6  ;;  %2151 = vrot.lane.b32.xlu0 %v6852_v56, %s4965_s6 }
 0xcdd   :  { %v7033_v47 = vpop.permute.xlu1 %1943  ;;  %v7035_v37 = vpop.permute.xlu0 %1941 }
 0xcde   :  { %10069 = vst [vmem:[#allocation65_spill] sm:$0xff] %v7033_v47  ;;  %10070 = vst [vmem:[#allocation37_spill] sm:$0xff] %v7035_v37 }
 0xcdf   :  { %2157 = vrot.lane.b32.xlu1 %v6871_v63, %s4965_s6  ;;  %2155 = vrot.lane.b32.xlu0 %v6869_v41, %s4965_s6 }
 0xce1   :  { %v7041_v15 = vpop.permute.xlu1 %1947  ;;  %v7043_v57 = vpop.permute.xlu0 %1945 }
 0xce2   :  { %10071 = vst [vmem:[#allocation36_spill] sm:$0xff] %v7041_v15  ;;  %10072 = vst [vmem:[#allocation44_spill] sm:$0xff] %v7043_v57 }
 0xce3   :  { %2168 = vrot.lane.b32.xlu1 %v6854_v50, %s4967_s21  ;;  %2166 = vrot.lane.b32.xlu0 %v6852_v56, %s4967_s21 }
 0xce5   :  { %v7049_v38 = vpop.permute.xlu1 %1958  ;;  %v7051_v32 = vpop.permute.xlu0 %1956 }
 0xce6   :  { %10073 = vst [vmem:[#allocation45_spill] sm:$0xff] %v7049_v38  ;;  %10074 = vst [vmem:[#allocation66_spill] sm:$0xff] %v7051_v32 }
 0xce7   :  { %2172 = vrot.lane.b32.xlu1 %v6871_v63, %s4967_s21  ;;  %2170 = vrot.lane.b32.xlu0 %v6869_v41, %s4967_s21 }
 0xce9   :  { %v7057_v40 = vpop.permute.xlu1 %1962  ;;  %v7059_v7 = vpop.permute.xlu0 %1960 }
 0xcea   :  { %10075 = vst [vmem:[#allocation67_spill] sm:$0xff] %v7057_v40  ;;  %10076 = vst [vmem:[#allocation77_spill] sm:$0xff] %v7059_v7 }
 0xceb   :  { %2183 = vrot.lane.b32.xlu1 %v6854_v50, %s4969_s24  ;;  %2181 = vrot.lane.b32.xlu0 %v6852_v56, %s4969_s24 }
 0xced   :  { %v7065_v27 = vpop.permute.xlu1 %1973  ;;  %v7067_v44 = vpop.permute.xlu0 %1971 }
 0xcee   :  { %10077 = vst [vmem:[#allocation76_spill] sm:$0xff] %v7065_v27  ;;  %10078 = vst [vmem:[#allocation46_spill] sm:$0xff] %v7067_v44 }
 0xcef   :  { %2187 = vrot.lane.b32.xlu1 %v6871_v63, %s4969_s24  ;;  %2185 = vrot.lane.b32.xlu0 %v6869_v41, %s4969_s24 }
 0xcf1   :  { %v7073_v58 = vpop.permute.xlu1 %1977  ;;  %v7075_v8 = vpop.permute.xlu0 %1975 }
 0xcf2   :  { %10079 = vst [vmem:[#allocation47_spill] sm:$0xff] %v7073_v58  ;;  %10080 = vst [vmem:[#allocation57_spill] sm:$0xff] %v7075_v8 }
 0xcf3   :  { %2198 = vrot.lane.b32.xlu1 %v6854_v50, %s4971_s25  ;;  %2196 = vrot.lane.b32.xlu0 %v6852_v56, %s4971_s25 }
 0xcf5   :  { %v7081_v4 = vpop.permute.xlu1 %1988  ;;  %v7083_v9 = vpop.permute.xlu0 %1986 }
 0xcf6   :  { %10081 = vst [vmem:[#allocation56_spill] sm:$0xff] %v7081_v4  ;;  %10082 = vst [vmem:[#allocation79_spill] sm:$0xff] %v7083_v9 }
 0xcf7   :  { %2202 = vrot.lane.b32.xlu1 %v6871_v63, %s4971_s25  ;;  %2200 = vrot.lane.b32.xlu0 %v6869_v41, %s4971_s25 }
 0xcf9   :  { %v7089_v35 = vpop.permute.xlu1 %1992  ;;  %v7091_v22 = vpop.permute.xlu0 %1990 }
 0xcfa   :  { %10083 = vst [vmem:[#allocation78_spill] sm:$0xff] %v7089_v35  ;;  %10084 = vst [vmem:[#allocation88_spill] sm:$0xff] %v7091_v22  ;;  %v10187_v35 = vld [vmem:[#allocation51_spill] sm:$0xff] }
 0xcfb   :  { %2213 = vrot.lane.b32.xlu1 %v6854_v50, %s10085_s26  ;;  %2211 = vrot.lane.b32.xlu0 %v6852_v56, %s10085_s26 }
 0xcfd   :  { %v7097_v39 = vpop.permute.xlu1 %2003  ;;  %v7099_v18 = vpop.permute.xlu0 %2001 }
 0xcfe   :  { %10086 = vst [vmem:[#allocation89_spill] sm:$0xff] %v7097_v39  ;;  %10087 = vst [vmem:[#allocation59_spill] sm:$0xff] %v7099_v18 }
 0xcff   :  { %2217 = vrot.lane.b32.xlu1 %v6871_v63, %s10085_s26  ;;  %2215 = vrot.lane.b32.xlu0 %v6869_v41, %s10085_s26 }
 0xd01   :  { %v7105_v62 = vpop.permute.xlu1 %2007  ;;  %v7107_v21 = vpop.permute.xlu0 %2005 }
 0xd02   :  { %10088 = vst [vmem:[#allocation58_spill] sm:$0xff] %v7105_v62  ;;  %10089 = vst [vmem:[#allocation68_spill] sm:$0xff] %v7107_v21 }
 0xd03   :  { %2228 = vrot.lane.b32.xlu1 %v6854_v50, %s4975_s28  ;;  %2226 = vrot.lane.b32.xlu0 %v6852_v56, %s4975_s28 }
 0xd05   :  { %v7113_v12 = vpop.permute.xlu1 %2018  ;;  %v7115_v11 = vpop.permute.xlu0 %2016 }
 0xd06   :  { %10090 = vst [vmem:[#allocation69_spill] sm:$0xff] %v7113_v12  ;;  %10091 = vst [vmem:[#allocation90_spill] sm:$0xff] %v7115_v11 }
 0xd07   :  { %2232 = vrot.lane.b32.xlu1 %v6871_v63, %s4975_s28  ;;  %2230 = vrot.lane.b32.xlu0 %v6869_v41, %s4975_s28 }
 0xd09   :  { %v7125_v10 = vpop.permute.xlu1 %2022  ;;  %v7127_v48 = vpop.permute.xlu0 %2020 }
 0xd0a   :  { %10093 = vst [vmem:[#allocation91_spill] sm:$0xff] %v7125_v10  ;;  %10094 = vst [vmem:[#allocation101_spill] sm:$0xff] %v7127_v48 }
 0xd0b   :  { %2243 = vrot.lane.b32.xlu1 %v6854_v50, %s4976_s2  ;;  %2241 = vrot.lane.b32.xlu0 %v6852_v56, %s4976_s2  ;;  %v7150_v50 = vrot.slane %v2263_v14, %v7122_v49  ;;  %v10105_v14 = vld [vmem:[#allocation7_spill] sm:$0xff] }
 0xd0d   :  { %v7141_v42 = vpop.permute.xlu1 %2033  ;;  %v7143_v52 = vpop.permute.xlu0 %2031  ;;  %v2291_v31 = vmul.f32 %v7150_v50, %v10099_v33  ;;  %v2293_v51 = vmul.f32 %v7150_v50, %v10102_v61  ;;  %v2295_v5 = vmul.f32 %v7150_v50, %v10105_v14  ;;  %v2294_v33 = vmul.f32 %v7153_v29, %v10105_v14  ;;  %v10108_v61 = vld [vmem:[#allocation8_spill] sm:$0xff] }
 0xd0e   :  { %10095 = vst [vmem:[#allocation100_spill] sm:$0xff] %v7141_v42  ;;  %10096 = vst [vmem:[#allocation70_spill] sm:$0xff] %v7143_v52 }
 0xd0f   :  { %2247 = vrot.lane.b32.xlu1 %v6871_v63, %s4976_s2  ;;  %2245 = vrot.lane.b32.xlu0 %v6869_v41, %s4976_s2 }
 0xd11   :  { %v7155_v60 = vpop.permute.xlu1 %2037  ;;  %v7157_v46 = vpop.permute.xlu0 %2035 }
 0xd12   :  { %10097 = vst [vmem:[#allocation71_spill] sm:$0xff] %v7155_v60  ;;  %10098 = vst [vmem:[#allocation81_spill] sm:$0xff] %v7157_v46 }
 0xd13   :  { %2308 = vrot.lane.b32.xlu1 %v2291_v31, %s4935_s7  ;;  %2306 = vrot.lane.b32.xlu0 %v2290_v0, %s4935_s7 }
 0xd15   :  { %v7165_v34 = vpop.permute.xlu1 %2048  ;;  %v7167_v36 = vpop.permute.xlu0 %2046 }
 0xd16   :  { %10100 = vst [vmem:[#allocation80_spill] sm:$0xff] %v7165_v34  ;;  %10101 = vst [vmem:[#allocation103_spill] sm:$0xff] %v7167_v36 }
 0xd17   :  { %2312 = vrot.lane.b32.xlu1 %v2293_v51, %s4935_s7  ;;  %2310 = vrot.lane.b32.xlu0 %v2292_v54, %s4935_s7  ;;  %v2297_v51 = vmul.f32 %v7150_v50, %v10108_v61  ;;  %v2296_v54 = vmul.f32 %v7153_v29, %v10108_v61 }
 0xd19   :  { %v7175_v63 = vpop.permute.xlu1 %2052  ;;  %v7177_v25 = vpop.permute.xlu0 %2050 }
 0xd1a   :  { %10103 = vst [vmem:[#allocation102_spill] sm:$0xff] %v7175_v63  ;;  %10104 = vst [vmem:[#allocation112_spill] sm:$0xff] %v7177_v25 }
 0xd1b   :  { %2316 = vrot.lane.b32.xlu1 %v2295_v5, %s4935_s7  ;;  %2314 = vrot.lane.b32.xlu0 %v2294_v33, %s4935_s7  ;;  %v10111_v5 = vld [vmem:[#allocation9_spill] sm:$0xff] }
 0xd1c   :  { %v2343_v33 = vmul.f32 %v7150_v50, %v10111_v5 }
 0xd1d   :  { %v7185_v31 = vpop.permute.xlu1 %2063  ;;  %v7187_v0 = vpop.permute.xlu0 %2061 }
 0xd1e   :  { %10106 = vst [vmem:[#allocation113_spill] sm:$0xff] %v7185_v31  ;;  %10107 = vst [vmem:[#allocation83_spill] sm:$0xff] %v7187_v0  ;;  %v2342_v0 = vmul.f32 %v7153_v29, %v10111_v5 }
 0xd1f   :  { %2320 = vrot.lane.b32.xlu1 %v2297_v51, %s4935_s7  ;;  %2318 = vrot.lane.b32.xlu0 %v2296_v54, %s4935_s7  ;;  %v10114_v51 = vld [vmem:[#allocation10_spill] sm:$0xff] }
 0xd20   :  { %v2345_v54 = vmul.f32 %v7150_v50, %v10114_v51 }
 0xd21   :  { %v7195_v25 = vpop.permute.xlu1 %2067  ;;  %v7197_v14 = vpop.permute.xlu0 %2065 }
 0xd22   :  { %10109 = vst [vmem:[#allocation82_spill] sm:$0xff] %v7195_v25  ;;  %10110 = vst [vmem:[#allocation92_spill] sm:$0xff] %v7197_v14  ;;  %v2344_v14 = vmul.f32 %v7153_v29, %v10114_v51 }
 0xd23   :  { %2360 = vrot.lane.b32.xlu1 %v2343_v33, %s4936_s8  ;;  %2358 = vrot.lane.b32.xlu0 %v2342_v0, %s4936_s8  ;;  %v10117_v33 = vld [vmem:[#allocation11_spill] sm:$0xff] }
 0xd24   :  { %v2347_v0 = vmul.f32 %v7150_v50, %v10117_v33 }
 0xd25   :  { %v7205_v31 = vpop.permute.xlu1 %2078  ;;  %v7207_v61 = vpop.permute.xlu0 %2076 }
 0xd26   :  { %10112 = vst [vmem:[#allocation93_spill] sm:$0xff] %v7205_v31  ;;  %10113 = vst [vmem:[#allocation114_spill] sm:$0xff] %v7207_v61  ;;  %v2346_v61 = vmul.f32 %v7153_v29, %v10117_v33 }
 0xd27   :  { %2364 = vrot.lane.b32.xlu1 %v2345_v54, %s4936_s8  ;;  %2362 = vrot.lane.b32.xlu0 %v2344_v14, %s4936_s8  ;;  %v10120_v54 = vld [vmem:[#allocation12_spill] sm:$0xff] }
 0xd28   :  { %v2349_v14 = vmul.f32 %v7150_v50, %v10120_v54 }
 0xd29   :  { %v7215_v25 = vpop.permute.xlu1 %2082  ;;  %v7217_v5 = vpop.permute.xlu0 %2080 }
 0xd2a   :  { %10115 = vst [vmem:[#allocation115_spill] sm:$0xff] %v7215_v25  ;;  %10116 = vst [vmem:[#allocation125_spill] sm:$0xff] %v7217_v5  ;;  %v2348_v5 = vmul.f32 %v7153_v29, %v10120_v54 }
 0xd2b   :  { %2368 = vrot.lane.b32.xlu1 %v2347_v0, %s4936_s8  ;;  %2366 = vrot.lane.b32.xlu0 %v2346_v61, %s4936_s8  ;;  %v10123_v0 = vld [vmem:[#allocation13_spill] sm:$0xff] }
 0xd2c   :  { %v2395_v61 = vmul.f32 %v7150_v50, %v10123_v0 }
 0xd2d   :  { %v7225_v31 = vpop.permute.xlu1 %2093  ;;  %v7227_v51 = vpop.permute.xlu0 %2091 }
 0xd2e   :  { %10118 = vst [vmem:[#allocation124_spill] sm:$0xff] %v7225_v31  ;;  %10119 = vst [vmem:[#allocation94_spill] sm:$0xff] %v7227_v51  ;;  %v2394_v51 = vmul.f32 %v7153_v29, %v10123_v0 }
 0xd2f   :  { %2372 = vrot.lane.b32.xlu1 %v2349_v14, %s4936_s8  ;;  %2370 = vrot.lane.b32.xlu0 %v2348_v5, %s4936_s8  ;;  %v10126_v14 = vld [vmem:[#allocation14_spill] sm:$0xff] }
 0xd30   :  { %v2397_v5 = vmul.f32 %v7150_v50, %v10126_v14 }
 0xd31   :  { %v7235_v25 = vpop.permute.xlu1 %2097  ;;  %v7237_v33 = vpop.permute.xlu0 %2095 }
 0xd32   :  { %10121 = vst [vmem:[#allocation95_spill] sm:$0xff] %v7235_v25  ;;  %10122 = vst [vmem:[#allocation105_spill] sm:$0xff] %v7237_v33  ;;  %v2396_v33 = vmul.f32 %v7153_v29, %v10126_v14 }
 0xd33   :  { %2412 = vrot.lane.b32.xlu1 %v2395_v61, %s4937_s9  ;;  %2410 = vrot.lane.b32.xlu0 %v2394_v51, %s4937_s9  ;;  %v10129_v61 = vld [vmem:[#allocation15_spill] sm:$0xff] }
 0xd34   :  { %v2399_v51 = vmul.f32 %v7150_v50, %v10129_v61 }
 0xd35   :  { %v7245_v31 = vpop.permute.xlu1 %2108  ;;  %v7247_v54 = vpop.permute.xlu0 %2106 }
 0xd36   :  { %10124 = vst [vmem:[#allocation104_spill] sm:$0xff] %v7245_v31  ;;  %10125 = vst [vmem:[#allocation127_spill] sm:$0xff] %v7247_v54  ;;  %v2398_v54 = vmul.f32 %v7153_v29, %v10129_v61 }
 0xd37   :  { %2416 = vrot.lane.b32.xlu1 %v2397_v5, %s4937_s9  ;;  %2414 = vrot.lane.b32.xlu0 %v2396_v33, %s4937_s9  ;;  %v10132_v5 = vld [vmem:[#allocation16_spill] sm:$0xff] }
 0xd38   :  { %v2401_v33 = vmul.f32 %v7150_v50, %v10132_v5 }
 0xd39   :  { %v7255_v25 = vpop.permute.xlu1 %2112  ;;  %v7257_v0 = vpop.permute.xlu0 %2110 }
 0xd3a   :  { %10127 = vst [vmem:[#allocation126_spill] sm:$0xff] %v7255_v25  ;;  %10128 = vst [vmem:[#allocation136_spill] sm:$0xff] %v7257_v0  ;;  %v2400_v0 = vmul.f32 %v7153_v29, %v10132_v5 }
 0xd3b   :  { %2420 = vrot.lane.b32.xlu1 %v2399_v51, %s4937_s9  ;;  %2418 = vrot.lane.b32.xlu0 %v2398_v54, %s4937_s9  ;;  %v10135_v51 = vld [vmem:[#allocation17_spill] sm:$0xff] }
 0xd3c   :  { %v2447_v54 = vmul.f32 %v7150_v50, %v10135_v51  ;;  %v2446_v63 = vmul.f32 %v7153_v29, %v10135_v51 }
 0xd3d   :  { %v7265_v31 = vpop.permute.xlu1 %2123  ;;  %v7267_v14 = vpop.permute.xlu0 %2121 }
 0xd3e   :  { %10130 = vst [vmem:[#allocation137_spill] sm:$0xff] %v7265_v31  ;;  %10131 = vst [vmem:[#allocation107_spill] sm:$0xff] %v7267_v14 }
 0xd3f   :  { %2424 = vrot.lane.b32.xlu1 %v2401_v33, %s4937_s9  ;;  %2422 = vrot.lane.b32.xlu0 %v2400_v0, %s4937_s9  ;;  %v10138_v33 = vld [vmem:[#allocation18_spill] sm:$0xff] }
 0xd40   :  { %v2449_v0 = vmul.f32 %v7150_v50, %v10138_v33  ;;  %v2448_v34 = vmul.f32 %v7153_v29, %v10138_v33 }
 0xd41   :  { %v7275_v25 = vpop.permute.xlu1 %2127  ;;  %v7277_v61 = vpop.permute.xlu0 %2125 }
 0xd42   :  { %10133 = vst [vmem:[#allocation106_spill] sm:$0xff] %v7275_v25  ;;  %10134 = vst [vmem:[#allocation116_spill] sm:$0xff] %v7277_v61 }
 0xd43   :  { %2464 = vrot.lane.b32.xlu1 %v2447_v54, %s4938_s10  ;;  %2462 = vrot.lane.b32.xlu0 %v2446_v63, %s4938_s10  ;;  %v10141_v54 = vld [vmem:[#allocation19_spill] sm:$0xff] }
 0xd44   :  { %v2451_v63 = vmul.f32 %v7150_v50, %v10141_v54  ;;  %v2450_v60 = vmul.f32 %v7153_v29, %v10141_v54 }
 0xd45   :  { %v7285_v36 = vpop.permute.xlu1 %2138  ;;  %v7287_v5 = vpop.permute.xlu0 %2136 }
 0xd46   :  { %10136 = vst [vmem:[#allocation117_spill] sm:$0xff] %v7285_v36  ;;  %10137 = vst [vmem:[#allocation138_spill] sm:$0xff] %v7287_v5 }
 0xd47   :  { %2468 = vrot.lane.b32.xlu1 %v2449_v0, %s4938_s10  ;;  %2466 = vrot.lane.b32.xlu0 %v2448_v34, %s4938_s10  ;;  %v10144_v0 = vld [vmem:[#allocation20_spill] sm:$0xff] }
 0xd48   :  { %v2453_v34 = vmul.f32 %v7150_v50, %v10144_v0  ;;  %v2452_v42 = vmul.f32 %v7153_v29, %v10144_v0 }
 0xd49   :  { %v7295_v46 = vpop.permute.xlu1 %2142  ;;  %v7297_v51 = vpop.permute.xlu0 %2140 }
 0xd4a   :  { %10139 = vst [vmem:[#allocation139_spill] sm:$0xff] %v7295_v46  ;;  %10140 = vst [vmem:[#allocation149_spill] sm:$0xff] %v7297_v51 }
 0xd4b   :  { %2472 = vrot.lane.b32.xlu1 %v2451_v63, %s4938_s10  ;;  %2470 = vrot.lane.b32.xlu0 %v2450_v60, %s4938_s10  ;;  %v10147_v63 = vld [vmem:[#allocation21_spill] sm:$0xff] }
 0xd4c   :  { %v2499_v60 = vmul.f32 %v7150_v50, %v10147_v63  ;;  %v2498_v10 = vmul.f32 %v7153_v29, %v10147_v63 }
 0xd4d   :  { %v7305_v52 = vpop.permute.xlu1 %2153  ;;  %v7307_v33 = vpop.permute.xlu0 %2151 }
 0xd4e   :  { %10142 = vst [vmem:[#allocation148_spill] sm:$0xff] %v7305_v52  ;;  %10143 = vst [vmem:[#allocation118_spill] sm:$0xff] %v7307_v33 }
 0xd4f   :  { %2476 = vrot.lane.b32.xlu1 %v2453_v34, %s4938_s10  ;;  %2474 = vrot.lane.b32.xlu0 %v2452_v42, %s4938_s10  ;;  %v10150_v34 = vld [vmem:[#allocation22_spill] sm:$0xff] }
 0xd50   :  { %v2501_v42 = vmul.f32 %v7150_v50, %v10150_v34  ;;  %v2500_v12 = vmul.f32 %v7153_v29, %v10150_v34 }
 0xd51   :  { %v7315_v48 = vpop.permute.xlu1 %2157  ;;  %v7317_v54 = vpop.permute.xlu0 %2155 }
 0xd52   :  { %10145 = vst [vmem:[#allocation119_spill] sm:$0xff] %v7315_v48  ;;  %10146 = vst [vmem:[#allocation129_spill] sm:$0xff] %v7317_v54 }
 0xd53   :  { %2516 = vrot.lane.b32.xlu1 %v2499_v60, %s4939_s11  ;;  %2514 = vrot.lane.b32.xlu0 %v2498_v10, %s4939_s11  ;;  %v10153_v60 = vld [vmem:[#allocation23_spill] sm:$0xff] }
 0xd54   :  { %v2503_v10 = vmul.f32 %v7150_v50, %v10153_v60  ;;  %v2502_v62 = vmul.f32 %v7153_v29, %v10153_v60 }
 0xd55   :  { %v7325_v11 = vpop.permute.xlu1 %2168  ;;  %v7327_v0 = vpop.permute.xlu0 %2166 }
 0xd56   :  { %10148 = vst [vmem:[#allocation128_spill] sm:$0xff] %v7325_v11  ;;  %10149 = vst [vmem:[#allocation151_spill] sm:$0xff] %v7327_v0  ;;  %v2660_v0 = vmul.f32 %v7153_v29, %v10187_v35 }
 0xd57   :  { %2520 = vrot.lane.b32.xlu1 %v2501_v42, %s4939_s11  ;;  %2518 = vrot.lane.b32.xlu0 %v2500_v12, %s4939_s11  ;;  %v10156_v42 = vld [vmem:[#allocation24_spill] sm:$0xff] }
 0xd58   :  { %v2505_v12 = vmul.f32 %v7150_v50, %v10156_v42  ;;  %v2504_v39 = vmul.f32 %v7153_v29, %v10156_v42 }
 0xd59   :  { %v7335_v21 = vpop.permute.xlu1 %2172  ;;  %v7337_v63 = vpop.permute.xlu0 %2170 }
 0xd5a   :  { %10151 = vst [vmem:[#allocation150_spill] sm:$0xff] %v7335_v21  ;;  %10152 = vst [vmem:[#allocation160_spill] sm:$0xff] %v7337_v63 }
 0xd5b   :  { %2524 = vrot.lane.b32.xlu1 %v2503_v10, %s4939_s11  ;;  %2522 = vrot.lane.b32.xlu0 %v2502_v62, %s4939_s11  ;;  %v10159_v10 = vld [vmem:[#allocation30_spill] sm:$0xff] }
 0xd5c   :  { %v2551_v62 = vmul.f32 %v7150_v50, %v10159_v10 }
 0xd5d   :  { %v7345_v18 = vpop.permute.xlu1 %2183  ;;  %v7347_v34 = vpop.permute.xlu0 %2181 }
 0xd5e   :  { %10154 = vst [vmem:[#allocation161_spill] sm:$0xff] %v7345_v18  ;;  %10155 = vst [vmem:[#allocation131_spill] sm:$0xff] %v7347_v34  ;;  %v2550_v34 = vmul.f32 %v7153_v29, %v10159_v10 }
 0xd5f   :  { %2528 = vrot.lane.b32.xlu1 %v2505_v12, %s4939_s11  ;;  %2526 = vrot.lane.b32.xlu0 %v2504_v39, %s4939_s11  ;;  %v10162_v12 = vld [vmem:[#allocation31_spill] sm:$0xff] }
 0xd60   :  { %v2553_v39 = vmul.f32 %v7150_v50, %v10162_v12 }
 0xd61   :  { %v7355_v63 = vpop.permute.xlu1 %2187  ;;  %v7357_v60 = vpop.permute.xlu0 %2185 }
 0xd62   :  { %10157 = vst [vmem:[#allocation130_spill] sm:$0xff] %v7355_v63  ;;  %10158 = vst [vmem:[#allocation140_spill] sm:$0xff] %v7357_v60  ;;  %v2552_v60 = vmul.f32 %v7153_v29, %v10162_v12 }
 0xd63   :  { %2568 = vrot.lane.b32.xlu1 %v2551_v62, %s4941_s12  ;;  %2566 = vrot.lane.b32.xlu0 %v2550_v34, %s4941_s12  ;;  %v10165_v62 = vld [vmem:[#allocation32_spill] sm:$0xff] }
 0xd64   :  { %v2555_v34 = vmul.f32 %v7150_v50, %v10165_v62 }
 0xd65   :  { %v7365_v18 = vpop.permute.xlu1 %2198  ;;  %v7367_v42 = vpop.permute.xlu0 %2196 }
 0xd66   :  { %10160 = vst [vmem:[#allocation141_spill] sm:$0xff] %v7365_v18  ;;  %10161 = vst [vmem:[#allocation162_spill] sm:$0xff] %v7367_v42  ;;  %v2554_v42 = vmul.f32 %v7153_v29, %v10165_v62 }
 0xd67   :  { %2572 = vrot.lane.b32.xlu1 %v2553_v39, %s4941_s12  ;;  %2570 = vrot.lane.b32.xlu0 %v2552_v60, %s4941_s12  ;;  %v10168_v39 = vld [vmem:[#allocation33_spill] sm:$0xff] }
 0xd68   :  { %v2557_v60 = vmul.f32 %v7150_v50, %v10168_v39 }
 0xd69   :  { %v7375_v63 = vpop.permute.xlu1 %2202  ;;  %v7377_v10 = vpop.permute.xlu0 %2200 }
 0xd6a   :  { %10163 = vst [vmem:[#allocation163_spill] sm:$0xff] %v7375_v63  ;;  %10164 = vst [vmem:[#allocation172_spill] sm:$0xff] %v7377_v10  ;;  %v2556_v10 = vmul.f32 %v7153_v29, %v10168_v39 }
 0xd6b   :  { %2576 = vrot.lane.b32.xlu1 %v2555_v34, %s4941_s12  ;;  %2574 = vrot.lane.b32.xlu0 %v2554_v42, %s4941_s12  ;;  %v10171_v34 = vld [vmem:[#allocation38_spill] sm:$0xff] }
 0xd6c   :  { %v2603_v42 = vmul.f32 %v7150_v50, %v10171_v34 }
 0xd6d   :  { %v7385_v18 = vpop.permute.xlu1 %2213  ;;  %v7387_v12 = vpop.permute.xlu0 %2211 }
 0xd6e   :  { %10166 = vst [vmem:[#allocation142_spill] sm:$0xff] %v7385_v18  ;;  %10167 = vst [vmem:[#allocation143_spill] sm:$0xff] %v7387_v12  ;;  %v2602_v12 = vmul.f32 %v7153_v29, %v10171_v34 }
 0xd6f   :  { %2580 = vrot.lane.b32.xlu1 %v2557_v60, %s4941_s12  ;;  %2578 = vrot.lane.b32.xlu0 %v2556_v10, %s4941_s12  ;;  %v10174_v60 = vld [vmem:[#allocation39_spill] sm:$0xff] }
 0xd70   :  { %v2605_v10 = vmul.f32 %v7150_v50, %v10174_v60 }
 0xd71   :  { %v7395_v63 = vpop.permute.xlu1 %2217  ;;  %v7397_v62 = vpop.permute.xlu0 %2215 }
 0xd72   :  { %10169 = vst [vmem:[#allocation153_spill] sm:$0xff] %v7395_v63  ;;  %10170 = vst [vmem:[#allocation152_spill] sm:$0xff] %v7397_v62  ;;  %v2604_v62 = vmul.f32 %v7153_v29, %v10174_v60 }
 0xd73   :  { %2620 = vrot.lane.b32.xlu1 %v2603_v42, %s4943_s13  ;;  %2618 = vrot.lane.b32.xlu0 %v2602_v12, %s4943_s13  ;;  %v10177_v42 = vld [vmem:[#allocation40_spill] sm:$0xff] }
 0xd74   :  { %v2607_v12 = vmul.f32 %v7150_v50, %v10177_v42 }
 0xd75   :  { %v7405_v18 = vpop.permute.xlu1 %2228  ;;  %v7407_v39 = vpop.permute.xlu0 %2226 }
 0xd76   :  { %10172 = vst [vmem:[#allocation174_spill] sm:$0xff] %v7405_v18  ;;  %10173 = vst [vmem:[#allocation173_spill] sm:$0xff] %v7407_v39  ;;  %v2606_v39 = vmul.f32 %v7153_v29, %v10177_v42 }
 0xd77   :  { %2624 = vrot.lane.b32.xlu1 %v2605_v10, %s4943_s13  ;;  %2622 = vrot.lane.b32.xlu0 %v2604_v62, %s4943_s13  ;;  %v10180_v10 = vld [vmem:[#allocation41_spill] sm:$0xff] }
 0xd78   :  { %v2609_v62 = vmul.f32 %v7150_v50, %v10180_v10 }
 0xd79   :  { %v7415_v63 = vpop.permute.xlu1 %2232  ;;  %v7417_v34 = vpop.permute.xlu0 %2230 }
 0xd7a   :  { %10175 = vst [vmem:[#allocation183_spill] sm:$0xff] %v7415_v63  ;;  %10176 = vst [vmem:[#allocation184_spill] sm:$0xff] %v7417_v34  ;;  %v2608_v34 = vmul.f32 %v7153_v29, %v10180_v10 }
 0xd7b   :  { %2628 = vrot.lane.b32.xlu1 %v2607_v12, %s4943_s13  ;;  %2626 = vrot.lane.b32.xlu0 %v2606_v39, %s4943_s13  ;;  %v10183_v12 = vld [vmem:[#allocation48_spill] sm:$0xff] }
 0xd7c   :  { %v2655_v39 = vmul.f32 %v7150_v50, %v10183_v12 }
 0xd7d   :  { %v7425_v18 = vpop.permute.xlu1 %2243  ;;  %v7427_v60 = vpop.permute.xlu0 %2241 }
 0xd7e   :  { %10178 = vst [vmem:[#allocation155_spill] sm:$0xff] %v7425_v18  ;;  %10179 = vst [vmem:[#allocation154_spill] sm:$0xff] %v7427_v60  ;;  %v2654_v60 = vmul.f32 %v7153_v29, %v10183_v12 }
 0xd7f   :  { %2632 = vrot.lane.b32.xlu1 %v2609_v62, %s4943_s13  ;;  %2630 = vrot.lane.b32.xlu0 %v2608_v34, %s4943_s13  ;;  %v10184_v62 = vld [vmem:[#allocation49_spill] sm:$0xff] }
 0xd80   :  { %v2657_v34 = vmul.f32 %v7150_v50, %v10184_v62 }
 0xd81   :  { %v7435_v63 = vpop.permute.xlu1 %2247  ;;  %v7437_v42 = vpop.permute.xlu0 %2245 }
 0xd82   :  { %10181 = vst [vmem:[#allocation164_spill] sm:$0xff] %v7435_v63  ;;  %10182 = vst [vmem:[#allocation165_spill] sm:$0xff] %v7437_v42  ;;  %v2656_v42 = vmul.f32 %v7153_v29, %v10184_v62 }
 0xd83   :  { %2672 = vrot.lane.b32.xlu1 %v2655_v39, %s4945_s14  ;;  %2670 = vrot.lane.b32.xlu0 %v2654_v60, %s4945_s14  ;;  %v10185_v39 = vld [vmem:[#allocation50_spill] sm:$0xff] }
 0xd84   :  { %v2659_v60 = vmul.f32 %v7150_v50, %v10185_v39  ;;  %v2658_v21 = vmul.f32 %v7153_v29, %v10185_v39 }
 0xd85   :  { %v7445_v18 = vpop.permute.xlu1 %2308  ;;  %v7447_v10 = vpop.permute.xlu0 %2306 }
 0xd87   :  { %2676 = vrot.lane.b32.xlu1 %v2657_v34, %s4945_s14  ;;  %2674 = vrot.lane.b32.xlu0 %v2656_v42, %s4945_s14  ;;  %v10186_v34 = vld [vmem:[#allocation60_spill] sm:$0xff] }
 0xd88   :  { %v2706_v42 = vmul.f32 %v7153_v29, %v10186_v34  ;;  %v2707_v9 = vmul.f32 %v7150_v50, %v10186_v34 }
 0xd89   :  { %v7455_v63 = vpop.permute.xlu1 %2312  ;;  %v7457_v12 = vpop.permute.xlu0 %2310 }
 0xd8b   :  { %2680 = vrot.lane.b32.xlu1 %v2659_v60, %s4945_s14  ;;  %2678 = vrot.lane.b32.xlu0 %v2658_v21, %s4945_s14  ;;  %v10188_v60 = vld [vmem:[#allocation61_spill] sm:$0xff] }
 0xd8c   :  { %v2708_v21 = vmul.f32 %v7153_v29, %v10188_v60 }
 0xd8d   :  { %v7465_v22 = vpop.permute.xlu1 %2316  ;;  %v7467_v62 = vpop.permute.xlu0 %2314 }
 0xd8f   :  { %2722 = vrot.lane.b32.xlu1 %v2706_v42, %s4947_s15  ;;  %2682 = vrot.lane.b32.xlu0 %v2660_v0, %s4945_s14  ;;  %v2661_v0 = vmul.f32 %v7150_v50, %v10187_v35  ;;  %v2709_v42 = vmul.f32 %v7150_v50, %v10188_v60 }
 0xd91   :  { %v7475_v11 = vpop.permute.xlu1 %2320  ;;  %v7477_v39 = vpop.permute.xlu0 %2318 }
 0xd93   :  { %2726 = vrot.lane.b32.xlu1 %v2708_v21, %s4947_s15  ;;  %2724 = vrot.lane.b32.xlu0 %v2707_v9, %s4947_s15  ;;  %v10189_v21 = vld [vmem:[#allocation72_spill] sm:$0xff] }
 0xd94   :  { %v2759_v9 = vmul.f32 %v7150_v50, %v10189_v21  ;;  %v2758_v8 = vmul.f32 %v7153_v29, %v10189_v21 }
 0xd95   :  { %v7485_v4 = vpop.permute.xlu1 %2360  ;;  %v7487_v54 = vpop.permute.xlu0 %2358 }
 0xd97   :  { %2684 = vrot.lane.b32.xlu1 %v2661_v0, %s4945_s14  ;;  %2728 = vrot.lane.b32.xlu0 %v2709_v42, %s4947_s15  ;;  %v10190_v0 = vld [vmem:[#allocation73_spill] sm:$0xff] }
 0xd98   :  { %v2761_v42 = vmul.f32 %v7150_v50, %v10190_v0  ;;  %v2760_v58 = vmul.f32 %v7153_v29, %v10190_v0 }
 0xd99   :  { %v7495_v48 = vpop.permute.xlu1 %2364  ;;  %v7497_v34 = vpop.permute.xlu0 %2362 }
 0xd9b   :  { %2776 = vrot.lane.b32.xlu1 %v2759_v9, %s4949_s16  ;;  %2774 = vrot.lane.b32.xlu0 %v2758_v8, %s4949_s16  ;;  %v10191_v9 = vld [vmem:[#allocation62_spill] sm:$0xff] }
 0xd9c   :  { %v2711_v8 = vmul.f32 %v7150_v50, %v10191_v9  ;;  %v2710_v52 = vmul.f32 %v7153_v29, %v10191_v9 }
 0xd9d   :  { %v7505_v35 = vpop.permute.xlu1 %2368  ;;  %v7507_v60 = vpop.permute.xlu0 %2366 }
 0xd9f   :  { %2780 = vrot.lane.b32.xlu1 %v2761_v42, %s4949_s16  ;;  %2778 = vrot.lane.b32.xlu0 %v2760_v58, %s4949_s16  ;;  %v10192_v42 = vld [vmem:[#allocation63_spill] sm:$0xff] }
 0xda0   :  { %v2713_v58 = vmul.f32 %v7150_v50, %v10192_v42  ;;  %v2712_v27 = vmul.f32 %v7153_v29, %v10192_v42 }
 0xda1   :  { %v7515_v33 = vpop.permute.xlu1 %2372  ;;  %v7517_v21 = vpop.permute.xlu0 %2370 }
 0xda3   :  { %2732 = vrot.lane.b32.xlu1 %v2711_v8, %s4947_s15  ;;  %2730 = vrot.lane.b32.xlu0 %v2710_v52, %s4947_s15  ;;  %v10193_v8 = vld [vmem:[#allocation84_spill] sm:$0xff] }
 0xda4   :  { %v2811_v52 = vmul.f32 %v7150_v50, %v10193_v8  ;;  %v2810_v46 = vmul.f32 %v7153_v29, %v10193_v8 }
 0xda5   :  { %v7525_v44 = vpop.permute.xlu1 %2412  ;;  %v7527_v0 = vpop.permute.xlu0 %2410 }
 0xda7   :  { %2736 = vrot.lane.b32.xlu1 %v2713_v58, %s4947_s15  ;;  %2734 = vrot.lane.b32.xlu0 %v2712_v27, %s4947_s15  ;;  %v10194_v58 = vld [vmem:[#allocation85_spill] sm:$0xff] }
 0xda8   :  { %v2813_v27 = vmul.f32 %v7150_v50, %v10194_v58  ;;  %v2812_v40 = vmul.f32 %v7153_v29, %v10194_v58 }
 0xda9   :  { %v7535_v51 = vpop.permute.xlu1 %2416  ;;  %v7537_v9 = vpop.permute.xlu0 %2414 }
 0xdab   :  { %2828 = vrot.lane.b32.xlu1 %v2811_v52, %s4951_s17  ;;  %2826 = vrot.lane.b32.xlu0 %v2810_v46, %s4951_s17  ;;  %v10195_v52 = vld [vmem:[#allocation74_spill] sm:$0xff] }
 0xdac   :  { %v2763_v46 = vmul.f32 %v7150_v50, %v10195_v52  ;;  %v2762_v36 = vmul.f32 %v7153_v29, %v10195_v52 }
 0xdad   :  { %v7545_v7 = vpop.permute.xlu1 %2420  ;;  %v7547_v42 = vpop.permute.xlu0 %2418 }
 0xdaf   :  { %2832 = vrot.lane.b32.xlu1 %v2813_v27, %s4951_s17  ;;  %2830 = vrot.lane.b32.xlu0 %v2812_v40, %s4951_s17  ;;  %v10196_v27 = vld [vmem:[#allocation75_spill] sm:$0xff] }
 0xdb0   :  { %v2765_v40 = vmul.f32 %v7150_v50, %v10196_v27  ;;  %v2764_v38 = vmul.f32 %v7153_v29, %v10196_v27 }
 0xdb1   :  { %v7555_v5 = vpop.permute.xlu1 %2424  ;;  %v7557_v8 = vpop.permute.xlu0 %2422 }
 0xdb3   :  { %2784 = vrot.lane.b32.xlu1 %v2763_v46, %s4949_s16  ;;  %2782 = vrot.lane.b32.xlu0 %v2762_v36, %s4949_s16  ;;  %v10197_v46 = vld [vmem:[#allocation96_spill] sm:$0xff] }
 0xdb4   :  { %v2863_v36 = vmul.f32 %v7150_v50, %v10197_v46  ;;  %v2862_v25 = vmul.f32 %v7153_v29, %v10197_v46 }
 0xdb5   :  { %v7565_v32 = vpop.permute.xlu1 %2464  ;;  %v7567_v58 = vpop.permute.xlu0 %2462 }
 0xdb7   :  { %2788 = vrot.lane.b32.xlu1 %v2765_v40, %s4949_s16  ;;  %2786 = vrot.lane.b32.xlu0 %v2764_v38, %s4949_s16  ;;  %v10198_v40 = vld [vmem:[#allocation97_spill] sm:$0xff] }
 0xdb8   :  { %v2865_v38 = vmul.f32 %v7150_v50, %v10198_v40  ;;  %v2864_v15 = vmul.f32 %v7153_v29, %v10198_v40 }
 0xdb9   :  { %v7575_v61 = vpop.permute.xlu1 %2468  ;;  %v7577_v52 = vpop.permute.xlu0 %2466 }
 0xdbb   :  { %2880 = vrot.lane.b32.xlu1 %v2863_v36, %s4953_s18  ;;  %2878 = vrot.lane.b32.xlu0 %v2862_v25, %s4953_s18  ;;  %v10199_v36 = vld [vmem:[#allocation86_spill] sm:$0xff] }
 0xdbc   :  { %v2815_v25 = vmul.f32 %v7150_v50, %v10199_v36  ;;  %v2814_v31 = vmul.f32 %v7153_v29, %v10199_v36 }
 0xdbd   :  { %v7585_v57 = vpop.permute.xlu1 %2472  ;;  %v7587_v27 = vpop.permute.xlu0 %2470 }
 0xdbf   :  { %2884 = vrot.lane.b32.xlu1 %v2865_v38, %s4953_s18  ;;  %2882 = vrot.lane.b32.xlu0 %v2864_v15, %s4953_s18  ;;  %v10200_v38 = vld [vmem:[#allocation87_spill] sm:$0xff] }
 0xdc0   :  { %v2817_v15 = vmul.f32 %v7150_v50, %v10200_v38  ;;  %v2816_v47 = vmul.f32 %v7153_v29, %v10200_v38 }
 0xdc1   :  { %v7595_v14 = vpop.permute.xlu1 %2476  ;;  %v7597_v46 = vpop.permute.xlu0 %2474 }
 0xdc3   :  { %2836 = vrot.lane.b32.xlu1 %v2815_v25, %s4951_s17  ;;  %2834 = vrot.lane.b32.xlu0 %v2814_v31, %s4951_s17  ;;  %v10201_v25 = vld [vmem:[#allocation108_spill] sm:$0xff] }
 0xdc4   :  { %v2915_v31 = vmul.f32 %v7150_v50, %v10201_v25  ;;  %v2914_v2 = vmul.f32 %v7153_v29, %v10201_v25 }
 0xdc5   :  { %v7605_v37 = vpop.permute.xlu1 %2516  ;;  %v7607_v40 = vpop.permute.xlu0 %2514 }
 0xdc7   :  { %2840 = vrot.lane.b32.xlu1 %v2817_v15, %s4951_s17  ;;  %2838 = vrot.lane.b32.xlu0 %v2816_v47, %s4951_s17  ;;  %v10202_v15 = vld [vmem:[#allocation109_spill] sm:$0xff] }
 0xdc8   :  { %v2917_v47 = vmul.f32 %v7150_v50, %v10202_v15  ;;  %v2916_v1 = vmul.f32 %v7153_v29, %v10202_v15 }
 0xdc9   :  { %v7615_v19 = vpop.permute.xlu1 %2520  ;;  %v7617_v36 = vpop.permute.xlu0 %2518 }
 0xdcb   :  { %2932 = vrot.lane.b32.xlu1 %v2915_v31, %s4955_s19  ;;  %2930 = vrot.lane.b32.xlu0 %v2914_v2, %s4955_s19  ;;  %v10203_v31 = vld [vmem:[#allocation98_spill] sm:$0xff] }
 0xdcc   :  { %v2867_v2 = vmul.f32 %v7150_v50, %v10203_v31  ;;  %v2866_v53 = vmul.f32 %v7153_v29, %v10203_v31 }
 0xdcd   :  { %v7625_v55 = vpop.permute.xlu1 %2524  ;;  %v7627_v38 = vpop.permute.xlu0 %2522 }
 0xdcf   :  { %2936 = vrot.lane.b32.xlu1 %v2917_v47, %s4955_s19  ;;  %2934 = vrot.lane.b32.xlu0 %v2916_v1, %s4955_s19  ;;  %v10204_v47 = vld [vmem:[#allocation99_spill] sm:$0xff] }
 0xdd0   :  { %v2869_v1 = vmul.f32 %v7150_v50, %v10204_v47  ;;  %v2868_v59 = vmul.f32 %v7153_v29, %v10204_v47 }
 0xdd1   :  { %v7635_v13 = vpop.permute.xlu1 %2528  ;;  %v7637_v25 = vpop.permute.xlu0 %2526 }
 0xdd3   :  { %2888 = vrot.lane.b32.xlu1 %v2867_v2, %s4953_s18  ;;  %2886 = vrot.lane.b32.xlu0 %v2866_v53, %s4953_s18  ;;  %v10207_v2 = vld [vmem:[#allocation120_spill] sm:$0xff] }
 0xdd4   :  { %v2967_v53 = vmul.f32 %v7150_v50, %v10207_v2  ;;  %v2966_v6 = vmul.f32 %v7153_v29, %v10207_v2 }
 0xdd5   :  { %v7645_v24 = vpop.permute.xlu1 %2568  ;;  %v7647_v15 = vpop.permute.xlu0 %2566 }
 0xdd7   :  { %2892 = vrot.lane.b32.xlu1 %v2869_v1, %s4953_s18  ;;  %2890 = vrot.lane.b32.xlu0 %v2868_v59, %s4953_s18  ;;  %v10210_v1 = vld [vmem:[#allocation121_spill] sm:$0xff] }
 0xdd8   :  { %v2969_v59 = vmul.f32 %v7150_v50, %v10210_v1  ;;  %v2968_v45 = vmul.f32 %v7153_v29, %v10210_v1 }
 0xdd9   :  { %v7655_v17 = vpop.permute.xlu1 %2572  ;;  %v7657_v31 = vpop.permute.xlu0 %2570 }
 0xdda   :  { %10205 = vst [vmem:[#allocation185_spill] sm:$0xff] %v7655_v17  ;;  %10206 = vst [vmem:[#allocation186_spill] sm:$0xff] %v7657_v31  ;;  %v10381_v31 = vld [vmem:[#allocation255_spill] sm:$0xff] }
 0xddb   :  { %2984 = vrot.lane.b32.xlu1 %v2967_v53, %s4957_s20  ;;  %2982 = vrot.lane.b32.xlu0 %v2966_v6, %s4957_s20  ;;  %v10213_v53 = vld [vmem:[#allocation110_spill] sm:$0xff] }
 0xddc   :  { %v2919_v6 = vmul.f32 %v7150_v50, %v10213_v53  ;;  %v2918_v56 = vmul.f32 %v7153_v29, %v10213_v53 }
 0xddd   :  { %v7665_v16 = vpop.permute.xlu1 %2576  ;;  %v7667_v47 = vpop.permute.xlu0 %2574 }
 0xdde   :  { %10208 = vst [vmem:[#allocation196_spill] sm:$0xff] %v7665_v16  ;;  %10209 = vst [vmem:[#allocation195_spill] sm:$0xff] %v7667_v47 }
 0xddf   :  { %2988 = vrot.lane.b32.xlu1 %v2969_v59, %s4957_s20  ;;  %2986 = vrot.lane.b32.xlu0 %v2968_v45, %s4957_s20  ;;  %v10216_v59 = vld [vmem:[#allocation111_spill] sm:$0xff] }
 0xde0   :  { %v2921_v45 = vmul.f32 %v7150_v50, %v10216_v59 }
 0xde1   :  { %v7675_v41 = vpop.permute.xlu1 %2580  ;;  %v7677_v2 = vpop.permute.xlu0 %2578 }
 0xde2   :  { %10211 = vst [vmem:[#allocation197_spill] sm:$0xff] %v7675_v41  ;;  %10212 = vst [vmem:[#allocation166_spill] sm:$0xff] %v7677_v2  ;;  %v2920_v2 = vmul.f32 %v7153_v29, %v10216_v59 }
 0xde3   :  { %2940 = vrot.lane.b32.xlu1 %v2919_v6, %s4955_s19  ;;  %2938 = vrot.lane.b32.xlu0 %v2918_v56, %s4955_s19  ;;  %v10219_v6 = vld [vmem:[#allocation132_spill] sm:$0xff] }
 0xde4   :  { %v3019_v56 = vmul.f32 %v7150_v50, %v10219_v6 }
 0xde5   :  { %v7685_v47 = vpop.permute.xlu1 %2620  ;;  %v7687_v1 = vpop.permute.xlu0 %2618 }
 0xde6   :  { %10214 = vst [vmem:[#allocation167_spill] sm:$0xff] %v7685_v47  ;;  %10215 = vst [vmem:[#allocation176_spill] sm:$0xff] %v7687_v1  ;;  %v3018_v1 = vmul.f32 %v7153_v29, %v10219_v6 }
 0xde7   :  { %2944 = vrot.lane.b32.xlu1 %v2921_v45, %s4955_s19  ;;  %2942 = vrot.lane.b32.xlu0 %v2920_v2, %s4955_s19  ;;  %v10222_v45 = vld [vmem:[#allocation133_spill] sm:$0xff] }
 0xde8   :  { %v3021_v2 = vmul.f32 %v7150_v50, %v10222_v45 }
 0xde9   :  { %v7695_v41 = vpop.permute.xlu1 %2624  ;;  %v7697_v53 = vpop.permute.xlu0 %2622 }
 0xdea   :  { %10217 = vst [vmem:[#allocation175_spill] sm:$0xff] %v7695_v41  ;;  %10218 = vst [vmem:[#allocation199_spill] sm:$0xff] %v7697_v53  ;;  %v3020_v53 = vmul.f32 %v7153_v29, %v10222_v45 }
 0xdeb   :  { %3036 = vrot.lane.b32.xlu1 %v3019_v56, %s4959_s27  ;;  %3034 = vrot.lane.b32.xlu0 %v3018_v1, %s4959_s27  ;;  %v10225_v56 = vld [vmem:[#allocation122_spill] sm:$0xff] }
 0xdec   :  { %v2971_v1 = vmul.f32 %v7150_v50, %v10225_v56 }
 0xded   :  { %v7705_v47 = vpop.permute.xlu1 %2628  ;;  %v7707_v59 = vpop.permute.xlu0 %2626 }
 0xdee   :  { %10220 = vst [vmem:[#allocation198_spill] sm:$0xff] %v7705_v47  ;;  %10221 = vst [vmem:[#allocation200_spill] sm:$0xff] %v7707_v59  ;;  %v2970_v59 = vmul.f32 %v7153_v29, %v10225_v56 }
 0xdef   :  { %3040 = vrot.lane.b32.xlu1 %v3021_v2, %s4959_s27  ;;  %3038 = vrot.lane.b32.xlu0 %v3020_v53, %s4959_s27  ;;  %v10228_v2 = vld [vmem:[#allocation123_spill] sm:$0xff] }
 0xdf0   :  { %v2973_v53 = vmul.f32 %v7150_v50, %v10228_v2 }
 0xdf1   :  { %v7715_v41 = vpop.permute.xlu1 %2632  ;;  %v7717_v6 = vpop.permute.xlu0 %2630 }
 0xdf2   :  { %10223 = vst [vmem:[#allocation211_spill] sm:$0xff] %v7715_v41  ;;  %10224 = vst [vmem:[#allocation212_spill] sm:$0xff] %v7717_v6  ;;  %v2972_v6 = vmul.f32 %v7153_v29, %v10228_v2 }
 0xdf3   :  { %2992 = vrot.lane.b32.xlu1 %v2971_v1, %s4957_s20  ;;  %2990 = vrot.lane.b32.xlu0 %v2970_v59, %s4957_s20  ;;  %v10231_v1 = vld [vmem:[#allocation144_spill] sm:$0xff] }
 0xdf4   :  { %v3071_v59 = vmul.f32 %v7150_v50, %v10231_v1 }
 0xdf5   :  { %v7725_v47 = vpop.permute.xlu1 %2672  ;;  %v7727_v45 = vpop.permute.xlu0 %2670 }
 0xdf6   :  { %10226 = vst [vmem:[#allocation214_spill] sm:$0xff] %v7725_v47  ;;  %10227 = vst [vmem:[#allocation178_spill] sm:$0xff] %v7727_v45  ;;  %v3070_v45 = vmul.f32 %v7153_v29, %v10231_v1 }
 0xdf7   :  { %2996 = vrot.lane.b32.xlu1 %v2973_v53, %s4957_s20  ;;  %2994 = vrot.lane.b32.xlu0 %v2972_v6, %s4957_s20  ;;  %v10234_v53 = vld [vmem:[#allocation145_spill] sm:$0xff] }
 0xdf8   :  { %v3073_v6 = vmul.f32 %v7150_v50, %v10234_v53 }
 0xdf9   :  { %v7735_v41 = vpop.permute.xlu1 %2676  ;;  %v7737_v56 = vpop.permute.xlu0 %2674 }
 0xdfa   :  { %10229 = vst [vmem:[#allocation177_spill] sm:$0xff] %v7735_v41  ;;  %10230 = vst [vmem:[#allocation187_spill] sm:$0xff] %v7737_v56  ;;  %v3072_v56 = vmul.f32 %v7153_v29, %v10234_v53 }
 0xdfb   :  { %3088 = vrot.lane.b32.xlu1 %v3071_v59, %s4961_s1  ;;  %3086 = vrot.lane.b32.xlu0 %v3070_v45, %s4961_s1  ;;  %v10237_v59 = vld [vmem:[#allocation134_spill] sm:$0xff] }
 0xdfc   :  { %v3023_v45 = vmul.f32 %v7150_v50, %v10237_v59 }
 0xdfd   :  { %v7745_v47 = vpop.permute.xlu1 %2680  ;;  %v7747_v2 = vpop.permute.xlu0 %2678 }
 0xdfe   :  { %10232 = vst [vmem:[#allocation188_spill] sm:$0xff] %v7745_v47  ;;  %10233 = vst [vmem:[#allocation216_spill] sm:$0xff] %v7747_v2  ;;  %v3022_v2 = vmul.f32 %v7153_v29, %v10237_v59 }
 0xdff   :  { %3092 = vrot.lane.b32.xlu1 %v3073_v6, %s4961_s1  ;;  %3090 = vrot.lane.b32.xlu0 %v3072_v56, %s4961_s1  ;;  %v10240_v6 = vld [vmem:[#allocation135_spill] sm:$0xff] }
 0xe00   :  { %v3025_v56 = vmul.f32 %v7150_v50, %v10240_v6 }
 0xe01   :  { %v7755_v41 = vpop.permute.xlu1 %2722  ;;  %v7757_v1 = vpop.permute.xlu0 %2682 }
 0xe02   :  { %10235 = vst [vmem:[#allocation213_spill] sm:$0xff] %v7755_v41  ;;  %10236 = vst [vmem:[#allocation215_spill] sm:$0xff] %v7757_v1  ;;  %v3024_v1 = vmul.f32 %v7153_v29, %v10240_v6 }
 0xe03   :  { %3044 = vrot.lane.b32.xlu1 %v3023_v45, %s4959_s27  ;;  %3042 = vrot.lane.b32.xlu0 %v3022_v2, %s4959_s27  ;;  %v10243_v45 = vld [vmem:[#allocation156_spill] sm:$0xff] }
 0xe04   :  { %v3123_v2 = vmul.f32 %v7150_v50, %v10243_v45 }
 0xe05   :  { %v7765_v47 = vpop.permute.xlu1 %2726  ;;  %v7767_v53 = vpop.permute.xlu0 %2724 }
 0xe06   :  { %10238 = vst [vmem:[#allocation228_spill] sm:$0xff] %v7765_v47  ;;  %10239 = vst [vmem:[#allocation227_spill] sm:$0xff] %v7767_v53  ;;  %v3122_v47 = vmul.f32 %v7153_v29, %v10243_v45 }
 0xe07   :  { %3048 = vrot.lane.b32.xlu1 %v3025_v56, %s4959_s27  ;;  %3046 = vrot.lane.b32.xlu0 %v3024_v1, %s4959_s27  ;;  %v10246_v56 = vld [vmem:[#allocation157_spill] sm:$0xff] }
 0xe08   :  { %v3125_v1 = vmul.f32 %v7150_v50, %v10246_v56 }
 0xe09   :  { %v7775_v41 = vpop.permute.xlu1 %2684  ;;  %v7777_v59 = vpop.permute.xlu0 %2728 }
 0xe0a   :  { %10241 = vst [vmem:[#allocation229_spill] sm:$0xff] %v7775_v41  ;;  %10242 = vst [vmem:[#allocation189_spill] sm:$0xff] %v7777_v59  ;;  %v3124_v41 = vmul.f32 %v7153_v29, %v10246_v56 }
 0xe0b   :  { %3140 = vrot.lane.b32.xlu1 %v3123_v2, %s4963_s30  ;;  %3138 = vrot.lane.b32.xlu0 %v3122_v47, %s4963_s30  ;;  %v10249_v2 = vld [vmem:[#allocation146_spill] sm:$0xff] }
 0xe0c   :  { %v3075_v47 = vmul.f32 %v7150_v50, %v10249_v2 }
 0xe0d   :  { %v7785_v53 = vpop.permute.xlu1 %2776  ;;  %v7787_v6 = vpop.permute.xlu0 %2774 }
 0xe0e   :  { %10244 = vst [vmem:[#allocation190_spill] sm:$0xff] %v7785_v53  ;;  %10245 = vst [vmem:[#allocation202_spill] sm:$0xff] %v7787_v6  ;;  %v3074_v6 = vmul.f32 %v7153_v29, %v10249_v2 }
 0xe0f   :  { %3144 = vrot.lane.b32.xlu1 %v3125_v1, %s4963_s30  ;;  %3142 = vrot.lane.b32.xlu0 %v3124_v41, %s4963_s30  ;;  %v10252_v1 = vld [vmem:[#allocation147_spill] sm:$0xff] }
 0xe10   :  { %v3077_v41 = vmul.f32 %v7150_v50, %v10252_v1 }
 0xe11   :  { %v7795_v59 = vpop.permute.xlu1 %2780  ;;  %v7797_v45 = vpop.permute.xlu0 %2778 }
 0xe12   :  { %10247 = vst [vmem:[#allocation201_spill] sm:$0xff] %v7795_v59  ;;  %10248 = vst [vmem:[#allocation203_spill] sm:$0xff] %v7797_v45  ;;  %v3076_v45 = vmul.f32 %v7153_v29, %v10252_v1 }
 0xe13   :  { %3096 = vrot.lane.b32.xlu1 %v3075_v47, %s4961_s1  ;;  %3094 = vrot.lane.b32.xlu0 %v3074_v6, %s4961_s1  ;;  %v10255_v47 = vld [vmem:[#allocation168_spill] sm:$0xff] }
 0xe14   :  { %v3175_v6 = vmul.f32 %v7150_v50, %v10255_v47 }
 0xe15   :  { %v7805_v53 = vpop.permute.xlu1 %2732  ;;  %v7807_v56 = vpop.permute.xlu0 %2730 }
 0xe16   :  { %10250 = vst [vmem:[#allocation230_spill] sm:$0xff] %v7805_v53  ;;  %10251 = vst [vmem:[#allocation241_spill] sm:$0xff] %v7807_v56  ;;  %v3174_v56 = vmul.f32 %v7153_v29, %v10255_v47 }
 0xe17   :  { %3100 = vrot.lane.b32.xlu1 %v3077_v41, %s4961_s1  ;;  %3098 = vrot.lane.b32.xlu0 %v3076_v45, %s4961_s1  ;;  %v10258_v41 = vld [vmem:[#allocation169_spill] sm:$0xff] }
 0xe18   :  { %v3177_v45 = vmul.f32 %v7150_v50, %v10258_v41 }
 0xe19   :  { %v7815_v59 = vpop.permute.xlu1 %2736  ;;  %v7817_v2 = vpop.permute.xlu0 %2734 }
 0xe1a   :  { %10253 = vst [vmem:[#allocation242_spill] sm:$0xff] %v7815_v59  ;;  %10254 = vst [vmem:[#allocation205_spill] sm:$0xff] %v7817_v2  ;;  %v3176_v2 = vmul.f32 %v7153_v29, %v10258_v41 }
 0xe1b   :  { %3192 = vrot.lane.b32.xlu1 %v3175_v6, %s4965_s6  ;;  %3190 = vrot.lane.b32.xlu0 %v3174_v56, %s4965_s6  ;;  %v10261_v6 = vld [vmem:[#allocation158_spill] sm:$0xff] }
 0xe1c   :  { %v3127_v56 = vmul.f32 %v7150_v50, %v10261_v6 }
 0xe1d   :  { %v7825_v53 = vpop.permute.xlu1 %2828  ;;  %v7827_v1 = vpop.permute.xlu0 %2826 }
 0xe1e   :  { %10256 = vst [vmem:[#allocation204_spill] sm:$0xff] %v7825_v53  ;;  %10257 = vst [vmem:[#allocation206_spill] sm:$0xff] %v7827_v1  ;;  %v3126_v1 = vmul.f32 %v7153_v29, %v10261_v6 }
 0xe1f   :  { %3196 = vrot.lane.b32.xlu1 %v3177_v45, %s4965_s6  ;;  %3194 = vrot.lane.b32.xlu0 %v3176_v2, %s4965_s6  ;;  %v10264_v45 = vld [vmem:[#allocation159_spill] sm:$0xff] }
 0xe20   :  { %v3129_v2 = vmul.f32 %v7150_v50, %v10264_v45 }
 0xe21   :  { %v7835_v59 = vpop.permute.xlu1 %2832  ;;  %v7837_v47 = vpop.permute.xlu0 %2830 }
 0xe22   :  { %10259 = vst [vmem:[#allocation217_spill] sm:$0xff] %v7835_v59  ;;  %10260 = vst [vmem:[#allocation218_spill] sm:$0xff] %v7837_v47  ;;  %v3128_v47 = vmul.f32 %v7153_v29, %v10264_v45 }
 0xe23   :  { %3148 = vrot.lane.b32.xlu1 %v3127_v56, %s4963_s30  ;;  %3146 = vrot.lane.b32.xlu0 %v3126_v1, %s4963_s30  ;;  %v10267_v56 = vld [vmem:[#allocation179_spill] sm:$0xff] }
 0xe24   :  { %v3227_v1 = vmul.f32 %v7150_v50, %v10267_v56 }
 0xe25   :  { %v7845_v53 = vpop.permute.xlu1 %2784  ;;  %v7847_v41 = vpop.permute.xlu0 %2782 }
 0xe26   :  { %10262 = vst [vmem:[#allocation220_spill] sm:$0xff] %v7845_v53  ;;  %10263 = vst [vmem:[#allocation244_spill] sm:$0xff] %v7847_v41  ;;  %v3226_v41 = vmul.f32 %v7153_v29, %v10267_v56 }
 0xe27   :  { %3152 = vrot.lane.b32.xlu1 %v3129_v2, %s4963_s30  ;;  %3150 = vrot.lane.b32.xlu0 %v3128_v47, %s4963_s30  ;;  %v10270_v2 = vld [vmem:[#allocation180_spill] sm:$0xff] }
 0xe28   :  { %v3229_v47 = vmul.f32 %v7150_v50, %v10270_v2 }
 0xe29   :  { %v7855_v59 = vpop.permute.xlu1 %2788  ;;  %v7857_v6 = vpop.permute.xlu0 %2786 }
 0xe2a   :  { %10265 = vst [vmem:[#allocation243_spill] sm:$0xff] %v7855_v59  ;;  %10266 = vst [vmem:[#allocation245_spill] sm:$0xff] %v7857_v6  ;;  %v3228_v6 = vmul.f32 %v7153_v29, %v10270_v2 }
 0xe2b   :  { %3244 = vrot.lane.b32.xlu1 %v3227_v1, %s4967_s21  ;;  %3242 = vrot.lane.b32.xlu0 %v3226_v41, %s4967_s21  ;;  %v10273_v1 = vld [vmem:[#allocation170_spill] sm:$0xff] }
 0xe2c   :  { %v3179_v41 = vmul.f32 %v7150_v50, %v10273_v1 }
 0xe2d   :  { %v7865_v53 = vpop.permute.xlu1 %2880  ;;  %v7867_v45 = vpop.permute.xlu0 %2878 }
 0xe2e   :  { %10268 = vst [vmem:[#allocation222_spill] sm:$0xff] %v7865_v53  ;;  %10269 = vst [vmem:[#allocation219_spill] sm:$0xff] %v7867_v45  ;;  %v3178_v45 = vmul.f32 %v7153_v29, %v10273_v1  ;;  %v3280_v53 = vsub.s32 5, %v10092_v43 }
 0xe2f   :  { %3248 = vrot.lane.b32.xlu1 %v3229_v47, %s4967_s21  ;;  %3246 = vrot.lane.b32.xlu0 %v3228_v6, %s4967_s21  ;;  %v10276_v6 = vld [vmem:[#allocation171_spill] sm:$0xff] }
 0xe30   :  { %v3281_v16 = vrot.slane %v7136_v30, %v3280_v53 }
 0xe31   :  { %v7875_v59 = vpop.permute.xlu1 %2884  ;;  %v7877_v56 = vpop.permute.xlu0 %2882 }
 0xe32   :  { %10271 = vst [vmem:[#allocation221_spill] sm:$0xff] %v7875_v59  ;;  %10272 = vst [vmem:[#allocation232_spill] sm:$0xff] %v7877_v56  ;;  %v3181_v59 = vmul.f32 %v7150_v50, %v10276_v6  ;;  %v3180_v56 = vmul.f32 %v7153_v29, %v10276_v6 }
 0xe33   :  { %3200 = vrot.lane.b32.xlu1 %v3179_v41, %s4965_s6  ;;  %3198 = vrot.lane.b32.xlu0 %v3178_v45, %s4965_s6  ;;  %v10279_v45 = vld [vmem:[#allocation191_spill] sm:$0xff] }
 0xe34   :  { %v3288_v41 = vmul.f32 %v7150_v50, %v10279_v45 }
 0xe35   :  { %v7886_v2 = vpop.permute.xlu1 %2836  ;;  %v7888_v47 = vpop.permute.xlu0 %2834 }
 0xe36   :  { %10274 = vst [vmem:[#allocation231_spill] sm:$0xff] %v7886_v2  ;;  %10275 = vst [vmem:[#allocation233_spill] sm:$0xff] %v7888_v47  ;;  %v3287_v47 = vmul.f32 %v7153_v29, %v10279_v45  ;;  %v7906_v2 = vrot.slane %v3281_v16, %v7122_v49 }
 0xe37   :  { %3204 = vrot.lane.b32.xlu1 %v3181_v59, %s4965_s6  ;;  %3202 = vrot.lane.b32.xlu0 %v3180_v56, %s4965_s6  ;;  %v10282_v59 = vld [vmem:[#allocation192_spill] sm:$0xff] }
 0xe38   :  { %v3290_v56 = vmul.f32 %v7153_v29, %v10282_v59  ;;  %v3289_v6 = vmul.f32 %v7906_v2, %v10279_v45 }
 0xe39   :  { %v7897_v43 = vpop.permute.xlu1 %2840  ;;  %v7899_v1 = vpop.permute.xlu0 %2838 }
 0xe3a   :  { %10277 = vst [vmem:[#allocation235_spill] sm:$0xff] %v7897_v43  ;;  %10278 = vst [vmem:[#allocation234_spill] sm:$0xff] %v7899_v1 }
 0xe3b   :  { %3313 = vrot.lane.b32.xlu1 %v3288_v41, %s4969_s24  ;;  %3311 = vrot.lane.b32.xlu0 %v3287_v47, %s4969_s24  ;;  %v3292_v47 = vmul.f32 %v7906_v2, %v10282_v59  ;;  %v3291_v41 = vmul.f32 %v7150_v50, %v10282_v59 }
 0xe3d   :  { %v7910_v30 = vpop.permute.xlu1 %2932  ;;  %v7912_v53 = vpop.permute.xlu0 %2930 }
 0xe3e   :  { %10280 = vst [vmem:[#allocation236_spill] sm:$0xff] %v7910_v30  ;;  %10281 = vst [vmem:[#allocation247_spill] sm:$0xff] %v7912_v53 }
 0xe3f   :  { %3317 = vrot.lane.b32.xlu1 %v3290_v56, %s4969_s24  ;;  %3315 = vrot.lane.b32.xlu0 %v3289_v6, %s4969_s24  ;;  %v10287_v56 = vld [vmem:[#allocation181_spill] sm:$0xff] }
 0xe40   :  { %v3231_v6 = vmul.f32 %v7150_v50, %v10287_v56  ;;  %v3230_v43 = vmul.f32 %v7153_v29, %v10287_v56 }
 0xe41   :  { %v7920_v16 = vpop.permute.xlu1 %2936  ;;  %v7922_v49 = vpop.permute.xlu0 %2934 }
 0xe42   :  { %10283 = vst [vmem:[#allocation246_spill] sm:$0xff] %v7920_v16  ;;  %10284 = vst [vmem:[#allocation248_spill] sm:$0xff] %v7922_v49 }
 0xe43   :  { %3321 = vrot.lane.b32.xlu1 %v3292_v47, %s4969_s24  ;;  %3319 = vrot.lane.b32.xlu0 %v3291_v41, %s4969_s24  ;;  %v10290_v47 = vld [vmem:[#allocation182_spill] sm:$0xff] }
 0xe44   :  { %v3233_v41 = vmul.f32 %v7150_v50, %v10290_v47 }
 0xe45   :  { %v7930_v1 = vpop.permute.xlu1 %2888  ;;  %v7932_v45 = vpop.permute.xlu0 %2886 }
 0xe46   :  { %10285 = vst [vmem:[#allocation250_spill] sm:$0xff] %v7930_v1  ;;  %10286 = vst [vmem:[#allocation249_spill] sm:$0xff] %v7932_v45  ;;  %v3232_v45 = vmul.f32 %v7153_v29, %v10290_v47 }
 0xe47   :  { %3252 = vrot.lane.b32.xlu1 %v3231_v6, %s4967_s21  ;;  %3250 = vrot.lane.b32.xlu0 %v3230_v43, %s4967_s21  ;;  %v10293_v6 = vld [vmem:[#allocation207_spill] sm:$0xff] }
 0xe48   :  { %v3360_v43 = vmul.f32 %v7150_v50, %v10293_v6  ;;  %v3361_v16 = vmul.f32 %v7906_v2, %v10293_v6 }
 0xe49   :  { %v7940_v49 = vpop.permute.xlu1 %2892  ;;  %v7942_v59 = vpop.permute.xlu0 %2890 }
 0xe4a   :  { %10288 = vst [vmem:[#allocation251_spill] sm:$0xff] %v7940_v49  ;;  %10289 = vst [vmem:[#allocation3_spill] sm:$0xff] %v7942_v59  ;;  %v3359_v59 = vmul.f32 %v7153_v29, %v10293_v6 }
 0xe4b   :  { %3256 = vrot.lane.b32.xlu1 %v3233_v41, %s4967_s21  ;;  %3254 = vrot.lane.b32.xlu0 %v3232_v45, %s4967_s21  ;;  %v10296_v41 = vld [vmem:[#allocation208_spill] sm:$0xff] }
 0xe4c   :  { %v3362_v45 = vmul.f32 %v7153_v29, %v10296_v41 }
 0xe4d   :  { %v7950_v1 = vpop.permute.xlu1 %2984  ;;  %v7952_v56 = vpop.permute.xlu0 %2982 }
 0xe4e   :  { %10291 = vst [vmem:[#allocation4_spill] sm:$0xff] %v7950_v1  ;;  %10292 = vst [vmem:[#allocation6_spill] sm:$0xff] %v7952_v56 }
 0xe4f   :  { %3385 = vrot.lane.b32.xlu1 %v3360_v43, %s4971_s25  ;;  %3383 = vrot.lane.b32.xlu0 %v3359_v59, %s4971_s25  ;;  %v3364_v59 = vmul.f32 %v7906_v2, %v10296_v41  ;;  %v3363_v43 = vmul.f32 %v7150_v50, %v10296_v41 }
 0xe51   :  { %v7960_v49 = vpop.permute.xlu1 %2988  ;;  %v7962_v47 = vpop.permute.xlu0 %2986 }
 0xe52   :  { %10294 = vst [vmem:[#allocation7_spill] sm:$0xff] %v7960_v49  ;;  %10295 = vst [vmem:[#allocation8_spill] sm:$0xff] %v7962_v47 }
 0xe53   :  { %3389 = vrot.lane.b32.xlu1 %v3362_v45, %s4971_s25  ;;  %3387 = vrot.lane.b32.xlu0 %v3361_v16, %s4971_s25  ;;  %v10301_v45 = vld [vmem:[#allocation193_spill] sm:$0xff] }
 0xe54   :  { %v3294_v16 = vmul.f32 %v7150_v50, %v10301_v45 }
 0xe55   :  { %v7970_v56 = vpop.permute.xlu1 %2940  ;;  %v7972_v1 = vpop.permute.xlu0 %2938 }
 0xe56   :  { %10297 = vst [vmem:[#allocation9_spill] sm:$0xff] %v7970_v56  ;;  %10298 = vst [vmem:[#allocation10_spill] sm:$0xff] %v7972_v1  ;;  %v3293_v1 = vmul.f32 %v7153_v29, %v10301_v45 }
 0xe57   :  { %3393 = vrot.lane.b32.xlu1 %v3364_v59, %s4971_s25  ;;  %3391 = vrot.lane.b32.xlu0 %v3363_v43, %s4971_s25  ;;  %v10304_v59 = vld [vmem:[#allocation194_spill] sm:$0xff] }
 0xe58   :  { %v3296_v43 = vmul.f32 %v7153_v29, %v10304_v59 }
 0xe59   :  { %v7980_v47 = vpop.permute.xlu1 %2944  ;;  %v7982_v6 = vpop.permute.xlu0 %2942 }
 0xe5a   :  { %10299 = vst [vmem:[#allocation11_spill] sm:$0xff] %v7980_v47  ;;  %10300 = vst [vmem:[#allocation12_spill] sm:$0xff] %v7982_v6  ;;  %v3295_v6 = vmul.f32 %v7906_v2, %v10301_v45 }
 0xe5b   :  { %3325 = vrot.lane.b32.xlu1 %v3294_v16, %s4969_s24  ;;  %3323 = vrot.lane.b32.xlu0 %v3293_v1, %s4969_s24  ;;  %v3298_v1 = vmul.f32 %v7906_v2, %v10304_v59  ;;  %v3297_v16 = vmul.f32 %v7150_v50, %v10304_v59 }
 0xe5d   :  { %v7990_v56 = vpop.permute.xlu1 %3036  ;;  %v7992_v41 = vpop.permute.xlu0 %3034 }
 0xe5e   :  { %10302 = vst [vmem:[#allocation13_spill] sm:$0xff] %v7990_v56  ;;  %10303 = vst [vmem:[#allocation14_spill] sm:$0xff] %v7992_v41 }
 0xe5f   :  { %3329 = vrot.lane.b32.xlu1 %v3296_v43, %s4969_s24  ;;  %3327 = vrot.lane.b32.xlu0 %v3295_v6, %s4969_s24  ;;  %v10309_v43 = vld [vmem:[#allocation223_spill] sm:$0xff] }
 0xe60   :  { %v3432_v6 = vmul.f32 %v7150_v50, %v10309_v43 }
 0xe61   :  { %v8000_v47 = vpop.permute.xlu1 %3040  ;;  %v8002_v49 = vpop.permute.xlu0 %3038 }
 0xe62   :  { %10305 = vst [vmem:[#allocation15_spill] sm:$0xff] %v8000_v47  ;;  %10306 = vst [vmem:[#allocation16_spill] sm:$0xff] %v8002_v49  ;;  %v3431_v49 = vmul.f32 %v7153_v29, %v10309_v43 }
 0xe63   :  { %3333 = vrot.lane.b32.xlu1 %v3298_v1, %s4969_s24  ;;  %3331 = vrot.lane.b32.xlu0 %v3297_v16, %s4969_s24  ;;  %v10312_v1 = vld [vmem:[#allocation224_spill] sm:$0xff] }
 0xe64   :  { %v3434_v16 = vmul.f32 %v7153_v29, %v10312_v1 }
 0xe65   :  { %v8010_v41 = vpop.permute.xlu1 %2992  ;;  %v8012_v45 = vpop.permute.xlu0 %2990 }
 0xe66   :  { %10307 = vst [vmem:[#allocation17_spill] sm:$0xff] %v8010_v41  ;;  %10308 = vst [vmem:[#allocation18_spill] sm:$0xff] %v8012_v45  ;;  %v3433_v45 = vmul.f32 %v7906_v2, %v10309_v43 }
 0xe67   :  { %3457 = vrot.lane.b32.xlu1 %v3432_v6, %s10085_s26  ;;  %3455 = vrot.lane.b32.xlu0 %v3431_v49, %s10085_s26  ;;  %v3436_v49 = vmul.f32 %v7906_v2, %v10312_v1  ;;  %v3435_v6 = vmul.f32 %v7150_v50, %v10312_v1 }
 0xe69   :  { %v8020_v47 = vpop.permute.xlu1 %2996  ;;  %v8022_v59 = vpop.permute.xlu0 %2994 }
 0xe6a   :  { %10310 = vst [vmem:[#allocation19_spill] sm:$0xff] %v8020_v47  ;;  %10311 = vst [vmem:[#allocation20_spill] sm:$0xff] %v8022_v59 }
 0xe6b   :  { %3461 = vrot.lane.b32.xlu1 %v3434_v16, %s10085_s26  ;;  %3459 = vrot.lane.b32.xlu0 %v3433_v45, %s10085_s26  ;;  %v10317_v16 = vld [vmem:[#allocation209_spill] sm:$0xff] }
 0xe6c   :  { %v3366_v45 = vmul.f32 %v7150_v50, %v10317_v16  ;;  %v3365_v47 = vmul.f32 %v7153_v29, %v10317_v16 }
 0xe6d   :  { %v8030_v41 = vpop.permute.xlu1 %3088  ;;  %v8032_v56 = vpop.permute.xlu0 %3086 }
 0xe6e   :  { %10313 = vst [vmem:[#allocation21_spill] sm:$0xff] %v8030_v41  ;;  %10314 = vst [vmem:[#allocation22_spill] sm:$0xff] %v8032_v56 }
 0xe6f   :  { %3465 = vrot.lane.b32.xlu1 %v3436_v49, %s10085_s26  ;;  %3463 = vrot.lane.b32.xlu0 %v3435_v6, %s10085_s26  ;;  %v10320_v49 = vld [vmem:[#allocation210_spill] sm:$0xff] }
 0xe70   :  { %v3368_v6 = vmul.f32 %v7153_v29, %v10320_v49 }
 0xe71   :  { %v8040_v59 = vpop.permute.xlu1 %3092  ;;  %v8042_v43 = vpop.permute.xlu0 %3090 }
 0xe72   :  { %10315 = vst [vmem:[#allocation23_spill] sm:$0xff] %v8040_v59  ;;  %10316 = vst [vmem:[#allocation24_spill] sm:$0xff] %v8042_v43  ;;  %v3367_v43 = vmul.f32 %v7906_v2, %v10317_v16 }
 0xe73   :  { %3397 = vrot.lane.b32.xlu1 %v3366_v45, %s4971_s25  ;;  %3395 = vrot.lane.b32.xlu0 %v3365_v47, %s4971_s25  ;;  %v3370_v47 = vmul.f32 %v7906_v2, %v10320_v49  ;;  %v3369_v45 = vmul.f32 %v7150_v50, %v10320_v49 }
 0xe75   :  { %v8050_v56 = vpop.permute.xlu1 %3044  ;;  %v8052_v1 = vpop.permute.xlu0 %3042 }
 0xe76   :  { %10318 = vst [vmem:[#allocation30_spill] sm:$0xff] %v8050_v56  ;;  %10319 = vst [vmem:[#allocation31_spill] sm:$0xff] %v8052_v1 }
 0xe77   :  { %3401 = vrot.lane.b32.xlu1 %v3368_v6, %s4971_s25  ;;  %3399 = vrot.lane.b32.xlu0 %v3367_v43, %s4971_s25  ;;  %v10325_v6 = vld [vmem:[#allocation237_spill] sm:$0xff] }
 0xe78   :  { %v3504_v43 = vmul.f32 %v7150_v50, %v10325_v6  ;;  %v3505_v56 = vmul.f32 %v7906_v2, %v10325_v6 }
 0xe79   :  { %v8060_v59 = vpop.permute.xlu1 %3048  ;;  %v8062_v41 = vpop.permute.xlu0 %3046 }
 0xe7a   :  { %10321 = vst [vmem:[#allocation32_spill] sm:$0xff] %v8060_v59  ;;  %10322 = vst [vmem:[#allocation33_spill] sm:$0xff] %v8062_v41  ;;  %v3503_v41 = vmul.f32 %v7153_v29, %v10325_v6 }
 0xe7b   :  { %3405 = vrot.lane.b32.xlu1 %v3370_v47, %s4971_s25  ;;  %3403 = vrot.lane.b32.xlu0 %v3369_v45, %s4971_s25  ;;  %v10328_v47 = vld [vmem:[#allocation238_spill] sm:$0xff] }
 0xe7c   :  { %v3506_v45 = vmul.f32 %v7153_v29, %v10328_v47 }
 0xe7d   :  { %v8070_v1 = vpop.permute.xlu1 %3140  ;;  %v8072_v16 = vpop.permute.xlu0 %3138 }
 0xe7e   :  { %10323 = vst [vmem:[#allocation38_spill] sm:$0xff] %v8070_v1  ;;  %10324 = vst [vmem:[#allocation39_spill] sm:$0xff] %v8072_v16 }
 0xe7f   :  { %3529 = vrot.lane.b32.xlu1 %v3504_v43, %s4975_s28  ;;  %3527 = vrot.lane.b32.xlu0 %v3503_v41, %s4975_s28  ;;  %v3508_v41 = vmul.f32 %v7906_v2, %v10328_v47  ;;  %v3507_v43 = vmul.f32 %v7150_v50, %v10328_v47 }
 0xe81   :  { %v8080_v59 = vpop.permute.xlu1 %3144  ;;  %v8082_v49 = vpop.permute.xlu0 %3142 }
 0xe82   :  { %10326 = vst [vmem:[#allocation40_spill] sm:$0xff] %v8080_v59  ;;  %10327 = vst [vmem:[#allocation41_spill] sm:$0xff] %v8082_v49 }
 0xe83   :  { %3533 = vrot.lane.b32.xlu1 %v3506_v45, %s4975_s28  ;;  %3531 = vrot.lane.b32.xlu0 %v3505_v56, %s4975_s28  ;;  %v10333_v45 = vld [vmem:[#allocation225_spill] sm:$0xff] }
 0xe84   :  { %v3438_v56 = vmul.f32 %v7150_v50, %v10333_v45 }
 0xe85   :  { %v8090_v16 = vpop.permute.xlu1 %3096  ;;  %v8092_v1 = vpop.permute.xlu0 %3094 }
 0xe86   :  { %10329 = vst [vmem:[#allocation48_spill] sm:$0xff] %v8090_v16  ;;  %10330 = vst [vmem:[#allocation49_spill] sm:$0xff] %v8092_v1  ;;  %v3437_v1 = vmul.f32 %v7153_v29, %v10333_v45 }
 0xe87   :  { %3537 = vrot.lane.b32.xlu1 %v3508_v41, %s4975_s28  ;;  %3535 = vrot.lane.b32.xlu0 %v3507_v43, %s4975_s28  ;;  %v10336_v41 = vld [vmem:[#allocation226_spill] sm:$0xff] }
 0xe88   :  { %v3440_v43 = vmul.f32 %v7153_v29, %v10336_v41 }
 0xe89   :  { %v8100_v49 = vpop.permute.xlu1 %3100  ;;  %v8102_v6 = vpop.permute.xlu0 %3098 }
 0xe8a   :  { %10331 = vst [vmem:[#allocation50_spill] sm:$0xff] %v8100_v49  ;;  %10332 = vst [vmem:[#allocation60_spill] sm:$0xff] %v8102_v6  ;;  %v3439_v6 = vmul.f32 %v7906_v2, %v10333_v45 }
 0xe8b   :  { %3469 = vrot.lane.b32.xlu1 %v3438_v56, %s10085_s26  ;;  %3467 = vrot.lane.b32.xlu0 %v3437_v1, %s10085_s26  ;;  %v3442_v1 = vmul.f32 %v7906_v2, %v10336_v41  ;;  %v3441_v56 = vmul.f32 %v7150_v50, %v10336_v41 }
 0xe8d   :  { %v8110_v16 = vpop.permute.xlu1 %3192  ;;  %v8112_v47 = vpop.permute.xlu0 %3190 }
 0xe8e   :  { %10334 = vst [vmem:[#allocation51_spill] sm:$0xff] %v8110_v16  ;;  %10335 = vst [vmem:[#allocation61_spill] sm:$0xff] %v8112_v47 }
 0xe8f   :  { %3473 = vrot.lane.b32.xlu1 %v3440_v43, %s10085_s26  ;;  %3471 = vrot.lane.b32.xlu0 %v3439_v6, %s10085_s26  ;;  %v10341_v43 = vld [vmem:[#allocation252_spill] sm:$0xff] }
 0xe90   :  { %v3576_v6 = vmul.f32 %v7150_v50, %v10341_v43 }
 0xe91   :  { %v8120_v49 = vpop.permute.xlu1 %3196  ;;  %v8122_v59 = vpop.permute.xlu0 %3194 }
 0xe92   :  { %10337 = vst [vmem:[#allocation72_spill] sm:$0xff] %v8120_v49  ;;  %10338 = vst [vmem:[#allocation73_spill] sm:$0xff] %v8122_v59  ;;  %v3575_v59 = vmul.f32 %v7153_v29, %v10341_v43 }
 0xe93   :  { %3477 = vrot.lane.b32.xlu1 %v3442_v1, %s10085_s26  ;;  %3475 = vrot.lane.b32.xlu0 %v3441_v56, %s10085_s26  ;;  %v10344_v1 = vld [vmem:[#allocation253_spill] sm:$0xff] }
 0xe94   :  { %v3578_v56 = vmul.f32 %v7153_v29, %v10344_v1 }
 0xe95   :  { %v8130_v47 = vpop.permute.xlu1 %3148  ;;  %v8132_v45 = vpop.permute.xlu0 %3146 }
 0xe96   :  { %10339 = vst [vmem:[#allocation62_spill] sm:$0xff] %v8130_v47  ;;  %10340 = vst [vmem:[#allocation63_spill] sm:$0xff] %v8132_v45  ;;  %v3577_v45 = vmul.f32 %v7906_v2, %v10341_v43 }
 0xe97   :  { %3601 = vrot.lane.b32.xlu1 %v3576_v6, %s4976_s2  ;;  %3599 = vrot.lane.b32.xlu0 %v3575_v59, %s4976_s2  ;;  %v3580_v59 = vmul.f32 %v7906_v2, %v10344_v1  ;;  %v3579_v6 = vmul.f32 %v7150_v50, %v10344_v1 }
 0xe99   :  { %v8140_v49 = vpop.permute.xlu1 %3152  ;;  %v8142_v41 = vpop.permute.xlu0 %3150 }
 0xe9a   :  { %10342 = vst [vmem:[#allocation84_spill] sm:$0xff] %v8140_v49  ;;  %10343 = vst [vmem:[#allocation85_spill] sm:$0xff] %v8142_v41 }
 0xe9b   :  { %3605 = vrot.lane.b32.xlu1 %v3578_v56, %s4976_s2  ;;  %3603 = vrot.lane.b32.xlu0 %v3577_v45, %s4976_s2  ;;  %v10349_v56 = vld [vmem:[#allocation239_spill] sm:$0xff] }
 0xe9c   :  { %v3510_v45 = vmul.f32 %v7150_v50, %v10349_v56  ;;  %v3509_v49 = vmul.f32 %v7153_v29, %v10349_v56 }
 0xe9d   :  { %v8150_v47 = vpop.permute.xlu1 %3244  ;;  %v8152_v16 = vpop.permute.xlu0 %3242 }
 0xe9e   :  { %10345 = vst [vmem:[#allocation74_spill] sm:$0xff] %v8150_v47  ;;  %10346 = vst [vmem:[#allocation75_spill] sm:$0xff] %v8152_v16 }
 0xe9f   :  { %3609 = vrot.lane.b32.xlu1 %v3580_v59, %s4976_s2  ;;  %3607 = vrot.lane.b32.xlu0 %v3579_v6, %s4976_s2  ;;  %v10352_v59 = vld [vmem:[#allocation240_spill] sm:$0xff] }
 0xea0   :  { %v3512_v6 = vmul.f32 %v7153_v29, %v10352_v59 }
 0xea1   :  { %v8160_v41 = vpop.permute.xlu1 %3248  ;;  %v8162_v43 = vpop.permute.xlu0 %3246 }
 0xea2   :  { %10347 = vst [vmem:[#allocation96_spill] sm:$0xff] %v8160_v41  ;;  %10348 = vst [vmem:[#allocation97_spill] sm:$0xff] %v8162_v43  ;;  %v3511_v43 = vmul.f32 %v7906_v2, %v10349_v56 }
 0xea3   :  { %3541 = vrot.lane.b32.xlu1 %v3510_v45, %s4975_s28  ;;  %3539 = vrot.lane.b32.xlu0 %v3509_v49, %s4975_s28  ;;  %v3514_v49 = vmul.f32 %v7906_v2, %v10352_v59  ;;  %v3513_v45 = vmul.f32 %v7150_v50, %v10352_v59 }
 0xea5   :  { %v8170_v16 = vpop.permute.xlu1 %3200  ;;  %v8172_v1 = vpop.permute.xlu0 %3198 }
 0xea6   :  { %10350 = vst [vmem:[#allocation86_spill] sm:$0xff] %v8170_v16  ;;  %10351 = vst [vmem:[#allocation87_spill] sm:$0xff] %v8172_v1 }
 0xea7   :  { %3545 = vrot.lane.b32.xlu1 %v3512_v6, %s4975_s28  ;;  %3543 = vrot.lane.b32.xlu0 %v3511_v43, %s4975_s28  ;;  %v10357_v6 = vld [vmem:[#allocation254_spill] sm:$0xff] }
 0xea8   :  { %v3582_v43 = vmul.f32 %v7150_v50, %v10357_v6  ;;  %v3583_v16 = vmul.f32 %v7906_v2, %v10357_v6 }
 0xea9   :  { %v8180_v41 = vpop.permute.xlu1 %3204  ;;  %v8182_v47 = vpop.permute.xlu0 %3202 }
 0xeaa   :  { %10353 = vst [vmem:[#allocation108_spill] sm:$0xff] %v8180_v41  ;;  %10354 = vst [vmem:[#allocation109_spill] sm:$0xff] %v8182_v47  ;;  %v3581_v47 = vmul.f32 %v7153_v29, %v10357_v6 }
 0xeab   :  { %3549 = vrot.lane.b32.xlu1 %v3514_v49, %s4975_s28  ;;  %3547 = vrot.lane.b32.xlu0 %v3513_v45, %s4975_s28  ;;  %v10360_v49 = vld [vmem:[#allocation256_spill] sm:$0xff] }
 0xeac   :  { %v3584_v45 = vmul.f32 %v7153_v29, %v10360_v49 }
 0xead   :  { %v8190_v1 = vpop.permute.xlu1 %3313  ;;  %v8192_v56 = vpop.permute.xlu0 %3311 }
 0xeae   :  { %10355 = vst [vmem:[#allocation98_spill] sm:$0xff] %v8190_v1  ;;  %10356 = vst [vmem:[#allocation99_spill] sm:$0xff] %v8192_v56 }
 0xeaf   :  { %3613 = vrot.lane.b32.xlu1 %v3582_v43, %s4976_s2  ;;  %3611 = vrot.lane.b32.xlu0 %v3581_v47, %s4976_s2  ;;  %v3586_v47 = vmul.f32 %v7906_v2, %v10360_v49  ;;  %v3585_v43 = vmul.f32 %v7150_v50, %v10360_v49 }
 0xeb1   :  { %v8200_v41 = vpop.permute.xlu1 %3317  ;;  %v8202_v59 = vpop.permute.xlu0 %3315 }
 0xeb2   :  { %10358 = vst [vmem:[#allocation120_spill] sm:$0xff] %v8200_v41  ;;  %10359 = vst [vmem:[#allocation121_spill] sm:$0xff] %v8202_v59 }
 0xeb3   :  { %3617 = vrot.lane.b32.xlu1 %v3584_v45, %s4976_s2  ;;  %3615 = vrot.lane.b32.xlu0 %v3583_v16, %s4976_s2 }
 0xeb5   :  { %v8210_v56 = vpop.permute.xlu1 %3321  ;;  %v8212_v1 = vpop.permute.xlu0 %3319 }
 0xeb6   :  { %10361 = vst [vmem:[#allocation110_spill] sm:$0xff] %v8210_v56  ;;  %10362 = vst [vmem:[#allocation111_spill] sm:$0xff] %v8212_v1 }
 0xeb7   :  { %3621 = vrot.lane.b32.xlu1 %v3586_v47, %s4976_s2  ;;  %3619 = vrot.lane.b32.xlu0 %v3585_v43, %s4976_s2 }
 0xeb9   :  { %v8220_v41 = vpop.permute.xlu1 %3252  ;;  %v8222_v6 = vpop.permute.xlu0 %3250 }
 0xeba   :  { %10363 = vst [vmem:[#allocation132_spill] sm:$0xff] %v8220_v41  ;;  %10364 = vst [vmem:[#allocation133_spill] sm:$0xff] %v8222_v6 }
 0xebd   :  { %v8224_v45 = vpop.permute.xlu1 %3256  ;;  %v8226_v16 = vpop.permute.xlu0 %3254 }
 0xebe   :  { %10365 = vst [vmem:[#allocation122_spill] sm:$0xff] %v8224_v45  ;;  %10366 = vst [vmem:[#allocation123_spill] sm:$0xff] %v8226_v16  ;;  %v2281_v16 = vmul.f32 %v7150_v50, %v5086_v28 }
 0xec0   :  { %v2289_v53 = vadd.f32 %v2281_v16, %v5080_v26 }
 0xec1   :  { %v8228_v56 = vpop.permute.xlu1 %3385  ;;  %v8230_v1 = vpop.permute.xlu0 %3383 }
 0xec2   :  { %10367 = vst [vmem:[#allocation144_spill] sm:$0xff] %v8228_v56  ;;  %10368 = vst [vmem:[#allocation145_spill] sm:$0xff] %v8230_v1  ;;  %v10377_v1 = vld [vmem:[#allocation257_spill] sm:$0xff] }
 0xec5   :  { %v8232_v2 = vpop.permute.xlu1 %3389  ;;  %v8234_v59 = vpop.permute.xlu0 %3387 }
 0xec6   :  { %10369 = vst [vmem:[#allocation134_spill] sm:$0xff] %v8232_v2  ;;  %10370 = vst [vmem:[#allocation135_spill] sm:$0xff] %v8234_v59  ;;  %v2280_v2 = vmul.f32 %v7153_v29, %v5086_v28  ;;  %v2275_v59 = vmul.f32 %v7150_v50, %v10377_v1  ;;  %v2322_v28 = vsel %vm153_vm0, %v7447_v10, %v7445_v18 }
 0xec8   :  { %v2288_v30 = vadd.f32 %v2280_v2, %v5080_v26  ;;  %v2325_v26 = vsel %vm153_vm0, %v7477_v39, %v7475_v11 }
 0xec9   :  { %v8236_v49 = vpop.permute.xlu1 %3393  ;;  %v8238_v47 = vpop.permute.xlu0 %3391 }
 0xeca   :  { %10371 = vst [vmem:[#allocation156_spill] sm:$0xff] %v8236_v49  ;;  %10372 = vst [vmem:[#allocation157_spill] sm:$0xff] %v8238_v47  ;;  %v2274_v49 = vmul.f32 %v7153_v29, %v10377_v1  ;;  %v2340_v39 = vadd.f32 %v2325_v26, %v2288_v30 }
 0xecc   :  { %v2282_v17 = vadd.f32 %v2274_v49, %v10381_v31 }
 0xecd   :  { %v8240_v43 = vpop.permute.xlu1 %3325  ;;  %v8242_v41 = vpop.permute.xlu0 %3323 }
 0xece   :  { %10373 = vst [vmem:[#allocation146_spill] sm:$0xff] %v8240_v43  ;;  %10374 = vst [vmem:[#allocation147_spill] sm:$0xff] %v8242_v41  ;;  %v2279_v43 = vmul.f32 %v7150_v50, %v6443_v23  ;;  %v10378_v41 = vld [vmem:[#allocation5_spill] sm:$0xff] }
 0xecf   :  { %v2276_v1 = vmul.f32 %v7153_v29, %v10378_v41 }
 0xed0   :  { %v2287_v10 = vadd.f32 %v2279_v43, %v5066_v20 }
 0xed1   :  { %v8244_v6 = vpop.permute.xlu1 %3329  ;;  %v8246_v45 = vpop.permute.xlu0 %3327 }
 0xed2   :  { %10375 = vst [vmem:[#allocation168_spill] sm:$0xff] %v8244_v6  ;;  %10376 = vst [vmem:[#allocation169_spill] sm:$0xff] %v8246_v45  ;;  %v2277_v6 = vmul.f32 %v7150_v50, %v10378_v41  ;;  %v2278_v45 = vmul.f32 %v7153_v29, %v6443_v23  ;;  %v2283_v50 = vadd.f32 %v2275_v59, %v10381_v31 }
 0xed3   :  { %v2324_v29 = vsel %vm153_vm0, %v7467_v62, %v7465_v22  ;;  %v2334_v41 = vadd.f32 %v2322_v28, %v2282_v17  ;;  %v2339_v2 = vadd.f32 %v7465_v22, %v2287_v10  ;;  %v2426_v22 = vsel %vm291_vm2, %v7527_v0, %v7525_v44 }
 0xed4   :  { %v2285_v23 = vadd.f32 %v2277_v6, %v6411_v3  ;;  %v2335_v31 = vadd.f32 %v7445_v18, %v2283_v50  ;;  %v2286_v59 = vadd.f32 %v2278_v45, %v5066_v20  ;;  %v2375_v18 = vsel %vm222_vm1, %v7497_v34, %v7495_v48 }
 0xed5   :  { %v8262_v47 = vpop.permute.xlu1 %3333  ;;  %v8264_v56 = vpop.permute.xlu0 %3331  ;;  %v2341_v20 = vadd.f32 %v7475_v11, %v2289_v53  ;;  %v2391_v11 = vadd.f32 %v7505_v35, %v2339_v2  ;;  %v2428_v0 = vsel %vm291_vm2, %v7547_v42, %v7545_v7  ;;  %v2479_v42 = vsel %vm360_vm3, %v7577_v52, %v7575_v61  ;;  %v10382_v2 = vld [vmem:[#allocation185_spill] sm:$0xff] }
 0xed6   :  { %10379 = vst [vmem:[#allocation158_spill] sm:$0xff] %v8262_v47  ;;  %10380 = vst [vmem:[#allocation159_spill] sm:$0xff] %v8264_v56  ;;  %v2323_v47 = vsel %vm153_vm0, %v7457_v12, %v7455_v63  ;;  %v2284_v56 = vadd.f32 %v2276_v1, %v6411_v3  ;;  %v2374_v12 = vsel %vm222_vm1, %v7487_v54, %v7485_v4 }
 0xed7   :  { %v2337_v16 = vadd.f32 %v7455_v63, %v2285_v23  ;;  %v2338_v17 = vadd.f32 %v2324_v29, %v2286_v59  ;;  %v2376_v54 = vsel %vm222_vm1, %v7507_v60, %v7505_v35  ;;  %v2387_v45 = vadd.f32 %v7485_v4, %v2335_v31 }
 0xed8   :  { %v2336_v62 = vadd.f32 %v2323_v47, %v2284_v56  ;;  %v2386_v49 = vadd.f32 %v2374_v12, %v2334_v41  ;;  %v2377_v63 = vsel %vm222_vm1, %v7517_v21, %v7515_v33  ;;  %v2427_v60 = vsel %vm291_vm2, %v7537_v9, %v7535_v51 }
 0xed9   :  { %v8292_v3 = vpop.permute.xlu1 %3457  ;;  %v8294_v6 = vpop.permute.xlu0 %3455  ;;  %v2389_v34 = vadd.f32 %v7495_v48, %v2337_v16  ;;  %v2390_v53 = vadd.f32 %v2376_v54, %v2338_v17  ;;  %v2393_v21 = vadd.f32 %v7515_v33, %v2341_v20  ;;  %v2429_v48 = vsel %vm291_vm2, %v7557_v8, %v7555_v5  ;;  %v10385_v54 = vld [vmem:[#allocation195_spill] sm:$0xff] }
 0xeda   :  { %v2388_v56 = vadd.f32 %v2375_v18, %v2336_v62  ;;  %v2392_v35 = vadd.f32 %v2377_v63, %v2340_v39  ;;  %v2439_v47 = vadd.f32 %v7525_v44, %v2387_v45  ;;  %v2438_v43 = vadd.f32 %v2426_v22, %v2386_v49  ;;  %v10383_v18 = vld [vmem:[#allocation186_spill] sm:$0xff]  ;;  %v10384_v39 = vld [vmem:[#allocation196_spill] sm:$0xff]  ;;  %v10386_v63 = vld [vmem:[#allocation197_spill] sm:$0xff] }
 0xedb   :  { %v2478_v9 = vsel %vm360_vm3, %v7567_v58, %v7565_v32  ;;  %v2441_v28 = vadd.f32 %v7535_v51, %v2389_v34  ;;  %v2443_v33 = vadd.f32 %v7545_v7, %v2391_v11  ;;  %v2442_v50 = vadd.f32 %v2428_v0, %v2390_v53  ;;  %v10389_v34 = vld [vmem:[#allocation176_spill] sm:$0xff]  ;;  %v10390_v53 = vld [vmem:[#allocation175_spill] sm:$0xff] }
 0xedc   :  { %v2440_v1 = vadd.f32 %v2427_v60, %v2388_v56  ;;  %v2445_v8 = vadd.f32 %v7555_v5, %v2393_v21  ;;  %v2444_v23 = vadd.f32 %v2429_v48, %v2392_v35  ;;  %v2480_v44 = vsel %vm360_vm3, %v7587_v27, %v7585_v57  ;;  %v10391_v21 = vld [vmem:[#allocation199_spill] sm:$0xff] }
 0xedd   :  { %v8317_v30 = vpop.permute.xlu1 %3461  ;;  %v8319_v4 = vpop.permute.xlu0 %3459  ;;  %v2491_v51 = vadd.f32 %v7565_v32, %v2439_v47  ;;  %v2490_v29 = vadd.f32 %v2478_v9, %v2438_v43  ;;  %v2481_v7 = vsel %vm360_vm3, %v7597_v46, %v7595_v14  ;;  %v2530_v5 = vsel %vm429_vm4, %v7607_v40, %v7605_v37  ;;  %v10392_v43 = vld [vmem:[#allocation198_spill] sm:$0xff]  ;;  %v10393_v9 = vld [vmem:[#allocation200_spill] sm:$0xff] }
 0xede   :  { %v2493_v52 = vadd.f32 %v7575_v61, %v2441_v28  ;;  %v2492_v26 = vadd.f32 %v2479_v42, %v2440_v1  ;;  %v2495_v27 = vadd.f32 %v7585_v57, %v2443_v33  ;;  %v2531_v31 = vsel %vm429_vm4, %v7617_v36, %v7615_v19  ;;  %v10394_v1 = vld [vmem:[#allocation211_spill] sm:$0xff]  ;;  %v10395_v33 = vld [vmem:[#allocation212_spill] sm:$0xff] }
 0xedf   :  { %v2494_v41 = vadd.f32 %v2480_v44, %v2442_v50  ;;  %v2497_v32 = vadd.f32 %v7595_v14, %v2445_v8  ;;  %v2532_v46 = vsel %vm429_vm4, %v7627_v38, %v7625_v55  ;;  %v2533_v40 = vsel %vm429_vm4, %v7637_v25, %v7635_v13  ;;  %v10396_v44 = vld [vmem:[#allocation214_spill] sm:$0xff] }
 0xee0   :  { %v2496_v59 = vadd.f32 %v2481_v7, %v2444_v23  ;;  %v2543_v61 = vadd.f32 %v7605_v37, %v2491_v51  ;;  %v2542_v12 = vadd.f32 %v2530_v5, %v2490_v29  ;;  %v2582_v57 = vsel %vm9642_vm5, %v7647_v15, %v7645_v24  ;;  %v10397_v51 = vld [vmem:[#allocation178_spill] sm:$0xff] }
 0xee1   :  { %v8341_v10 = vpop.permute.xlu1 %3465  ;;  %v8343_v58 = vpop.permute.xlu0 %3463  ;;  %v2545_v14 = vadd.f32 %v7615_v19, %v2493_v52  ;;  %v2544_v62 = vadd.f32 %v2531_v31, %v2492_v26  ;;  %v2547_v38 = vadd.f32 %v7625_v55, %v2495_v27  ;;  %v2583_v25 = vsel %vm9642_vm5, %v10383_v18, %v10382_v2  ;;  %v10387_v19 = vld [vmem:[#allocation166_spill] sm:$0xff]  ;;  %v10388_v55 = vld [vmem:[#allocation167_spill] sm:$0xff]  ;;  %v10398_v26 = vld [vmem:[#allocation177_spill] sm:$0xff] }
 0xee2   :  { %v2546_v17 = vadd.f32 %v2532_v46, %v2494_v41  ;;  %v2549_v37 = vadd.f32 %v7635_v13, %v2497_v32  ;;  %v2548_v20 = vadd.f32 %v2533_v40, %v2496_v59  ;;  %v2584_v15 = vsel %vm9642_vm5, %v10385_v54, %v10384_v39  ;;  %v10399_v27 = vld [vmem:[#allocation187_spill] sm:$0xff]  ;;  %v10400_v40 = vld [vmem:[#allocation188_spill] sm:$0xff] }
 0xee3   :  { %v2595_v45 = vadd.f32 %v7645_v24, %v2543_v61  ;;  %v2594_v49 = vadd.f32 %v2582_v57, %v2542_v12  ;;  %v2585_v22 = vsel %vm9642_vm5, %v10387_v19, %v10386_v63  ;;  %v2634_v56 = vsel %vm9641_vm6, %v10389_v34, %v10388_v55  ;;  %v10401_v59 = vld [vmem:[#allocation216_spill] sm:$0xff] }
 0xee4   :  { %v2597_v11 = vadd.f32 %v10382_v2, %v2545_v14  ;;  %v2596_v60 = vadd.f32 %v2583_v25, %v2544_v62  ;;  %v2599_v13 = vadd.f32 %v10384_v39, %v2547_v38  ;;  %v2635_v0 = vsel %vm9641_vm6, %v10391_v21, %v10390_v53  ;;  %v10402_v38 = vld [vmem:[#allocation227_spill] sm:$0xff]  ;;  %v10403_v2 = vld [vmem:[#allocation213_spill] sm:$0xff] }
 0xee5   :  { %v8368_v36 = vpop.permute.xlu1 %3397  ;;  %v8370_v16 = vpop.permute.xlu0 %3395  ;;  %v2598_v35 = vadd.f32 %v2584_v15, %v2546_v17  ;;  %v2601_v47 = vadd.f32 %v10386_v63, %v2549_v37  ;;  %v2636_v28 = vsel %vm9641_vm6, %v10393_v9, %v10392_v43  ;;  %v2637_v42 = vsel %vm9641_vm6, %v10395_v33, %v10394_v1  ;;  %v10404_v25 = vld [vmem:[#allocation189_spill] sm:$0xff]  ;;  %v10405_v17 = vld [vmem:[#allocation228_spill] sm:$0xff] }
 0xee6   :  { %v2600_v50 = vadd.f32 %v2585_v22, %v2548_v20  ;;  %v2647_v8 = vadd.f32 %v10388_v55, %v2595_v45  ;;  %v2646_v23 = vadd.f32 %v2634_v56, %v2594_v49  ;;  %v2686_v29 = vsel %vm9640_vm7, %v10397_v51, %v10396_v44  ;;  %v10406_v15 = vld [vmem:[#allocation229_spill] sm:$0xff]  ;;  %v10407_v45 = vld [vmem:[#allocation215_spill] sm:$0xff]  ;;  %v10408_v22 = vld [vmem:[#allocation190_spill] sm:$0xff] }
 0xee7   :  { %v2649_v7 = vadd.f32 %v10390_v53, %v2597_v11  ;;  %v2648_v5 = vadd.f32 %v2635_v0, %v2596_v60  ;;  %v2651_v52 = vadd.f32 %v10392_v43, %v2599_v13  ;;  %v2687_v31 = vsel %vm9640_vm7, %v10399_v27, %v10398_v26  ;;  %v10409_v55 = vld [vmem:[#allocation202_spill] sm:$0xff]  ;;  %v10410_v56 = vld [vmem:[#allocation201_spill] sm:$0xff]  ;;  %v10411_v11 = vld [vmem:[#allocation203_spill] sm:$0xff] }
 0xee8   :  { %v2650_v41 = vadd.f32 %v2636_v28, %v2598_v35  ;;  %v2653_v32 = vadd.f32 %v10394_v1, %v2601_v47  ;;  %v2652_v46 = vadd.f32 %v2637_v42, %v2600_v50  ;;  %v2688_v61 = vsel %vm9640_vm7, %v10401_v59, %v10400_v40  ;;  %v10412_v0 = vld [vmem:[#allocation230_spill] sm:$0xff]  ;;  %v10413_v35 = vld [vmem:[#allocation241_spill] sm:$0xff]  ;;  %v10414_v42 = vld [vmem:[#allocation204_spill] sm:$0xff] }
 0xee9   :  { %v8393_v48 = vpop.permute.xlu1 %3401  ;;  %v8395_v24 = vpop.permute.xlu0 %3399  ;;  %v2699_v14 = vadd.f32 %v10396_v44, %v2647_v8  ;;  %v2698_v62 = vadd.f32 %v2686_v29, %v2646_v23  ;;  %v2738_v18 = vsel %vm705_vm8, %v10403_v2, %v10402_v38  ;;  %v2739_v37 = vsel %vm705_vm8, %v10405_v17, %v10404_v25  ;;  %v10415_v50 = vld [vmem:[#allocation206_spill] sm:$0xff]  ;;  %v10419_v27 = vld [vmem:[#allocation217_spill] sm:$0xff] }
 0xeea   :  { %v2701_v20 = vadd.f32 %v10398_v26, %v2649_v7  ;;  %v2700_v39 = vadd.f32 %v2687_v31, %v2648_v5  ;;  %v2703_v54 = vadd.f32 %v10400_v40, %v2651_v52  ;;  %v2689_v49 = vsel %vm9640_vm7, %v10407_v45, %v10406_v15  ;;  %v10417_v29 = vld [vmem:[#allocation242_spill] sm:$0xff]  ;;  %v10418_v7 = vld [vmem:[#allocation205_spill] sm:$0xff]  ;;  %v10430_v45 = vld [vmem:[#allocation247_spill] sm:$0xff] }
 0xeeb   :  { %v2702_v63 = vadd.f32 %v2688_v61, %v2650_v41  ;;  %v2751_v19 = vadd.f32 %v10402_v38, %v2699_v14  ;;  %v2790_v34 = vsel %vm9643_vm9, %v10409_v55, %v10408_v22  ;;  %v2791_v60 = vsel %vm9643_vm9, %v10411_v11, %v10410_v56  ;;  %v10420_v31 = vld [vmem:[#allocation218_spill] sm:$0xff]  ;;  %v10426_v38 = vld [vmem:[#allocation244_spill] sm:$0xff]  ;;  %v10432_v55 = vld [vmem:[#allocation221_spill] sm:$0xff] }
 0xeec   :  { %v2750_v13 = vadd.f32 %v2738_v18, %v2698_v62  ;;  %v2752_v53 = vadd.f32 %v2739_v37, %v2700_v39  ;;  %v2753_v21 = vadd.f32 %v10404_v25, %v2701_v20  ;;  %v2740_v47 = vsel %vm705_vm8, %v10413_v35, %v10412_v0  ;;  %v10425_v62 = vld [vmem:[#allocation220_spill] sm:$0xff]  ;;  %v10427_v20 = vld [vmem:[#allocation243_spill] sm:$0xff]  ;;  %v10428_v39 = vld [vmem:[#allocation245_spill] sm:$0xff] }
 0xeed   :  { %v8417_v12 = vpop.permute.xlu1 %3405  ;;  %v8419_v57 = vpop.permute.xlu0 %3403  ;;  %v2704_v28 = vadd.f32 %v2689_v49, %v2652_v46  ;;  %v2705_v1 = vadd.f32 %v10406_v15, %v2653_v32  ;;  %v2803_v33 = vadd.f32 %v10408_v22, %v2751_v19  ;;  %vm10416_vm7 = vcmask 777216   ;;  %v10422_v32 = vld [vmem:[#allocation222_spill] sm:$0xff]  ;;  %v10423_v46 = vld [vmem:[#allocation219_spill] sm:$0xff]  ;;  %v10429_v15 = vld [vmem:[#allocation236_spill] sm:$0xff] }
 0xeee   :  { %v2842_v8 = vsel %vm10416_vm7, %v10415_v50, %v10414_v42  ;;  %v2802_v23 = vadd.f32 %v2790_v34, %v2750_v13  ;;  %v2805_v44 = vadd.f32 %v10410_v56, %v2753_v21  ;;  %v2804_v51 = vadd.f32 %v2791_v60, %v2752_v53  ;;  %vm10421_vm6 = vmmov %vm10416_vm7  ;;  %v10433_v34 = vld [vmem:[#allocation232_spill] sm:$0xff]  ;;  %v10436_v21 = vld [vmem:[#allocation6_spill] sm:$0xff] }
 0xeef   :  { %v2741_v5 = vsel %vm705_vm8, %v10418_v7, %v10417_v29  ;;  %v2755_v52 = vadd.f32 %v10412_v0, %v2703_v54  ;;  %v2754_v26 = vadd.f32 %v2740_v47, %v2702_v63  ;;  %v2843_v41 = vsel %vm10421_vm6, %v10420_v31, %v10419_v27  ;;  %v10435_v53 = vld [vmem:[#allocation4_spill] sm:$0xff]  ;;  %v10438_v47 = vld [vmem:[#allocation231_spill] sm:$0xff] }
 0xef0   :  { %vm10424_vm5 = vcmask 769024   ;;  %v2757_v59 = vadd.f32 %v10417_v29, %v2705_v1  ;;  %v2855_v61 = vadd.f32 %v10414_v42, %v2803_v33  ;;  %v2854_v14 = vadd.f32 %v2842_v8, %v2802_v23  ;;  %v10442_v29 = vld [vmem:[#allocation248_spill] sm:$0xff]  ;;  %v10447_v31 = vld [vmem:[#allocation235_spill] sm:$0xff] }
 0xef1   :  { %v8444_v43 = vpop.permute.xlu1 %3529  ;;  %v8446_v9 = vpop.permute.xlu0 %3527  ;;  %v2894_v40 = vsel %vm10424_vm5, %v10423_v46, %v10422_v32  ;;  %v2792_v2 = vsel %vm9643_vm9, %v10426_v38, %v10425_v62  ;;  %v2756_v17 = vadd.f32 %v2741_v5, %v2704_v28  ;;  %v2857_v37 = vadd.f32 %v10419_v27, %v2805_v44  ;;  %v10439_v28 = vld [vmem:[#allocation233_spill] sm:$0xff] }
 0xef2   :  { %v2793_v54 = vsel %vm9643_vm9, %v10428_v39, %v10427_v20  ;;  %vm10431_vm5 = vcmask 760832   ;;  %v2856_v63 = vadd.f32 %v2843_v41, %v2804_v51  ;;  %v2907_v19 = vadd.f32 %v10422_v32, %v2855_v61  ;;  %v10441_v51 = vld [vmem:[#allocation246_spill] sm:$0xff]  ;;  %v10444_v5 = vld [vmem:[#allocation13_spill] sm:$0xff] }
 0xef3   :  { %v2946_v49 = vsel %vm10431_vm5, %v10430_v45, %v10429_v15  ;;  %v2906_v22 = vadd.f32 %v2894_v40, %v2854_v14  ;;  %vm10434_vm6 = vcmask 769024   ;;  %v2807_v11 = vadd.f32 %v10425_v62, %v2755_v52  ;;  %v10445_v52 = vld [vmem:[#allocation14_spill] sm:$0xff]  ;;  %v10449_v14 = vld [vmem:[#allocation7_spill] sm:$0xff]  ;;  %v10450_v62 = vld [vmem:[#allocation8_spill] sm:$0xff] }
 0xef4   :  { %v2895_v56 = vsel %vm10434_vm6, %v10433_v34, %v10432_v55  ;;  %v2806_v60 = vadd.f32 %v2792_v2, %v2754_v26  ;;  %v2809_v13 = vadd.f32 %v10427_v20, %v2757_v59  ;;  %vm10437_vm7 = vcmask 752640   ;;  %v10448_v41 = vld [vmem:[#allocation234_spill] sm:$0xff]  ;;  %v10452_v2 = vld [vmem:[#allocation21_spill] sm:$0xff]  ;;  %v10458_v34 = vld [vmem:[#allocation15_spill] sm:$0xff] }
 0xef5   :  { %v8469_v18 = vpop.permute.xlu1 %3533  ;;  %v8471_v25 = vpop.permute.xlu0 %3531  ;;  %v2998_v0 = vsel %vm10437_vm7, %v10436_v21, %v10435_v53  ;;  %v2808_v35 = vadd.f32 %v2793_v54, %v2756_v17  ;;  %vm10440_vm5 = vcmask 777216   ;;  %v2959_v33 = vadd.f32 %v10429_v15, %v2907_v19  ;;  %v10453_v17 = vld [vmem:[#allocation22_spill] sm:$0xff]  ;;  %v10456_v54 = vld [vmem:[#allocation249_spill] sm:$0xff] }
 0xef6   :  { %v2844_v1 = vsel %vm10440_vm5, %v10439_v28, %v10438_v47  ;;  %v2958_v42 = vadd.f32 %v2946_v49, %v2906_v22  ;;  %v2909_v23 = vadd.f32 %v10432_v55, %v2857_v37  ;;  %v2908_v44 = vadd.f32 %v2895_v56, %v2856_v63  ;;  %v10455_v39 = vld [vmem:[#allocation250_spill] sm:$0xff]  ;;  %v10459_v56 = vld [vmem:[#allocation16_spill] sm:$0xff] }
 0xef7   :  { %vm10443_vm6 = vcmask 760832   ;;  %vm10446_vm7 = vcmask 654336   ;;  %v2859_v27 = vadd.f32 %v10438_v47, %v2807_v11  ;;  %v2845_v32 = vsel %vm10440_vm5, %v10448_v41, %v10447_v31 }
 0xef8   :  { %v2947_v7 = vsel %vm10443_vm6, %v10442_v29, %v10441_v51  ;;  %v3050_v26 = vsel %vm10446_vm7, %v10445_v52, %v10444_v5  ;;  %v3011_v46 = vadd.f32 %v10435_v53, %v2959_v33  ;;  %v3010_v40 = vadd.f32 %v2998_v0, %v2958_v42  ;;  %v10462_v53 = vld [vmem:[#allocation39_spill] sm:$0xff] }
 0xef9   :  { %v8493_v50 = vpop.permute.xlu1 %3537  ;;  %v8495_v8 = vpop.permute.xlu0 %3535  ;;  %v2858_v59 = vadd.f32 %v2844_v1, %v2806_v60  ;;  %v2961_v61 = vadd.f32 %v10441_v51, %v2909_v23  ;;  %vm10451_vm9 = vcmask 752640   ;;  %vm10454_vm6 = vcmask 646144   ;;  %v10461_v60 = vld [vmem:[#allocation38_spill] sm:$0xff]  ;;  %v10467_v51 = vld [vmem:[#allocation61_spill] sm:$0xff] }
 0xefa   :  { %v2999_v38 = vsel %vm10451_vm9, %v10450_v62, %v10449_v14  ;;  %v3102_v37 = vsel %vm10454_vm6, %v10453_v17, %v10452_v2  ;;  %v2960_v20 = vadd.f32 %v2947_v7, %v2908_v44  ;;  %vm10457_vm7 = vcmask 769024   ;;  %v10466_v44 = vld [vmem:[#allocation51_spill] sm:$0xff]  ;;  %v10474_v62 = vld [vmem:[#allocation74_spill] sm:$0xff] }
 0xefb   :  { %v2896_v15 = vsel %vm10457_vm7, %v10456_v54, %v10455_v39  ;;  %v3063_v45 = vadd.f32 %v10444_v5, %v3011_v46  ;;  %v3062_v49 = vadd.f32 %v3050_v26, %v3010_v40  ;;  %v2861_v22 = vadd.f32 %v10447_v31, %v2809_v13  ;;  %v10464_v13 = vld [vmem:[#allocation23_spill] sm:$0xff]  ;;  %v10476_v54 = vld [vmem:[#allocation9_spill] sm:$0xff] }
 0xefc   :  { %v8525_v55 = vadd.f32 %v2845_v32, %v2808_v35  ;;  %vm10460_vm9 = vcmask 654336   ;;  %vm10463_vm5 = vcmask 637952   ;;  %v3013_v0 = vadd.f32 %v10449_v14, %v2961_v61  ;;  %v10465_v35 = vld [vmem:[#allocation24_spill] sm:$0xff]  ;;  %v10470_v46 = vld [vmem:[#allocation3_spill] sm:$0xff]  ;;  %v10473_v61 = vld [vmem:[#allocation41_spill] sm:$0xff] }
 0xefd   :  { %v8520_v63 = vpop.permute.xlu1 %3469  ;;  %v8522_v19 = vpop.permute.xlu0 %3467  ;;  %v3051_v11 = vsel %vm10460_vm9, %v10459_v56, %v10458_v34  ;;  %v3154_v21 = vsel %vm10463_vm5, %v10462_v53, %v10461_v60  ;;  %v3012_v47 = vadd.f32 %v2999_v38, %v2960_v20  ;;  %v3115_v28 = vadd.f32 %v10452_v2, %v3063_v45  ;;  %v10475_v38 = vld [vmem:[#allocation75_spill] sm:$0xff]  ;;  %v10477_v45 = vld [vmem:[#allocation72_spill] sm:$0xff] }
 0xefe   :  { %v3114_v1 = vadd.f32 %v3102_v37, %v3062_v49  ;;  %v2911_v33 = vadd.f32 %v10455_v39, %v2859_v27  ;;  %v2910_v42 = vadd.f32 %v2896_v15, %v2858_v59  ;;  %v3103_v23 = vsel %vm10454_vm6, %v10465_v35, %v10464_v13  ;;  %v10469_v27 = vld [vmem:[#allocation251_spill] sm:$0xff]  ;;  %v10472_v59 = vld [vmem:[#allocation40_spill] sm:$0xff]  ;;  %v10478_v49 = vld [vmem:[#allocation73_spill] sm:$0xff] }
 0xeff   :  { %vm10468_vm7 = vcmask 629760   ;;  %v3065_v7 = vadd.f32 %v10458_v34, %v3013_v0  ;;  %v3064_v5 = vadd.f32 %v3051_v11, %v3012_v47  ;;  %v3167_v52 = vadd.f32 %v10461_v60, %v3115_v28  ;;  %v10480_v34 = vld [vmem:[#allocation98_spill] sm:$0xff]  ;;  %v10481_v56 = vld [vmem:[#allocation99_spill] sm:$0xff]  ;;  %v10482_v60 = vld [vmem:[#allocation121_spill] sm:$0xff] }
 0xf00   :  { %v3206_v29 = vsel %vm10468_vm7, %v10467_v51, %v10466_v44  ;;  %v3166_v26 = vadd.f32 %v3154_v21, %v3114_v1  ;;  %v8549_v32 = vadd.f32 %v10469_v27, %v2861_v22  ;;  %vm10471_vm9 = vcmask 769024   ;;  %vm10479_vm6 = vmmov %vm10468_vm7 }
 0xf01   :  { %v8544_v31 = vpop.permute.xlu1 %3473  ;;  %v8546_v41 = vpop.permute.xlu0 %3471  ;;  %v2897_v40 = vsel %vm10471_vm9, %v10470_v46, %v10469_v27  ;;  %v3155_v14 = vsel %vm10463_vm5, %v10473_v61, %v10472_v59  ;;  %v3258_v2 = vsel %vm1395_vm12, %v10475_v38, %v10474_v62  ;;  %v3117_v17 = vadd.f32 %v10464_v13, %v3065_v7  ;;  %v10483_v13 = vld [vmem:[#allocation10_spill] sm:$0xff]  ;;  %v10488_v7 = vld [vmem:[#allocation145_spill] sm:$0xff] }
 0xf02   :  { %v3116_v37 = vadd.f32 %v3103_v23, %v3064_v5  ;;  %v3219_v20 = vadd.f32 %v10466_v44, %v3167_v52  ;;  %v3218_v39 = vadd.f32 %v3206_v29, %v3166_v26  ;;  %v2963_v15 = vadd.f32 %v10476_v54, %v2911_v33  ;;  %v10485_v23 = vld [vmem:[#allocation96_spill] sm:$0xff]  ;;  %v10486_v44 = vld [vmem:[#allocation97_spill] sm:$0xff]  ;;  %v10489_v52 = vld [vmem:[#allocation135_spill] sm:$0xff] }
 0xf03   :  { %v3207_v22 = vsel %vm10479_vm6, %v10478_v49, %v10477_v45  ;;  %v3335_v11 = vsel %vm1489_vm13, %v10481_v56, %v10480_v34  ;;  %v3336_v53 = vsel %vm1489_vm13, %v10480_v34, %v10482_v60  ;;  %v3169_v21 = vadd.f32 %v10472_v59, %v3117_v17  ;;  %v10487_v29 = vld [vmem:[#allocation144_spill] sm:$0xff]  ;;  %v10493_v56 = vld [vmem:[#allocation157_spill] sm:$0xff] }
 0xf04   :  { %v3168_v0 = vadd.f32 %v3155_v14, %v3116_v37  ;;  %v3271_v47 = vadd.f32 %v10474_v62, %v3219_v20  ;;  %v3270_v28 = vadd.f32 %v3258_v2, %v3218_v39  ;;  %vm10484_vm7 = vcmask 760832   ;;  %v10490_v14 = vld [vmem:[#allocation111_spill] sm:$0xff]  ;;  %v10491_v62 = vld [vmem:[#allocation120_spill] sm:$0xff]  ;;  %v10492_v2 = vld [vmem:[#allocation110_spill] sm:$0xff] }
 0xf05   :  { %v8574_v1 = vpop.permute.xlu1 %3477  ;;  %v8576_v33 = vpop.permute.xlu0 %3475  ;;  %v2948_v35 = vsel %vm10484_vm7, %v10483_v13, %v10476_v54  ;;  %v3259_v51 = vsel %vm1395_vm12, %v10486_v44, %v10485_v23  ;;  %v3407_v5 = vsel %vm1578_vm14, %v10488_v7, %v10487_v29  ;;  %v3408_v26 = vsel %vm1578_vm14, %v10487_v29, %v10489_v52  ;;  %v10496_v52 = vld [vmem:[#allocation17_spill] sm:$0xff]  ;;  %vm10501_vm5 = vmmov %vm10484_vm7 }
 0xf06   :  { %v3221_v27 = vadd.f32 %v10477_v45, %v3169_v21  ;;  %v3220_v46 = vadd.f32 %v3207_v22, %v3168_v0  ;;  %v3351_v59 = vadd.f32 %v3335_v11, %v3270_v28  ;;  %v3352_v61 = vadd.f32 %v3336_v53, %v3271_v47  ;;  %v10494_v11 = vld [vmem:[#allocation134_spill] sm:$0xff]  ;;  %v10495_v53 = vld [vmem:[#allocation156_spill] sm:$0xff] }
 0xf07   :  { %v3337_v38 = vsel %vm1489_vm13, %v10491_v62, %v10490_v14  ;;  %v3338_v17 = vsel %vm1489_vm13, %v10490_v14, %v10492_v2  ;;  %v3479_v37 = vsel %vm1667_vm10, %v8294_v6, %v8292_v3  ;;  %v3480_v20 = vsel %vm1667_vm10, %v8292_v3, %v8319_v4  ;;  %v10499_v14 = vld [vmem:[#allocation11_spill] sm:$0xff] }
 0xf08   :  { %v3273_v39 = vadd.f32 %v10485_v23, %v3221_v27  ;;  %v3272_v54 = vadd.f32 %v3259_v51, %v3220_v46  ;;  %v3423_v45 = vadd.f32 %v3407_v5, %v3351_v59  ;;  %v3424_v49 = vadd.f32 %v3408_v26, %v3352_v61  ;;  %v10497_v26 = vld [vmem:[#allocation18_spill] sm:$0xff] }
 0xf09   :  { %v3602_v22 = vpop.permute.xlu1 %3601  ;;  %v3600_v34 = vpop.permute.xlu0 %3599  ;;  %v3409_v60 = vsel %vm1578_vm14, %v10494_v11, %v10493_v56  ;;  %v3410_v21 = vsel %vm1578_vm14, %v10493_v56, %v10495_v53  ;;  %v3551_v6 = vsel %vm1756_vm11, %v8446_v9, %v8444_v43  ;;  %v3552_v3 = vsel %vm1756_vm11, %v8444_v43, %v8471_v25 }
 0xf0a   :  { %v3353_v4 = vadd.f32 %v3337_v38, %v3272_v54  ;;  %v3354_v0 = vadd.f32 %v3338_v17, %v3273_v39  ;;  %v3495_v47 = vadd.f32 %v3479_v37, %v3423_v45  ;;  %v3496_v28 = vadd.f32 %v3480_v20, %v3424_v49  ;;  %v10500_v38 = vld [vmem:[#allocation12_spill] sm:$0xff]  ;;  %v10502_v37 = vld [vmem:[#allocation30_spill] sm:$0xff]  ;;  %v10505_v49 = vld [vmem:[#allocation19_spill] sm:$0xff] }
 0xf0b   :  { %v2962_v13 = vadd.f32 %v2948_v35, %v2910_v42  ;;  %v3481_v23 = vsel %vm1667_vm10, %v8317_v30, %v8343_v58  ;;  %v3482_v44 = vsel %vm1667_vm10, %v8343_v58, %v8341_v10  ;;  %v3623_v51 = vsel %vm1845_vm15, %v3600_v34, %v3602_v22 }
 0xf0c   :  { %v3425_v9 = vadd.f32 %v3409_v60, %v3353_v4  ;;  %v3426_v29 = vadd.f32 %v3410_v21, %v3354_v0  ;;  %v3567_v7 = vadd.f32 %v3551_v6, %v3495_v47  ;;  %v3568_v5 = vadd.f32 %v3552_v3, %v3496_v28  ;;  %v10511_v47 = vld [vmem:[#allocation32_spill] sm:$0xff]  ;;  %v10512_v28 = vld [vmem:[#allocation33_spill] sm:$0xff] }
 0xf0d   :  { %v3606_v43 = vpop.permute.xlu1 %3605  ;;  %v3604_v25 = vpop.permute.xlu0 %3603  ;;  %vm10498_vm9 = vcmask 752640   ;;  %v3553_v30 = vsel %vm1756_vm11, %v8469_v18, %v8495_v8  ;;  %v3554_v10 = vsel %vm1756_vm11, %v8495_v8, %v8493_v50  ;;  %v2912_v61 = vadd.f32 %v2897_v40, %v8525_v55  ;;  %v10503_v50 = vld [vmem:[#allocation31_spill] sm:$0xff]  ;;  %v10506_v55 = vld [vmem:[#allocation20_spill] sm:$0xff] }
 0xf0e   :  { %v3000_v42 = vsel %vm10498_vm9, %v10497_v26, %v10496_v52  ;;  %v3624_v58 = vsel %vm1845_vm15, %v3602_v22, %v3604_v25  ;;  %v3497_v35 = vadd.f32 %v3481_v23, %v3425_v9  ;;  %v3498_v27 = vadd.f32 %v3482_v44, %v3426_v29  ;;  %vm10507_vm7 = vmmov %vm10498_vm9  ;;  %v10509_v22 = vld [vmem:[#allocation49_spill] sm:$0xff]  ;;  %v10515_v25 = vld [vmem:[#allocation63_spill] sm:$0xff] }
 0xf0f   :  { %v3639_v46 = vadd.f32 %v3623_v51, %v3567_v7  ;;  %v3640_v59 = vadd.f32 %v3624_v58, %v3568_v5  ;;  %v2965_v62 = vadd.f32 %v10499_v14, %v8549_v32  ;;  %v2949_v2 = vsel %vm10501_vm5, %v10500_v38, %v10499_v14  ;;  %v10508_v32 = vld [vmem:[#allocation48_spill] sm:$0xff]  ;;  %v10521_v38 = vld [vmem:[#allocation87_spill] sm:$0xff] }
 0xf10   :  { %v3015_v18 = vadd.f32 %v10496_v52, %v2963_v15  ;;  %v3014_v17 = vadd.f32 %v3000_v42, %v2962_v13  ;;  %vm10504_vm6 = vcmask 654336   ;;  %v3569_v20 = vadd.f32 %v3553_v30, %v3497_v35 }
 0xf11   :  { %v3052_v8 = vsel %vm10504_vm6, %v10503_v50, %v10502_v37  ;;  %v3570_v39 = vadd.f32 %v3554_v10, %v3498_v27  ;;  %v3610_v54 = vpop.permute.xlu1 %3609  ;;  %v3608_v45 = vpop.permute.xlu0 %3607  ;;  %v3001_v40 = vsel %vm10507_vm7, %v10506_v55, %v10505_v49  ;;  %vm10510_vm9 = vcmask 646144   ;;  %vm10513_vm5 = vmmov %vm10504_vm6  ;;  %v10517_v27 = vld [vmem:[#allocation50_spill] sm:$0xff] }
 0xf12   :  { %v3104_v34 = vsel %vm10510_vm9, %v10509_v22, %v10508_v32  ;;  %v3625_v56 = vsel %vm1845_vm15, %v3606_v43, %v3608_v45  ;;  %v3626_v15 = vsel %vm1845_vm15, %v3608_v45, %v3610_v54  ;;  %v3647_v11 = vmul.f32 0.01, %v3639_v46  ;;  %v10514_v43 = vld [vmem:[#allocation62_spill] sm:$0xff]  ;;  %vm10519_vm7 = vmmov %vm10510_vm9  ;;  %v10526_v45 = vld [vmem:[#allocation132_spill] sm:$0xff] }
 0xf13   :  { %v3648_v60 = vmul.f32 0.01, %v3640_v59  ;;  %v3641_v53 = vadd.f32 %v3625_v56, %v3569_v20  ;;  %v3642_v21 = vadd.f32 %v3626_v15, %v3570_v39  ;;  %v2964_v6 = vadd.f32 %v2949_v2, %v2912_v61  ;;  %v10518_v61 = vld [vmem:[#allocation60_spill] sm:$0xff]  ;;  %v10524_v39 = vld [vmem:[#allocation85_spill] sm:$0xff] }
 0xf14   :  { %v3067_v3 = vadd.f32 %v10502_v37, %v3015_v18  ;;  %v3066_v4 = vadd.f32 %v3052_v8, %v3014_v17  ;;  %v3017_v0 = vadd.f32 %v10505_v49, %v2965_v62  ;;  %v3053_v13 = vsel %vm10513_vm5, %v10512_v28, %v10511_v47  ;;  %v10520_v62 = vld [vmem:[#allocation86_spill] sm:$0xff]  ;;  %v10523_v20 = vld [vmem:[#allocation84_spill] sm:$0xff]  ;;  %v10527_v49 = vld [vmem:[#allocation133_spill] sm:$0xff] }
 0xf15   :  { %v3649_v23 = vmul.f32 0.01, %v3641_v53  ;;  %v3650_v44 = vmul.f32 0.01, %v3642_v21  ;;  %v3542_v51 = vpop.permute.xlu1 %3541  ;;  %v3540_v9 = vpop.permute.xlu0 %3539  ;;  %v3016_v29 = vadd.f32 %v3001_v40, %v2964_v6  ;;  %vm10516_vm6 = vcmask 637952   ;;  %v10529_v56 = vld [vmem:[#allocation109_spill] sm:$0xff] }
 0xf16   :  { %v3119_v7 = vadd.f32 %v10508_v32, %v3067_v3  ;;  %v3118_v5 = vadd.f32 %v3104_v34, %v3066_v4  ;;  %v3156_v52 = vsel %vm10516_vm6, %v10515_v25, %v10514_v43  ;;  %v3655_v26 = vmax.f32 %v3639_v46, %v3647_v11  ;;  %vm10525_vm5 = vmmov %vm10516_vm6  ;;  %v10528_v34 = vld [vmem:[#allocation108_spill] sm:$0xff]  ;;  %v10531_v11 = vld [vmem:[#allocation146_spill] sm:$0xff] }
 0xf17   :  { %v3656_v42 = vmax.f32 %v3640_v59, %v3648_v60  ;;  %v3657_v30 = vmax.f32 %v3641_v53, %v3649_v23  ;;  %v3658_v10 = vmax.f32 %v3642_v21, %v3650_v44  ;;  %v3069_v58 = vadd.f32 %v10511_v47, %v3017_v0  ;;  %v10532_v60 = vld [vmem:[#allocation147_spill] sm:$0xff]  ;;  %v10533_v21 = vld [vmem:[#allocation169_spill] sm:$0xff]  ;;  %v10535_v44 = vld [vmem:[#allocation122_spill] sm:$0xff] }
 0xf18   :  { %v3068_v35 = vadd.f32 %v3053_v13, %v3016_v29  ;;  %v3105_v14 = vsel %vm10519_vm7, %v10518_v61, %v10517_v27  ;;  %vm10522_vm9 = vcmask 629760   ;;  %v3171_v18 = vadd.f32 %v10514_v43, %v3119_v7  ;;  %v10534_v28 = vld [vmem:[#allocation25_spill] sm:$0xff]  ;;  %v10536_v29 = vld [vmem:[#allocation123_spill] sm:$0xff] }
 0xf19   :  { %v3208_v2 = vsel %vm10522_vm9, %v10521_v38, %v10520_v62  ;;  %v3170_v17 = vadd.f32 %v3156_v52, %v3118_v5  ;;  %v8668_v37 = vpack.c.bf16 %v3657_v30, %v3655_v26  ;;  %v8670_v46 = vpack.c.bf16 %v3658_v10, %v3656_v42  ;;  %v3546_v59 = vpop.permute.xlu1 %3545  ;;  %v3544_v50 = vpop.permute.xlu0 %3543  ;;  %vm10530_vm6 = vmmov %vm10522_vm9  ;;  %v10537_v30 = vld [vmem:[#allocation159_spill] sm:$0xff]  ;;  %v10538_v10 = vld [vmem:[#allocation168_spill] sm:$0xff] }
 0xf1a   :  { %v3121_v8 = vadd.f32 %v10517_v27, %v3069_v58  ;;  %v3157_v54 = vsel %vm10525_vm5, %v10524_v39, %v10523_v20  ;;  %v3260_v55 = vsel %vm1395_vm12, %v10527_v49, %v10526_v45  ;;  %v3120_v40 = vadd.f32 %v3105_v14, %v3068_v35  ;;  %v10539_v35 = vld [vmem:[#allocation158_spill] sm:$0xff] }
 0xf1b   :  { %v3223_v32 = vadd.f32 %v10520_v62, %v3171_v18  ;;  %v3222_v22 = vadd.f32 %v3208_v2, %v3170_v17  ;;  %3675 = vrot.lane.b32.xlu1 %v8670_v46, %s4935_s7  ;;  %3673 = vrot.lane.b32.xlu0 %v8668_v37, %s4935_s7  ;;  %v3209_v15 = vsel %vm10530_vm6, %v10529_v56, %v10528_v34 }
 0xf1c   :  { %v3339_v53 = vsel %vm1489_vm13, %v10532_v60, %v10531_v11  ;;  %v3340_v6 = vsel %vm1489_vm13, %v10531_v11, %v10533_v21  ;;  %4342 = vmatprep.subr.bf16.mxu1 %v8668_v37  ;;  %v3173_v3 = vadd.f32 %v10523_v20, %v3121_v8  ;;  %v3172_v4 = vadd.f32 %v3157_v54, %v3120_v40 }
 0xf1d   :  { %v3275_v0 = vadd.f32 %v10526_v45, %v3223_v32  ;;  %v3274_v47 = vadd.f32 %v3260_v55, %v3222_v22  ;;  %4343 = vmatpush1.bf16.msra.mxu1 %v10534_v28  ;;  %v3550_v13 = vpop.permute.xlu1 %3549  ;;  %v3548_v23 = vpop.permute.xlu0 %3547  ;;  %v3261_v7 = vsel %vm1395_vm12, %v10536_v29, %v10535_v44  ;;  %v3411_v5 = vsel %vm1578_vm14, %v8370_v16, %v8368_v36 }
 0xf1e   :  { %v3412_v43 = vsel %vm1578_vm14, %v8368_v36, %v8395_v24  ;;  %v3225_v25 = vadd.f32 %v10528_v34, %v3173_v3  ;;  %v3224_v52 = vadd.f32 %v3209_v15, %v3172_v4  ;;  %v3341_v58 = vsel %vm1489_vm13, %v10538_v10, %v10537_v30 }
 0xf1f   :  { %v3355_v26 = vadd.f32 %v3339_v53, %v3274_v47  ;;  %v3356_v42 = vadd.f32 %v3340_v6, %v3275_v0  ;;  %v3342_v27 = vsel %vm1489_vm13, %v10537_v30, %v10539_v35  ;;  %v3483_v16 = vsel %vm1667_vm10, %v8522_v19, %v8520_v63 }
 0xf20   :  { %v3484_v36 = vsel %vm1667_vm10, %v8520_v63, %v8546_v41  ;;  %v3277_v24 = vadd.f32 %v10535_v44, %v3225_v25  ;;  %v3276_v61 = vadd.f32 %v3261_v7, %v3224_v52  ;;  %v3413_v18 = vsel %vm1578_vm14, %v8393_v48, %v8419_v57  ;;  %v10540_v7 = vld [vmem:[#allocation26_spill] sm:$0xff] }
 0xf21   :  { %v3427_v14 = vadd.f32 %v3411_v5, %v3355_v26  ;;  %v3428_v62 = vadd.f32 %v3412_v43, %v3356_v42  ;;  %v3614_v38 = vpop.permute.xlu1 %3613  ;;  %v3612_v2 = vpop.permute.xlu0 %3611  ;;  %v3414_v17 = vsel %vm1578_vm14, %v8419_v57, %v8417_v12  ;;  %v3555_v19 = vsel %vm1756_vm11, %v3540_v9, %v3542_v51  ;;  %v4884_v5 = vld [vmem:[%s9293_s3 + $0x4] ss:$28 sps:$4 sm:$0xff]   ;;  %v10542_v42 = vld [vmem:[#allocation42_spill] sm:$0xff] }
 0xf22   :  { %v3556_v8 = vsel %vm1756_vm11, %v3542_v51, %v3544_v50  ;;  %v3357_v63 = vadd.f32 %v3341_v58, %v3276_v61  ;;  %v3358_v41 = vadd.f32 %v3342_v27, %v3277_v24  ;;  %v3485_v54 = vsel %vm1667_vm10, %v8544_v31, %v8576_v33  ;;  %4374 = vmatprep.mubr.bf16.mxu1 %v4884_v5  ;;  %v10541_v26 = vld [vmem:[#allocation27_spill] sm:$0xff]  ;;  %v10563_v5 = vld [vmem:[#allocation116_spill] sm:$0xff] }
 0xf23   :  { %v3499_v20 = vadd.f32 %v3483_v16, %v3427_v14  ;;  %v3500_v39 = vadd.f32 %v3484_v36, %v3428_v62  ;;  %v3486_v48 = vsel %vm1667_vm10, %v8576_v33, %v8574_v1  ;;  %v3627_v45 = vsel %vm1845_vm15, %v3612_v2, %v3614_v38  ;;  %v10543_v27 = vld [vmem:[#allocation43_spill] sm:$0xff]  ;;  %v10544_v16 = vld [vmem:[#allocation53_spill] sm:$0xff]  ;;  %v10545_v62 = vld [vmem:[#allocation52_spill] sm:$0xff] }
 0xf24   :  { %v3429_v49 = vadd.f32 %v3413_v18, %v3357_v63  ;;  %v3430_v12 = vadd.f32 %v3414_v17, %v3358_v41  ;;  %v3557_v50 = vsel %vm1756_vm11, %v3546_v59, %v3548_v23  ;;  %v3558_v40 = vsel %vm1756_vm11, %v3548_v23, %v3550_v13  ;;  %v10548_v63 = vld [vmem:[#allocation35_spill] sm:$0xff] }
 0xf25   :  { %v3571_v57 = vadd.f32 %v3555_v19, %v3499_v20  ;;  %v3572_v9 = vadd.f32 %v3556_v8, %v3500_v39  ;;  %v3618_v55 = vpop.permute.xlu1 %3617  ;;  %v3616_v51 = vpop.permute.xlu0 %3615  ;;  %v1905_v30 = vsel %vm153_vm0, %v10542_v42, %v10541_v26  ;;  %v1906_v36 = vsel %vm153_vm0, %v10544_v16, %v10543_v27  ;;  %v10547_v8 = vld [vmem:[#allocation29_spill] sm:$0xff] }
 0xf26   :  { %v3628_v32 = vsel %vm1845_vm15, %v3614_v38, %v3616_v51  ;;  %v3501_v22 = vadd.f32 %v3485_v54, %v3429_v49  ;;  %v3502_v31 = vadd.f32 %v3486_v48, %v3430_v12  ;;  %v10546_v38 = vld [vmem:[#allocation28_spill] sm:$0xff]  ;;  %v1921_v41 = vsel %vm222_vm1, %v10548_v63, %v10547_v8  ;;  %v10549_v48 = vld [vmem:[#allocation34_spill] sm:$0xff]  ;;  %v10565_v42 = vld [vmem:[#allocation45_spill] sm:$0xff] }
 0xf27   :  { %v3643_v34 = vadd.f32 %v3627_v45, %v3571_v57  ;;  %v3644_v56 = vadd.f32 %v3628_v32, %v3572_v9  ;;  %v1920_v2 = vsel %vm222_vm1, %v10546_v38, %v10545_v62  ;;  %v10550_v45 = vld [vmem:[#allocation55_spill] sm:$0xff]  ;;  %v10552_v51 = vld [vmem:[#allocation64_spill] sm:$0xff]  ;;  %v10568_v16 = vld [vmem:[#allocation117_spill] sm:$0xff] }
 0xf28   :  { %v3573_v15 = vadd.f32 %v3557_v50, %v3501_v22  ;;  %v3574_v1 = vadd.f32 %v3558_v40, %v3502_v31  ;;  %v1935_v49 = vsel %vm291_vm2, %v10550_v45, %v10549_v48  ;;  %v10553_v31 = vld [vmem:[#allocation65_spill] sm:$0xff]  ;;  %v10571_v38 = vld [vmem:[#allocation67_spill] sm:$0xff]  ;;  %v10578_v45 = vld [vmem:[#allocation76_spill] sm:$0xff] }
 0xf29   :  { %v3622_v33 = vpop.permute.xlu1 %3621  ;;  %v3620_v11 = vpop.permute.xlu0 %3619  ;;  %v3651_v21 = vmul.f32 0.01, %v3643_v34  ;;  %v3652_v6 = vmul.f32 0.01, %v3644_v56  ;;  %v10574_v63 = vld [vmem:[#allocation139_spill] sm:$0xff] }
 0xf2a   :  { %v3629_v60 = vsel %vm1845_vm15, %v3618_v55, %v3620_v11  ;;  %v3630_v53 = vsel %vm1845_vm15, %v3620_v11, %v3622_v33  ;;  %v10551_v55 = vld [vmem:[#allocation54_spill] sm:$0xff]  ;;  %v10556_v11 = vld [vmem:[#allocation137_spill] sm:$0xff] }
 0xf2b   :  { %v3645_v3 = vadd.f32 %v3629_v60, %v3573_v15  ;;  %v3646_v59 = vadd.f32 %v3630_v53, %v3574_v1  ;;  %v3659_v47 = vmax.f32 %v3643_v34, %v3651_v21  ;;  %v3660_v28 = vmax.f32 %v3644_v56, %v3652_v6  ;;  %v10554_v34 = vld [vmem:[#allocation37_spill] sm:$0xff]  ;;  %v10557_v60 = vld [vmem:[#allocation107_spill] sm:$0xff] }
 0xf2c   :  { %v1936_v50 = vsel %vm291_vm2, %v10552_v51, %v10551_v55  ;;  %v1950_v56 = vsel %vm360_vm3, %v10554_v34, %v10553_v31  ;;  %v10582_v51 = vld [vmem:[#allocation148_spill] sm:$0xff]  ;;  %v10586_v34 = vld [vmem:[#allocation47_spill] sm:$0xff] }
 0xf2d   :  { %v3653_v4 = vmul.f32 0.01, %v3645_v3  ;;  %v3654_v0 = vmul.f32 0.01, %v3646_v59 }
 0xf2f   :  { %v3661_v13 = vmax.f32 %v3645_v3, %v3653_v4  ;;  %v3662_v23 = vmax.f32 %v3646_v59, %v3654_v0  ;;  %v4887_v3 = vld [vmem:[%s9293_s3 + $0x14] ss:$28 sps:$4 sm:$0xff]   ;;  %v10559_v4 = vld [vmem:[#allocation36_spill] sm:$0xff] }
 0xf30   :  { %v10560_v0 = vld [vmem:[#allocation44_spill] sm:$0xff]  ;;  %4520 = vmatprep.mubr.bf16.mxu0 %v4887_v3 }
 0xf31   :  { %v8740_v44 = vpack.c.bf16 %v3661_v13, %v3659_v47  ;;  %v8742_v29 = vpack.c.bf16 %v3662_v23, %v3660_v28  ;;  %v1951_v47 = vsel %vm360_vm3, %v10560_v0, %v10559_v4  ;;  %v10594_v3 = vld [vmem:[#allocation56_spill] sm:$0xff]  ;;  %v4141_v0 = vld [vmem:[%s9294_s4] sm:$0xff] }
 0xf33   :  { %3679 = vrot.lane.b32.xlu1 %v8742_v29, %s4935_s7  ;;  %3677 = vrot.lane.b32.xlu0 %v8740_v44, %s4935_s7 }
 0xf34   :  { %4344 = vmatprep.subr.bf16.mxu1 %v8740_v44 }
 0xf35   :  { %4345 = vmatpush1.bf16.msra.mxu1 %v10540_v7  ;;  %v10562_v7 = vld [vmem:[#allocation106_spill] sm:$0xff] }
 0xf37   :  { %3689 = vrot.lane.b32.xlu1 %v8670_v46, %s4936_s8  ;;  %3687 = vrot.lane.b32.xlu0 %v8668_v37, %s4936_s8 }
 0xf3b   :  { %3693 = vrot.lane.b32.xlu1 %v8742_v29, %s4936_s8  ;;  %3691 = vrot.lane.b32.xlu0 %v8740_v44, %s4936_s8 }
 0xf3f   :  { %3703 = vrot.lane.b32.xlu1 %v8670_v46, %s4937_s9  ;;  %3701 = vrot.lane.b32.xlu0 %v8668_v37, %s4937_s9 }
 0xf43   :  { %3707 = vrot.lane.b32.xlu1 %v8742_v29, %s4937_s9  ;;  %3705 = vrot.lane.b32.xlu0 %v8740_v44, %s4937_s9 }
 0xf47   :  { %3717 = vrot.lane.b32.xlu1 %v8670_v46, %s4938_s10  ;;  %3715 = vrot.lane.b32.xlu0 %v8668_v37, %s4938_s10 }
 0xf4b   :  { %3885 = vrot.lane.b32.xlu1 %v8670_v46, %s4961_s1  ;;  %3883 = vrot.lane.b32.xlu0 %v8668_v37, %s4961_s1 }
 0xf4f   :  { %3721 = vrot.lane.b32.xlu1 %v8742_v29, %s4938_s10  ;;  %3719 = vrot.lane.b32.xlu0 %v8740_v44, %s4938_s10 }
 0xf53   :  { %3889 = vrot.lane.b32.xlu1 %v8742_v29, %s4961_s1  ;;  %3887 = vrot.lane.b32.xlu0 %v8740_v44, %s4961_s1 }
 0xf57   :  { %3731 = vrot.lane.b32.xlu1 %v8670_v46, %s4939_s11  ;;  %3729 = vrot.lane.b32.xlu0 %v8668_v37, %s4939_s11 }
 0xf5b   :  { %3899 = vrot.lane.b32.xlu1 %v8670_v46, %s4963_s30  ;;  %3897 = vrot.lane.b32.xlu0 %v8668_v37, %s4963_s30 }
 0xf5f   :  { %3735 = vrot.lane.b32.xlu1 %v8742_v29, %s4939_s11  ;;  %3733 = vrot.lane.b32.xlu0 %v8740_v44, %s4939_s11 }
 0xf63   :  { %3903 = vrot.lane.b32.xlu1 %v8742_v29, %s4963_s30  ;;  %3901 = vrot.lane.b32.xlu0 %v8740_v44, %s4963_s30 }
 0xf67   :  { %3745 = vrot.lane.b32.xlu1 %v8670_v46, %s4941_s12  ;;  %3743 = vrot.lane.b32.xlu0 %v8668_v37, %s4941_s12 }
 0xf6b   :  { %3913 = vrot.lane.b32.xlu1 %v8670_v46, %s4965_s6  ;;  %3911 = vrot.lane.b32.xlu0 %v8668_v37, %s4965_s6 }
 0xf6f   :  { %3749 = vrot.lane.b32.xlu1 %v8742_v29, %s4941_s12  ;;  %3747 = vrot.lane.b32.xlu0 %v8740_v44, %s4941_s12 }
 0xf73   :  { %3917 = vrot.lane.b32.xlu1 %v8742_v29, %s4965_s6  ;;  %3915 = vrot.lane.b32.xlu0 %v8740_v44, %s4965_s6 }
 0xf77   :  { %3759 = vrot.lane.b32.xlu1 %v8670_v46, %s4943_s13  ;;  %3757 = vrot.lane.b32.xlu0 %v8668_v37, %s4943_s13 }
 0xf7b   :  { %3927 = vrot.lane.b32.xlu1 %v8670_v46, %s4967_s21  ;;  %3925 = vrot.lane.b32.xlu0 %v8668_v37, %s4967_s21 }
 0xf7f   :  { %3763 = vrot.lane.b32.xlu1 %v8742_v29, %s4943_s13  ;;  %3761 = vrot.lane.b32.xlu0 %v8740_v44, %s4943_s13 }
 0xf83   :  { %3931 = vrot.lane.b32.xlu1 %v8742_v29, %s4967_s21  ;;  %3929 = vrot.lane.b32.xlu0 %v8740_v44, %s4967_s21 }
 0xf87   :  { %3773 = vrot.lane.b32.xlu1 %v8670_v46, %s4945_s14  ;;  %3771 = vrot.lane.b32.xlu0 %v8668_v37, %s4945_s14 }
 0xf8b   :  { %3941 = vrot.lane.b32.xlu1 %v8670_v46, %s4969_s24  ;;  %3939 = vrot.lane.b32.xlu0 %v8668_v37, %s4969_s24 }
 0xf8d   :  { %v3676_v43 = vpop.permute.xlu1 %3675  ;;  %v3674_v25 = vpop.permute.xlu0 %3673 }
 0xf8e   :  { %v3681_v52 = vsel %vm153_vm0, %v3674_v25, %v3676_v43 }
 0xf8f   :  { %3777 = vrot.lane.b32.xlu1 %v8742_v29, %s4945_s14  ;;  %3775 = vrot.lane.b32.xlu0 %v8740_v44, %s4945_s14 }
 0xf90   :  { %4346 = vmatprep.subr.bf16.mxu1 %v3681_v52 }
 0xf91   :  { %4347 = vmatpush1.bf16.msra.mxu1 %v1905_v30  ;;  %v10566_v30 = vld [vmem:[#allocation66_spill] sm:$0xff] }
 0xf93   :  { %3945 = vrot.lane.b32.xlu1 %v8742_v29, %s4969_s24  ;;  %3943 = vrot.lane.b32.xlu0 %v8740_v44, %s4969_s24 }
 0xf97   :  { %3787 = vrot.lane.b32.xlu1 %v8670_v46, %s4947_s15  ;;  %3785 = vrot.lane.b32.xlu0 %v8668_v37, %s4947_s15 }
 0xf9b   :  { %3955 = vrot.lane.b32.xlu1 %v8670_v46, %s4971_s25  ;;  %3953 = vrot.lane.b32.xlu0 %v8668_v37, %s4971_s25 }
 0xf9f   :  { %3791 = vrot.lane.b32.xlu1 %v8742_v29, %s4947_s15  ;;  %3789 = vrot.lane.b32.xlu0 %v8740_v44, %s4947_s15 }
 0xfa3   :  { %3959 = vrot.lane.b32.xlu1 %v8742_v29, %s4971_s25  ;;  %3957 = vrot.lane.b32.xlu0 %v8740_v44, %s4971_s25 }
 0xfa5   :  { %v3680_v10 = vpop.permute.xlu1 %3679  ;;  %v3678_v58 = vpop.permute.xlu0 %3677 }
 0xfa6   :  { %v3682_v35 = vsel %vm153_vm0, %v3678_v58, %v3680_v10  ;;  %vm10555_vm0 = vmmov %vm10519_vm7  ;;  %v1965_v10 = vsel %vm429_vm4, %v10566_v30, %v10565_v42  ;;  %v4146_v30 = vld [vmem:[%s9294_s4 + $0x28] sm:$0xff] }
 0xfa7   :  { %3801 = vrot.lane.b32.xlu1 %v8670_v46, %s4949_s16  ;;  %3799 = vrot.lane.b32.xlu0 %v8668_v37, %s4949_s16  ;;  %vm10564_vm7 = vmmov %vm10555_vm0 }
 0xfa8   :  { %4348 = vmatprep.subr.bf16.mxu1 %v3682_v35  ;;  %v2131_v43 = vsel %vm10564_vm7, %v10563_v5, %v10562_v7  ;;  %v4144_v7 = vld [vmem:[%s9294_s4 + $0x18] sm:$0xff] }
 0xfa9   :  { %4349 = vmatpush1.bf16.msra.mxu1 %v1906_v36  ;;  %v3690_v24 = vpop.permute.xlu1 %3689  ;;  %v3688_v61 = vpop.permute.xlu0 %3687  ;;  %v10569_v36 = vld [vmem:[#allocation138_spill] sm:$0xff] }
 0xfaa   :  { %v3695_v14 = vsel %vm222_vm1, %v3688_v61, %v3690_v24 }
 0xfab   :  { %3969 = vrot.lane.b32.xlu1 %v8670_v46, %s10085_s26  ;;  %3967 = vrot.lane.b32.xlu0 %v8668_v37, %s10085_s26 }
 0xfac   :  { %4350 = vmatprep.subr.bf16.mxu1 %v3695_v14 }
 0xfad   :  { %4351 = vmatpush1.bf16.msra.mxu1 %v1920_v2  ;;  %v3694_v18 = vpop.permute.xlu1 %3693  ;;  %v3692_v17 = vpop.permute.xlu0 %3691  ;;  %v10572_v2 = vld [vmem:[#allocation77_spill] sm:$0xff] }
 0xfae   :  { %v3696_v19 = vsel %vm222_vm1, %v3692_v17, %v3694_v18  ;;  %vm10558_vm1 = vmmov %vm10555_vm0  ;;  %v1966_v18 = vsel %vm429_vm4, %v10572_v2, %v10571_v38 }
 0xfaf   :  { %3805 = vrot.lane.b32.xlu1 %v8742_v29, %s4949_s16  ;;  %3803 = vrot.lane.b32.xlu0 %v8740_v44, %s4949_s16  ;;  %v2130_v53 = vsel %vm10558_vm1, %v10557_v60, %v10556_v11  ;;  %vm10581_vm1 = vcmask 629760   ;;  %v10591_v60 = vld [vmem:[#allocation129_spill] sm:$0xff] }
 0xfb0   :  { %4352 = vmatprep.subr.bf16.mxu1 %v3696_v19 }
 0xfb1   :  { %4353 = vmatpush1.bf16.msra.mxu1 %v1921_v41  ;;  %v3704_v20 = vpop.permute.xlu1 %3703  ;;  %v3702_v39 = vpop.permute.xlu0 %3701  ;;  %v10575_v41 = vld [vmem:[#allocation149_spill] sm:$0xff] }
 0xfb2   :  { %v3709_v54 = vsel %vm291_vm2, %v3702_v39, %v3704_v20 }
 0xfb3   :  { %3973 = vrot.lane.b32.xlu1 %v8742_v29, %s10085_s26  ;;  %3971 = vrot.lane.b32.xlu0 %v8740_v44, %s10085_s26 }
 0xfb4   :  { %4354 = vmatprep.subr.bf16.mxu1 %v3709_v54 }
 0xfb5   :  { %4355 = vmatpush1.bf16.msra.mxu1 %v1935_v49  ;;  %v3708_v12 = vpop.permute.xlu1 %3707  ;;  %v3706_v57 = vpop.permute.xlu0 %3705  ;;  %v10579_v49 = vld [vmem:[#allocation46_spill] sm:$0xff] }
 0xfb6   :  { %v3710_v9 = vsel %vm291_vm2, %v3706_v57, %v3708_v12  ;;  %vm10561_vm2 = vmmov %vm10555_vm0 }
 0xfb7   :  { %3815 = vrot.lane.b32.xlu1 %v8670_v46, %s4951_s17  ;;  %3813 = vrot.lane.b32.xlu0 %v8668_v37, %s4951_s17 }
 0xfb8   :  { %4356 = vmatprep.subr.bf16.mxu1 %v3710_v9 }
 0xfb9   :  { %4357 = vmatpush1.bf16.msra.mxu1 %v1936_v50  ;;  %v3718_v40 = vpop.permute.xlu1 %3717  ;;  %v3716_v32 = vpop.permute.xlu0 %3715  ;;  %v10583_v50 = vld [vmem:[#allocation118_spill] sm:$0xff] }
 0xfba   :  { %v3723_v22 = vsel %vm360_vm3, %v3716_v32, %v3718_v40 }
 0xfbb   :  { %3983 = vrot.lane.b32.xlu1 %v8670_v46, %s4975_s28  ;;  %3981 = vrot.lane.b32.xlu0 %v8668_v37, %s4975_s28 }
 0xfbc   :  { %4358 = vmatprep.subr.bf16.mxu1 %v3723_v22 }
 0xfbd   :  { %4359 = vmatpush1.bf16.msra.mxu1 %v1950_v56  ;;  %v3886_v15 = vpop.permute.xlu1 %3885  ;;  %v3884_v1 = vpop.permute.xlu0 %3883  ;;  %v10587_v56 = vld [vmem:[#allocation57_spill] sm:$0xff] }
 0xfbe   :  { %v3891_v33 = vsel %vm10555_vm0, %v3884_v1, %v3886_v15 }
 0xfbf   :  { %3819 = vrot.lane.b32.xlu1 %v8742_v29, %s4951_s17  ;;  %3817 = vrot.lane.b32.xlu0 %v8740_v44, %s4951_s17 }
 0xfc0   :  { %4488 = vmatprep.subr.bf16.mxu0 %v3891_v33 }
 0xfc1   :  { %4489 = vmatpush1.bf16.msra.mxu0 %v2130_v53  ;;  %v3722_v21 = vpop.permute.xlu1 %3721  ;;  %v3720_v6 = vpop.permute.xlu0 %3719 }
 0xfc2   :  { %v3724_v59 = vsel %vm360_vm3, %v3720_v6, %v3722_v21  ;;  %vm10567_vm3 = vmmov %vm10525_vm5 }
 0xfc3   :  { %3987 = vrot.lane.b32.xlu1 %v8742_v29, %s4975_s28  ;;  %3985 = vrot.lane.b32.xlu0 %v8740_v44, %s4975_s28  ;;  %vm10570_vm9 = vmmov %vm10567_vm3 }
 0xfc4   :  { %4360 = vmatprep.subr.bf16.mxu1 %v3724_v59  ;;  %v2145_v24 = vsel %vm10570_vm9, %v10569_v36, %v10568_v16  ;;  %vm10573_vm5 = vmmov %vm10567_vm3  ;;  %v10595_v59 = vld [vmem:[#allocation79_spill] sm:$0xff]  ;;  %v10603_v36 = vld [vmem:[#allocation150_spill] sm:$0xff] }
 0xfc5   :  { %4361 = vmatpush1.bf16.msra.mxu1 %v1951_v47  ;;  %v3890_v28 = vpop.permute.xlu1 %3889  ;;  %v3888_v13 = vpop.permute.xlu0 %3887  ;;  %vm10576_vm6 = vmmov %vm10567_vm3 }
 0xfc6   :  { %v3892_v23 = vsel %vm10561_vm2, %v3888_v13, %v3890_v28  ;;  %v2146_v20 = vsel %vm10576_vm6, %v10575_v41, %v10574_v63  ;;  %vm10584_vm2 = vmmov %vm10581_vm1  ;;  %vm10593_vm6 = vcmask 900096   ;;  %v4890_v63 = vld [vmem:[%s9293_s3 + $0x38] ss:$28 sps:$4 sm:$0xff]  }
 0xfc7   :  { %3829 = vrot.lane.b32.xlu1 %v8670_v46, %s4953_s18  ;;  %3827 = vrot.lane.b32.xlu0 %v8668_v37, %s4953_s18  ;;  %v2160_v40 = vsel %vm10584_vm2, %v10583_v50, %v10582_v51  ;;  %vm10589_vm9 = vmmov %vm10581_vm1  ;;  %vm10605_vm2 = vcmask 891904   ;;  %v4145_v51 = vld [vmem:[%s9294_s4 + $0x20] sm:$0xff]  ;;  %v10612_v50 = vld [vmem:[#allocation58_spill] sm:$0xff] }
 0xfc8   :  { %4490 = vmatprep.subr.bf16.mxu0 %v3892_v23  ;;  %v10598_v23 = vld [vmem:[#allocation151_spill] sm:$0xff] }
 0xfc9   :  { %4491 = vmatpush1.bf16.msra.mxu0 %v2131_v43  ;;  %v3732_v25 = vpop.permute.xlu1 %3731  ;;  %v3730_v52 = vpop.permute.xlu0 %3729 }
 0xfca   :  { %v3737_v26 = vsel %vm429_vm4, %v3730_v52, %v3732_v25  ;;  %v10600_v52 = vld [vmem:[#allocation78_spill] sm:$0xff] }
 0xfcb   :  { %3833 = vrot.lane.b32.xlu1 %v8742_v29, %s4953_s18  ;;  %3831 = vrot.lane.b32.xlu0 %v8740_v44, %s4953_s18 }
 0xfcc   :  { %4362 = vmatprep.subr.bf16.mxu1 %v3737_v26  ;;  %v10601_v26 = vld [vmem:[#allocation88_spill] sm:$0xff] }
 0xfcd   :  { %4363 = vmatpush1.bf16.msra.mxu1 %v1965_v10  ;;  %v3900_v58 = vpop.permute.xlu1 %3899  ;;  %v3898_v35 = vpop.permute.xlu0 %3897  ;;  %v4882_v10 = vld [vmem:[%s9293_s3] ss:$28 sps:$4 sm:$0xff]  }
 0xfce   :  { %v3905_v27 = vsel %vm10567_vm3, %v3898_v35, %v3900_v58 }
 0xfcf   :  { %3843 = vrot.lane.b32.xlu1 %v8670_v46, %s4955_s19  ;;  %3841 = vrot.lane.b32.xlu0 %v8668_v37, %s4955_s19 }
 0xfd0   :  { %4492 = vmatprep.subr.bf16.mxu0 %v3905_v27  ;;  %v4888_v27 = vld [vmem:[%s9293_s3 + $0x3c] ss:$28 sps:$4 sm:$0xff]  }
 0xfd1   :  { %4493 = vmatpush1.bf16.msra.mxu0 %v2145_v24  ;;  %v3736_v61 = vpop.permute.xlu1 %3735  ;;  %v3734_v14 = vpop.permute.xlu0 %3733  ;;  %v10604_v24 = vld [vmem:[#allocation160_spill] sm:$0xff] }
 0xfd2   :  { %v3738_v62 = vsel %vm429_vm4, %v3734_v14, %v3736_v61  ;;  %vm10577_vm4 = vcmask 908288   ;;  %v2176_v61 = vsel %vm1395_vm12, %v10604_v24, %v10603_v36  ;;  %v4148_v14 = vld [vmem:[%s9294_s4 + $0x38] sm:$0xff]  ;;  %v10626_v24 = vld [vmem:[#allocation100_spill] sm:$0xff] }
 0xfd3   :  { %3847 = vrot.lane.b32.xlu1 %v8742_v29, %s4955_s19  ;;  %3845 = vrot.lane.b32.xlu0 %v8740_v44, %s4955_s19  ;;  %vm10580_vm0 = vmmov %vm10577_vm4 }
 0xfd4   :  { %4364 = vmatprep.subr.bf16.mxu1 %v3738_v62  ;;  %v1980_v12 = vsel %vm10580_vm0, %v10579_v49, %v10578_v45  ;;  %vm10585_vm7 = vmmov %vm10580_vm0  ;;  %v10609_v45 = vld [vmem:[#allocation161_spill] sm:$0xff]  ;;  %v10610_v49 = vld [vmem:[#allocation131_spill] sm:$0xff] }
 0xfd5   :  { %4365 = vmatpush1.bf16.msra.mxu1 %v1966_v18  ;;  %v3904_v17 = vpop.permute.xlu1 %3903  ;;  %v3902_v19 = vpop.permute.xlu0 %3901  ;;  %vm10588_vm3 = vmmov %vm10580_vm0  ;;  %v10606_v18 = vld [vmem:[#allocation89_spill] sm:$0xff] }
 0xfd6   :  { %v3906_v8 = vsel %vm10573_vm5, %v3902_v19, %v3904_v17  ;;  %v1981_v15 = vsel %vm10588_vm3, %v10587_v56, %v10586_v34  ;;  %vm10592_vm5 = vmmov %vm10581_vm1  ;;  %v10607_v17 = vld [vmem:[#allocation59_spill] sm:$0xff]  ;;  %v4900_v56 = vld [vmem:[%s9293_s3 + $0xac] ss:$28 sps:$4 sm:$0xff]  }
 0xfd7   :  { %3857 = vrot.lane.b32.xlu1 %v8670_v46, %s4957_s20  ;;  %3855 = vrot.lane.b32.xlu0 %v8668_v37, %s4957_s20  ;;  %vm10614_vm3 = vmmov %vm10605_vm2 }
 0xfd8   :  { %4494 = vmatprep.subr.bf16.mxu0 %v3906_v8  ;;  %v4142_v8 = vld [vmem:[%s9294_s4 + $0x8] sm:$0xff] }
 0xfd9   :  { %4495 = vmatpush1.bf16.msra.mxu0 %v2146_v20  ;;  %v3746_v39 = vpop.permute.xlu1 %3745  ;;  %v3744_v54 = vpop.permute.xlu0 %3743 }
 0xfda   :  { %v3751_v48 = vsel %vm10577_vm4, %v3744_v54, %v3746_v39  ;;  %vm10596_vm4 = vmmov %vm10593_vm6  ;;  %v4894_v39 = vld [vmem:[%s9293_s3 + $0x74] ss:$28 sps:$4 sm:$0xff]  }
 0xfdb   :  { %3861 = vrot.lane.b32.xlu1 %v8742_v29, %s4957_s20  ;;  %3859 = vrot.lane.b32.xlu0 %v8740_v44, %s4957_s20  ;;  %v1995_v4 = vsel %vm10596_vm4, %v10595_v59, %v10594_v3  ;;  %vm10599_vm0 = vmmov %vm10596_vm4  ;;  %v4902_v59 = vld [vmem:[%s9293_s3 + $0xa8] ss:$28 sps:$4 sm:$0xff]  }
 0xfdc   :  { %4366 = vmatprep.subr.bf16.mxu1 %v3751_v48  ;;  %v4143_v48 = vld [vmem:[%s9294_s4 + $0x10] sm:$0xff] }
 0xfdd   :  { %4367 = vmatpush1.bf16.msra.mxu1 %v1980_v12  ;;  %v3914_v57 = vpop.permute.xlu1 %3913  ;;  %v3912_v9 = vpop.permute.xlu0 %3911  ;;  %v2190_v12 = vsel %vm1489_vm13, %v10610_v49, %v10609_v45 }
 0xfde   :  { %v3919_v55 = vsel %vm10581_vm1, %v3912_v9, %v3914_v57  ;;  %vm10602_vm1 = vmmov %vm10599_vm0 }
 0xfdf   :  { %3871 = vrot.lane.b32.xlu1 %v8670_v46, %s4959_s27  ;;  %3869 = vrot.lane.b32.xlu0 %v8668_v37, %s4959_s27  ;;  %v1996_v42 = vsel %vm10602_vm1, %v10601_v26, %v10600_v52 }
 0xfe0   :  { %4496 = vmatprep.subr.bf16.mxu0 %v3919_v55 }
 0xfe1   :  { %4497 = vmatpush1.bf16.msra.mxu0 %v2160_v40  ;;  %v3750_v32 = vpop.permute.xlu1 %3749  ;;  %v3748_v22 = vpop.permute.xlu0 %3747  ;;  %v10613_v40 = vld [vmem:[#allocation68_spill] sm:$0xff] }
 0xfe2   :  { %v3752_v31 = vsel %vm10585_vm7, %v3748_v22, %v3750_v32  ;;  %vm10608_vm7 = vmmov %vm10605_vm2  ;;  %v2011_v32 = vsel %vm10614_vm3, %v10613_v40, %v10612_v50  ;;  %v4896_v22 = vld [vmem:[%s9293_s3 + $0x70] ss:$28 sps:$4 sm:$0xff]  }
 0xfe3   :  { %3997 = vrot.lane.b32.xlu1 %v8670_v46, %s4976_s2  ;;  %3995 = vrot.lane.b32.xlu0 %v8668_v37, %s4976_s2  ;;  %v10590_v46 = vld [vmem:[#allocation119_spill] sm:$0xff]  ;;  %v2010_v19 = vsel %vm10608_vm7, %v10607_v17, %v10606_v18  ;;  %v10629_v18 = vld [vmem:[#allocation142_spill] sm:$0xff]  ;;  %v10638_v40 = vld [vmem:[#allocation80_spill] sm:$0xff]  ;;  %vm10657_vm7 = vcmask 760832  }
 0xfe4   :  { %4368 = vmatprep.subr.bf16.mxu1 %v3752_v31  ;;  %v2161_v37 = vsel %vm10592_vm5, %v10591_v60, %v10590_v46  ;;  %v10630_v17 = vld [vmem:[#allocation143_spill] sm:$0xff]  ;;  %vm10637_vm5 = vcmask 777216   ;;  %vm10661_vm3 = vmmov %vm10657_vm7 }
 0xfe5   :  { %4369 = vmatpush1.bf16.msra.mxu1 %v1981_v15  ;;  %v3918_v1 = vpop.permute.xlu1 %3917  ;;  %v3916_v33 = vpop.permute.xlu0 %3915  ;;  %vm10646_vm4 = vmmov %vm10637_vm5 }
 0xfe6   :  { %v3920_v11 = vsel %vm10589_vm9, %v3916_v33, %v3918_v1  ;;  %v4147_v1 = vld [vmem:[%s9294_s4 + $0x30] sm:$0xff]  ;;  %v10615_v33 = vld [vmem:[#allocation130_spill] sm:$0xff] }
 0xfe7   :  { %3875 = vrot.lane.b32.xlu1 %v8742_v29, %s4959_s27  ;;  %3873 = vrot.lane.b32.xlu0 %v8740_v44, %s4959_s27 }
 0xfe8   :  { %4498 = vmatprep.subr.bf16.mxu0 %v3920_v11  ;;  %v10616_v11 = vld [vmem:[#allocation140_spill] sm:$0xff] }
 0xfe9   :  { %4499 = vmatpush1.bf16.msra.mxu0 %v2161_v37  ;;  %v3760_v53 = vpop.permute.xlu1 %3759  ;;  %v3758_v21 = vpop.permute.xlu0 %3757  ;;  %v2191_v46 = vsel %vm1489_vm13, %v10616_v11, %v10615_v33 }
 0xfea   :  { %v3765_v6 = vsel %vm10593_vm6, %v3758_v21, %v3760_v53  ;;  %v10617_v21 = vld [vmem:[#allocation69_spill] sm:$0xff]  ;;  %vm10640_vm6 = vmmov %vm10637_vm5 }
 0xfeb   :  { %4001 = vrot.lane.b32.xlu1 %v8742_v29, %s4976_s2  ;;  %3999 = vrot.lane.b32.xlu0 %v8740_v44, %s4976_s2  ;;  %v10597_v29 = vld [vmem:[#allocation128_spill] sm:$0xff] }
 0xfec   :  { %4370 = vmatprep.subr.bf16.mxu1 %v3765_v6  ;;  %v2175_v44 = vsel %vm1395_vm12, %v10598_v23, %v10597_v29  ;;  %v10618_v6 = vld [vmem:[#allocation90_spill] sm:$0xff] }
 0xfed   :  { %4371 = vmatpush1.bf16.msra.mxu1 %v1995_v4  ;;  %v3928_v47 = vpop.permute.xlu1 %3927  ;;  %v3926_v28 = vpop.permute.xlu0 %3925  ;;  %v2025_v3 = vsel %vm705_vm8, %v10618_v6, %v10617_v21  ;;  %v10620_v29 = vld [vmem:[#allocation162_spill] sm:$0xff] }
 0xfee   :  { %v3933_v13 = vsel %vm1395_vm12, %v3926_v28, %v3928_v47  ;;  %v4908_v47 = vld [vmem:[%s9293_s3 + $0xc] ss:$28 sps:$4 sm:$0xff]  }
 0xfef   :  { %4151 = vperm.xlu0 %4880, %v4141_v0   ;;  %4500 = vmatprep.subr.bf16.mxu0 %v3933_v13  ;;  %v10619_v13 = vld [vmem:[#allocation141_spill] sm:$0xff] }
 0xff0   :  { %4501 = vmatpush1.bf16.msra.mxu0 %v2175_v44  ;;  %4156 = vperm.xlu1 %4881, %v4142_v8   ;;  %v2205_v23 = vsel %vm1578_vm14, %v10620_v29, %v10619_v13  ;;  %v4891_v13 = vld [vmem:[%s9293_s3 + $0x4c] ss:$28 sps:$4 sm:$0xff]  }
 0xff1   :  { %v3764_v5 = vpop.permute.xlu1 %3763  ;;  %v3762_v43 = vpop.permute.xlu0 %3761 }
 0xff2   :  { %v3766_v25 = vsel %vm10599_vm0, %v3762_v43, %v3764_v5  ;;  %v10621_v43 = vld [vmem:[#allocation91_spill] sm:$0xff]  ;;  %vm10649_vm0 = vcmask 769024  }
 0xff3   :  { %4166 = vperm.xlu0 %4880, %v4144_v7   ;;  %4372 = vmatprep.subr.bf16.mxu1 %v3766_v25  ;;  %v10622_v25 = vld [vmem:[#allocation101_spill] sm:$0xff]  ;;  %vm10652_vm1 = vmmov %vm10649_vm0 }
 0xff4   :  { %4373 = vmatpush1.bf16.msra.mxu1 %v1996_v42  ;;  %4161 = vperm.xlu1 %4881, %v4143_v48   ;;  %v2026_v52 = vsel %vm705_vm8, %v10622_v25, %v10621_v43 }
 0xff5   :  { %v3932_v58 = vpop.permute.xlu1 %3931  ;;  %v3930_v35 = vpop.permute.xlu0 %3929 }
 0xff6   :  { %v3934_v16 = vsel %vm1395_vm12, %v3930_v35, %v3932_v58  ;;  %vm10611_vm12 = vmmov %vm10605_vm2  ;;  %v10624_v58 = vld [vmem:[#allocation172_spill] sm:$0xff] }
 0xff7   :  { %4176 = vperm.xlu0 %4880, %v4146_v30   ;;  %4502 = vmatprep.subr.bf16.mxu0 %v3934_v16 }
 0xff8   :  { %4503 = vmatpush1.bf16.msra.mxu0 %v2176_v61  ;;  %4375 = vmatmul.mubr.bf16.vlgmr.msra.gmra.mrb[0].mxu1 %v4882_v10  ;;  %v10623_v10 = vld [vmem:[#allocation163_spill] sm:$0xff]  ;;  %v10627_v61 = vld [vmem:[#allocation70_spill] sm:$0xff] }
 0xff9   :  { %v3774_v62 = vpop.permute.xlu1 %3773  ;;  %v3772_v38 = vpop.permute.xlu0 %3771  ;;  %4384 = vmatprep.mubr.bf16.mxu1 %v4888_v27  ;;  %4171 = vperm.xlu1 %4881, %v4145_v51   ;;  %v2206_v35 = vsel %vm1578_vm14, %v10624_v58, %v10623_v10  ;;  %v4893_v58 = vld [vmem:[%s9293_s3 + $0x48] ss:$28 sps:$4 sm:$0xff]  }
 0xffa   :  { %v3779_v2 = vsel %vm10605_vm2, %v3772_v38, %v3774_v62  ;;  %vm10656_vm2 = vmmov %vm10649_vm0 }
 0xffb   :  { %4186 = vperm.xlu0 %4880, %v4148_v14   ;;  %4415 = vmatprep.subr.bf16.mxu1 %v3779_v2 }
 0xffc   :  { %4416 = vmatpush1.bf16.msra.mxu1 %v2010_v19  ;;  %v2220_v19 = vsel %vm1667_vm10, %v10630_v17, %v10629_v18  ;;  %v10662_v18 = vld [vmem:[#allocation115_spill] sm:$0xff]  ;;  %v10663_v17 = vld [vmem:[#allocation125_spill] sm:$0xff] }
 0xffd   :  { %v3942_v41 = vpop.permute.xlu1 %3941  ;;  %v3940_v20 = vpop.permute.xlu0 %3939  ;;  %4181 = vperm.xlu1 %4881, %v4147_v1   ;;  %v10642_v1 = vld [vmem:[#allocation173_spill] sm:$0xff] }
 0xffe   :  { %v3947_v54 = vsel %vm1489_vm13, %v3940_v20, %v3942_v41  ;;  %v10632_v20 = vld [vmem:[#allocation71_spill] sm:$0xff] }
 0xfff   :  { %4504 = vmatprep.subr.bf16.mxu0 %v3947_v54 }
0x1000   :  { %4505 = vmatpush1.bf16.msra.mxu0 %v2190_v12  ;;  %4385 = vmatmul.mubr.bf16.gmra.mrb[4].mxu1 %v4890_v63  ;;  %v10635_v12 = vld [vmem:[#allocation153_spill] sm:$0xff] }
0x1001   :  { %v3778_v57 = vpop.permute.xlu1 %3777  ;;  %v3776_v9 = vpop.permute.xlu0 %3775  ;;  %4394 = vmatprep.mubr.bf16.mxu1 %v4894_v39  ;;  %v10633_v39 = vld [vmem:[#allocation81_spill] sm:$0xff] }
0x1002   :  { %v3780_v55 = vsel %vm10611_vm12, %v3776_v9, %v3778_v57  ;;  %v10636_v57 = vld [vmem:[#allocation152_spill] sm:$0xff]  ;;  %vm10660_vm12 = vmmov %vm10657_vm7 }
0x1003   :  { %4417 = vmatprep.subr.bf16.mxu1 %v3780_v55  ;;  %v2221_v9 = vsel %vm1667_vm10, %v10636_v57, %v10635_v12 }
0x1004   :  { %4418 = vmatpush1.bf16.msra.mxu1 %v2011_v32  ;;  %v10639_v32 = vld [vmem:[#allocation103_spill] sm:$0xff] }
0x1005   :  { %v3946_v31 = vpop.permute.xlu1 %3945  ;;  %v3944_v34 = vpop.permute.xlu0 %3943 }
0x1006   :  { %v3948_v15 = vsel %vm1489_vm13, %v3944_v34, %v3946_v31  ;;  %vm10625_vm13 = vcmask 785408  }
0x1007   :  { %4506 = vmatprep.subr.bf16.mxu0 %v3948_v15  ;;  %vm10628_vm9 = vmmov %vm10625_vm13  ;;  %v10641_v15 = vld [vmem:[#allocation174_spill] sm:$0xff] }
0x1008   :  { %4507 = vmatpush1.bf16.msra.mxu0 %v2191_v46  ;;  %4395 = vmatmul.mubr.bf16.gmra.mrb[8].mxu1 %v4896_v22  ;;  %v2040_v14 = vsel %vm10628_vm9, %v10627_v61, %v10626_v24  ;;  %v2055_v22 = vsel %vm10640_vm6, %v10639_v32, %v10638_v40  ;;  %v2235_v33 = vsel %vm1756_vm11, %v10642_v1, %v10641_v15  ;;  %v10658_v24 = vld [vmem:[#allocation93_spill] sm:$0xff]  ;;  %v10659_v61 = vld [vmem:[#allocation114_spill] sm:$0xff]  ;;  %vm10673_vm6 = vcmask 654336  }
0x1009   :  { %v3788_v60 = vpop.permute.xlu1 %3787  ;;  %v3786_v37 = vpop.permute.xlu0 %3785  ;;  %4404 = vmatprep.mubr.bf16.mxu1 %v4900_v56  ;;  %v10677_v15 = vmov 0  }
0x100a   :  { %v3793_v53 = vsel %vm705_vm8, %v3786_v37, %v3788_v60  ;;  %v10644_v37 = vld [vmem:[#allocation102_spill] sm:$0xff] }
0x100b   :  { %4419 = vmatprep.subr.bf16.mxu1 %v3793_v53  ;;  %v10645_v53 = vld [vmem:[#allocation112_spill] sm:$0xff] }
0x100c   :  { %4420 = vmatpush1.bf16.msra.mxu1 %v2025_v3  ;;  %v2056_v21 = vsel %vm10646_vm4, %v10645_v53, %v10644_v37  ;;  %vm10680_vm4 = vmmov %vm10673_vm6 }
0x100d   :  { %v3956_v4 = vpop.permute.xlu1 %3955  ;;  %v3954_v0 = vpop.permute.xlu0 %3953 }
0x100e   :  { %v3961_v28 = vsel %vm1578_vm14, %v3954_v0, %v3956_v4  ;;  %v10647_v4 = vld [vmem:[#allocation183_spill] sm:$0xff]  ;;  %v10648_v0 = vld [vmem:[#allocation184_spill] sm:$0xff] }
0x100f   :  { %4508 = vmatprep.subr.bf16.mxu0 %v3961_v28  ;;  %v4885_v28 = vld [vmem:[%s9293_s3 + $0x10] ss:$28 sps:$4 sm:$0xff]  }
0x1010   :  { %4509 = vmatpush1.bf16.msra.mxu0 %v2205_v23  ;;  %4405 = vmatmul.mubr.bf16.gmra.mrb[12].mxu1 %v4902_v59 }
0x1011   :  { %v3792_v44 = vpop.permute.xlu1 %3791  ;;  %v3790_v7 = vpop.permute.xlu0 %3789  ;;  %4447 = vmatprep.mubr.bf16.mxu1 %v4908_v47  ;;  %v2236_v47 = vsel %vm1756_vm11, %v10648_v0, %v10647_v4  ;;  %v4906_v0 = vld [vmem:[%s9293_s3 + $0x8] ss:$28 sps:$4 sm:$0xff]  }
0x1012   :  { %v3794_v5 = vsel %vm705_vm8, %v3790_v7, %v3792_v44  ;;  %vm10631_vm8 = vmmov %vm10628_vm9  ;;  %v10650_v7 = vld [vmem:[#allocation113_spill] sm:$0xff]  ;;  %vm10665_vm9 = vcmask 752640  }
0x1013   :  { %4421 = vmatprep.subr.bf16.mxu1 %v3794_v5  ;;  %v10651_v5 = vld [vmem:[#allocation83_spill] sm:$0xff] }
0x1014   :  { %4422 = vmatpush1.bf16.msra.mxu1 %v2026_v52  ;;  %v2070_v43 = vsel %vm10652_vm1, %v10651_v5, %v10650_v7  ;;  %v4909_v5 = vld [vmem:[%s9293_s3 + $0x18] ss:$28 sps:$4 sm:$0xff]   ;;  %vm4329_vm1 = vcmask 261120  }
0x1015   :  { %v3960_v26 = vpop.permute.xlu1 %3959  ;;  %v3958_v42 = vpop.permute.xlu0 %3957 }
0x1016   :  { %v3962_v30 = vsel %vm1578_vm14, %v3958_v42, %v3960_v26  ;;  %vm10634_vm14 = vmmov %vm10631_vm8  ;;  %v10654_v42 = vld [vmem:[#allocation82_spill] sm:$0xff] }
0x1017   :  { %4510 = vmatprep.subr.bf16.mxu0 %v3962_v30  ;;  %v2041_v54 = vsel %vm10634_vm14, %v10633_v39, %v10632_v20  ;;  %v10655_v30 = vld [vmem:[#allocation92_spill] sm:$0xff] }
0x1018   :  { %4511 = vmatpush1.bf16.msra.mxu0 %v2206_v35  ;;  %v2071_v10 = vsel %vm10656_vm2, %v10655_v30, %v10654_v42  ;;  %v4897_v35 = vld [vmem:[%s9293_s3 + $0x84] ss:$28 sps:$4 sm:$0xff]   ;;  %v4918_v42 = vld [vmem:[%s9293_s3 + $0xb4] ss:$28 sps:$4 sm:$0xff]  }
0x1019   :  { %v3802_v27 = vpop.permute.xlu1 %3801  ;;  %v3800_v16 = vpop.permute.xlu0 %3799  ;;  %v4917_v30 = vld [vmem:[%s9293_s3 + $0x88] ss:$28 sps:$4 sm:$0xff]  }
0x101a   :  { %v3807_v36 = vsel %vm10625_vm13, %v3800_v16, %v3802_v27  ;;  %vm10664_vm13 = vmmov %vm10661_vm3 }
0x101b   :  { %4423 = vmatprep.subr.bf16.mxu1 %v3807_v36 }
0x101c   :  { %4424 = vmatpush1.bf16.msra.mxu1 %v2040_v14  ;;  %v2085_v14 = vsel %vm10660_vm12, %v10659_v61, %v10658_v24 }
0x101d   :  { %v3970_v62 = vpop.permute.xlu1 %3969  ;;  %v3968_v38 = vpop.permute.xlu0 %3967 }
0x101e   :  { %v3975_v2 = vsel %vm1667_vm10, %v3968_v38, %v3970_v62 }
0x101f   :  { %4512 = vmatprep.subr.bf16.mxu0 %v3975_v2 }
0x1020   :  { %4513 = vmatpush1.bf16.msra.mxu0 %v2220_v19  ;;  %v2086_v19 = vsel %vm10664_vm13, %v10663_v17, %v10662_v18 }
0x1021   :  { %v3806_v8 = vpop.permute.xlu1 %3805  ;;  %v3804_v63 = vpop.permute.xlu0 %3803 }
0x1022   :  { %v3808_v41 = vsel %vm10631_vm8, %v3804_v63, %v3806_v8  ;;  %v4899_v8 = vld [vmem:[%s9293_s3 + $0x80] ss:$28 sps:$4 sm:$0xff]   ;;  %vm10668_vm8 = vmmov %vm10665_vm9 }
0x1023   :  { %4425 = vmatprep.subr.bf16.mxu1 %v3808_v41  ;;  %v4903_v63 = vld [vmem:[%s9293_s3 + $0xbc] ss:$28 sps:$4 sm:$0xff]   ;;  %vm10669_vm14 = vmmov %vm10668_vm8 }
0x1024   :  { %4426 = vmatpush1.bf16.msra.mxu1 %v2041_v54  ;;  %v10666_v54 = vld [vmem:[#allocation124_spill] sm:$0xff] }
0x1025   :  { %v3974_v48 = vpop.permute.xlu1 %3973  ;;  %v3972_v45 = vpop.permute.xlu0 %3971 }
0x1026   :  { %v3976_v49 = vsel %vm1667_vm10, %v3972_v45, %v3974_v48  ;;  %vm10643_vm10 = vmmov %vm10637_vm5  ;;  %v10667_v48 = vld [vmem:[#allocation94_spill] sm:$0xff] }
0x1027   :  { %4514 = vmatprep.subr.bf16.mxu0 %v3976_v49  ;;  %v2100_v45 = vsel %vm10668_vm8, %v10667_v48, %v10666_v54 }
0x1028   :  { %4515 = vmatpush1.bf16.msra.mxu0 %v2221_v9  ;;  %v10670_v9 = vld [vmem:[#allocation95_spill] sm:$0xff] }
0x1029   :  { %v3816_v55 = vpop.permute.xlu1 %3815  ;;  %v3814_v51 = vpop.permute.xlu0 %3813 }
0x102a   :  { %v3821_v50 = vsel %vm10637_vm5, %v3814_v51, %v3816_v55  ;;  %v10671_v55 = vld [vmem:[#allocation105_spill] sm:$0xff]  ;;  %vm10672_vm5 = vmmov %vm10668_vm8 }
0x102b   :  { %4427 = vmatprep.subr.bf16.mxu1 %v3821_v50  ;;  %v2101_v51 = vsel %vm10672_vm5, %v10671_v55, %v10670_v9  ;;  %v4905_v50 = vld [vmem:[%s9293_s3 + $0xb8] ss:$28 sps:$4 sm:$0xff]  }
0x102c   :  { %4428 = vmatpush1.bf16.msra.mxu1 %v2055_v22 }
0x102d   :  { %v3984_v31 = vpop.permute.xlu1 %3983  ;;  %v3982_v34 = vpop.permute.xlu0 %3981 }
0x102e   :  { %v3989_v56 = vsel %vm1756_vm11, %v3982_v34, %v3984_v31  ;;  %v10674_v31 = vld [vmem:[#allocation104_spill] sm:$0xff]  ;;  %v10675_v34 = vld [vmem:[#allocation127_spill] sm:$0xff] }
0x102f   :  { %4516 = vmatprep.subr.bf16.mxu0 %v3989_v56 }
0x1030   :  { %4517 = vmatpush1.bf16.msra.mxu0 %v2235_v33 }
0x1031   :  { %v3820_v11 = vpop.permute.xlu1 %3819  ;;  %v3818_v46 = vpop.permute.xlu0 %3817 }
0x1032   :  { %v3822_v60 = vsel %vm10643_vm10, %v3818_v46, %v3820_v11  ;;  %vm10676_vm10 = vmmov %vm10673_vm6  ;;  %v10678_v46 = vld [vmem:[#allocation155_spill] sm:$0xff] }
0x1033   :  { %4429 = vmatprep.subr.bf16.mxu1 %v3822_v60  ;;  %v2115_v56 = vsel %vm10676_vm10, %v10675_v34, %v10674_v31  ;;  %v10679_v60 = vld [vmem:[#allocation154_spill] sm:$0xff] }
0x1034   :  { %4430 = vmatpush1.bf16.msra.mxu1 %v2056_v21  ;;  %v2250_v37 = vsel %vm1845_vm15, %v10679_v60, %v10678_v46 }
0x1035   :  { %v3988_v6 = vpop.permute.xlu1 %3987  ;;  %v3986_v3 = vpop.permute.xlu0 %3985 }
0x1036   :  { %v3990_v59 = vsel %vm1756_vm11, %v3986_v3, %v3988_v6  ;;  %vm10653_vm11 = vmmov %vm10649_vm0  ;;  %v10681_v3 = vld [vmem:[#allocation126_spill] sm:$0xff] }
0x1037   :  { %4518 = vmatprep.subr.bf16.mxu0 %v3990_v59  ;;  %v10682_v59 = vld [vmem:[#allocation136_spill] sm:$0xff] }
0x1038   :  { %4519 = vmatpush1.bf16.msra.mxu0 %v2236_v47  ;;  %v4910_v47 = vld [vmem:[%s9293_s3 + $0x44] ss:$28 sps:$4 sm:$0xff]  }
0x1039   :  { %v3830_v29 = vpop.permute.xlu1 %3829  ;;  %v3828_v23 = vpop.permute.xlu0 %3827 }
0x103a   :  { %v3835_v44 = vsel %vm10649_vm0, %v3828_v23, %v3830_v29  ;;  %vm10683_vm0 = vmmov %vm10680_vm4  ;;  %v10684_v23 = vld [vmem:[#allocation164_spill] sm:$0xff] }
0x103b   :  { %4431 = vmatprep.subr.bf16.mxu1 %v3835_v44  ;;  %4521 = vmatmul.mubr.bf16.vlgmr.msra.gmra.mrb[0].mxu0 %v4885_v28  ;;  %v2116_v4 = vsel %vm10683_vm0, %v10682_v59, %v10681_v3  ;;  %v10685_v44 = vld [vmem:[#allocation165_spill] sm:$0xff] }
0x103c   :  { %4432 = vmatpush1.bf16.msra.mxu1 %v2070_v43  ;;  %4530 = vmatprep.mubr.bf16.mxu0 %v4891_v13  ;;  %v2251_v7 = vsel %vm1845_vm15, %v10685_v44, %v10684_v23  ;;  %v4912_v43 = vld [vmem:[%s9293_s3 + $0x40] ss:$28 sps:$4 sm:$0xff]  }
0x103d   :  { %v3834_v25 = vpop.permute.xlu1 %3833  ;;  %v3832_v52 = vpop.permute.xlu0 %3831 }
0x103e   :  { %v3836_v26 = vsel %vm10653_vm11, %v3832_v52, %v3834_v25  ;;  %v4914_v25 = vld [vmem:[%s9293_s3 + $0x7c] ss:$28 sps:$4 sm:$0xff]   ;;  %v4913_v52 = vld [vmem:[%s9293_s3 + $0x50] ss:$28 sps:$4 sm:$0xff]  }
0x103f   :  { %4433 = vmatprep.subr.bf16.mxu1 %v3836_v26  ;;  %v4916_v26 = vld [vmem:[%s9293_s3 + $0x78] ss:$28 sps:$4 sm:$0xff]  }
0x1040   :  { %4434 = vmatpush1.bf16.msra.mxu1 %v2071_v10  ;;  %v4920_v10 = vld [vmem:[%s9293_s3 + $0xb0] ss:$28 sps:$4 sm:$0xff]  }
0x1041   :  { %v3844_v27 = vpop.permute.xlu1 %3843  ;;  %v3842_v16 = vpop.permute.xlu0 %3841 }
0x1042   :  { %v3849_v36 = vsel %vm10657_vm7, %v3842_v16, %v3844_v27 }
0x1043   :  { %4435 = vmatprep.subr.bf16.mxu1 %v3849_v36  ;;  %4531 = vmatmul.mubr.bf16.gmra.mrb[4].mxu0 %v4893_v58  ;;  %v4921_v58 = vld [vmem:[%s9293_s3 + $0xc0] ss:$28 sps:$4 sm:$0xff]  }
0x1044   :  { %4436 = vmatpush1.bf16.msra.mxu1 %v2085_v14  ;;  %4540 = vmatprep.mubr.bf16.mxu0 %v4897_v35 }
0x1045   :  { %v3848_v62 = vpop.permute.xlu1 %3847  ;;  %v3846_v38 = vpop.permute.xlu0 %3845 }
0x1046   :  { %v3850_v2 = vsel %vm10661_vm3, %v3846_v38, %v3848_v62 }
0x1047   :  { %4437 = vmatprep.subr.bf16.mxu1 %v3850_v2 }
0x1048   :  { %4438 = vmatpush1.bf16.msra.mxu1 %v2086_v19 }
0x1049   :  { %v3858_v41 = vpop.permute.xlu1 %3857  ;;  %v3856_v20 = vpop.permute.xlu0 %3855 }
0x104a   :  { %v3863_v39 = vsel %vm10665_vm9, %v3856_v20, %v3858_v41 }
0x104b   :  { %4439 = vmatprep.subr.bf16.mxu1 %v3863_v39  ;;  %4541 = vmatmul.mubr.bf16.gmra.mrb[8].mxu0 %v4899_v8 }
0x104c   :  { %4440 = vmatpush1.bf16.msra.mxu1 %v2100_v45  ;;  %4550 = vmatprep.mubr.bf16.mxu0 %v4903_v63 }
0x104d   :  { %v3862_v49 = vpop.permute.xlu1 %3861  ;;  %v3860_v12 = vpop.permute.xlu0 %3859 }
0x104e   :  { %v3864_v57 = vsel %vm10669_vm14, %v3860_v12, %v3862_v49 }
0x104f   :  { %4441 = vmatprep.subr.bf16.mxu1 %v3864_v57 }
0x1050   :  { %4442 = vmatpush1.bf16.msra.mxu1 %v2101_v51 }
0x1051   :  { %v3872_v40 = vpop.permute.xlu1 %3871  ;;  %v3870_v32 = vpop.permute.xlu0 %3869 }
0x1052   :  { %v3877_v22 = vsel %vm10673_vm6, %v3870_v32, %v3872_v40 }
0x1053   :  { %4443 = vmatprep.subr.bf16.mxu1 %v3877_v22  ;;  %4551 = vmatmul.mubr.bf16.gmra.mrb[12].mxu0 %v4905_v50 }
0x1054   :  { %4444 = vmatpush1.bf16.msra.mxu1 %v2115_v56  ;;  %4593 = vmatprep.mubr.bf16.mxu0 %v10677_v15 }
0x1055   :  { %v3998_v1 = vpop.permute.xlu1 %3997  ;;  %v3996_v33 = vpop.permute.xlu0 %3995 }
0x1056   :  { %v4003_v11 = vsel %vm1845_vm15, %v3996_v33, %v3998_v1 }
0x1057   :  { %4561 = vmatprep.subr.bf16.mxu0 %v4003_v11 }
0x1058   :  { %4562 = vmatpush1.bf16.msra.mxu0 %v2250_v37 }
0x1059   :  { %v3876_v53 = vpop.permute.xlu1 %3875  ;;  %v3874_v21 = vpop.permute.xlu0 %3873 }
0x105a   :  { %v3878_v6 = vsel %vm10680_vm4, %v3874_v21, %v3876_v53 }
0x105b   :  { %4445 = vmatprep.subr.bf16.mxu1 %v3878_v6 }
0x105c   :  { %4446 = vmatpush1.bf16.msra.mxu1 %v2116_v4 }
0x105d   :  { %v4002_v28 = vpop.permute.xlu1 %4001  ;;  %v4000_v13 = vpop.permute.xlu0 %3999 }
0x105e   :  { %v4004_v29 = vsel %vm1845_vm15, %v4000_v13, %v4002_v28 }
0x105f   :  { %4448 = vmatmul.mubr.bf16.vlgmr.msra.gmra.mrb[0].mxu1 %v4906_v0  ;;  %4563 = vmatprep.subr.bf16.mxu0 %v4004_v29 }
0x1060   :  { %4564 = vmatpush1.bf16.msra.mxu0 %v2251_v7  ;;  %4457 = vmatprep.mubr.bf16.mxu1 %v4910_v47 }
0x1063   :  { %4714 = vmatmul.mubr.msk.bf16.vlgmr.msra.gmra.mrb[0].mxu0 %vm4329_vm1, %v4909_v5 }
0x1064   :  { %4603 = vmatprep.mubr.bf16.mxu0 %v10677_v15 }
0x1067   :  { %4458 = vmatmul.mubr.bf16.gmra.mrb[4].mxu1 %v4912_v43 }
0x1068   :  { %4467 = vmatprep.mubr.bf16.mxu1 %v4914_v25 }
0x106b   :  { %4715 = vmatmul.mubr.msk.bf16.gmra.mrb[4].mxu0 %vm4329_vm1, %v4913_v52 }
0x106c   :  { %4613 = vmatprep.mubr.bf16.mxu0 %v10677_v15 }
0x106e   :  { %v4152_v27 = vpop.permute.xlu0 %4151 }
0x106f   :  { %4468 = vmatmul.mubr.bf16.gmra.mrb[8].mxu1 %v4916_v26  ;;  %v4157_v36 = vpop.permute.xlu1 %4156 }
0x1070   :  { %4477 = vmatprep.mubr.bf16.mxu1 %v4918_v42 }
0x1072   :  { %v4167_v31 = vpop.permute.xlu0 %4166 }
0x1073   :  { %4716 = vmatmul.mubr.msk.bf16.gmra.mrb[8].mxu0 %vm4329_vm1, %v4917_v30  ;;  %v4162_v45 = vpop.permute.xlu1 %4161 }
0x1074   :  { %4623 = vmatprep.mubr.bf16.mxu0 %v10677_v15 }
0x1076   :  { %v4177_v25 = vpop.permute.xlu0 %4176 }
0x1077   :  { %4478 = vmatmul.mubr.bf16.gmra.mrb[12].mxu1 %v4920_v10 }
0x1078   :  { %v4172_v23 = vpop.permute.xlu1 %4171 }
0x107b   :  { %4717 = vmatmul.mubr.msk.bf16.gmra.mrb[12].mxu0 %vm4329_vm1, %v4921_v58 }
0x1132   :  { %v4449_v35 = vpop.f32.mrb[0].mxu1 }
0x1133   :  { %v4451_v16 = vpop.f32.mrb[1].mxu1  ;;  %v4718_v61 = vadd.f32 %v4449_v35, %v4152_v27 }
0x1134   :  { %v4453_v24 = vpop.f32.mrb[2].mxu1  ;;  %v4720_v62 = vadd.f32 %v4451_v16, %v4152_v27 }
0x1135   :  { %v4455_v14 = vpop.f32.mrb[3].mxu1  ;;  %v4722_v2 = vadd.f32 %v4453_v24, %v4157_v36 }
0x1136   :  { %v4595_v38 = vpop.f32.mrb[0].mxu0  ;;  %v4724_v19 = vadd.f32 %v4455_v14, %v4157_v36 }
0x1137   :  { %v4719_v18 = vadd.f32 %v4718_v61, %v4595_v38  ;;  %v4597_v17 = vpop.f32.mrb[1].mxu0 }
0x1138   :  { %v4721_v8 = vadd.f32 %v4720_v62, %v4597_v17  ;;  %v4599_v63 = vpop.f32.mrb[2].mxu0 }
0x1139   :  { %v4634_v41 = vmul.f32 0.01, %v4719_v18  ;;  %v4723_v20 = vadd.f32 %v4722_v2, %v4599_v63  ;;  %v4601_v39 = vpop.f32.mrb[3].mxu0  ;;  %v4182_v63 = vpop.permute.xlu1 %4181 }
0x113a   :  { %v4635_v54 = vmul.f32 0.01, %v4721_v8  ;;  %v4725_v48 = vadd.f32 %v4724_v19, %v4601_v39  ;;  %v4459_v49 = vpop.f32.mrb[4].mxu1 }
0x113b   :  { %v4650_v12 = vmax.f32 %v4719_v18, %v4634_v41  ;;  %v4636_v57 = vmul.f32 0.01, %v4723_v20  ;;  %v4461_v9 = vpop.f32.mrb[5].mxu1  ;;  %v4726_v32 = vadd.f32 %v4459_v49, %v4162_v45 }
0x113c   :  { %v4651_v55 = vmax.f32 %v4721_v8, %v4635_v54  ;;  %v4637_v51 = vmul.f32 0.01, %v4725_v48  ;;  %v4463_v50 = vpop.f32.mrb[6].mxu1  ;;  %v4728_v56 = vadd.f32 %v4461_v9, %v4162_v45 }
0x113d   :  { %4666 = vst [vmem:[%s9295_s5] sm:$0xff] %v4650_v12  ;;  %v4652_v40 = vmax.f32 %v4723_v20, %v4636_v57  ;;  %v4465_v22 = vpop.f32.mrb[7].mxu1  ;;  %v4730_v1 = vadd.f32 %v4463_v50, %v4167_v31 }
0x113e   :  { %4674 = vst [vmem:[%s9295_s5 + $0x40] sm:$0xff] %v4651_v55  ;;  %v4653_v34 = vmax.f32 %v4725_v48, %v4637_v51  ;;  %v4605_v15 = vpop.f32.mrb[4].mxu0  ;;  %v4732_v46 = vadd.f32 %v4465_v22, %v4167_v31  ;;  %v4187_v48 = vpop.permute.xlu0 %4186 }
0x113f   :  { %4667 = vst [vmem:[%s9295_s5 + $0x8] sm:$0xff] %v4652_v40  ;;  %v4727_v33 = vadd.f32 %v4726_v32, %v4605_v15  ;;  %v4607_v11 = vpop.f32.mrb[5].mxu0 }
0x1140   :  { %4675 = vst [vmem:[%s9295_s5 + $0x48] sm:$0xff] %v4653_v34  ;;  %v4729_v60 = vadd.f32 %v4728_v56, %v4607_v11  ;;  %v4609_v37 = vpop.f32.mrb[6].mxu0 }
0x1141   :  { %v4638_v53 = vmul.f32 0.01, %v4727_v33  ;;  %v4731_v21 = vadd.f32 %v4730_v1, %v4609_v37  ;;  %v4611_v6 = vpop.f32.mrb[7].mxu0 }
0x1142   :  { %v4639_v3 = vmul.f32 0.01, %v4729_v60  ;;  %v4733_v59 = vadd.f32 %v4732_v46, %v4611_v6  ;;  %v4469_v4 = vpop.f32.mrb[8].mxu1 }
0x1143   :  { %v4654_v0 = vmax.f32 %v4727_v33, %v4638_v53  ;;  %v4640_v47 = vmul.f32 0.01, %v4731_v21  ;;  %v4471_v28 = vpop.f32.mrb[9].mxu1  ;;  %v4734_v5 = vadd.f32 %v4469_v4, %v4172_v23 }
0x1144   :  { %v4655_v13 = vmax.f32 %v4729_v60, %v4639_v3  ;;  %v4641_v29 = vmul.f32 0.01, %v4733_v59  ;;  %v4473_v44 = vpop.f32.mrb[10].mxu1  ;;  %v4736_v26 = vadd.f32 %v4471_v28, %v4172_v23 }
0x1145   :  { %4668 = vst [vmem:[%s9295_s5 + $0x10] sm:$0xff] %v4654_v0  ;;  %v4656_v7 = vmax.f32 %v4731_v21, %v4640_v47  ;;  %v4475_v43 = vpop.f32.mrb[11].mxu1  ;;  %v4738_v30 = vadd.f32 %v4473_v44, %v4177_v25 }
0x1146   :  { %4676 = vst [vmem:[%s9295_s5 + $0x50] sm:$0xff] %v4655_v13  ;;  %v4657_v52 = vmax.f32 %v4733_v59, %v4641_v29  ;;  %v4615_v42 = vpop.f32.mrb[8].mxu0  ;;  %v4740_v35 = vadd.f32 %v4475_v43, %v4177_v25 }
0x1147   :  { %4669 = vst [vmem:[%s9295_s5 + $0x18] sm:$0xff] %v4656_v7  ;;  %v4735_v10 = vadd.f32 %v4734_v5, %v4615_v42  ;;  %v4617_v58 = vpop.f32.mrb[9].mxu0 }
0x1148   :  { %4677 = vst [vmem:[%s9295_s5 + $0x58] sm:$0xff] %v4657_v52  ;;  %v4737_v27 = vadd.f32 %v4736_v26, %v4617_v58  ;;  %v4619_v16 = vpop.f32.mrb[10].mxu0 }
0x1149   :  { %v4642_v36 = vmul.f32 0.01, %v4735_v10  ;;  %v4739_v24 = vadd.f32 %v4738_v30, %v4619_v16  ;;  %v4621_v61 = vpop.f32.mrb[11].mxu0 }
0x114a   :  { %v4643_v14 = vmul.f32 0.01, %v4737_v27  ;;  %v4741_v62 = vadd.f32 %v4740_v35, %v4621_v61  ;;  %v4479_v38 = vpop.f32.mrb[12].mxu1 }
0x114b   :  { %v4658_v2 = vmax.f32 %v4735_v10, %v4642_v36  ;;  %v4644_v18 = vmul.f32 0.01, %v4739_v24  ;;  %v4481_v17 = vpop.f32.mrb[13].mxu1  ;;  %v4742_v39 = vadd.f32 %v4479_v38, %v4182_v63 }
0x114c   :  { %v4659_v19 = vmax.f32 %v4737_v27, %v4643_v14  ;;  %v4645_v8 = vmul.f32 0.01, %v4741_v62  ;;  %v4483_v41 = vpop.f32.mrb[14].mxu1  ;;  %v4744_v49 = vadd.f32 %v4481_v17, %v4182_v63 }
0x114d   :  { %4670 = vst [vmem:[%s9295_s5 + $0x20] sm:$0xff] %v4658_v2  ;;  %v4660_v20 = vmax.f32 %v4739_v24, %v4644_v18  ;;  %v4485_v54 = vpop.f32.mrb[15].mxu1  ;;  %v4746_v57 = vadd.f32 %v4483_v41, %v4187_v48 }
0x114e   :  { %4678 = vst [vmem:[%s9295_s5 + $0x60] sm:$0xff] %v4659_v19  ;;  %v4661_v45 = vmax.f32 %v4741_v62, %v4645_v8  ;;  %v4625_v12 = vpop.f32.mrb[12].mxu0  ;;  %v4748_v51 = vadd.f32 %v4485_v54, %v4187_v48 }
0x114f   :  { %4671 = vst [vmem:[%s9295_s5 + $0x28] sm:$0xff] %v4660_v20  ;;  %v4743_v9 = vadd.f32 %v4742_v39, %v4625_v12  ;;  %v4627_v55 = vpop.f32.mrb[13].mxu0 }
0x1150   :  { %4679 = vst [vmem:[%s9295_s5 + $0x68] sm:$0xff] %v4661_v45  ;;  %v4745_v50 = vadd.f32 %v4744_v49, %v4627_v55  ;;  %v4629_v40 = vpop.f32.mrb[14].mxu0 }
0x1151   :  { %v4646_v32 = vmul.f32 0.01, %v4743_v9  ;;  %v4747_v22 = vadd.f32 %v4746_v57, %v4629_v40  ;;  %v4631_v31 = vpop.f32.mrb[15].mxu0 }
0x1152   :  { %v4647_v34 = vmul.f32 0.01, %v4745_v50  ;;  %v4749_v56 = vadd.f32 %v4748_v51, %v4631_v31 }
0x1153   :  { %v4662_v15 = vmax.f32 %v4743_v9, %v4646_v32  ;;  %v4648_v1 = vmul.f32 0.01, %v4747_v22 }
0x1154   :  { %v4663_v33 = vmax.f32 %v4745_v50, %v4647_v34  ;;  %v4649_v11 = vmul.f32 0.01, %v4749_v56 }
0x1155   :  { %4672 = vst [vmem:[%s9295_s5 + $0x30] sm:$0xff] %v4662_v15  ;;  %v4664_v46 = vmax.f32 %v4747_v22, %v4648_v1 }
0x1156   :  { %4680 = vst [vmem:[%s9295_s5 + $0x70] sm:$0xff] %v4663_v33  ;;  %v4665_v60 = vmax.f32 %v4749_v56, %v4649_v11 }
0x1157   :  { %4673 = vst [vmem:[%s9295_s5 + $0x38] sm:$0xff] %v4664_v46 }
0x1158   :  { %4681 = vst [vmem:[%s9295_s5 + $0x78] sm:$0xff] %v4665_v60 }

</bundles_post_ra>
